<compile_context>
chip_gen: v7x
topology: tpu7x:2x2x1
jax: 0.10.0
libtpu: 0.0.40
codegen_flags: <defaults>
</compile_context>

<pallas_src>
import functools
import math

import jax
import jax.numpy as jnp
from jax.experimental import pallas as pl
from jax.experimental.pallas import tpu as pltpu


def _round_up(x, m):
    return (x + m - 1) // m * m


# ----------------------------- geometry ---------------------------------------

def _geometry(H, W):
    """All lane-layout constants, derived from the input spatial size."""
    assert H % 4 == 0 and W % 4 == 0, "two 2x2 pools require H, W divisible by 4"
    g = {}
    g["Wp1"] = W + 6                      # conv1 padded row stride
    g["P1"] = (H + 6) * (W + 6)           # flattened padded-input length
    g["H2"], g["W2"] = H // 2, W // 2     # after pool1
    g["Wp2"] = g["W2"] + 6                # conv2 padded row stride
    g["P2"] = (g["H2"] + 6) * g["Wp2"]
    g["H3"], g["W3"] = g["H2"] // 2, g["W2"] // 2   # after pool2

    need_m1 = (H - 2) * g["Wp1"] + (W - 2) + 1      # pool1 top-left lane span
    g["SEL1"] = _round_up(need_m1, 8)
    g["L1"] = _round_up(g["SEL1"] + g["Wp1"] + 1, 128)       # conv1 output lanes
    g["LX1"] = _round_up(max(g["P1"], 6 * g["Wp1"] + 6 + g["L1"]), 128)

    need_m2 = (g["H2"] - 2) * g["Wp2"] + (g["W2"] - 2) + 1
    g["SEL2"] = _round_up(need_m2, 8)
    g["L2"] = _round_up(g["SEL2"] + g["Wp2"] + 1, 128)        # conv2 output lanes
    g["LX2"] = _round_up(max(g["P2"], 6 * g["Wp2"] + 6 + g["L2"]), 128)

    g["OUTW"] = _round_up(g["H3"] * g["W3"], 128)             # flattened spatial
    return g


def _build_selectors(g):
    """Constant 0/1 matmul operands that implement pool-downsample + re-layout."""
    H2, W2, Wp1, Wp2 = g["H2"], g["W2"], g["Wp1"], g["Wp2"]
    H3, W3 = g["H3"], g["W3"]
    # pool1: pick lane 2*h2*Wp1 + 2*w2 of the 4-way max and drop it at the
    # zero-padded conv2 layout position (h2+3)*Wp2 + (w2+3).
    h2, w2 = jnp.meshgrid(jnp.arange(H2), jnp.arange(W2), indexing="ij")
    rows1 = (2 * h2 * Wp1 + 2 * w2).reshape(-1)
    cols1 = ((h2 + 3) * Wp2 + (w2 + 3)).reshape(-1)
    s1 = jnp.zeros((g["SEL1"], g["LX2"]), jnp.float32).at[rows1, cols1].set(1.0)
    # pool2: pick lane 2*h3*Wp2 + 2*w3 and compact to torch-flatten order h3*W3+w3.
    h3, w3 = jnp.meshgrid(jnp.arange(H3), jnp.arange(W3), indexing="ij")
    rows2 = (2 * h3 * Wp2 + 2 * w3).reshape(-1)
    cols2 = (h3 * W3 + w3).reshape(-1)
    s2 = jnp.zeros((g["SEL2"], g["OUTW"]), jnp.float32).at[rows2, cols2].set(1.0)
    return s1, s2


# ----------------------------- Pallas kernels ----------------------------------

def _fused_conv_kernel(x_ref, w1_ref, b1_ref, s1_ref, w2_ref, b2_ref, s2_ref,
                       o_ref, slab1_ref, slab2_ref, *, g, C, OC1P):
    """Per-sample: conv1+ReLU -> pool1 -> conv2+ReLU -> pool2+flatten (VMEM only)."""
    L1, L2 = g["L1"], g["L2"]
    Wp1, Wp2 = g["Wp1"], g["Wp2"]
    SEL1, SEL2 = g["SEL1"], g["SEL2"]

    # ---- conv1: stacked-K im2col slab (49*C, L1) + one MXU matmul ----
    x1 = x_ref[...]                                           # (C, LX1)
    for t in range(49):
        off = (t // 7) * Wp1 + (t % 7)
        slab1_ref[pl.ds(t * C, C), :] = x1[:, off:off + L1]
    y1 = jnp.dot(w1_ref[...], slab1_ref[...],
                 preferred_element_type=jnp.float32)          # (OC1P, L1)
    y1 = jnp.maximum(y1 + b1_ref[...], 0.0)                   # lane p = h*Wp1 + w

    # ---- pool1: 2x2 max via 4 shifted windows, then one selection matmul
    #      that downsamples AND re-embeds into conv2's zero-padded layout ----
    m1 = jnp.maximum(
        jnp.maximum(y1[:, 0:SEL1], y1[:, 1:SEL1 + 1]),
        jnp.maximum(y1[:, Wp1:Wp1 + SEL1], y1[:, Wp1 + 1:Wp1 + 1 + SEL1]))
    x2 = jnp.dot(m1, s1_ref[...], preferred_element_type=jnp.float32)  # (OC1P, LX2)

    # ---- conv2: stacked-K im2col slab (49*OC1P, L2) + one big MXU matmul ----
    for t in range(49):
        off = (t // 7) * Wp2 + (t % 7)
        slab2_ref[pl.ds(t * OC1P, OC1P), :] = x2[:, off:off + L2]
    y2 = jnp.dot(w2_ref[...], slab2_ref[...],
                 preferred_element_type=jnp.float32)          # (OC2P, L2)
    y2 = jnp.maximum(y2 + b2_ref[...], 0.0)

    # ---- pool2 + compaction to torch-flatten spatial order ----
    m2 = jnp.maximum(
        jnp.maximum(y2[:, 0:SEL2], y2[:, 1:SEL2 + 1]),
        jnp.maximum(y2[:, Wp2:Wp2 + SEL2], y2[:, Wp2 + 1:Wp2 + 1 + SEL2]))
    o_ref[...] = jnp.dot(m2, s2_ref[...], preferred_element_type=jnp.float32)


def _fc_kernel(x_ref, w_ref, b_ref, o_ref):
    o_ref[...] = (jnp.dot(x_ref[...], w_ref[...],
                          preferred_element_type=jnp.float32)
                  + b_ref[...]).astype(o_ref.dtype)


# ----------------------------- params ------------------------------------------

def init_params(key, input_channels=1, num_classes=10):
    ks = jax.random.split(key, 6)

    def u(k, shape, fan_in):
        bound = 1.0 / math.sqrt(fan_in)
        return jax.random.uniform(k, shape, jnp.float32, -bound, bound)

    return {
        "w1": u(ks[0], (13, input_channels, 7, 7), input_channels * 49),
        "b1": u(ks[1], (13,), input_channels * 49),
        "w2": u(ks[2], (26, 13, 7, 7), 13 * 49),
        "b2": u(ks[3], (26,), 13 * 49),
        "wf": u(ks[4], (num_classes, 26 * 7 * 7), 26 * 7 * 7),
        "bf": u(ks[5], (num_classes,), 26 * 7 * 7),
    }


def prepare_params(params, H=28, W=28):
    """One-time re-layout of torch-style params into kernel layouts (all f32)."""
    g = _geometry(H, W)
    oc1, C = params["w1"].shape[0], params["w1"].shape[1]
    oc2 = params["w2"].shape[0]
    nc = params["wf"].shape[0]
    oc1p, oc2p = _round_up(oc1, 8), _round_up(oc2, 8)

    # conv1 taps -> (OC1P, 49*C), column index t*C + c, tap t = kh*7 + kw
    w1t = jnp.transpose(params["w1"], (2, 3, 1, 0)).reshape(49 * C, oc1)
    w1m = jnp.zeros((oc1p, 49 * C), jnp.float32).at[:oc1, :].set(w1t.T)
    b1 = jnp.zeros((oc1p, 1), jnp.float32).at[:oc1, 0].set(params["b1"])

    # conv2 taps -> (OC2P, 49*OC1P), column index t*OC1P + c (pad channels zero)
    w2t = jnp.transpose(params["w2"], (2, 3, 1, 0))                   # (7,7,13,26)
    w2f = jnp.zeros((7, 7, oc1p, oc2p), jnp.float32).at[:, :, :oc1, :oc2].set(w2t)
    w2m = w2f.reshape(49 * oc1p, oc2p).T
    b2 = jnp.zeros((oc2p, 1), jnp.float32).at[:oc2, 0].set(params["b2"])

    s1, s2 = _build_selectors(g)

    # FC: kernel-1 emits (OC2P, OUTW) per sample (channel-major flatten);
    # build the matching (OC2P*OUTW, NC) weight with zeros at pad rows.
    h3w3 = g["H3"] * g["W3"]
    wf_r = params["wf"].reshape(nc, oc2, h3w3)
    wf_big = jnp.zeros((oc2p, g["OUTW"], nc), jnp.float32)
    wf_big = wf_big.at[:oc2, :h3w3, :].set(jnp.transpose(wf_r, (1, 2, 0)))
    wf_big = wf_big.reshape(oc2p * g["OUTW"], nc)
    bf = params["bf"].reshape(1, -1).astype(jnp.float32)

    return {"w1": w1m, "b1": b1, "w2": w2m, "b2": b2,
            "s1": s1, "s2": s2, "wf": wf_big, "bf": bf}


# ----------------------------- model --------------------------------------------

@jax.jit
def cnn_kernel_7x7_forward(kp, x):
    B, C, H, W = x.shape
    g = _geometry(H, W)
    OC1P = kp["b1"].shape[0]
    OC2P = kp["b2"].shape[0]
    NC = kp["wf"].shape[1]

    # One-time input prep: zero-pad to (H+6, W+6), flatten per sample, lane-pad.
    xp = jnp.pad(x.astype(jnp.float32), ((0, 0), (0, 0), (3, 3), (3, 3)))
    xf = xp.reshape(B, C, g["P1"])
    xf = jnp.pad(xf, ((0, 0), (0, 0), (0, g["LX1"] - g["P1"])))

    kernel = functools.partial(_fused_conv_kernel, g=g, C=C, OC1P=OC1P)
    feats = pl.pallas_call(
        kernel,
        out_shape=jax.ShapeDtypeStruct((B, OC2P, g["OUTW"]), jnp.float32),
        grid=(B,),
        in_specs=[
            pl.BlockSpec((None, C, g["LX1"]), lambda b: (b, 0, 0)),
            pl.BlockSpec(kp["w1"].shape, lambda b: (0, 0)),
            pl.BlockSpec(kp["b1"].shape, lambda b: (0, 0)),
            pl.BlockSpec(kp["s1"].shape, lambda b: (0, 0)),
            pl.BlockSpec(kp["w2"].shape, lambda b: (0, 0)),
            pl.BlockSpec(kp["b2"].shape, lambda b: (0, 0)),
            pl.BlockSpec(kp["s2"].shape, lambda b: (0, 0)),
        ],
        out_specs=pl.BlockSpec((None, OC2P, g["OUTW"]), lambda b: (b, 0, 0)),
        scratch_shapes=[
            pltpu.VMEM((49 * C, g["L1"]), jnp.float32),      # conv1 im2col slab
            pltpu.VMEM((49 * OC1P, g["L2"]), jnp.float32),   # conv2 im2col slab
        ],
        compiler_params=pltpu.CompilerParams(
            dimension_semantics=("parallel",)),
    )(xf, kp["w1"], kp["b1"], kp["s1"], kp["w2"], kp["b2"], kp["s2"])

    # Contiguous -> free reshape; pad rows of wf are zero so pad lanes/channels
    # in `feats` contribute nothing.
    feats = feats.reshape(B, OC2P * g["OUTW"])
    return pl.pallas_call(
        _fc_kernel,
        out_shape=jax.ShapeDtypeStruct((B, NC), jnp.float32),
        in_specs=[pl.BlockSpec(memory_space=pltpu.MemorySpace.VMEM)] * 3,
        out_specs=pl.BlockSpec(memory_space=pltpu.MemorySpace.VMEM),
    )(feats, kp["wf"], kp["bf"])


# -------------------------- pure-JAX reference ----------------------------------

def _ref_pool(x):
    B, C, H, W = x.shape
    return jnp.max(x.reshape(B, C, H // 2, 2, W // 2, 2), axis=(3, 5))


def reference_forward(params, x):
    dn = ("NCHW", "OIHW", "NCHW")
    y = jax.lax.conv_general_dilated(
        x, params["w1"], (1, 1), [(3, 3), (3, 3)], dimension_numbers=dn)
    y = jnp.maximum(y + params["b1"].reshape(1, -1, 1, 1), 0.0)
    y = _ref_pool(y)
    y = jax.lax.conv_general_dilated(
        y, params["w2"], (1, 1), [(3, 3), (3, 3)], dimension_numbers=dn)
    y = jnp.maximum(y + params["b2"].reshape(1, -1, 1, 1), 0.0)
    y = _ref_pool(y)
    y = y.reshape(y.shape[0], -1)
    return y @ params["wf"].T + params["bf"]


# ----------------------------- main ----------------------------------------------

if __name__ == "__main__":
    key = jax.random.PRNGKey(0)
    kparam, kx = jax.random.split(key)
    params = init_params(kparam)
    kp = prepare_params(params)                  # one-time weight re-layout
    x = jax.random.normal(kx, (2, 1, 28, 28), jnp.float32)

    out = jax.block_until_ready(cnn_kernel_7x7_forward(kp, x))
    assert out.shape == (2, 10), out.shape

    ref = reference_forward(params, x)
    assert jnp.allclose(out, ref, atol=2e-2, rtol=2e-2), (
        float(jnp.max(jnp.abs(out - ref))))

    print("KERNEL_OK")
</pallas_src>

<mosaic_0001>
module attributes {stable_mosaic.version = 11 : i64} {
  func.func @_fused_conv_kernel(%arg0: i32, %arg1: memref<1x1x1280xf32, #tpu.memory_space<vmem>>, %arg2: memref<16x49xf32, #tpu.memory_space<vmem>>, %arg3: memref<16x1xf32, #tpu.memory_space<vmem>>, %arg4: memref<912x512xf32, #tpu.memory_space<vmem>>, %arg5: memref<32x784xf32, #tpu.memory_space<vmem>>, %arg6: memref<32x1xf32, #tpu.memory_space<vmem>>, %arg7: memref<256x128xf32, #tpu.memory_space<vmem>>, %arg8: memref<1x32x128xf32, #tpu.memory_space<vmem>>, %arg9: memref<49x1024xf32, #tpu.memory_space<vmem>>, %arg10: memref<784x384xf32, #tpu.memory_space<vmem>>) attributes {dimension_semantics = [#tpu.dimension_semantics<parallel>], iteration_bounds = array<i64: 2>, scalar_prefetch = 0 : i64, scratch_operands = 2 : i64, tpu.core_type = #tpu.core_type<tc>, window_params = [{transform_indices = @transform_0, window_bounds = array<i64: 1, 1, 1280>}, {pipeline_mode = #tpu.pipeline_mode<synchronous>, transform_indices = @transform_1, window_bounds = array<i64: 16, 49>}, {pipeline_mode = #tpu.pipeline_mode<synchronous>, transform_indices = @transform_2, window_bounds = array<i64: 16, 1>}, {pipeline_mode = #tpu.pipeline_mode<synchronous>, transform_indices = @transform_3, window_bounds = array<i64: 912, 512>}, {pipeline_mode = #tpu.pipeline_mode<synchronous>, transform_indices = @transform_4, window_bounds = array<i64: 32, 784>}, {pipeline_mode = #tpu.pipeline_mode<synchronous>, transform_indices = @transform_5, window_bounds = array<i64: 32, 1>}, {pipeline_mode = #tpu.pipeline_mode<synchronous>, transform_indices = @transform_6, window_bounds = array<i64: 256, 128>}, {transform_indices = @transform_7, window_bounds = array<i64: 1, 32, 128>}]} {
    %c0 = arith.constant 0 : index
    %c0_0 = arith.constant 0 : index
    %c0_1 = arith.constant 0 : index
    %0 = vector.load %arg1[%c0, %c0_0, %c0_1] : memref<1x1x1280xf32, #tpu.memory_space<vmem>>, vector<1x1x1280xf32>
    %1 = vector.shape_cast %0 : vector<1x1x1280xf32> to vector<1x1280xf32>
    %2 = vector.extract_strided_slice %1 {offsets = [0, 0], sizes = [1, 1024], strides = [1, 1]} : vector<1x1280xf32> to vector<1x1024xf32>
    %c0_2 = arith.constant 0 : index
    %c0_3 = arith.constant 0 : index
    %3 = vector.load %arg9[%c0_2, %c0_3] : memref<49x1024xf32, #tpu.memory_space<vmem>>, vector<1x1024xf32>
    tpu.vector_store %arg9[%c0_2, %c0_3], %2 {strides = array<i32>} : memref<49x1024xf32, #tpu.memory_space<vmem>>, vector<1x1024xf32>,
    %4 = vector.extract_strided_slice %1 {offsets = [0, 1], sizes = [1, 1024], strides = [1, 1]} : vector<1x1280xf32> to vector<1x1024xf32>
    %c1 = arith.constant 1 : index
    %c0_4 = arith.constant 0 : index
    %5 = vector.load %arg9[%c1, %c0_4] : memref<49x1024xf32, #tpu.memory_space<vmem>>, vector<1x1024xf32>
    tpu.vector_store %arg9[%c1, %c0_4], %4 {strides = array<i32>} : memref<49x1024xf32, #tpu.memory_space<vmem>>, vector<1x1024xf32>,
    %6 = vector.extract_strided_slice %1 {offsets = [0, 2], sizes = [1, 1024], strides = [1, 1]} : vector<1x1280xf32> to vector<1x1024xf32>
    %c2 = arith.constant 2 : index
    %c0_5 = arith.constant 0 : index
    %7 = vector.load %arg9[%c2, %c0_5] : memref<49x1024xf32, #tpu.memory_space<vmem>>, vector<1x1024xf32>
    tpu.vector_store %arg9[%c2, %c0_5], %6 {strides = array<i32>} : memref<49x1024xf32, #tpu.memory_space<vmem>>, vector<1x1024xf32>,
    %8 = vector.extract_strided_slice %1 {offsets = [0, 3], sizes = [1, 1024], strides = [1, 1]} : vector<1x1280xf32> to vector<1x1024xf32>
    %c3 = arith.constant 3 : index
    %c0_6 = arith.constant 0 : index
    %9 = vector.load %arg9[%c3, %c0_6] : memref<49x1024xf32, #tpu.memory_space<vmem>>, vector<1x1024xf32>
    tpu.vector_store %arg9[%c3, %c0_6], %8 {strides = array<i32>} : memref<49x1024xf32, #tpu.memory_space<vmem>>, vector<1x1024xf32>,
    %10 = vector.extract_strided_slice %1 {offsets = [0, 4], sizes = [1, 1024], strides = [1, 1]} : vector<1x1280xf32> to vector<1x1024xf32>
    %c4 = arith.constant 4 : index
    %c0_7 = arith.constant 0 : index
    %11 = vector.load %arg9[%c4, %c0_7] : memref<49x1024xf32, #tpu.memory_space<vmem>>, vector<1x1024xf32>
    tpu.vector_store %arg9[%c4, %c0_7], %10 {strides = array<i32>} : memref<49x1024xf32, #tpu.memory_space<vmem>>, vector<1x1024xf32>,
    %12 = vector.extract_strided_slice %1 {offsets = [0, 5], sizes = [1, 1024], strides = [1, 1]} : vector<1x1280xf32> to vector<1x1024xf32>
    %c5 = arith.constant 5 : index
    %c0_8 = arith.constant 0 : index
    %13 = vector.load %arg9[%c5, %c0_8] : memref<49x1024xf32, #tpu.memory_space<vmem>>, vector<1x1024xf32>
    tpu.vector_store %arg9[%c5, %c0_8], %12 {strides = array<i32>} : memref<49x1024xf32, #tpu.memory_space<vmem>>, vector<1x1024xf32>,
    %14 = vector.extract_strided_slice %1 {offsets = [0, 6], sizes = [1, 1024], strides = [1, 1]} : vector<1x1280xf32> to vector<1x1024xf32>
    %c6 = arith.constant 6 : index
    %c0_9 = arith.constant 0 : index
    %15 = vector.load %arg9[%c6, %c0_9] : memref<49x1024xf32, #tpu.memory_space<vmem>>, vector<1x1024xf32>
    tpu.vector_store %arg9[%c6, %c0_9], %14 {strides = array<i32>} : memref<49x1024xf32, #tpu.memory_space<vmem>>, vector<1x1024xf32>,
    %16 = vector.extract_strided_slice %1 {offsets = [0, 34], sizes = [1, 1024], strides = [1, 1]} : vector<1x1280xf32> to vector<1x1024xf32>
    %c7 = arith.constant 7 : index
    %c0_10 = arith.constant 0 : index
    %17 = vector.load %arg9[%c7, %c0_10] : memref<49x1024xf32, #tpu.memory_space<vmem>>, vector<1x1024xf32>
    tpu.vector_store %arg9[%c7, %c0_10], %16 {strides = array<i32>} : memref<49x1024xf32, #tpu.memory_space<vmem>>, vector<1x1024xf32>,
    %18 = vector.extract_strided_slice %1 {offsets = [0, 35], sizes = [1, 1024], strides = [1, 1]} : vector<1x1280xf32> to vector<1x1024xf32>
    %c8 = arith.constant 8 : index
    %c0_11 = arith.constant 0 : index
    %19 = vector.load %arg9[%c8, %c0_11] : memref<49x1024xf32, #tpu.memory_space<vmem>>, vector<1x1024xf32>
    tpu.vector_store %arg9[%c8, %c0_11], %18 {strides = array<i32>} : memref<49x1024xf32, #tpu.memory_space<vmem>>, vector<1x1024xf32>,
    %20 = vector.extract_strided_slice %1 {offsets = [0, 36], sizes = [1, 1024], strides = [1, 1]} : vector<1x1280xf32> to vector<1x1024xf32>
    %c9 = arith.constant 9 : index
    %c0_12 = arith.constant 0 : index
    %21 = vector.load %arg9[%c9, %c0_12] : memref<49x1024xf32, #tpu.memory_space<vmem>>, vector<1x1024xf32>
    tpu.vector_store %arg9[%c9, %c0_12], %20 {strides = array<i32>} : memref<49x1024xf32, #tpu.memory_space<vmem>>, vector<1x1024xf32>,
    %22 = vector.extract_strided_slice %1 {offsets = [0, 37], sizes = [1, 1024], strides = [1, 1]} : vector<1x1280xf32> to vector<1x1024xf32>
    %c10 = arith.constant 10 : index
    %c0_13 = arith.constant 0 : index
    %23 = vector.load %arg9[%c10, %c0_13] : memref<49x1024xf32, #tpu.memory_space<vmem>>, vector<1x1024xf32>
    tpu.vector_store %arg9[%c10, %c0_13], %22 {strides = array<i32>} : memref<49x1024xf32, #tpu.memory_space<vmem>>, vector<1x1024xf32>,
    %24 = vector.extract_strided_slice %1 {offsets = [0, 38], sizes = [1, 1024], strides = [1, 1]} : vector<1x1280xf32> to vector<1x1024xf32>
    %c11 = arith.constant 11 : index
    %c0_14 = arith.constant 0 : index
    %25 = vector.load %arg9[%c11, %c0_14] : memref<49x1024xf32, #tpu.memory_space<vmem>>, vector<1x1024xf32>
    tpu.vector_store %arg9[%c11, %c0_14], %24 {strides = array<i32>} : memref<49x1024xf32, #tpu.memory_space<vmem>>, vector<1x1024xf32>,
    %26 = vector.extract_strided_slice %1 {offsets = [0, 39], sizes = [1, 1024], strides = [1, 1]} : vector<1x1280xf32> to vector<1x1024xf32>
    %c12 = arith.constant 12 : index
    %c0_15 = arith.constant 0 : index
    %27 = vector.load %arg9[%c12, %c0_15] : memref<49x1024xf32, #tpu.memory_space<vmem>>, vector<1x1024xf32>
    tpu.vector_store %arg9[%c12, %c0_15], %26 {strides = array<i32>} : memref<49x1024xf32, #tpu.memory_space<vmem>>, vector<1x1024xf32>,
    %28 = vector.extract_strided_slice %1 {offsets = [0, 40], sizes = [1, 1024], strides = [1, 1]} : vector<1x1280xf32> to vector<1x1024xf32>
    %c13 = arith.constant 13 : index
    %c0_16 = arith.constant 0 : index
    %29 = vector.load %arg9[%c13, %c0_16] : memref<49x1024xf32, #tpu.memory_space<vmem>>, vector<1x1024xf32>
    tpu.vector_store %arg9[%c13, %c0_16], %28 {strides = array<i32>} : memref<49x1024xf32, #tpu.memory_space<vmem>>, vector<1x1024xf32>,
    %30 = vector.extract_strided_slice %1 {offsets = [0, 68], sizes = [1, 1024], strides = [1, 1]} : vector<1x1280xf32> to vector<1x1024xf32>
    %c14 = arith.constant 14 : index
    %c0_17 = arith.constant 0 : index
    %31 = vector.load %arg9[%c14, %c0_17] : memref<49x1024xf32, #tpu.memory_space<vmem>>, vector<1x1024xf32>
    tpu.vector_store %arg9[%c14, %c0_17], %30 {strides = array<i32>} : memref<49x1024xf32, #tpu.memory_space<vmem>>, vector<1x1024xf32>,
    %32 = vector.extract_strided_slice %1 {offsets = [0, 69], sizes = [1, 1024], strides = [1, 1]} : vector<1x1280xf32> to vector<1x1024xf32>
    %c15 = arith.constant 15 : index
    %c0_18 = arith.constant 0 : index
    %33 = vector.load %arg9[%c15, %c0_18] : memref<49x1024xf32, #tpu.memory_space<vmem>>, vector<1x1024xf32>
    tpu.vector_store %arg9[%c15, %c0_18], %32 {strides = array<i32>} : memref<49x1024xf32, #tpu.memory_space<vmem>>, vector<1x1024xf32>,
    %34 = vector.extract_strided_slice %1 {offsets = [0, 70], sizes = [1, 1024], strides = [1, 1]} : vector<1x1280xf32> to vector<1x1024xf32>
    %c16 = arith.constant 16 : index
    %c0_19 = arith.constant 0 : index
    %35 = vector.load %arg9[%c16, %c0_19] : memref<49x1024xf32, #tpu.memory_space<vmem>>, vector<1x1024xf32>
    tpu.vector_store %arg9[%c16, %c0_19], %34 {strides = array<i32>} : memref<49x1024xf32, #tpu.memory_space<vmem>>, vector<1x1024xf32>,
    %36 = vector.extract_strided_slice %1 {offsets = [0, 71], sizes = [1, 1024], strides = [1, 1]} : vector<1x1280xf32> to vector<1x1024xf32>
    %c17 = arith.constant 17 : index
    %c0_20 = arith.constant 0 : index
    %37 = vector.load %arg9[%c17, %c0_20] : memref<49x1024xf32, #tpu.memory_space<vmem>>, vector<1x1024xf32>
    tpu.vector_store %arg9[%c17, %c0_20], %36 {strides = array<i32>} : memref<49x1024xf32, #tpu.memory_space<vmem>>, vector<1x1024xf32>,
    %38 = vector.extract_strided_slice %1 {offsets = [0, 72], sizes = [1, 1024], strides = [1, 1]} : vector<1x1280xf32> to vector<1x1024xf32>
    %c18 = arith.constant 18 : index
    %c0_21 = arith.constant 0 : index
    %39 = vector.load %arg9[%c18, %c0_21] : memref<49x1024xf32, #tpu.memory_space<vmem>>, vector<1x1024xf32>
    tpu.vector_store %arg9[%c18, %c0_21], %38 {strides = array<i32>} : memref<49x1024xf32, #tpu.memory_space<vmem>>, vector<1x1024xf32>,
    %40 = vector.extract_strided_slice %1 {offsets = [0, 73], sizes = [1, 1024], strides = [1, 1]} : vector<1x1280xf32> to vector<1x1024xf32>
    %c19 = arith.constant 19 : index
    %c0_22 = arith.constant 0 : index
    %41 = vector.load %arg9[%c19, %c0_22] : memref<49x1024xf32, #tpu.memory_space<vmem>>, vector<1x1024xf32>
    tpu.vector_store %arg9[%c19, %c0_22], %40 {strides = array<i32>} : memref<49x1024xf32, #tpu.memory_space<vmem>>, vector<1x1024xf32>,
    %42 = vector.extract_strided_slice %1 {offsets = [0, 74], sizes = [1, 1024], strides = [1, 1]} : vector<1x1280xf32> to vector<1x1024xf32>
    %c20 = arith.constant 20 : index
    %c0_23 = arith.constant 0 : index
    %43 = vector.load %arg9[%c20, %c0_23] : memref<49x1024xf32, #tpu.memory_space<vmem>>, vector<1x1024xf32>
    tpu.vector_store %arg9[%c20, %c0_23], %42 {strides = array<i32>} : memref<49x1024xf32, #tpu.memory_space<vmem>>, vector<1x1024xf32>,
    %44 = vector.extract_strided_slice %1 {offsets = [0, 102], sizes = [1, 1024], strides = [1, 1]} : vector<1x1280xf32> to vector<1x1024xf32>
    %c21 = arith.constant 21 : index
    %c0_24 = arith.constant 0 : index
    %45 = vector.load %arg9[%c21, %c0_24] : memref<49x1024xf32, #tpu.memory_space<vmem>>, vector<1x1024xf32>
    tpu.vector_store %arg9[%c21, %c0_24], %44 {strides = array<i32>} : memref<49x1024xf32, #tpu.memory_space<vmem>>, vector<1x1024xf32>,
    %46 = vector.extract_strided_slice %1 {offsets = [0, 103], sizes = [1, 1024], strides = [1, 1]} : vector<1x1280xf32> to vector<1x1024xf32>
    %c22 = arith.constant 22 : index
    %c0_25 = arith.constant 0 : index
    %47 = vector.load %arg9[%c22, %c0_25] : memref<49x1024xf32, #tpu.memory_space<vmem>>, vector<1x1024xf32>
    tpu.vector_store %arg9[%c22, %c0_25], %46 {strides = array<i32>} : memref<49x1024xf32, #tpu.memory_space<vmem>>, vector<1x1024xf32>,
    %48 = vector.extract_strided_slice %1 {offsets = [0, 104], sizes = [1, 1024], strides = [1, 1]} : vector<1x1280xf32> to vector<1x1024xf32>
    %c23 = arith.constant 23 : index
    %c0_26 = arith.constant 0 : index
    %49 = vector.load %arg9[%c23, %c0_26] : memref<49x1024xf32, #tpu.memory_space<vmem>>, vector<1x1024xf32>
    tpu.vector_store %arg9[%c23, %c0_26], %48 {strides = array<i32>} : memref<49x1024xf32, #tpu.memory_space<vmem>>, vector<1x1024xf32>,
    %50 = vector.extract_strided_slice %1 {offsets = [0, 105], sizes = [1, 1024], strides = [1, 1]} : vector<1x1280xf32> to vector<1x1024xf32>
    %c24 = arith.constant 24 : index
    %c0_27 = arith.constant 0 : index
    %51 = vector.load %arg9[%c24, %c0_27] : memref<49x1024xf32, #tpu.memory_space<vmem>>, vector<1x1024xf32>
    tpu.vector_store %arg9[%c24, %c0_27], %50 {strides = array<i32>} : memref<49x1024xf32, #tpu.memory_space<vmem>>, vector<1x1024xf32>,
    %52 = vector.extract_strided_slice %1 {offsets = [0, 106], sizes = [1, 1024], strides = [1, 1]} : vector<1x1280xf32> to vector<1x1024xf32>
    %c25 = arith.constant 25 : index
    %c0_28 = arith.constant 0 : index
    %53 = vector.load %arg9[%c25, %c0_28] : memref<49x1024xf32, #tpu.memory_space<vmem>>, vector<1x1024xf32>
    tpu.vector_store %arg9[%c25, %c0_28], %52 {strides = array<i32>} : memref<49x1024xf32, #tpu.memory_space<vmem>>, vector<1x1024xf32>,
    %54 = vector.extract_strided_slice %1 {offsets = [0, 107], sizes = [1, 1024], strides = [1, 1]} : vector<1x1280xf32> to vector<1x1024xf32>
    %c26 = arith.constant 26 : index
    %c0_29 = arith.constant 0 : index
    %55 = vector.load %arg9[%c26, %c0_29] : memref<49x1024xf32, #tpu.memory_space<vmem>>, vector<1x1024xf32>
    tpu.vector_store %arg9[%c26, %c0_29], %54 {strides = array<i32>} : memref<49x1024xf32, #tpu.memory_space<vmem>>, vector<1x1024xf32>,
    %56 = vector.extract_strided_slice %1 {offsets = [0, 108], sizes = [1, 1024], strides = [1, 1]} : vector<1x1280xf32> to vector<1x1024xf32>
    %c27 = arith.constant 27 : index
    %c0_30 = arith.constant 0 : index
    %57 = vector.load %arg9[%c27, %c0_30] : memref<49x1024xf32, #tpu.memory_space<vmem>>, vector<1x1024xf32>
    tpu.vector_store %arg9[%c27, %c0_30], %56 {strides = array<i32>} : memref<49x1024xf32, #tpu.memory_space<vmem>>, vector<1x1024xf32>,
    %58 = vector.extract_strided_slice %1 {offsets = [0, 136], sizes = [1, 1024], strides = [1, 1]} : vector<1x1280xf32> to vector<1x1024xf32>
    %c28 = arith.constant 28 : index
    %c0_31 = arith.constant 0 : index
    %59 = vector.load %arg9[%c28, %c0_31] : memref<49x1024xf32, #tpu.memory_space<vmem>>, vector<1x1024xf32>
    tpu.vector_store %arg9[%c28, %c0_31], %58 {strides = array<i32>} : memref<49x1024xf32, #tpu.memory_space<vmem>>, vector<1x1024xf32>,
    %60 = vector.extract_strided_slice %1 {offsets = [0, 137], sizes = [1, 1024], strides = [1, 1]} : vector<1x1280xf32> to vector<1x1024xf32>
    %c29 = arith.constant 29 : index
    %c0_32 = arith.constant 0 : index
    %61 = vector.load %arg9[%c29, %c0_32] : memref<49x1024xf32, #tpu.memory_space<vmem>>, vector<1x1024xf32>
    tpu.vector_store %arg9[%c29, %c0_32], %60 {strides = array<i32>} : memref<49x1024xf32, #tpu.memory_space<vmem>>, vector<1x1024xf32>,
    %62 = vector.extract_strided_slice %1 {offsets = [0, 138], sizes = [1, 1024], strides = [1, 1]} : vector<1x1280xf32> to vector<1x1024xf32>
    %c30 = arith.constant 30 : index
    %c0_33 = arith.constant 0 : index
    %63 = vector.load %arg9[%c30, %c0_33] : memref<49x1024xf32, #tpu.memory_space<vmem>>, vector<1x1024xf32>
    tpu.vector_store %arg9[%c30, %c0_33], %62 {strides = array<i32>} : memref<49x1024xf32, #tpu.memory_space<vmem>>, vector<1x1024xf32>,
    %64 = vector.extract_strided_slice %1 {offsets = [0, 139], sizes = [1, 1024], strides = [1, 1]} : vector<1x1280xf32> to vector<1x1024xf32>
    %c31 = arith.constant 31 : index
    %c0_34 = arith.constant 0 : index
    %65 = vector.load %arg9[%c31, %c0_34] : memref<49x1024xf32, #tpu.memory_space<vmem>>, vector<1x1024xf32>
    tpu.vector_store %arg9[%c31, %c0_34], %64 {strides = array<i32>} : memref<49x1024xf32, #tpu.memory_space<vmem>>, vector<1x1024xf32>,
    %66 = vector.extract_strided_slice %1 {offsets = [0, 140], sizes = [1, 1024], strides = [1, 1]} : vector<1x1280xf32> to vector<1x1024xf32>
    %c32 = arith.constant 32 : index
    %c0_35 = arith.constant 0 : index
    %67 = vector.load %arg9[%c32, %c0_35] : memref<49x1024xf32, #tpu.memory_space<vmem>>, vector<1x1024xf32>
    tpu.vector_store %arg9[%c32, %c0_35], %66 {strides = array<i32>} : memref<49x1024xf32, #tpu.memory_space<vmem>>, vector<1x1024xf32>,
    %68 = vector.extract_strided_slice %1 {offsets = [0, 141], sizes = [1, 1024], strides = [1, 1]} : vector<1x1280xf32> to vector<1x1024xf32>
    %c33 = arith.constant 33 : index
    %c0_36 = arith.constant 0 : index
    %69 = vector.load %arg9[%c33, %c0_36] : memref<49x1024xf32, #tpu.memory_space<vmem>>, vector<1x1024xf32>
    tpu.vector_store %arg9[%c33, %c0_36], %68 {strides = array<i32>} : memref<49x1024xf32, #tpu.memory_space<vmem>>, vector<1x1024xf32>,
    %70 = vector.extract_strided_slice %1 {offsets = [0, 142], sizes = [1, 1024], strides = [1, 1]} : vector<1x1280xf32> to vector<1x1024xf32>
    %c34 = arith.constant 34 : index
    %c0_37 = arith.constant 0 : index
    %71 = vector.load %arg9[%c34, %c0_37] : memref<49x1024xf32, #tpu.memory_space<vmem>>, vector<1x1024xf32>
    tpu.vector_store %arg9[%c34, %c0_37], %70 {strides = array<i32>} : memref<49x1024xf32, #tpu.memory_space<vmem>>, vector<1x1024xf32>,
    %72 = vector.extract_strided_slice %1 {offsets = [0, 170], sizes = [1, 1024], strides = [1, 1]} : vector<1x1280xf32> to vector<1x1024xf32>
    %c35 = arith.constant 35 : index
    %c0_38 = arith.constant 0 : index
    %73 = vector.load %arg9[%c35, %c0_38] : memref<49x1024xf32, #tpu.memory_space<vmem>>, vector<1x1024xf32>
    tpu.vector_store %arg9[%c35, %c0_38], %72 {strides = array<i32>} : memref<49x1024xf32, #tpu.memory_space<vmem>>, vector<1x1024xf32>,
    %74 = vector.extract_strided_slice %1 {offsets = [0, 171], sizes = [1, 1024], strides = [1, 1]} : vector<1x1280xf32> to vector<1x1024xf32>
    %c36 = arith.constant 36 : index
    %c0_39 = arith.constant 0 : index
    %75 = vector.load %arg9[%c36, %c0_39] : memref<49x1024xf32, #tpu.memory_space<vmem>>, vector<1x1024xf32>
    tpu.vector_store %arg9[%c36, %c0_39], %74 {strides = array<i32>} : memref<49x1024xf32, #tpu.memory_space<vmem>>, vector<1x1024xf32>,
    %76 = vector.extract_strided_slice %1 {offsets = [0, 172], sizes = [1, 1024], strides = [1, 1]} : vector<1x1280xf32> to vector<1x1024xf32>
    %c37 = arith.constant 37 : index
    %c0_40 = arith.constant 0 : index
    %77 = vector.load %arg9[%c37, %c0_40] : memref<49x1024xf32, #tpu.memory_space<vmem>>, vector<1x1024xf32>
    tpu.vector_store %arg9[%c37, %c0_40], %76 {strides = array<i32>} : memref<49x1024xf32, #tpu.memory_space<vmem>>, vector<1x1024xf32>,
    %78 = vector.extract_strided_slice %1 {offsets = [0, 173], sizes = [1, 1024], strides = [1, 1]} : vector<1x1280xf32> to vector<1x1024xf32>
    %c38 = arith.constant 38 : index
    %c0_41 = arith.constant 0 : index
    %79 = vector.load %arg9[%c38, %c0_41] : memref<49x1024xf32, #tpu.memory_space<vmem>>, vector<1x1024xf32>
    tpu.vector_store %arg9[%c38, %c0_41], %78 {strides = array<i32>} : memref<49x1024xf32, #tpu.memory_space<vmem>>, vector<1x1024xf32>,
    %80 = vector.extract_strided_slice %1 {offsets = [0, 174], sizes = [1, 1024], strides = [1, 1]} : vector<1x1280xf32> to vector<1x1024xf32>
    %c39 = arith.constant 39 : index
    %c0_42 = arith.constant 0 : index
    %81 = vector.load %arg9[%c39, %c0_42] : memref<49x1024xf32, #tpu.memory_space<vmem>>, vector<1x1024xf32>
    tpu.vector_store %arg9[%c39, %c0_42], %80 {strides = array<i32>} : memref<49x1024xf32, #tpu.memory_space<vmem>>, vector<1x1024xf32>,
    %82 = vector.extract_strided_slice %1 {offsets = [0, 175], sizes = [1, 1024], strides = [1, 1]} : vector<1x1280xf32> to vector<1x1024xf32>
    %c40 = arith.constant 40 : index
    %c0_43 = arith.constant 0 : index
    %83 = vector.load %arg9[%c40, %c0_43] : memref<49x1024xf32, #tpu.memory_space<vmem>>, vector<1x1024xf32>
    tpu.vector_store %arg9[%c40, %c0_43], %82 {strides = array<i32>} : memref<49x1024xf32, #tpu.memory_space<vmem>>, vector<1x1024xf32>,
    %84 = vector.extract_strided_slice %1 {offsets = [0, 176], sizes = [1, 1024], strides = [1, 1]} : vector<1x1280xf32> to vector<1x1024xf32>
    %c41 = arith.constant 41 : index
    %c0_44 = arith.constant 0 : index
    %85 = vector.load %arg9[%c41, %c0_44] : memref<49x1024xf32, #tpu.memory_space<vmem>>, vector<1x1024xf32>
    tpu.vector_store %arg9[%c41, %c0_44], %84 {strides = array<i32>} : memref<49x1024xf32, #tpu.memory_space<vmem>>, vector<1x1024xf32>,
    %86 = vector.extract_strided_slice %1 {offsets = [0, 204], sizes = [1, 1024], strides = [1, 1]} : vector<1x1280xf32> to vector<1x1024xf32>
    %c42 = arith.constant 42 : index
    %c0_45 = arith.constant 0 : index
    %87 = vector.load %arg9[%c42, %c0_45] : memref<49x1024xf32, #tpu.memory_space<vmem>>, vector<1x1024xf32>
    tpu.vector_store %arg9[%c42, %c0_45], %86 {strides = array<i32>} : memref<49x1024xf32, #tpu.memory_space<vmem>>, vector<1x1024xf32>,
    %88 = vector.extract_strided_slice %1 {offsets = [0, 205], sizes = [1, 1024], strides = [1, 1]} : vector<1x1280xf32> to vector<1x1024xf32>
    %c43 = arith.constant 43 : index
    %c0_46 = arith.constant 0 : index
    %89 = vector.load %arg9[%c43, %c0_46] : memref<49x1024xf32, #tpu.memory_space<vmem>>, vector<1x1024xf32>
    tpu.vector_store %arg9[%c43, %c0_46], %88 {strides = array<i32>} : memref<49x1024xf32, #tpu.memory_space<vmem>>, vector<1x1024xf32>,
    %90 = vector.extract_strided_slice %1 {offsets = [0, 206], sizes = [1, 1024], strides = [1, 1]} : vector<1x1280xf32> to vector<1x1024xf32>
    %c44 = arith.constant 44 : index
    %c0_47 = arith.constant 0 : index
    %91 = vector.load %arg9[%c44, %c0_47] : memref<49x1024xf32, #tpu.memory_space<vmem>>, vector<1x1024xf32>
    tpu.vector_store %arg9[%c44, %c0_47], %90 {strides = array<i32>} : memref<49x1024xf32, #tpu.memory_space<vmem>>, vector<1x1024xf32>,
    %92 = vector.extract_strided_slice %1 {offsets = [0, 207], sizes = [1, 1024], strides = [1, 1]} : vector<1x1280xf32> to vector<1x1024xf32>
    %c45 = arith.constant 45 : index
    %c0_48 = arith.constant 0 : index
    %93 = vector.load %arg9[%c45, %c0_48] : memref<49x1024xf32, #tpu.memory_space<vmem>>, vector<1x1024xf32>
    tpu.vector_store %arg9[%c45, %c0_48], %92 {strides = array<i32>} : memref<49x1024xf32, #tpu.memory_space<vmem>>, vector<1x1024xf32>,
    %94 = vector.extract_strided_slice %1 {offsets = [0, 208], sizes = [1, 1024], strides = [1, 1]} : vector<1x1280xf32> to vector<1x1024xf32>
    %c46 = arith.constant 46 : index
    %c0_49 = arith.constant 0 : index
    %95 = vector.load %arg9[%c46, %c0_49] : memref<49x1024xf32, #tpu.memory_space<vmem>>, vector<1x1024xf32>
    tpu.vector_store %arg9[%c46, %c0_49], %94 {strides = array<i32>} : memref<49x1024xf32, #tpu.memory_space<vmem>>, vector<1x1024xf32>,
    %96 = vector.extract_strided_slice %1 {offsets = [0, 209], sizes = [1, 1024], strides = [1, 1]} : vector<1x1280xf32> to vector<1x1024xf32>
    %c47 = arith.constant 47 : index
    %c0_50 = arith.constant 0 : index
    %97 = vector.load %arg9[%c47, %c0_50] : memref<49x1024xf32, #tpu.memory_space<vmem>>, vector<1x1024xf32>
    tpu.vector_store %arg9[%c47, %c0_50], %96 {strides = array<i32>} : memref<49x1024xf32, #tpu.memory_space<vmem>>, vector<1x1024xf32>,
    %98 = vector.extract_strided_slice %1 {offsets = [0, 210], sizes = [1, 1024], strides = [1, 1]} : vector<1x1280xf32> to vector<1x1024xf32>
    %c48 = arith.constant 48 : index
    %c0_51 = arith.constant 0 : index
    %99 = vector.load %arg9[%c48, %c0_51] : memref<49x1024xf32, #tpu.memory_space<vmem>>, vector<1x1024xf32>
    tpu.vector_store %arg9[%c48, %c0_51], %98 {strides = array<i32>} : memref<49x1024xf32, #tpu.memory_space<vmem>>, vector<1x1024xf32>,
    %c0_52 = arith.constant 0 : index
    %c0_53 = arith.constant 0 : index
    %100 = vector.load %arg2[%c0_52, %c0_53] : memref<16x49xf32, #tpu.memory_space<vmem>>, vector<16x49xf32>
    %c0_54 = arith.constant 0 : index
    %c0_55 = arith.constant 0 : index
    %101 = vector.load %arg9[%c0_54, %c0_55] : memref<49x1024xf32, #tpu.memory_space<vmem>>, vector<49x1024xf32>
    %cst = arith.constant dense<0.000000e+00> : vector<16x1024xf32>
    %102 = tpu.matmul %100, %101, %cst {dimension_numbers = #tpu.dot_dimension_numbers<[1], [0], [0], [1], [0, 0, 1, 1], [], []>} : vector<16x49xf32>, vector<49x1024xf32>, vector<16x1024xf32> -> vector<16x1024xf32>
    %c0_56 = arith.constant 0 : index
    %c0_57 = arith.constant 0 : index
    %103 = vector.load %arg3[%c0_56, %c0_57] : memref<16x1xf32, #tpu.memory_space<vmem>>, vector<16x1xf32>
    %104 = vector.broadcast %103 : vector<16x1xf32> to vector<16x1024xf32>
    %105 = arith.addf %102, %104 : vector<16x1024xf32>
    %cst_58 = arith.constant 0.000000e+00 : f32
    %106 = vector.broadcast %cst_58 : f32 to vector<16x1024xf32>
    %107 = arith.maximumf %105, %106 : vector<16x1024xf32>
    %108 = vector.extract_strided_slice %107 {offsets = [0, 0], sizes = [16, 912], strides = [1, 1]} : vector<16x1024xf32> to vector<16x912xf32>
    %109 = vector.extract_strided_slice %107 {offsets = [0, 1], sizes = [16, 912], strides = [1, 1]} : vector<16x1024xf32> to vector<16x912xf32>
    %110 = arith.maximumf %108, %109 : vector<16x912xf32>
    %111 = vector.extract_strided_slice %107 {offsets = [0, 34], sizes = [16, 912], strides = [1, 1]} : vector<16x1024xf32> to vector<16x912xf32>
    %112 = vector.extract_strided_slice %107 {offsets = [0, 35], sizes = [16, 912], strides = [1, 1]} : vector<16x1024xf32> to vector<16x912xf32>
    %113 = arith.maximumf %111, %112 : vector<16x912xf32>
    %114 = arith.maximumf %110, %113 : vector<16x912xf32>
    %c0_59 = arith.constant 0 : index
    %c0_60 = arith.constant 0 : index
    %115 = vector.load %arg4[%c0_59, %c0_60] : memref<912x512xf32, #tpu.memory_space<vmem>>, vector<912x512xf32>
    %cst_61 = arith.constant dense<0.000000e+00> : vector<16x512xf32>
    %116 = tpu.matmul %114, %115, %cst_61 {dimension_numbers = #tpu.dot_dimension_numbers<[1], [0], [0], [1], [0, 0, 1, 1], [], []>} : vector<16x912xf32>, vector<912x512xf32>, vector<16x512xf32> -> vector<16x512xf32>
    %117 = vector.extract_strided_slice %116 {offsets = [0, 0], sizes = [16, 384], strides = [1, 1]} : vector<16x512xf32> to vector<16x384xf32>
    %c0_62 = arith.constant 0 : index
    %c0_63 = arith.constant 0 : index
    %118 = vector.load %arg10[%c0_62, %c0_63] : memref<784x384xf32, #tpu.memory_space<vmem>>, vector<16x384xf32>
    tpu.vector_store %arg10[%c0_62, %c0_63], %117 {strides = array<i32>} : memref<784x384xf32, #tpu.memory_space<vmem>>, vector<16x384xf32>,
    %119 = vector.extract_strided_slice %116 {offsets = [0, 1], sizes = [16, 384], strides = [1, 1]} : vector<16x512xf32> to vector<16x384xf32>
    %c16_64 = arith.constant 16 : index
    %c0_65 = arith.constant 0 : index
    %120 = vector.load %arg10[%c16_64, %c0_65] : memref<784x384xf32, #tpu.memory_space<vmem>>, vector<16x384xf32>
    tpu.vector_store %arg10[%c16_64, %c0_65], %119 {strides = array<i32>} : memref<784x384xf32, #tpu.memory_space<vmem>>, vector<16x384xf32>,
    %121 = vector.extract_strided_slice %116 {offsets = [0, 2], sizes = [16, 384], strides = [1, 1]} : vector<16x512xf32> to vector<16x384xf32>
    %c32_66 = arith.constant 32 : index
    %c0_67 = arith.constant 0 : index
    %122 = vector.load %arg10[%c32_66, %c0_67] : memref<784x384xf32, #tpu.memory_space<vmem>>, vector<16x384xf32>
    tpu.vector_store %arg10[%c32_66, %c0_67], %121 {strides = array<i32>} : memref<784x384xf32, #tpu.memory_space<vmem>>, vector<16x384xf32>,
    %123 = vector.extract_strided_slice %116 {offsets = [0, 3], sizes = [16, 384], strides = [1, 1]} : vector<16x512xf32> to vector<16x384xf32>
    %c48_68 = arith.constant 48 : index
    %c0_69 = arith.constant 0 : index
    %124 = vector.load %arg10[%c48_68, %c0_69] : memref<784x384xf32, #tpu.memory_space<vmem>>, vector<16x384xf32>
    tpu.vector_store %arg10[%c48_68, %c0_69], %123 {strides = array<i32>} : memref<784x384xf32, #tpu.memory_space<vmem>>, vector<16x384xf32>,
    %125 = vector.extract_strided_slice %116 {offsets = [0, 4], sizes = [16, 384], strides = [1, 1]} : vector<16x512xf32> to vector<16x384xf32>
    %c64 = arith.constant 64 : index
    %c0_70 = arith.constant 0 : index
    %126 = vector.load %arg10[%c64, %c0_70] : memref<784x384xf32, #tpu.memory_space<vmem>>, vector<16x384xf32>
    tpu.vector_store %arg10[%c64, %c0_70], %125 {strides = array<i32>} : memref<784x384xf32, #tpu.memory_space<vmem>>, vector<16x384xf32>,
    %127 = vector.extract_strided_slice %116 {offsets = [0, 5], sizes = [16, 384], strides = [1, 1]} : vector<16x512xf32> to vector<16x384xf32>
    %c80 = arith.constant 80 : index
    %c0_71 = arith.constant 0 : index
    %128 = vector.load %arg10[%c80, %c0_71] : memref<784x384xf32, #tpu.memory_space<vmem>>, vector<16x384xf32>
    tpu.vector_store %arg10[%c80, %c0_71], %127 {strides = array<i32>} : memref<784x384xf32, #tpu.memory_space<vmem>>, vector<16x384xf32>,
    %129 = vector.extract_strided_slice %116 {offsets = [0, 6], sizes = [16, 384], strides = [1, 1]} : vector<16x512xf32> to vector<16x384xf32>
    %c96 = arith.constant 96 : index
    %c0_72 = arith.constant 0 : index
    %130 = vector.load %arg10[%c96, %c0_72] : memref<784x384xf32, #tpu.memory_space<vmem>>, vector<16x384xf32>
    tpu.vector_store %arg10[%c96, %c0_72], %129 {strides = array<i32>} : memref<784x384xf32, #tpu.memory_space<vmem>>, vector<16x384xf32>,
    %131 = vector.extract_strided_slice %116 {offsets = [0, 20], sizes = [16, 384], strides = [1, 1]} : vector<16x512xf32> to vector<16x384xf32>
    %c112 = arith.constant 112 : index
    %c0_73 = arith.constant 0 : index
    %132 = vector.load %arg10[%c112, %c0_73] : memref<784x384xf32, #tpu.memory_space<vmem>>, vector<16x384xf32>
    tpu.vector_store %arg10[%c112, %c0_73], %131 {strides = array<i32>} : memref<784x384xf32, #tpu.memory_space<vmem>>, vector<16x384xf32>,
    %133 = vector.extract_strided_slice %116 {offsets = [0, 21], sizes = [16, 384], strides = [1, 1]} : vector<16x512xf32> to vector<16x384xf32>
    %c128 = arith.constant 128 : index
    %c0_74 = arith.constant 0 : index
    %134 = vector.load %arg10[%c128, %c0_74] : memref<784x384xf32, #tpu.memory_space<vmem>>, vector<16x384xf32>
    tpu.vector_store %arg10[%c128, %c0_74], %133 {strides = array<i32>} : memref<784x384xf32, #tpu.memory_space<vmem>>, vector<16x384xf32>,
    %135 = vector.extract_strided_slice %116 {offsets = [0, 22], sizes = [16, 384], strides = [1, 1]} : vector<16x512xf32> to vector<16x384xf32>
    %c144 = arith.constant 144 : index
    %c0_75 = arith.constant 0 : index
    %136 = vector.load %arg10[%c144, %c0_75] : memref<784x384xf32, #tpu.memory_space<vmem>>, vector<16x384xf32>
    tpu.vector_store %arg10[%c144, %c0_75], %135 {strides = array<i32>} : memref<784x384xf32, #tpu.memory_space<vmem>>, vector<16x384xf32>,
    %137 = vector.extract_strided_slice %116 {offsets = [0, 23], sizes = [16, 384], strides = [1, 1]} : vector<16x512xf32> to vector<16x384xf32>
    %c160 = arith.constant 160 : index
    %c0_76 = arith.constant 0 : index
    %138 = vector.load %arg10[%c160, %c0_76] : memref<784x384xf32, #tpu.memory_space<vmem>>, vector<16x384xf32>
    tpu.vector_store %arg10[%c160, %c0_76], %137 {strides = array<i32>} : memref<784x384xf32, #tpu.memory_space<vmem>>, vector<16x384xf32>,
    %139 = vector.extract_strided_slice %116 {offsets = [0, 24], sizes = [16, 384], strides = [1, 1]} : vector<16x512xf32> to vector<16x384xf32>
    %c176 = arith.constant 176 : index
    %c0_77 = arith.constant 0 : index
    %140 = vector.load %arg10[%c176, %c0_77] : memref<784x384xf32, #tpu.memory_space<vmem>>, vector<16x384xf32>
    tpu.vector_store %arg10[%c176, %c0_77], %139 {strides = array<i32>} : memref<784x384xf32, #tpu.memory_space<vmem>>, vector<16x384xf32>,
    %141 = vector.extract_strided_slice %116 {offsets = [0, 25], sizes = [16, 384], strides = [1, 1]} : vector<16x512xf32> to vector<16x384xf32>
    %c192 = arith.constant 192 : index
    %c0_78 = arith.constant 0 : index
    %142 = vector.load %arg10[%c192, %c0_78] : memref<784x384xf32, #tpu.memory_space<vmem>>, vector<16x384xf32>
    tpu.vector_store %arg10[%c192, %c0_78], %141 {strides = array<i32>} : memref<784x384xf32, #tpu.memory_space<vmem>>, vector<16x384xf32>,
    %143 = vector.extract_strided_slice %116 {offsets = [0, 26], sizes = [16, 384], strides = [1, 1]} : vector<16x512xf32> to vector<16x384xf32>
    %c208 = arith.constant 208 : index
    %c0_79 = arith.constant 0 : index
    %144 = vector.load %arg10[%c208, %c0_79] : memref<784x384xf32, #tpu.memory_space<vmem>>, vector<16x384xf32>
    tpu.vector_store %arg10[%c208, %c0_79], %143 {strides = array<i32>} : memref<784x384xf32, #tpu.memory_space<vmem>>, vector<16x384xf32>,
    %145 = vector.extract_strided_slice %116 {offsets = [0, 40], sizes = [16, 384], strides = [1, 1]} : vector<16x512xf32> to vector<16x384xf32>
    %c224 = arith.constant 224 : index
    %c0_80 = arith.constant 0 : index
    %146 = vector.load %arg10[%c224, %c0_80] : memref<784x384xf32, #tpu.memory_space<vmem>>, vector<16x384xf32>
    tpu.vector_store %arg10[%c224, %c0_80], %145 {strides = array<i32>} : memref<784x384xf32, #tpu.memory_space<vmem>>, vector<16x384xf32>,
    %147 = vector.extract_strided_slice %116 {offsets = [0, 41], sizes = [16, 384], strides = [1, 1]} : vector<16x512xf32> to vector<16x384xf32>
    %c240 = arith.constant 240 : index
    %c0_81 = arith.constant 0 : index
    %148 = vector.load %arg10[%c240, %c0_81] : memref<784x384xf32, #tpu.memory_space<vmem>>, vector<16x384xf32>
    tpu.vector_store %arg10[%c240, %c0_81], %147 {strides = array<i32>} : memref<784x384xf32, #tpu.memory_space<vmem>>, vector<16x384xf32>,
    %149 = vector.extract_strided_slice %116 {offsets = [0, 42], sizes = [16, 384], strides = [1, 1]} : vector<16x512xf32> to vector<16x384xf32>
    %c256 = arith.constant 256 : index
    %c0_82 = arith.constant 0 : index
    %150 = vector.load %arg10[%c256, %c0_82] : memref<784x384xf32, #tpu.memory_space<vmem>>, vector<16x384xf32>
    tpu.vector_store %arg10[%c256, %c0_82], %149 {strides = array<i32>} : memref<784x384xf32, #tpu.memory_space<vmem>>, vector<16x384xf32>,
    %151 = vector.extract_strided_slice %116 {offsets = [0, 43], sizes = [16, 384], strides = [1, 1]} : vector<16x512xf32> to vector<16x384xf32>
    %c272 = arith.constant 272 : index
    %c0_83 = arith.constant 0 : index
    %152 = vector.load %arg10[%c272, %c0_83] : memref<784x384xf32, #tpu.memory_space<vmem>>, vector<16x384xf32>
    tpu.vector_store %arg10[%c272, %c0_83], %151 {strides = array<i32>} : memref<784x384xf32, #tpu.memory_space<vmem>>, vector<16x384xf32>,
    %153 = vector.extract_strided_slice %116 {offsets = [0, 44], sizes = [16, 384], strides = [1, 1]} : vector<16x512xf32> to vector<16x384xf32>
    %c288 = arith.constant 288 : index
    %c0_84 = arith.constant 0 : index
    %154 = vector.load %arg10[%c288, %c0_84] : memref<784x384xf32, #tpu.memory_space<vmem>>, vector<16x384xf32>
    tpu.vector_store %arg10[%c288, %c0_84], %153 {strides = array<i32>} : memref<784x384xf32, #tpu.memory_space<vmem>>, vector<16x384xf32>,
    %155 = vector.extract_strided_slice %116 {offsets = [0, 45], sizes = [16, 384], strides = [1, 1]} : vector<16x512xf32> to vector<16x384xf32>
    %c304 = arith.constant 304 : index
    %c0_85 = arith.constant 0 : index
    %156 = vector.load %arg10[%c304, %c0_85] : memref<784x384xf32, #tpu.memory_space<vmem>>, vector<16x384xf32>
    tpu.vector_store %arg10[%c304, %c0_85], %155 {strides = array<i32>} : memref<784x384xf32, #tpu.memory_space<vmem>>, vector<16x384xf32>,
    %157 = vector.extract_strided_slice %116 {offsets = [0, 46], sizes = [16, 384], strides = [1, 1]} : vector<16x512xf32> to vector<16x384xf32>
    %c320 = arith.constant 320 : index
    %c0_86 = arith.constant 0 : index
    %158 = vector.load %arg10[%c320, %c0_86] : memref<784x384xf32, #tpu.memory_space<vmem>>, vector<16x384xf32>
    tpu.vector_store %arg10[%c320, %c0_86], %157 {strides = array<i32>} : memref<784x384xf32, #tpu.memory_space<vmem>>, vector<16x384xf32>,
    %159 = vector.extract_strided_slice %116 {offsets = [0, 60], sizes = [16, 384], strides = [1, 1]} : vector<16x512xf32> to vector<16x384xf32>
    %c336 = arith.constant 336 : index
    %c0_87 = arith.constant 0 : index
    %160 = vector.load %arg10[%c336, %c0_87] : memref<784x384xf32, #tpu.memory_space<vmem>>, vector<16x384xf32>
    tpu.vector_store %arg10[%c336, %c0_87], %159 {strides = array<i32>} : memref<784x384xf32, #tpu.memory_space<vmem>>, vector<16x384xf32>,
    %161 = vector.extract_strided_slice %116 {offsets = [0, 61], sizes = [16, 384], strides = [1, 1]} : vector<16x512xf32> to vector<16x384xf32>
    %c352 = arith.constant 352 : index
    %c0_88 = arith.constant 0 : index
    %162 = vector.load %arg10[%c352, %c0_88] : memref<784x384xf32, #tpu.memory_space<vmem>>, vector<16x384xf32>
    tpu.vector_store %arg10[%c352, %c0_88], %161 {strides = array<i32>} : memref<784x384xf32, #tpu.memory_space<vmem>>, vector<16x384xf32>,
    %163 = vector.extract_strided_slice %116 {offsets = [0, 62], sizes = [16, 384], strides = [1, 1]} : vector<16x512xf32> to vector<16x384xf32>
    %c368 = arith.constant 368 : index
    %c0_89 = arith.constant 0 : index
    %164 = vector.load %arg10[%c368, %c0_89] : memref<784x384xf32, #tpu.memory_space<vmem>>, vector<16x384xf32>
    tpu.vector_store %arg10[%c368, %c0_89], %163 {strides = array<i32>} : memref<784x384xf32, #tpu.memory_space<vmem>>, vector<16x384xf32>,
    %165 = vector.extract_strided_slice %116 {offsets = [0, 63], sizes = [16, 384], strides = [1, 1]} : vector<16x512xf32> to vector<16x384xf32>
    %c384 = arith.constant 384 : index
    %c0_90 = arith.constant 0 : index
    %166 = vector.load %arg10[%c384, %c0_90] : memref<784x384xf32, #tpu.memory_space<vmem>>, vector<16x384xf32>
    tpu.vector_store %arg10[%c384, %c0_90], %165 {strides = array<i32>} : memref<784x384xf32, #tpu.memory_space<vmem>>, vector<16x384xf32>,
    %167 = vector.extract_strided_slice %116 {offsets = [0, 64], sizes = [16, 384], strides = [1, 1]} : vector<16x512xf32> to vector<16x384xf32>
    %c400 = arith.constant 400 : index
    %c0_91 = arith.constant 0 : index
    %168 = vector.load %arg10[%c400, %c0_91] : memref<784x384xf32, #tpu.memory_space<vmem>>, vector<16x384xf32>
    tpu.vector_store %arg10[%c400, %c0_91], %167 {strides = array<i32>} : memref<784x384xf32, #tpu.memory_space<vmem>>, vector<16x384xf32>,
    %169 = vector.extract_strided_slice %116 {offsets = [0, 65], sizes = [16, 384], strides = [1, 1]} : vector<16x512xf32> to vector<16x384xf32>
    %c416 = arith.constant 416 : index
    %c0_92 = arith.constant 0 : index
    %170 = vector.load %arg10[%c416, %c0_92] : memref<784x384xf32, #tpu.memory_space<vmem>>, vector<16x384xf32>
    tpu.vector_store %arg10[%c416, %c0_92], %169 {strides = array<i32>} : memref<784x384xf32, #tpu.memory_space<vmem>>, vector<16x384xf32>,
    %171 = vector.extract_strided_slice %116 {offsets = [0, 66], sizes = [16, 384], strides = [1, 1]} : vector<16x512xf32> to vector<16x384xf32>
    %c432 = arith.constant 432 : index
    %c0_93 = arith.constant 0 : index
    %172 = vector.load %arg10[%c432, %c0_93] : memref<784x384xf32, #tpu.memory_space<vmem>>, vector<16x384xf32>
    tpu.vector_store %arg10[%c432, %c0_93], %171 {strides = array<i32>} : memref<784x384xf32, #tpu.memory_space<vmem>>, vector<16x384xf32>,
    %173 = vector.extract_strided_slice %116 {offsets = [0, 80], sizes = [16, 384], strides = [1, 1]} : vector<16x512xf32> to vector<16x384xf32>
    %c448 = arith.constant 448 : index
    %c0_94 = arith.constant 0 : index
    %174 = vector.load %arg10[%c448, %c0_94] : memref<784x384xf32, #tpu.memory_space<vmem>>, vector<16x384xf32>
    tpu.vector_store %arg10[%c448, %c0_94], %173 {strides = array<i32>} : memref<784x384xf32, #tpu.memory_space<vmem>>, vector<16x384xf32>,
    %175 = vector.extract_strided_slice %116 {offsets = [0, 81], sizes = [16, 384], strides = [1, 1]} : vector<16x512xf32> to vector<16x384xf32>
    %c464 = arith.constant 464 : index
    %c0_95 = arith.constant 0 : index
    %176 = vector.load %arg10[%c464, %c0_95] : memref<784x384xf32, #tpu.memory_space<vmem>>, vector<16x384xf32>
    tpu.vector_store %arg10[%c464, %c0_95], %175 {strides = array<i32>} : memref<784x384xf32, #tpu.memory_space<vmem>>, vector<16x384xf32>,
    %177 = vector.extract_strided_slice %116 {offsets = [0, 82], sizes = [16, 384], strides = [1, 1]} : vector<16x512xf32> to vector<16x384xf32>
    %c480 = arith.constant 480 : index
    %c0_96 = arith.constant 0 : index
    %178 = vector.load %arg10[%c480, %c0_96] : memref<784x384xf32, #tpu.memory_space<vmem>>, vector<16x384xf32>
    tpu.vector_store %arg10[%c480, %c0_96], %177 {strides = array<i32>} : memref<784x384xf32, #tpu.memory_space<vmem>>, vector<16x384xf32>,
    %179 = vector.extract_strided_slice %116 {offsets = [0, 83], sizes = [16, 384], strides = [1, 1]} : vector<16x512xf32> to vector<16x384xf32>
    %c496 = arith.constant 496 : index
    %c0_97 = arith.constant 0 : index
    %180 = vector.load %arg10[%c496, %c0_97] : memref<784x384xf32, #tpu.memory_space<vmem>>, vector<16x384xf32>
    tpu.vector_store %arg10[%c496, %c0_97], %179 {strides = array<i32>} : memref<784x384xf32, #tpu.memory_space<vmem>>, vector<16x384xf32>,
    %181 = vector.extract_strided_slice %116 {offsets = [0, 84], sizes = [16, 384], strides = [1, 1]} : vector<16x512xf32> to vector<16x384xf32>
    %c512 = arith.constant 512 : index
    %c0_98 = arith.constant 0 : index
    %182 = vector.load %arg10[%c512, %c0_98] : memref<784x384xf32, #tpu.memory_space<vmem>>, vector<16x384xf32>
    tpu.vector_store %arg10[%c512, %c0_98], %181 {strides = array<i32>} : memref<784x384xf32, #tpu.memory_space<vmem>>, vector<16x384xf32>,
    %183 = vector.extract_strided_slice %116 {offsets = [0, 85], sizes = [16, 384], strides = [1, 1]} : vector<16x512xf32> to vector<16x384xf32>
    %c528 = arith.constant 528 : index
    %c0_99 = arith.constant 0 : index
    %184 = vector.load %arg10[%c528, %c0_99] : memref<784x384xf32, #tpu.memory_space<vmem>>, vector<16x384xf32>
    tpu.vector_store %arg10[%c528, %c0_99], %183 {strides = array<i32>} : memref<784x384xf32, #tpu.memory_space<vmem>>, vector<16x384xf32>,
    %185 = vector.extract_strided_slice %116 {offsets = [0, 86], sizes = [16, 384], strides = [1, 1]} : vector<16x512xf32> to vector<16x384xf32>
    %c544 = arith.constant 544 : index
    %c0_100 = arith.constant 0 : index
    %186 = vector.load %arg10[%c544, %c0_100] : memref<784x384xf32, #tpu.memory_space<vmem>>, vector<16x384xf32>
    tpu.vector_store %arg10[%c544, %c0_100], %185 {strides = array<i32>} : memref<784x384xf32, #tpu.memory_space<vmem>>, vector<16x384xf32>,
    %187 = vector.extract_strided_slice %116 {offsets = [0, 100], sizes = [16, 384], strides = [1, 1]} : vector<16x512xf32> to vector<16x384xf32>
    %c560 = arith.constant 560 : index
    %c0_101 = arith.constant 0 : index
    %188 = vector.load %arg10[%c560, %c0_101] : memref<784x384xf32, #tpu.memory_space<vmem>>, vector<16x384xf32>
    tpu.vector_store %arg10[%c560, %c0_101], %187 {strides = array<i32>} : memref<784x384xf32, #tpu.memory_space<vmem>>, vector<16x384xf32>,
    %189 = vector.extract_strided_slice %116 {offsets = [0, 101], sizes = [16, 384], strides = [1, 1]} : vector<16x512xf32> to vector<16x384xf32>
    %c576 = arith.constant 576 : index
    %c0_102 = arith.constant 0 : index
    %190 = vector.load %arg10[%c576, %c0_102] : memref<784x384xf32, #tpu.memory_space<vmem>>, vector<16x384xf32>
    tpu.vector_store %arg10[%c576, %c0_102], %189 {strides = array<i32>} : memref<784x384xf32, #tpu.memory_space<vmem>>, vector<16x384xf32>,
    %191 = vector.extract_strided_slice %116 {offsets = [0, 102], sizes = [16, 384], strides = [1, 1]} : vector<16x512xf32> to vector<16x384xf32>
    %c592 = arith.constant 592 : index
    %c0_103 = arith.constant 0 : index
    %192 = vector.load %arg10[%c592, %c0_103] : memref<784x384xf32, #tpu.memory_space<vmem>>, vector<16x384xf32>
    tpu.vector_store %arg10[%c592, %c0_103], %191 {strides = array<i32>} : memref<784x384xf32, #tpu.memory_space<vmem>>, vector<16x384xf32>,
    %193 = vector.extract_strided_slice %116 {offsets = [0, 103], sizes = [16, 384], strides = [1, 1]} : vector<16x512xf32> to vector<16x384xf32>
    %c608 = arith.constant 608 : index
    %c0_104 = arith.constant 0 : index
    %194 = vector.load %arg10[%c608, %c0_104] : memref<784x384xf32, #tpu.memory_space<vmem>>, vector<16x384xf32>
    tpu.vector_store %arg10[%c608, %c0_104], %193 {strides = array<i32>} : memref<784x384xf32, #tpu.memory_space<vmem>>, vector<16x384xf32>,
    %195 = vector.extract_strided_slice %116 {offsets = [0, 104], sizes = [16, 384], strides = [1, 1]} : vector<16x512xf32> to vector<16x384xf32>
    %c624 = arith.constant 624 : index
    %c0_105 = arith.constant 0 : index
    %196 = vector.load %arg10[%c624, %c0_105] : memref<784x384xf32, #tpu.memory_space<vmem>>, vector<16x384xf32>
    tpu.vector_store %arg10[%c624, %c0_105], %195 {strides = array<i32>} : memref<784x384xf32, #tpu.memory_space<vmem>>, vector<16x384xf32>,
    %197 = vector.extract_strided_slice %116 {offsets = [0, 105], sizes = [16, 384], strides = [1, 1]} : vector<16x512xf32> to vector<16x384xf32>
    %c640 = arith.constant 640 : index
    %c0_106 = arith.constant 0 : index
    %198 = vector.load %arg10[%c640, %c0_106] : memref<784x384xf32, #tpu.memory_space<vmem>>, vector<16x384xf32>
    tpu.vector_store %arg10[%c640, %c0_106], %197 {strides = array<i32>} : memref<784x384xf32, #tpu.memory_space<vmem>>, vector<16x384xf32>,
    %199 = vector.extract_strided_slice %116 {offsets = [0, 106], sizes = [16, 384], strides = [1, 1]} : vector<16x512xf32> to vector<16x384xf32>
    %c656 = arith.constant 656 : index
    %c0_107 = arith.constant 0 : index
    %200 = vector.load %arg10[%c656, %c0_107] : memref<784x384xf32, #tpu.memory_space<vmem>>, vector<16x384xf32>
    tpu.vector_store %arg10[%c656, %c0_107], %199 {strides = array<i32>} : memref<784x384xf32, #tpu.memory_space<vmem>>, vector<16x384xf32>,
    %201 = vector.extract_strided_slice %116 {offsets = [0, 120], sizes = [16, 384], strides = [1, 1]} : vector<16x512xf32> to vector<16x384xf32>
    %c672 = arith.constant 672 : index
    %c0_108 = arith.constant 0 : index
    %202 = vector.load %arg10[%c672, %c0_108] : memref<784x384xf32, #tpu.memory_space<vmem>>, vector<16x384xf32>
    tpu.vector_store %arg10[%c672, %c0_108], %201 {strides = array<i32>} : memref<784x384xf32, #tpu.memory_space<vmem>>, vector<16x384xf32>,
    %203 = vector.extract_strided_slice %116 {offsets = [0, 121], sizes = [16, 384], strides = [1, 1]} : vector<16x512xf32> to vector<16x384xf32>
    %c688 = arith.constant 688 : index
    %c0_109 = arith.constant 0 : index
    %204 = vector.load %arg10[%c688, %c0_109] : memref<784x384xf32, #tpu.memory_space<vmem>>, vector<16x384xf32>
    tpu.vector_store %arg10[%c688, %c0_109], %203 {strides = array<i32>} : memref<784x384xf32, #tpu.memory_space<vmem>>, vector<16x384xf32>,
    %205 = vector.extract_strided_slice %116 {offsets = [0, 122], sizes = [16, 384], strides = [1, 1]} : vector<16x512xf32> to vector<16x384xf32>
    %c704 = arith.constant 704 : index
    %c0_110 = arith.constant 0 : index
    %206 = vector.load %arg10[%c704, %c0_110] : memref<784x384xf32, #tpu.memory_space<vmem>>, vector<16x384xf32>
    tpu.vector_store %arg10[%c704, %c0_110], %205 {strides = array<i32>} : memref<784x384xf32, #tpu.memory_space<vmem>>, vector<16x384xf32>,
    %207 = vector.extract_strided_slice %116 {offsets = [0, 123], sizes = [16, 384], strides = [1, 1]} : vector<16x512xf32> to vector<16x384xf32>
    %c720 = arith.constant 720 : index
    %c0_111 = arith.constant 0 : index
    %208 = vector.load %arg10[%c720, %c0_111] : memref<784x384xf32, #tpu.memory_space<vmem>>, vector<16x384xf32>
    tpu.vector_store %arg10[%c720, %c0_111], %207 {strides = array<i32>} : memref<784x384xf32, #tpu.memory_space<vmem>>, vector<16x384xf32>,
    %209 = vector.extract_strided_slice %116 {offsets = [0, 124], sizes = [16, 384], strides = [1, 1]} : vector<16x512xf32> to vector<16x384xf32>
    %c736 = arith.constant 736 : index
    %c0_112 = arith.constant 0 : index
    %210 = vector.load %arg10[%c736, %c0_112] : memref<784x384xf32, #tpu.memory_space<vmem>>, vector<16x384xf32>
    tpu.vector_store %arg10[%c736, %c0_112], %209 {strides = array<i32>} : memref<784x384xf32, #tpu.memory_space<vmem>>, vector<16x384xf32>,
    %211 = vector.extract_strided_slice %116 {offsets = [0, 125], sizes = [16, 384], strides = [1, 1]} : vector<16x512xf32> to vector<16x384xf32>
    %c752 = arith.constant 752 : index
    %c0_113 = arith.constant 0 : index
    %212 = vector.load %arg10[%c752, %c0_113] : memref<784x384xf32, #tpu.memory_space<vmem>>, vector<16x384xf32>
    tpu.vector_store %arg10[%c752, %c0_113], %211 {strides = array<i32>} : memref<784x384xf32, #tpu.memory_space<vmem>>, vector<16x384xf32>,
    %213 = vector.extract_strided_slice %116 {offsets = [0, 126], sizes = [16, 384], strides = [1, 1]} : vector<16x512xf32> to vector<16x384xf32>
    %c768 = arith.constant 768 : index
    %c0_114 = arith.constant 0 : index
    %214 = vector.load %arg10[%c768, %c0_114] : memref<784x384xf32, #tpu.memory_space<vmem>>, vector<16x384xf32>
    tpu.vector_store %arg10[%c768, %c0_114], %213 {strides = array<i32>} : memref<784x384xf32, #tpu.memory_space<vmem>>, vector<16x384xf32>,
    %c0_115 = arith.constant 0 : index
    %c0_116 = arith.constant 0 : index
    %215 = vector.load %arg5[%c0_115, %c0_116] : memref<32x784xf32, #tpu.memory_space<vmem>>, vector<32x784xf32>
    %c0_117 = arith.constant 0 : index
    %c0_118 = arith.constant 0 : index
    %216 = vector.load %arg10[%c0_117, %c0_118] : memref<784x384xf32, #tpu.memory_space<vmem>>, vector<784x384xf32>
    %cst_119 = arith.constant dense<0.000000e+00> : vector<32x384xf32>
    %217 = tpu.matmul %215, %216, %cst_119 {dimension_numbers = #tpu.dot_dimension_numbers<[1], [0], [0], [1], [0, 0, 1, 1], [], []>} : vector<32x784xf32>, vector<784x384xf32>, vector<32x384xf32> -> vector<32x384xf32>
    %c0_120 = arith.constant 0 : index
    %c0_121 = arith.constant 0 : index
    %218 = vector.load %arg6[%c0_120, %c0_121] : memref<32x1xf32, #tpu.memory_space<vmem>>, vector<32x1xf32>
    %219 = vector.broadcast %218 : vector<32x1xf32> to vector<32x384xf32>
    %220 = arith.addf %217, %219 : vector<32x384xf32>
    %cst_122 = arith.constant 0.000000e+00 : f32
    %221 = vector.broadcast %cst_122 : f32 to vector<32x384xf32>
    %222 = arith.maximumf %220, %221 : vector<32x384xf32>
    %223 = vector.extract_strided_slice %222 {offsets = [0, 0], sizes = [32, 256], strides = [1, 1]} : vector<32x384xf32> to vector<32x256xf32>
    %224 = vector.extract_strided_slice %222 {offsets = [0, 1], sizes = [32, 256], strides = [1, 1]} : vector<32x384xf32> to vector<32x256xf32>
    %225 = arith.maximumf %223, %224 : vector<32x256xf32>
    %226 = vector.extract_strided_slice %222 {offsets = [0, 20], sizes = [32, 256], strides = [1, 1]} : vector<32x384xf32> to vector<32x256xf32>
    %227 = vector.extract_strided_slice %222 {offsets = [0, 21], sizes = [32, 256], strides = [1, 1]} : vector<32x384xf32> to vector<32x256xf32>
    %228 = arith.maximumf %226, %227 : vector<32x256xf32>
    %229 = arith.maximumf %225, %228 : vector<32x256xf32>
    %c0_123 = arith.constant 0 : index
    %c0_124 = arith.constant 0 : index
    %230 = vector.load %arg7[%c0_123, %c0_124] : memref<256x128xf32, #tpu.memory_space<vmem>>, vector<256x128xf32>
    %cst_125 = arith.constant dense<0.000000e+00> : vector<32x128xf32>
    %231 = tpu.matmul %229, %230, %cst_125 {dimension_numbers = #tpu.dot_dimension_numbers<[1], [0], [0], [1], [0, 0, 1, 1], [], []>} : vector<32x256xf32>, vector<256x128xf32>, vector<32x128xf32> -> vector<32x128xf32>
    %c0_126 = arith.constant 0 : index
    %c0_127 = arith.constant 0 : index
    %c0_128 = arith.constant 0 : index
    %232 = vector.load %arg8[%c0_126, %c0_127, %c0_128] : memref<1x32x128xf32, #tpu.memory_space<vmem>>, vector<1x32x128xf32>
    %233 = vector.shape_cast %232 : vector<1x32x128xf32> to vector<32x128xf32>
    %234 = vector.shape_cast %231 : vector<32x128xf32> to vector<1x32x128xf32>
    tpu.vector_store %arg8[%c0_126, %c0_127, %c0_128], %234 {strides = array<i32>} : memref<1x32x128xf32, #tpu.memory_space<vmem>>, vector<1x32x128xf32>,
    return
  }
  func.func @transform_0(%arg0: i32) -> (i32, i32, i32) {
    %c0_i32 = arith.constant 0 : i32
    %c0_i32_0 = arith.constant 0 : i32
    %c0_i32_1 = arith.constant 0 : i32
    return %arg0, %c0_i32, %c0_i32_0 : i32, i32, i32
  }
  func.func @transform_1(%arg0: i32) -> (i32, i32) {
    %c0_i32 = arith.constant 0 : i32
    %c0_i32_0 = arith.constant 0 : i32
    %c0_i32_1 = arith.constant 0 : i32
    return %c0_i32, %c0_i32_0 : i32, i32
  }
  func.func @transform_2(%arg0: i32) -> (i32, i32) {
    %c0_i32 = arith.constant 0 : i32
    %c0_i32_0 = arith.constant 0 : i32
    %c0_i32_1 = arith.constant 0 : i32
    return %c0_i32, %c0_i32_0 : i32, i32
  }
  func.func @transform_3(%arg0: i32) -> (i32, i32) {
    %c0_i32 = arith.constant 0 : i32
    %c0_i32_0 = arith.constant 0 : i32
    %c0_i32_1 = arith.constant 0 : i32
    return %c0_i32, %c0_i32_0 : i32, i32
  }
  func.func @transform_4(%arg0: i32) -> (i32, i32) {
    %c0_i32 = arith.constant 0 : i32
    %c0_i32_0 = arith.constant 0 : i32
    %c0_i32_1 = arith.constant 0 : i32
    return %c0_i32, %c0_i32_0 : i32, i32
  }
  func.func @transform_5(%arg0: i32) -> (i32, i32) {
    %c0_i32 = arith.constant 0 : i32
    %c0_i32_0 = arith.constant 0 : i32
    %c0_i32_1 = arith.constant 0 : i32
    return %c0_i32, %c0_i32_0 : i32, i32
  }
  func.func @transform_6(%arg0: i32) -> (i32, i32) {
    %c0_i32 = arith.constant 0 : i32
    %c0_i32_0 = arith.constant 0 : i32
    %c0_i32_1 = arith.constant 0 : i32
    return %c0_i32, %c0_i32_0 : i32, i32
  }
  func.func @transform_7(%arg0: i32) -> (i32, i32, i32) {
    %c0_i32 = arith.constant 0 : i32
    %c0_i32_0 = arith.constant 0 : i32
    %c0_i32_1 = arith.constant 0 : i32
    return %arg0, %c0_i32, %c0_i32_0 : i32, i32, i32
  }
}

module attributes {stable_mosaic.version = 11 : i64} {
  func.func @_fc_kernel(%arg0: memref<2x4096xf32, #tpu.memory_space<vmem>>, %arg1: memref<4096x10xf32, #tpu.memory_space<vmem>>, %arg2: memref<1x10xf32, #tpu.memory_space<vmem>>, %arg3: memref<2x10xf32, #tpu.memory_space<vmem>>) attributes {dimension_semantics = [], scalar_prefetch = 0 : i64, scratch_operands = 0 : i64, tpu.core_type = #tpu.core_type<tc>} {
    %c0 = arith.constant 0 : index
    %c0_0 = arith.constant 0 : index
    %0 = vector.load %arg0[%c0, %c0_0] : memref<2x4096xf32, #tpu.memory_space<vmem>>, vector<2x4096xf32>
    %c0_1 = arith.constant 0 : index
    %c0_2 = arith.constant 0 : index
    %1 = vector.load %arg1[%c0_1, %c0_2] : memref<4096x10xf32, #tpu.memory_space<vmem>>, vector<4096x10xf32>
    %cst = arith.constant dense<0.000000e+00> : vector<2x10xf32>
    %2 = tpu.matmul %0, %1, %cst {dimension_numbers = #tpu.dot_dimension_numbers<[1], [0], [0], [1], [0, 0, 1, 1], [], []>} : vector<2x4096xf32>, vector<4096x10xf32>, vector<2x10xf32> -> vector<2x10xf32>
    %c0_3 = arith.constant 0 : index
    %c0_4 = arith.constant 0 : index
    %3 = vector.load %arg2[%c0_3, %c0_4] : memref<1x10xf32, #tpu.memory_space<vmem>>, vector<1x10xf32>
    %4 = vector.broadcast %3 : vector<1x10xf32> to vector<2x10xf32>
    %5 = arith.addf %2, %4 : vector<2x10xf32>
    %c0_5 = arith.constant 0 : index
    %c0_6 = arith.constant 0 : index
    %6 = vector.load %arg3[%c0_5, %c0_6] : memref<2x10xf32, #tpu.memory_space<vmem>>, vector<2x10xf32>
    tpu.vector_store %arg3[%c0_5, %c0_6], %5 {strides = array<i32>} : memref<2x10xf32, #tpu.memory_space<vmem>>, vector<2x10xf32>,
    return
  }
}

</mosaic_0001>

<bundles_post_ra>
// kernel: cnn_kernel_7x7_forward.3
= control target key start
LH: loop header
LB: loop body
LE: loop exit
PB: predicated region body
PF: predicated region fallthrough
CT: control target
= control target key end

     0   :  { %v2961_v47 = vmov 1983009808   ;;  %v554_v49 = vlaneseq  ;;  %s4646_s0 = inlined_call_operand.vmem [shape: f32[2,4096], index: 0, kind: input, shape index: {}]   ;;  %s4647_s1 = inlined_call_operand.vmem [shape: f32[4096,10], index: 1, kind: input, shape index: {}]   ;;  %s4648_s2 = inlined_call_operand.vmem [shape: f32[1,10], index: 2, kind: input, shape index: {}]   ;;  %s4649_s3 = inlined_call_operand.hbm [shape: f32[2,10], index: 3, kind: output, shape index: {}]  }
   0x1   :  { %v39_v0 = vld [vmem:[%s4647_s1 + $0x80] sm:$0xff]  ;;  %v40_v1 = vld [vmem:[%s4647_s1 + $0x88] sm:$0xff]  ;;  %v41_v11 = vld [vmem:[%s4647_s1 + $0x90] sm:$0xff]  ;;  %v552_v48 = vunpack.c.l.s4 %v2961_v47 }
   0x2   :  { %v23_v2 = vld [vmem:[%s4647_s1] sm:$0xff]  ;;  %v2415_v3 = vpack.c.bf16 %v40_v1, %v39_v0  ;;  %v24_v4 = vld [vmem:[%s4647_s1 + $0x8] sm:$0xff]  ;;  %v42_v13 = vld [vmem:[%s4647_s1 + $0x98] sm:$0xff]  ;;  %v555_v0 = vshrl.u32 %v554_v49, 7 }
   0x3   :  { %v71_v5 = vld [vmem:[%s4647_s1 + $0x180] sm:$0xff]  ;;  %v72_v6 = vld [vmem:[%s4647_s1 + $0x188] sm:$0xff]  ;;  %v2417_v7 = vpack.c.bf16 %v24_v4, %v23_v2  ;;  %v25_v14 = vld [vmem:[%s4647_s1 + $0x10] sm:$0xff]  ;;  %v2419_v16 = vpack.c.bf16 %v42_v13, %v41_v11  ;;  %v553_v63 = vunpack.c.0.s8 %v552_v48 }
   0x4   :  { %v2447_v8 = vpack.c.bf16 %v72_v6, %v71_v5  ;;  %v55_v9 = vld [vmem:[%s4647_s1 + $0x100] sm:$0xff]  ;;  %v56_v10 = vld [vmem:[%s4647_s1 + $0x108] sm:$0xff]  ;;  %2416 = vmatprep.subr.bf16.mxu0 %v2415_v3  ;;  %v26_v15 = vld [vmem:[%s4647_s1 + $0x18] sm:$0xff] }
   0x5   :  { %v2449_v12 = vpack.c.bf16 %v56_v10, %v55_v9  ;;  %2418 = vmatpush3.bf16.msra.mxu0 %v2417_v7  ;;  %v2421_v17 = vpack.c.bf16 %v26_v15, %v25_v14  ;;  %v73_v18 = vld [vmem:[%s4647_s1 + $0x190] sm:$0xff]  ;;  %v74_v19 = vld [vmem:[%s4647_s1 + $0x198] sm:$0xff]  ;;  %v43_v23 = vld [vmem:[%s4647_s1 + $0xa0] sm:$0xff]  ;;  %v3133_v13 = vsub.s32 %v553_v63, %v555_v0 }
   0x6   :  { %2448 = vmatprep.subr.bf16.mxu1 %v2447_v8  ;;  %v57_v20 = vld [vmem:[%s4647_s1 + $0x110] sm:$0xff]  ;;  %v2451_v21 = vpack.c.bf16 %v74_v19, %v73_v18  ;;  %v58_v22 = vld [vmem:[%s4647_s1 + $0x118] sm:$0xff]  ;;  %v44_v24 = vld [vmem:[%s4647_s1 + $0xa8] sm:$0xff]  ;;  %2420 = vmatprep.subr.bf16.mxu0 %v2419_v16 }
   0x7   :  { %2450 = vmatpush3.bf16.msra.mxu1 %v2449_v12  ;;  %v2453_v25 = vpack.c.bf16 %v58_v22, %v57_v20  ;;  %v2423_v26 = vpack.c.bf16 %v44_v24, %v43_v23  ;;  %v27_v27 = vld [vmem:[%s4647_s1 + $0x20] sm:$0xff]  ;;  %v28_v28 = vld [vmem:[%s4647_s1 + $0x28] sm:$0xff]  ;;  %v45_v35 = vld [vmem:[%s4647_s1 + $0xb0] sm:$0xff] }
   0x8   :  { %v75_v29 = vld [vmem:[%s4647_s1 + $0x1a0] sm:$0xff]  ;;  %2452 = vmatprep.subr.bf16.mxu1 %v2451_v21  ;;  %v76_v30 = vld [vmem:[%s4647_s1 + $0x1a8] sm:$0xff]  ;;  %v2425_v33 = vpack.c.bf16 %v28_v28, %v27_v27  ;;  %v46_v36 = vld [vmem:[%s4647_s1 + $0xb8] sm:$0xff] }
   0x9   :  { %v59_v31 = vld [vmem:[%s4647_s1 + $0x120] sm:$0xff]  ;;  %v60_v32 = vld [vmem:[%s4647_s1 + $0x128] sm:$0xff]  ;;  %2422 = vmatpush3.bf16.msra.mxu0 %v2421_v17  ;;  %v2455_v34 = vpack.c.bf16 %v76_v30, %v75_v29  ;;  %v29_v37 = vld [vmem:[%s4647_s1 + $0x30] sm:$0xff]  ;;  %v2427_v39 = vpack.c.bf16 %v46_v36, %v45_v35 }
   0xa   :  { %2424 = vmatprep.subr.bf16.mxu0 %v2423_v26  ;;  %v2457_v38 = vpack.c.bf16 %v60_v32, %v59_v31  ;;  %v30_v40 = vld [vmem:[%s4647_s1 + $0x38] sm:$0xff]  ;;  %v77_v41 = vld [vmem:[%s4647_s1 + $0x1b0] sm:$0xff]  ;;  %v47_v46 = vld [vmem:[%s4647_s1 + $0xc0] sm:$0xff] }
   0xb   :  { %2454 = vmatpush3.bf16.msra.mxu1 %v2453_v25  ;;  %v78_v42 = vld [vmem:[%s4647_s1 + $0x1b8] sm:$0xff]  ;;  %v61_v44 = vld [vmem:[%s4647_s1 + $0x130] sm:$0xff]  ;;  %v48_v50 = vld [vmem:[%s4647_s1 + $0xc8] sm:$0xff]  ;;  %v2429_v51 = vpack.c.bf16 %v30_v40, %v29_v37 }
   0xc   :  { %2456 = vmatprep.subr.bf16.mxu1 %v2455_v34  ;;  %v2459_v43 = vpack.c.bf16 %v78_v42, %v77_v41  ;;  %v62_v45 = vld [vmem:[%s4647_s1 + $0x138] sm:$0xff]  ;;  %v79_v52 = vld [vmem:[%s4647_s1 + $0x1c0] sm:$0xff]  ;;  %v80_v53 = vld [vmem:[%s4647_s1 + $0x1c8] sm:$0xff]  ;;  %v2431_v55 = vpack.c.bf16 %v48_v50, %v47_v46 }
   0xd   :  { %2426 = vmatpush3.bf16.msra.mxu0 %v2425_v33  ;;  %v2461_v54 = vpack.c.bf16 %v62_v45, %v61_v44  ;;  %v31_v56 = vld [vmem:[%s4647_s1 + $0x40] sm:$0xff]  ;;  %v32_v57 = vld [vmem:[%s4647_s1 + $0x48] sm:$0xff]  ;;  %v2463_v59 = vpack.c.bf16 %v80_v53, %v79_v52  ;;  %v49_v61 = vld [vmem:[%s4647_s1 + $0xd0] sm:$0xff] }
   0xe   :  { %2428 = vmatprep.subr.bf16.mxu0 %v2427_v39  ;;  %v63_v58 = vld [vmem:[%s4647_s1 + $0x140] sm:$0xff]  ;;  %v64_v60 = vld [vmem:[%s4647_s1 + $0x148] sm:$0xff]  ;;  %v50_v62 = vld [vmem:[%s4647_s1 + $0xd8] sm:$0xff]  ;;  %v2433_v3 = vpack.c.bf16 %v32_v57, %v31_v56 }
   0xf   :  { %2458 = vmatpush3.bf16.msra.mxu1 %v2457_v38  ;;  %v81_v1 = vld [vmem:[%s4647_s1 + $0x1d0] sm:$0xff]  ;;  %v82_v2 = vld [vmem:[%s4647_s1 + $0x1d8] sm:$0xff]  ;;  %v2465_v4 = vpack.c.bf16 %v64_v60, %v63_v58  ;;  %v2435_v5 = vpack.c.bf16 %v50_v62, %v49_v61  ;;  %v51_v11 = vld [vmem:[%s4647_s1 + $0xe0] sm:$0xff] }
  0x10   :  { %2460 = vmatprep.subr.bf16.mxu1 %v2459_v43  ;;  %v33_v6 = vld [vmem:[%s4647_s1 + $0x50] sm:$0xff]  ;;  %v34_v7 = vld [vmem:[%s4647_s1 + $0x58] sm:$0xff]  ;;  %v2467_v9 = vpack.c.bf16 %v82_v2, %v81_v1  ;;  %v52_v12 = vld [vmem:[%s4647_s1 + $0xe8] sm:$0xff] }
  0x11   :  { %2430 = vmatpush3.bf16.msra.mxu0 %v2429_v51  ;;  %v65_v8 = vld [vmem:[%s4647_s1 + $0x150] sm:$0xff]  ;;  %v66_v10 = vld [vmem:[%s4647_s1 + $0x158] sm:$0xff]  ;;  %v83_v14 = vld [vmem:[%s4647_s1 + $0x1e0] sm:$0xff]  ;;  %v2437_v16 = vpack.c.bf16 %v34_v7, %v33_v6  ;;  %v2439_v19 = vpack.c.bf16 %v52_v12, %v51_v11 }
  0x12   :  { %2432 = vmatprep.subr.bf16.mxu0 %v2431_v55  ;;  %v84_v15 = vld [vmem:[%s4647_s1 + $0x1e8] sm:$0xff]  ;;  %v35_v17 = vld [vmem:[%s4647_s1 + $0x60] sm:$0xff]  ;;  %v2469_v18 = vpack.c.bf16 %v66_v10, %v65_v8  ;;  %v53_v25 = vld [vmem:[%s4647_s1 + $0xf0] sm:$0xff] }
  0x13   :  { %2462 = vmatpush3.bf16.msra.mxu1 %v2461_v54  ;;  %v36_v20 = vld [vmem:[%s4647_s1 + $0x68] sm:$0xff]  ;;  %v67_v21 = vld [vmem:[%s4647_s1 + $0x160] sm:$0xff]  ;;  %v2471_v23 = vpack.c.bf16 %v84_v15, %v83_v14  ;;  %v54_v26 = vld [vmem:[%s4647_s1 + $0xf8] sm:$0xff] }
  0x14   :  { %2464 = vmatprep.subr.bf16.mxu1 %v2463_v59  ;;  %v15_v22 = vld [vmem:[%s4646_s0] sm:$0xff]  ;;  %v68_v24 = vld [vmem:[%s4647_s1 + $0x168] sm:$0xff]  ;;  %v85_v29 = vld [vmem:[%s4647_s1 + $0x1f0] sm:$0xff]  ;;  %v2441_v31 = vpack.c.bf16 %v36_v20, %v35_v17  ;;  %v2443_v35 = vpack.c.bf16 %v54_v26, %v53_v25 }
  0x15   :  { %2434 = vmatpush3.bf16.msra.mxu0 %v2433_v3  ;;  %v557_v27 = vrot.slane %v15_v22, %v3133_v13  ;;  %v550_v28 = vcombine.high %v15_v22, %v15_v22  ;;  %v86_v30 = vld [vmem:[%s4647_s1 + $0x1f8] sm:$0xff]  ;;  %v2473_v34 = vpack.c.bf16 %v68_v24, %v67_v21  ;;  %v37_v36 = vld [vmem:[%s4647_s1 + $0x70] sm:$0xff]  ;;  %v103_v41 = vld [vmem:[%s4647_s1 + $0x280] sm:$0xff] }
  0x16   :  { %2436 = vmatprep.subr.bf16.mxu0 %v2435_v5  ;;  %v38_v37 = vld [vmem:[%s4647_s1 + $0x78] sm:$0xff]  ;;  %v69_v38 = vld [vmem:[%s4647_s1 + $0x170] sm:$0xff]  ;;  %v2475_v39 = vpack.c.bf16 %v86_v30, %v85_v29  ;;  %v104_v42 = vld [vmem:[%s4647_s1 + $0x288] sm:$0xff] }
  0x17   :  { %2466 = vmatpush3.bf16.msra.mxu1 %v2465_v4  ;;  %v565_v32 = vcombine.high %v557_v27, %v557_v27  ;;  %v564_v33 = vrot.slane %v550_v28, %v3133_v13  ;;  %v70_v40 = vld [vmem:[%s4647_s1 + $0x178] sm:$0xff]  ;;  %v135_v44 = vld [vmem:[%s4647_s1 + $0x380] sm:$0xff]  ;;  %v136_v45 = vld [vmem:[%s4647_s1 + $0x388] sm:$0xff]  ;;  %v2445_v46 = vpack.c.bf16 %v38_v37, %v37_v36  ;;  %v2479_v48 = vpack.c.bf16 %v104_v42, %v103_v41 }
  0x18   :  { %2468 = vmatprep.subr.bf16.mxu1 %v2467_v9  ;;  %v2477_v47 = vpack.c.bf16 %v70_v40, %v69_v38  ;;  %v87_v49 = vld [vmem:[%s4647_s1 + $0x200] sm:$0xff]  ;;  %v88_v50 = vld [vmem:[%s4647_s1 + $0x208] sm:$0xff]  ;;  %v2511_v52 = vpack.c.bf16 %v136_v45, %v135_v44  ;;  %v105_v54 = vld [vmem:[%s4647_s1 + $0x290] sm:$0xff] }
  0x19   :  { %2438 = vmatpush3.bf16.msra.mxu0 %v2437_v16  ;;  %782 = vmatprep.mubr.f32.mxu0 %v565_v32  ;;  %v566_v43 = vcombine.high %v564_v33, %v564_v33  ;;  %v119_v51 = vld [vmem:[%s4647_s1 + $0x300] sm:$0xff]  ;;  %v120_v53 = vld [vmem:[%s4647_s1 + $0x308] sm:$0xff]  ;;  %v106_v55 = vld [vmem:[%s4647_s1 + $0x298] sm:$0xff]  ;;  %v2481_v58 = vpack.c.bf16 %v88_v50, %v87_v49 }
  0x1a   :  { %2440 = vmatprep.subr.bf16.mxu0 %v2439_v19  ;;  %v137_v56 = vld [vmem:[%s4647_s1 + $0x390] sm:$0xff]  ;;  %v138_v57 = vld [vmem:[%s4647_s1 + $0x398] sm:$0xff]  ;;  %v2513_v59 = vpack.c.bf16 %v120_v53, %v119_v51  ;;  %v2483_v60 = vpack.c.bf16 %v106_v55, %v105_v54  ;;  %v107_v2 = vld [vmem:[%s4647_s1 + $0x2a0] sm:$0xff] }
  0x1b   :  { %2470 = vmatpush3.bf16.msra.mxu1 %v2469_v18  ;;  %852 = vmatprep.mubr.f32.mxu1 %v566_v43  ;;  %v89_v61 = vld [vmem:[%s4647_s1 + $0x210] sm:$0xff]  ;;  %v90_v62 = vld [vmem:[%s4647_s1 + $0x218] sm:$0xff]  ;;  %v2515_v0 = vpack.c.bf16 %v138_v57, %v137_v56  ;;  %v108_v3 = vld [vmem:[%s4647_s1 + $0x2a8] sm:$0xff] }
  0x1c   :  { %2472 = vmatprep.subr.bf16.mxu1 %v2471_v23  ;;  %v121_v63 = vld [vmem:[%s4647_s1 + $0x310] sm:$0xff]  ;;  %v122_v1 = vld [vmem:[%s4647_s1 + $0x318] sm:$0xff]  ;;  %v139_v4 = vld [vmem:[%s4647_s1 + $0x3a0] sm:$0xff]  ;;  %v2485_v6 = vpack.c.bf16 %v90_v62, %v89_v61  ;;  %v2487_v8 = vpack.c.bf16 %v108_v3, %v107_v2 }
  0x1d   :  { %2442 = vmatpush3.bf16.msra.mxu0 %v2441_v31  ;;  %v140_v5 = vld [vmem:[%s4647_s1 + $0x3a8] sm:$0xff]  ;;  %v2517_v7 = vpack.c.bf16 %v122_v1, %v121_v63  ;;  %v91_v9 = vld [vmem:[%s4647_s1 + $0x220] sm:$0xff]  ;;  %v109_v15 = vld [vmem:[%s4647_s1 + $0x2b0] sm:$0xff] }
  0x1e   :  { %2444 = vmatprep.subr.bf16.mxu0 %v2443_v35  ;;  %v92_v10 = vld [vmem:[%s4647_s1 + $0x228] sm:$0xff]  ;;  %v123_v11 = vld [vmem:[%s4647_s1 + $0x320] sm:$0xff]  ;;  %v2519_v12 = vpack.c.bf16 %v140_v5, %v139_v4  ;;  %v110_v16 = vld [vmem:[%s4647_s1 + $0x2b8] sm:$0xff] }
  0x1f   :  { %2474 = vmatpush3.bf16.msra.mxu1 %v2473_v34  ;;  %v124_v14 = vld [vmem:[%s4647_s1 + $0x328] sm:$0xff]  ;;  %v141_v17 = vld [vmem:[%s4647_s1 + $0x3b0] sm:$0xff]  ;;  %v142_v18 = vld [vmem:[%s4647_s1 + $0x3b8] sm:$0xff]  ;;  %v2489_v19 = vpack.c.bf16 %v92_v10, %v91_v9  ;;  %v2491_v21 = vpack.c.bf16 %v110_v16, %v109_v15 }
  0x20   :  { %2476 = vmatprep.subr.bf16.mxu1 %v2475_v39  ;;  %v2521_v20 = vpack.c.bf16 %v124_v14, %v123_v11  ;;  %v93_v22 = vld [vmem:[%s4647_s1 + $0x230] sm:$0xff]  ;;  %v94_v23 = vld [vmem:[%s4647_s1 + $0x238] sm:$0xff]  ;;  %v2523_v25 = vpack.c.bf16 %v142_v18, %v141_v17  ;;  %v112_v28 = vld [vmem:[%s4647_s1 + $0x2c8] sm:$0xff] }
  0x21   :  { %2446 = vmatpush3.bf16.msra.mxu0 %v2445_v46  ;;  %v125_v24 = vld [vmem:[%s4647_s1 + $0x330] sm:$0xff]  ;;  %v126_v26 = vld [vmem:[%s4647_s1 + $0x338] sm:$0xff]  ;;  %v143_v29 = vld [vmem:[%s4647_s1 + $0x3c0] sm:$0xff]  ;;  %v2493_v32 = vpack.c.bf16 %v94_v23, %v93_v22 }
  0x22   :  { %2480 = vmatprep.subr.bf16.mxu0 %v2479_v48  ;;  %v144_v30 = vld [vmem:[%s4647_s1 + $0x3c8] sm:$0xff]  ;;  %v2525_v35 = vpack.c.bf16 %v126_v26, %v125_v24  ;;  %v95_v37 = vld [vmem:[%s4647_s1 + $0x240] sm:$0xff]  ;;  %v113_v42 = vld [vmem:[%s4647_s1 + $0x2d0] sm:$0xff] }
  0x23   :  { %2478 = vmatpush3.bf16.msra.mxu1 %v2477_v47  ;;  %v16_v31 = vld [vmem:[%s4646_s0 + $0x8] sm:$0xff]  ;;  %v127_v39 = vld [vmem:[%s4647_s1 + $0x340] sm:$0xff]  ;;  %v2527_v40 = vpack.c.bf16 %v144_v30, %v143_v29  ;;  %v114_v43 = vld [vmem:[%s4647_s1 + $0x2d8] sm:$0xff] }
  0x24   :  { %2512 = vmatprep.subr.bf16.mxu1 %v2511_v52  ;;  %783 = vmatmul.mubr.f32.vlgmr.msra.gmra.mrb[0].mxu0 %v557_v27  ;;  %v111_v27 = vld [vmem:[%s4647_s1 + $0x2c0] sm:$0xff]  ;;  %v567_v34 = vcombine.high %v16_v31, %v16_v31  ;;  %v96_v38 = vld [vmem:[%s4647_s1 + $0x248] sm:$0xff]  ;;  %v145_v46 = vld [vmem:[%s4647_s1 + $0x3d0] sm:$0xff]  ;;  %v2499_v51 = vpack.c.bf16 %v114_v43, %v113_v42 }
  0x25   :  { %2482 = vmatpush3.bf16.msra.mxu0 %v2481_v58  ;;  %v2495_v36 = vpack.c.bf16 %v112_v28, %v111_v27  ;;  %v128_v41 = vld [vmem:[%s4647_s1 + $0x348] sm:$0xff]  ;;  %v146_v47 = vld [vmem:[%s4647_s1 + $0x3d8] sm:$0xff]  ;;  %v2497_v48 = vpack.c.bf16 %v96_v38, %v95_v37  ;;  %v97_v52 = vld [vmem:[%s4647_s1 + $0x250] sm:$0xff] }
  0x26   :  { %853 = vmatmul.mubr.f32.vlgmr.msra.gmra.mrb[0].mxu1 %v564_v33  ;;  %2484 = vmatprep.subr.bf16.mxu0 %v2483_v60  ;;  %v3294_v33 = vrot.slane %v16_v31, %v3133_v13  ;;  %v3317_v45 = vrot.slane %v567_v34, %v3133_v13  ;;  %v2529_v50 = vpack.c.bf16 %v128_v41, %v127_v39  ;;  %v98_v53 = vld [vmem:[%s4647_s1 + $0x258] sm:$0xff]  ;;  %v129_v54 = vld [vmem:[%s4647_s1 + $0x350] sm:$0xff]  ;;  %v115_v57 = vld [vmem:[%s4647_s1 + $0x2e0] sm:$0xff] }
  0x27   :  { %2514 = vmatpush3.bf16.msra.mxu1 %v2513_v59  ;;  %v2531_v55 = vpack.c.bf16 %v146_v47, %v145_v46  ;;  %v130_v56 = vld [vmem:[%s4647_s1 + $0x358] sm:$0xff]  ;;  %v116_v58 = vld [vmem:[%s4647_s1 + $0x2e8] sm:$0xff]  ;;  %v147_v59 = vld [vmem:[%s4647_s1 + $0x3e0] sm:$0xff]  ;;  %v2501_v61 = vpack.c.bf16 %v98_v53, %v97_v52 }
  0x28   :  { %2516 = vmatprep.subr.bf16.mxu1 %v2515_v0  ;;  %v582_v44 = vcombine.high %v3294_v33, %v3294_v33  ;;  %v583_v49 = vcombine.high %v3317_v45, %v3317_v45  ;;  %v148_v60 = vld [vmem:[%s4647_s1 + $0x3e8] sm:$0xff]  ;;  %v2533_v62 = vpack.c.bf16 %v130_v56, %v129_v54  ;;  %v2503_v63 = vpack.c.bf16 %v116_v58, %v115_v57  ;;  %v99_v0 = vld [vmem:[%s4647_s1 + $0x260] sm:$0xff]  ;;  %v117_v5 = vld [vmem:[%s4647_s1 + $0x2f0] sm:$0xff] }
  0x29   :  { %2486 = vmatpush3.bf16.msra.mxu0 %v2485_v6  ;;  %v100_v1 = vld [vmem:[%s4647_s1 + $0x268] sm:$0xff]  ;;  %v131_v2 = vld [vmem:[%s4647_s1 + $0x360] sm:$0xff]  ;;  %v2535_v3 = vpack.c.bf16 %v148_v60, %v147_v59  ;;  %v118_v6 = vld [vmem:[%s4647_s1 + $0x2f8] sm:$0xff] }
  0x2a   :  { %2488 = vmatprep.subr.bf16.mxu0 %v2487_v8  ;;  %922 = vmatprep.mubr.f32.mxu0 %v582_v44  ;;  %v132_v4 = vld [vmem:[%s4647_s1 + $0x368] sm:$0xff]  ;;  %v150_v8 = vld [vmem:[%s4647_s1 + $0x3f8] sm:$0xff]  ;;  %v2505_v9 = vpack.c.bf16 %v100_v1, %v99_v0  ;;  %v2507_v11 = vpack.c.bf16 %v118_v6, %v117_v5  ;;  %v133_v15 = vld [vmem:[%s4647_s1 + $0x370] sm:$0xff] }
  0x2b   :  { %2518 = vmatpush3.bf16.msra.mxu1 %v2517_v7  ;;  %992 = vmatprep.mubr.f32.mxu1 %v583_v49  ;;  %v149_v7 = vld [vmem:[%s4647_s1 + $0x3f0] sm:$0xff]  ;;  %v2537_v10 = vpack.c.bf16 %v132_v4, %v131_v2  ;;  %v102_v14 = vld [vmem:[%s4647_s1 + $0x278] sm:$0xff]  ;;  %v167_v18 = vld [vmem:[%s4647_s1 + $0x480] sm:$0xff] }
  0x2c   :  { %2520 = vmatprep.subr.bf16.mxu1 %v2519_v12  ;;  %v101_v12 = vld [vmem:[%s4647_s1 + $0x270] sm:$0xff]  ;;  %v2539_v16 = vpack.c.bf16 %v150_v8, %v149_v7  ;;  %v134_v17 = vld [vmem:[%s4647_s1 + $0x378] sm:$0xff]  ;;  %v151_v23 = vld [vmem:[%s4647_s1 + $0x400] sm:$0xff] }
  0x2d   :  { %2490 = vmatpush3.bf16.msra.mxu0 %v2489_v19  ;;  %v168_v19 = vld [vmem:[%s4647_s1 + $0x488] sm:$0xff]  ;;  %v2509_v22 = vpack.c.bf16 %v102_v14, %v101_v12  ;;  %v2541_v24 = vpack.c.bf16 %v134_v17, %v133_v15  ;;  %v183_v27 = vld [vmem:[%s4647_s1 + $0x500] sm:$0xff]  ;;  %v169_v30 = vld [vmem:[%s4647_s1 + $0x490] sm:$0xff] }
  0x2e   :  { %2492 = vmatprep.subr.bf16.mxu0 %v2491_v21  ;;  %v200_v21 = vld [vmem:[%s4647_s1 + $0x588] sm:$0xff]  ;;  %v170_v31 = vld [vmem:[%s4647_s1 + $0x498] sm:$0xff]  ;;  %v17_v37 = vld [vmem:[%s4646_s0 + $0x10] sm:$0xff] }
  0x2f   :  { %2522 = vmatpush3.bf16.msra.mxu1 %v2521_v20  ;;  %v199_v20 = vld [vmem:[%s4647_s1 + $0x580] sm:$0xff]  ;;  %v152_v26 = vld [vmem:[%s4647_s1 + $0x408] sm:$0xff]  ;;  %v202_v34 = vld [vmem:[%s4647_s1 + $0x598] sm:$0xff]  ;;  %v2547_v38 = vpack.c.bf16 %v170_v31, %v169_v30  ;;  %v3436_v42 = vrot.slane %v17_v37, %v3133_v13  ;;  %v584_v43 = vcombine.high %v17_v37, %v17_v37 }
  0x30   :  { %2524 = vmatprep.subr.bf16.mxu1 %v2523_v25  ;;  %v2543_v25 = vpack.c.bf16 %v168_v19, %v167_v18  ;;  %v184_v28 = vld [vmem:[%s4647_s1 + $0x508] sm:$0xff]  ;;  %v2575_v29 = vpack.c.bf16 %v200_v21, %v199_v20  ;;  %v153_v39 = vld [vmem:[%s4647_s1 + $0x410] sm:$0xff]  ;;  %v186_v46 = vld [vmem:[%s4647_s1 + $0x518] sm:$0xff] }
  0x31   :  { %2494 = vmatpush3.bf16.msra.mxu0 %v2493_v32  ;;  %v201_v32 = vld [vmem:[%s4647_s1 + $0x590] sm:$0xff]  ;;  %v171_v47 = vld [vmem:[%s4647_s1 + $0x4a0] sm:$0xff]  ;;  %v3457_v52 = vrot.slane %v584_v43, %v3133_v13  ;;  %v156_v56 = vld [vmem:[%s4647_s1 + $0x428] sm:$0xff] }
  0x32   :  { %2496 = vmatprep.subr.bf16.mxu0 %v2495_v36  ;;  %v2577_v36 = vpack.c.bf16 %v184_v28, %v183_v27  ;;  %v185_v41 = vld [vmem:[%s4647_s1 + $0x510] sm:$0xff]  ;;  %v2579_v44 = vpack.c.bf16 %v202_v34, %v201_v32  ;;  %v203_v49 = vld [vmem:[%s4647_s1 + $0x5a0] sm:$0xff]  ;;  %v188_v59 = vld [vmem:[%s4647_s1 + $0x528] sm:$0xff] }
  0x33   :  { %2526 = vmatpush3.bf16.msra.mxu1 %v2525_v35  ;;  %v2545_v35 = vpack.c.bf16 %v152_v26, %v151_v23  ;;  %v187_v57 = vld [vmem:[%s4647_s1 + $0x520] sm:$0xff]  ;;  %v173_v60 = vld [vmem:[%s4647_s1 + $0x4b0] sm:$0xff]  ;;  %v158_v4 = vld [vmem:[%s4647_s1 + $0x438] sm:$0xff] }
  0x34   :  { %2528 = vmatprep.subr.bf16.mxu1 %v2527_v40  ;;  %v154_v40 = vld [vmem:[%s4647_s1 + $0x418] sm:$0xff]  ;;  %v2585_v1 = vpack.c.bf16 %v188_v59, %v187_v57  ;;  %v189_v5 = vld [vmem:[%s4647_s1 + $0x530] sm:$0xff]  ;;  %v175_v8 = vld [vmem:[%s4647_s1 + $0x4c0] sm:$0xff] }
  0x35   :  { %2498 = vmatpush3.bf16.msra.mxu0 %v2497_v48  ;;  %v172_v48 = vld [vmem:[%s4647_s1 + $0x4a8] sm:$0xff]  ;;  %v2549_v53 = vpack.c.bf16 %v154_v40, %v153_v39  ;;  %v190_v7 = vld [vmem:[%s4647_s1 + $0x538] sm:$0xff]  ;;  %v191_v18 = vld [vmem:[%s4647_s1 + $0x540] sm:$0xff] }
  0x36   :  { %2500 = vmatprep.subr.bf16.mxu0 %v2499_v51  ;;  %v599_v51 = vcombine.high %v3436_v42, %v3436_v42  ;;  %v2551_v54 = vpack.c.bf16 %v172_v48, %v171_v47  ;;  %v2589_v14 = vpack.c.bf16 %v190_v7, %v189_v5  ;;  %v160_v17 = vld [vmem:[%s4647_s1 + $0x448] sm:$0xff]  ;;  %v177_v21 = vld [vmem:[%s4647_s1 + $0x4d0] sm:$0xff]  ;;  %v194_v32 = vld [vmem:[%s4647_s1 + $0x558] sm:$0xff] }
  0x37   :  { %2530 = vmatpush3.bf16.msra.mxu1 %v2529_v50  ;;  %v204_v50 = vld [vmem:[%s4647_s1 + $0x5a8] sm:$0xff]  ;;  %v209_v23 = vld [vmem:[%s4647_s1 + $0x5d0] sm:$0xff]  ;;  %v179_v34 = vld [vmem:[%s4647_s1 + $0x4e0] sm:$0xff] }
  0x38   :  { %2532 = vmatprep.subr.bf16.mxu1 %v2531_v55  ;;  %v155_v55 = vld [vmem:[%s4647_s1 + $0x420] sm:$0xff]  ;;  %v2583_v58 = vpack.c.bf16 %v204_v50, %v203_v49  ;;  %v192_v20 = vld [vmem:[%s4647_s1 + $0x548] sm:$0xff]  ;;  %v161_v28 = vld [vmem:[%s4647_s1 + $0x450] sm:$0xff] }
  0x39   :  { %2502 = vmatpush3.bf16.msra.mxu0 %v2501_v61  ;;  %v174_v61 = vld [vmem:[%s4647_s1 + $0x4b8] sm:$0xff]  ;;  %v2553_v0 = vpack.c.bf16 %v156_v56, %v155_v55  ;;  %v2593_v26 = vpack.c.bf16 %v192_v20, %v191_v18  ;;  %v193_v30 = vld [vmem:[%s4647_s1 + $0x550] sm:$0xff]  ;;  %v212_v37 = vld [vmem:[%s4647_s1 + $0x5e8] sm:$0xff] }
  0x3a   :  { %2504 = vmatprep.subr.bf16.mxu0 %v2503_v63  ;;  %v206_v63 = vld [vmem:[%s4647_s1 + $0x5b8] sm:$0xff]  ;;  %v2555_v2 = vpack.c.bf16 %v174_v61, %v173_v60  ;;  %v2597_v39 = vpack.c.bf16 %v194_v32, %v193_v30  ;;  %v164_v43 = vld [vmem:[%s4647_s1 + $0x468] sm:$0xff]  ;;  %v181_v48 = vld [vmem:[%s4647_s1 + $0x4f0] sm:$0xff] }
  0x3b   :  { %2534 = vmatpush3.bf16.msra.mxu1 %v2533_v62  ;;  %v205_v62 = vld [vmem:[%s4647_s1 + $0x5b0] sm:$0xff]  ;;  %v196_v47 = vld [vmem:[%s4647_s1 + $0x568] sm:$0xff]  ;;  %v182_v49 = vld [vmem:[%s4647_s1 + $0x4f8] sm:$0xff] }
  0x3c   :  { %2536 = vmatprep.subr.bf16.mxu1 %v2535_v3  ;;  %v157_v3 = vld [vmem:[%s4647_s1 + $0x430] sm:$0xff]  ;;  %v2587_v6 = vpack.c.bf16 %v206_v63, %v205_v62  ;;  %v2571_v55 = vpack.c.bf16 %v182_v49, %v181_v48  ;;  %v166_v57 = vld [vmem:[%s4647_s1 + $0x478] sm:$0xff]  ;;  %v231_v60 = vld [vmem:[%s4647_s1 + $0x680] sm:$0xff] }
  0x3d   :  { %2506 = vmatpush3.bf16.msra.mxu0 %v2505_v9  ;;  %v176_v9 = vld [vmem:[%s4647_s1 + $0x4c8] sm:$0xff]  ;;  %v2557_v12 = vpack.c.bf16 %v158_v4, %v157_v3  ;;  %v213_v50 = vld [vmem:[%s4647_s1 + $0x5f0] sm:$0xff]  ;;  %v198_v59 = vld [vmem:[%s4647_s1 + $0x578] sm:$0xff] }
  0x3e   :  { %2508 = vmatprep.subr.bf16.mxu0 %v2507_v11  ;;  %v208_v11 = vld [vmem:[%s4647_s1 + $0x5c8] sm:$0xff]  ;;  %v2559_v15 = vpack.c.bf16 %v176_v9, %v175_v8  ;;  %v165_v56 = vld [vmem:[%s4647_s1 + $0x470] sm:$0xff]  ;;  %v263_v62 = vld [vmem:[%s4647_s1 + $0x780] sm:$0xff] }
  0x3f   :  { %2538 = vmatpush3.bf16.msra.mxu1 %v2537_v10  ;;  %v207_v10 = vld [vmem:[%s4647_s1 + $0x5c0] sm:$0xff]  ;;  %v232_v61 = vld [vmem:[%s4647_s1 + $0x688] sm:$0xff]  ;;  %v233_v9 = vld [vmem:[%s4647_s1 + $0x690] sm:$0xff] }
  0x40   :  { %2540 = vmatprep.subr.bf16.mxu1 %v2539_v16  ;;  %v159_v16 = vld [vmem:[%s4647_s1 + $0x440] sm:$0xff]  ;;  %v2591_v19 = vpack.c.bf16 %v208_v11, %v207_v10  ;;  %v264_v63 = vld [vmem:[%s4647_s1 + $0x788] sm:$0xff]  ;;  %v2607_v3 = vpack.c.bf16 %v232_v61, %v231_v60  ;;  %v234_v10 = vld [vmem:[%s4647_s1 + $0x698] sm:$0xff] }
  0x41   :  { %2510 = vmatpush3.bf16.msra.mxu0 %v2509_v22  ;;  %v178_v22 = vld [vmem:[%s4647_s1 + $0x4d8] sm:$0xff]  ;;  %v215_v4 = vld [vmem:[%s4647_s1 + $0x600] sm:$0xff]  ;;  %v216_v5 = vld [vmem:[%s4647_s1 + $0x608] sm:$0xff]  ;;  %v2639_v7 = vpack.c.bf16 %v264_v63, %v263_v62  ;;  %v2611_v18 = vpack.c.bf16 %v234_v10, %v233_v9 }
  0x42   :  { %2544 = vmatprep.subr.bf16.mxu0 %v2543_v25  ;;  %v2561_v25 = vpack.c.bf16 %v160_v17, %v159_v16  ;;  %v2563_v27 = vpack.c.bf16 %v178_v22, %v177_v21  ;;  %v248_v8 = vld [vmem:[%s4647_s1 + $0x708] sm:$0xff]  ;;  %v2609_v16 = vpack.c.bf16 %v216_v5, %v215_v4  ;;  %v218_v20 = vld [vmem:[%s4647_s1 + $0x618] sm:$0xff]  ;;  %v249_v21 = vld [vmem:[%s4647_s1 + $0x710] sm:$0xff] }
  0x43   :  { %2542 = vmatpush3.bf16.msra.mxu1 %v2541_v24  ;;  %v210_v24 = vld [vmem:[%s4647_s1 + $0x5d8] sm:$0xff]  ;;  %v253_v48 = vld [vmem:[%s4647_s1 + $0x730] sm:$0xff]  ;;  %v256_v61 = vld [vmem:[%s4647_s1 + $0x748] sm:$0xff] }
  0x44   :  { %2576 = vmatprep.subr.bf16.mxu1 %v2575_v29  ;;  %923 = vmatmul.mubr.f32.vlgmr.msra.gmra.mrb[2].mxu0 %v3294_v33  ;;  %v2581_v33 = vpack.c.bf16 %v186_v46, %v185_v41  ;;  %v162_v29 = vld [vmem:[%s4647_s1 + $0x458] sm:$0xff]  ;;  %v2595_v31 = vpack.c.bf16 %v210_v24, %v209_v23  ;;  %v163_v41 = vld [vmem:[%s4647_s1 + $0x460] sm:$0xff]  ;;  %v241_v62 = vld [vmem:[%s4647_s1 + $0x6d0] sm:$0xff] }
  0x45   :  { %2546 = vmatpush3.bf16.msra.mxu0 %v2545_v35  ;;  %1062 = vmatprep.mubr.f32.mxu0 %v599_v51  ;;  %v180_v35 = vld [vmem:[%s4647_s1 + $0x4e8] sm:$0xff]  ;;  %v214_v51 = vld [vmem:[%s4647_s1 + $0x5f8] sm:$0xff]  ;;  %v235_v24 = vld [vmem:[%s4647_s1 + $0x6a0] sm:$0xff] }
  0x46   :  { %993 = vmatmul.mubr.f32.vlgmr.msra.gmra.mrb[2].mxu1 %v3317_v45  ;;  %2548 = vmatprep.subr.bf16.mxu0 %v2547_v38  ;;  %v600_v45 = vcombine.high %v3457_v52, %v3457_v52  ;;  %v2565_v38 = vpack.c.bf16 %v162_v29, %v161_v28  ;;  %v2567_v40 = vpack.c.bf16 %v180_v35, %v179_v34  ;;  %v250_v23 = vld [vmem:[%s4647_s1 + $0x718] sm:$0xff]  ;;  %v268_v28 = vld [vmem:[%s4647_s1 + $0x7a8] sm:$0xff]  ;;  %v251_v35 = vld [vmem:[%s4647_s1 + $0x720] sm:$0xff] }
  0x47   :  { %2578 = vmatpush3.bf16.msra.mxu1 %v2577_v36  ;;  %v211_v36 = vld [vmem:[%s4647_s1 + $0x5e0] sm:$0xff]  ;;  %v220_v34 = vld [vmem:[%s4647_s1 + $0x628] sm:$0xff]  ;;  %v242_v63 = vld [vmem:[%s4647_s1 + $0x6d8] sm:$0xff] }
  0x48   :  { %2580 = vmatprep.subr.bf16.mxu1 %v2579_v44  ;;  %1132 = vmatprep.mubr.f32.mxu1 %v600_v45  ;;  %v195_v44 = vld [vmem:[%s4647_s1 + $0x560] sm:$0xff]  ;;  %v2599_v46 = vpack.c.bf16 %v212_v37, %v211_v36  ;;  %v197_v45 = vld [vmem:[%s4647_s1 + $0x570] sm:$0xff]  ;;  %v2627_v4 = vpack.c.bf16 %v242_v63, %v241_v62  ;;  %v258_v9 = vld [vmem:[%s4647_s1 + $0x758] sm:$0xff] }
  0x49   :  { %2550 = vmatpush3.bf16.msra.mxu0 %v2549_v53  ;;  %v2569_v53 = vpack.c.bf16 %v164_v43, %v163_v41  ;;  %v237_v37 = vld [vmem:[%s4647_s1 + $0x6b0] sm:$0xff]  ;;  %v243_v10 = vld [vmem:[%s4647_s1 + $0x6e0] sm:$0xff] }
  0x4a   :  { %2552 = vmatprep.subr.bf16.mxu0 %v2551_v54  ;;  %v2601_v54 = vpack.c.bf16 %v196_v47, %v195_v44  ;;  %v222_v47 = vld [vmem:[%s4647_s1 + $0x638] sm:$0xff]  ;;  %v225_v5 = vld [vmem:[%s4647_s1 + $0x650] sm:$0xff] }
  0x4b   :  { %2582 = vmatpush3.bf16.msra.mxu1 %v2581_v33  ;;  %v18_v33 = vld [vmem:[%s4646_s0 + $0x18] sm:$0xff]  ;;  %v313_v62 = vld [vmem:[%s4647_s1 + $0x910] sm:$0xff] }
  0x4c   :  { %2584 = vmatprep.subr.bf16.mxu1 %v2583_v58  ;;  %v2603_v58 = vpack.c.bf16 %v214_v51, %v213_v50  ;;  %v3628_v11 = vrot.slane %v18_v33, %v3133_v13  ;;  %v254_v50 = vld [vmem:[%s4647_s1 + $0x738] sm:$0xff]  ;;  %v239_v51 = vld [vmem:[%s4647_s1 + $0x6c0] sm:$0xff] }
  0x4d   :  { %2554 = vmatpush3.bf16.msra.mxu0 %v2553_v0  ;;  %v601_v0 = vcombine.high %v18_v33, %v18_v33  ;;  %v271_v33 = vld [vmem:[%s4647_s1 + $0x7c0] sm:$0xff] }
  0x4e   :  { %2556 = vmatprep.subr.bf16.mxu0 %v2555_v2  ;;  %v2605_v2 = vpack.c.bf16 %v198_v59, %v197_v45  ;;  %v223_v45 = vld [vmem:[%s4647_s1 + $0x640] sm:$0xff] }
  0x4f   :  { %2586 = vmatpush3.bf16.msra.mxu1 %v2585_v1  ;;  %v2573_v1 = vpack.c.bf16 %v166_v57, %v165_v56  ;;  %v2653_v56 = vpack.c.bf16 %v254_v50, %v253_v48  ;;  %v255_v59 = vld [vmem:[%s4647_s1 + $0x740] sm:$0xff]  ;;  %v280_v48 = vld [vmem:[%s4647_s1 + $0x808] sm:$0xff] }
  0x50   :  { %2588 = vmatprep.subr.bf16.mxu1 %v2587_v6  ;;  %v247_v6 = vld [vmem:[%s4647_s1 + $0x700] sm:$0xff] }
  0x51   :  { %2558 = vmatpush3.bf16.msra.mxu0 %v2557_v12  ;;  %v265_v12 = vld [vmem:[%s4647_s1 + $0x790] sm:$0xff]  ;;  %v2641_v17 = vpack.c.bf16 %v248_v8, %v247_v6  ;;  %v226_v6 = vld [vmem:[%s4647_s1 + $0x658] sm:$0xff] }
  0x52   :  { %2560 = vmatprep.subr.bf16.mxu0 %v2559_v15  ;;  %v3637_v15 = vrot.slane %v601_v0, %v3133_v13  ;;  %v273_v0 = vld [vmem:[%s4647_s1 + $0x7d0] sm:$0xff] }
  0x53   :  { %2590 = vmatpush3.bf16.msra.mxu1 %v2589_v14  ;;  %v266_v14 = vld [vmem:[%s4647_s1 + $0x798] sm:$0xff] }
  0x54   :  { %2592 = vmatprep.subr.bf16.mxu1 %v2591_v19  ;;  %v217_v19 = vld [vmem:[%s4647_s1 + $0x610] sm:$0xff]  ;;  %v2643_v22 = vpack.c.bf16 %v266_v14, %v265_v12  ;;  %v617_v29 = vcombine.high %v3637_v15, %v3637_v15  ;;  %v244_v12 = vld [vmem:[%s4647_s1 + $0x6e8] sm:$0xff]  ;;  %v275_v14 = vld [vmem:[%s4647_s1 + $0x7e0] sm:$0xff] }
  0x55   :  { %2562 = vmatpush3.bf16.msra.mxu0 %v2561_v25  ;;  %v236_v25 = vld [vmem:[%s4647_s1 + $0x6a8] sm:$0xff]  ;;  %v2613_v30 = vpack.c.bf16 %v218_v20, %v217_v19  ;;  %v2631_v19 = vpack.c.bf16 %v244_v12, %v243_v10  ;;  %v227_v20 = vld [vmem:[%s4647_s1 + $0x660] sm:$0xff] }
  0x56   :  { %2564 = vmatprep.subr.bf16.mxu0 %v2563_v27  ;;  %v267_v27 = vld [vmem:[%s4647_s1 + $0x7a0] sm:$0xff]  ;;  %v2615_v32 = vpack.c.bf16 %v236_v25, %v235_v24  ;;  %v260_v24 = vld [vmem:[%s4647_s1 + $0x768] sm:$0xff]  ;;  %v245_v25 = vld [vmem:[%s4647_s1 + $0x6f0] sm:$0xff] }
  0x57   :  { %2594 = vmatpush3.bf16.msra.mxu1 %v2593_v26  ;;  %v616_v26 = vcombine.high %v3628_v11, %v3628_v11  ;;  %v2647_v36 = vpack.c.bf16 %v268_v28, %v267_v27  ;;  %v277_v27 = vld [vmem:[%s4647_s1 + $0x7f0] sm:$0xff]  ;;  %v278_v28 = vld [vmem:[%s4647_s1 + $0x7f8] sm:$0xff]  ;;  %v284_v10 = vld [vmem:[%s4647_s1 + $0x828] sm:$0xff] }
  0x58   :  { %2596 = vmatprep.subr.bf16.mxu1 %v2595_v31  ;;  %v2645_v31 = vpack.c.bf16 %v250_v23, %v249_v21  ;;  %v228_v21 = vld [vmem:[%s4647_s1 + $0x668] sm:$0xff]  ;;  %v315_v12 = vld [vmem:[%s4647_s1 + $0x920] sm:$0xff] }
  0x59   :  { %2566 = vmatpush3.bf16.msra.mxu0 %v2565_v38  ;;  %v238_v38 = vld [vmem:[%s4647_s1 + $0x6b8] sm:$0xff] }
  0x5a   :  { %2568 = vmatprep.subr.bf16.mxu0 %v2567_v40  ;;  %v270_v40 = vld [vmem:[%s4647_s1 + $0x7b8] sm:$0xff]  ;;  %v2619_v44 = vpack.c.bf16 %v238_v38, %v237_v37  ;;  %v295_v37 = vld [vmem:[%s4647_s1 + $0x880] sm:$0xff]  ;;  %v296_v38 = vld [vmem:[%s4647_s1 + $0x888] sm:$0xff] }
  0x5b   :  { %2598 = vmatpush3.bf16.msra.mxu1 %v2597_v39  ;;  %v269_v39 = vld [vmem:[%s4647_s1 + $0x7b0] sm:$0xff] }
  0x5c   :  { %2600 = vmatprep.subr.bf16.mxu1 %v2599_v46  ;;  %v221_v46 = vld [vmem:[%s4647_s1 + $0x630] sm:$0xff]  ;;  %v2651_v49 = vpack.c.bf16 %v270_v40, %v269_v39  ;;  %v327_v39 = vld [vmem:[%s4647_s1 + $0x980] sm:$0xff]  ;;  %v328_v40 = vld [vmem:[%s4647_s1 + $0x988] sm:$0xff] }
  0x5d   :  { %2570 = vmatpush3.bf16.msra.mxu0 %v2569_v53  ;;  %v240_v53 = vld [vmem:[%s4647_s1 + $0x6c8] sm:$0xff]  ;;  %v2703_v50 = vpack.c.bf16 %v328_v40, %v327_v39  ;;  %v305_v39 = vld [vmem:[%s4647_s1 + $0x8d0] sm:$0xff]  ;;  %v306_v40 = vld [vmem:[%s4647_s1 + $0x8d8] sm:$0xff] }
  0x5e   :  { %2572 = vmatprep.subr.bf16.mxu0 %v2571_v55  ;;  %v2621_v55 = vpack.c.bf16 %v222_v47, %v221_v46  ;;  %v2623_v57 = vpack.c.bf16 %v240_v53, %v239_v51  ;;  %v2671_v46 = vpack.c.bf16 %v296_v38, %v295_v37  ;;  %v279_v47 = vld [vmem:[%s4647_s1 + $0x800] sm:$0xff]  ;;  %v312_v51 = vld [vmem:[%s4647_s1 + $0x908] sm:$0xff]  ;;  %v297_v53 = vld [vmem:[%s4647_s1 + $0x890] sm:$0xff] }
  0x5f   :  { %2602 = vmatpush3.bf16.msra.mxu1 %v2601_v54  ;;  %v272_v54 = vld [vmem:[%s4647_s1 + $0x7c8] sm:$0xff] }
  0x60   :  { %2604 = vmatprep.subr.bf16.mxu1 %v2603_v58  ;;  %v224_v58 = vld [vmem:[%s4647_s1 + $0x648] sm:$0xff]  ;;  %v2655_v60 = vpack.c.bf16 %v272_v54, %v271_v33  ;;  %v298_v33 = vld [vmem:[%s4647_s1 + $0x898] sm:$0xff] }
  0x61   :  { %2574 = vmatpush3.bf16.msra.mxu0 %v2573_v1  ;;  %v274_v1 = vld [vmem:[%s4647_s1 + $0x7d8] sm:$0xff]  ;;  %v320_v38 = vld [vmem:[%s4647_s1 + $0x948] sm:$0xff] }
  0x62   :  { %2608 = vmatprep.subr.bf16.mxu0 %v2607_v3  ;;  %v2657_v3 = vpack.c.bf16 %v256_v61, %v255_v59  ;;  %v2659_v8 = vpack.c.bf16 %v274_v1, %v273_v0  ;;  %v2675_v59 = vpack.c.bf16 %v298_v33, %v297_v53  ;;  %v282_v61 = vld [vmem:[%s4647_s1 + $0x818] sm:$0xff]  ;;  %v299_v1 = vld [vmem:[%s4647_s1 + $0x8a0] sm:$0xff] }
  0x63   :  { %2606 = vmatpush3.bf16.msra.mxu1 %v2605_v2  ;;  %v2625_v2 = vpack.c.bf16 %v224_v58, %v223_v45  ;;  %v2673_v45 = vpack.c.bf16 %v280_v48, %v279_v47  ;;  %v314_v0 = vld [vmem:[%s4647_s1 + $0x918] sm:$0xff]  ;;  %v2691_v47 = vpack.c.bf16 %v306_v40, %v305_v39  ;;  %v289_v48 = vld [vmem:[%s4647_s1 + $0x850] sm:$0xff]  ;;  %v307_v33 = vld [vmem:[%s4647_s1 + $0x8e0] sm:$0xff] }
  0x64   :  { %2640 = vmatprep.subr.bf16.mxu1 %v2639_v7  ;;  %1063 = vmatmul.mubr.f32.vlgmr.msra.gmra.mrb[4].mxu0 %v3436_v42  ;;  %v219_v42 = vld [vmem:[%s4647_s1 + $0x620] sm:$0xff]  ;;  %v257_v7 = vld [vmem:[%s4647_s1 + $0x750] sm:$0xff]  ;;  %v322_v53 = vld [vmem:[%s4647_s1 + $0x958] sm:$0xff] }
  0x65   :  { %2610 = vmatpush3.bf16.msra.mxu0 %v2609_v16  ;;  %1202 = vmatprep.mubr.f32.mxu0 %v616_v26  ;;  %v2617_v41 = vpack.c.bf16 %v220_v34, %v219_v42  ;;  %v276_v16 = vld [vmem:[%s4647_s1 + $0x7e8] sm:$0xff]  ;;  %v246_v26 = vld [vmem:[%s4647_s1 + $0x6f8] sm:$0xff]  ;;  %v229_v42 = vld [vmem:[%s4647_s1 + $0x670] sm:$0xff] }
  0x66   :  { %1133 = vmatmul.mubr.f32.vlgmr.msra.gmra.mrb[4].mxu1 %v3457_v52  ;;  %2612 = vmatprep.subr.bf16.mxu0 %v2611_v18  ;;  %v252_v52 = vld [vmem:[%s4647_s1 + $0x728] sm:$0xff]  ;;  %v2661_v18 = vpack.c.bf16 %v258_v9, %v257_v7  ;;  %v2663_v23 = vpack.c.bf16 %v276_v16, %v275_v14  ;;  %v230_v34 = vld [vmem:[%s4647_s1 + $0x678] sm:$0xff]  ;;  %v301_v16 = vld [vmem:[%s4647_s1 + $0x8b0] sm:$0xff] }
  0x67   :  { %2642 = vmatpush3.bf16.msra.mxu1 %v2641_v17  ;;  %1272 = vmatprep.mubr.f32.mxu1 %v617_v29  ;;  %v2649_v43 = vpack.c.bf16 %v252_v52, %v251_v35  ;;  %v2629_v17 = vpack.c.bf16 %v226_v6, %v225_v5  ;;  %v2633_v29 = vpack.c.bf16 %v228_v21, %v227_v20  ;;  %v261_v35 = vld [vmem:[%s4647_s1 + $0x770] sm:$0xff]  ;;  %v262_v52 = vld [vmem:[%s4647_s1 + $0x778] sm:$0xff]  ;;  %v332_v5 = vld [vmem:[%s4647_s1 + $0x9a8] sm:$0xff] }
  0x68   :  { %2644 = vmatprep.subr.bf16.mxu1 %v2643_v22  ;;  %v259_v22 = vld [vmem:[%s4647_s1 + $0x760] sm:$0xff]  ;;  %v377_v39 = vld [vmem:[%s4647_s1 + $0xb10] sm:$0xff] }
  0x69   :  { %2614 = vmatpush3.bf16.msra.mxu0 %v2613_v30  ;;  %v19_v30 = vld [vmem:[%s4646_s0 + $0x20] sm:$0xff] }
  0x6a   :  { %2616 = vmatprep.subr.bf16.mxu0 %v2615_v32  ;;  %v2635_v32 = vpack.c.bf16 %v246_v26, %v245_v25  ;;  %v3835_v54 = vrot.slane %v19_v30, %v3133_v13  ;;  %v317_v25 = vld [vmem:[%s4647_s1 + $0x930] sm:$0xff] }
  0x6b   :  { %2646 = vmatpush3.bf16.msra.mxu1 %v2645_v31  ;;  %v2665_v31 = vpack.c.bf16 %v260_v24, %v259_v22  ;;  %v286_v24 = vld [vmem:[%s4647_s1 + $0x838] sm:$0xff] }
  0x6c   :  { %2648 = vmatprep.subr.bf16.mxu1 %v2647_v36  ;;  %v2667_v36 = vpack.c.bf16 %v278_v28, %v277_v27  ;;  %v318_v27 = vld [vmem:[%s4647_s1 + $0x938] sm:$0xff]  ;;  %v303_v28 = vld [vmem:[%s4647_s1 + $0x8c0] sm:$0xff] }
  0x6d   :  { %2618 = vmatpush3.bf16.msra.mxu0 %v2617_v41  ;;  %v618_v41 = vcombine.high %v19_v30, %v19_v30  ;;  %v335_v30 = vld [vmem:[%s4647_s1 + $0x9c0] sm:$0xff] }
  0x6e   :  { %2620 = vmatprep.subr.bf16.mxu0 %v2619_v44  ;;  %v2669_v44 = vpack.c.bf16 %v262_v52, %v261_v35  ;;  %v287_v35 = vld [vmem:[%s4647_s1 + $0x840] sm:$0xff] }
  0x6f   :  { %2650 = vmatpush3.bf16.msra.mxu1 %v2649_v43  ;;  %v2637_v43 = vpack.c.bf16 %v230_v34, %v229_v42  ;;  %v2717_v42 = vpack.c.bf16 %v318_v27, %v317_v25  ;;  %v319_v52 = vld [vmem:[%s4647_s1 + $0x940] sm:$0xff]  ;;  %v344_v25 = vld [vmem:[%s4647_s1 + $0xa08] sm:$0xff] }
  0x70   :  { %2652 = vmatprep.subr.bf16.mxu1 %v2651_v49  ;;  %v311_v49 = vld [vmem:[%s4647_s1 + $0x900] sm:$0xff] }
  0x71   :  { %2622 = vmatpush3.bf16.msra.mxu0 %v2621_v55  ;;  %v329_v55 = vld [vmem:[%s4647_s1 + $0x990] sm:$0xff]  ;;  %v2705_v58 = vpack.c.bf16 %v312_v51, %v311_v49  ;;  %v290_v49 = vld [vmem:[%s4647_s1 + $0x858] sm:$0xff] }
  0x72   :  { %2624 = vmatprep.subr.bf16.mxu0 %v2623_v57  ;;  %v3844_v57 = vrot.slane %v618_v41, %v3133_v13  ;;  %v337_v41 = vld [vmem:[%s4647_s1 + $0x9d0] sm:$0xff] }
  0x73   :  { %2654 = vmatpush3.bf16.msra.mxu1 %v2653_v56  ;;  %v330_v56 = vld [vmem:[%s4647_s1 + $0x998] sm:$0xff] }
  0x74   :  { %2656 = vmatprep.subr.bf16.mxu1 %v2655_v60  ;;  %v281_v60 = vld [vmem:[%s4647_s1 + $0x810] sm:$0xff]  ;;  %v2707_v63 = vpack.c.bf16 %v330_v56, %v329_v55  ;;  %v634_v6 = vcombine.high %v3844_v57, %v3844_v57  ;;  %v308_v55 = vld [vmem:[%s4647_s1 + $0x8e8] sm:$0xff]  ;;  %v339_v56 = vld [vmem:[%s4647_s1 + $0x9e0] sm:$0xff] }
  0x75   :  { %2626 = vmatpush3.bf16.msra.mxu0 %v2625_v2  ;;  %v300_v2 = vld [vmem:[%s4647_s1 + $0x8a8] sm:$0xff]  ;;  %v2677_v7 = vpack.c.bf16 %v282_v61, %v281_v60  ;;  %v2695_v60 = vpack.c.bf16 %v308_v55, %v307_v33  ;;  %v291_v61 = vld [vmem:[%s4647_s1 + $0x860] sm:$0xff] }
  0x76   :  { %2628 = vmatprep.subr.bf16.mxu0 %v2627_v4  ;;  %v331_v4 = vld [vmem:[%s4647_s1 + $0x9a0] sm:$0xff]  ;;  %v2679_v9 = vpack.c.bf16 %v300_v2, %v299_v1  ;;  %v324_v1 = vld [vmem:[%s4647_s1 + $0x968] sm:$0xff]  ;;  %v309_v2 = vld [vmem:[%s4647_s1 + $0x8f0] sm:$0xff] }
  0x77   :  { %2658 = vmatpush3.bf16.msra.mxu1 %v2657_v3  ;;  %v633_v3 = vcombine.high %v3835_v54, %v3835_v54  ;;  %v2711_v14 = vpack.c.bf16 %v332_v5, %v331_v4  ;;  %v341_v4 = vld [vmem:[%s4647_s1 + $0x9f0] sm:$0xff]  ;;  %v342_v5 = vld [vmem:[%s4647_s1 + $0x9f8] sm:$0xff]  ;;  %v348_v33 = vld [vmem:[%s4647_s1 + $0xa28] sm:$0xff] }
  0x78   :  { %2660 = vmatprep.subr.bf16.mxu1 %v2659_v8  ;;  %v2709_v8 = vpack.c.bf16 %v314_v0, %v313_v62  ;;  %v292_v62 = vld [vmem:[%s4647_s1 + $0x868] sm:$0xff]  ;;  %v379_v55 = vld [vmem:[%s4647_s1 + $0xb20] sm:$0xff] }
  0x79   :  { %2630 = vmatpush3.bf16.msra.mxu0 %v2629_v17  ;;  %v302_v17 = vld [vmem:[%s4647_s1 + $0x8b8] sm:$0xff] }
  0x7a   :  { %2632 = vmatprep.subr.bf16.mxu0 %v2631_v19  ;;  %v334_v19 = vld [vmem:[%s4647_s1 + $0x9b8] sm:$0xff]  ;;  %v2683_v22 = vpack.c.bf16 %v302_v17, %v301_v16  ;;  %v359_v16 = vld [vmem:[%s4647_s1 + $0xa80] sm:$0xff]  ;;  %v360_v17 = vld [vmem:[%s4647_s1 + $0xa88] sm:$0xff] }
  0x7b   :  { %2662 = vmatpush3.bf16.msra.mxu1 %v2661_v18  ;;  %v333_v18 = vld [vmem:[%s4647_s1 + $0x9b0] sm:$0xff] }
  0x7c   :  { %2664 = vmatprep.subr.bf16.mxu1 %v2663_v23  ;;  %v285_v23 = vld [vmem:[%s4647_s1 + $0x830] sm:$0xff]  ;;  %v2715_v26 = vpack.c.bf16 %v334_v19, %v333_v18  ;;  %v391_v18 = vld [vmem:[%s4647_s1 + $0xb80] sm:$0xff]  ;;  %v392_v19 = vld [vmem:[%s4647_s1 + $0xb88] sm:$0xff] }
  0x7d   :  { %2634 = vmatpush3.bf16.msra.mxu0 %v2633_v29  ;;  %v304_v29 = vld [vmem:[%s4647_s1 + $0x8c8] sm:$0xff]  ;;  %v2767_v27 = vpack.c.bf16 %v392_v19, %v391_v18 }
  0x7e   :  { %2636 = vmatprep.subr.bf16.mxu0 %v2635_v32  ;;  %v2685_v32 = vpack.c.bf16 %v286_v24, %v285_v23  ;;  %v2687_v34 = vpack.c.bf16 %v304_v29, %v303_v28  ;;  %v2735_v23 = vpack.c.bf16 %v360_v17, %v359_v16  ;;  %v343_v24 = vld [vmem:[%s4647_s1 + $0xa00] sm:$0xff]  ;;  %v376_v28 = vld [vmem:[%s4647_s1 + $0xb08] sm:$0xff]  ;;  %v361_v29 = vld [vmem:[%s4647_s1 + $0xa90] sm:$0xff] }
  0x7f   :  { %2666 = vmatpush3.bf16.msra.mxu1 %v2665_v31  ;;  %v336_v31 = vld [vmem:[%s4647_s1 + $0x9c8] sm:$0xff] }
  0x80   :  { %2668 = vmatprep.subr.bf16.mxu1 %v2667_v36  ;;  %v288_v36 = vld [vmem:[%s4647_s1 + $0x848] sm:$0xff]  ;;  %v2719_v37 = vpack.c.bf16 %v336_v31, %v335_v30  ;;  %v362_v30 = vld [vmem:[%s4647_s1 + $0xa98] sm:$0xff] }
  0x81   :  { %2638 = vmatpush3.bf16.msra.mxu0 %v2637_v43  ;;  %v338_v43 = vld [vmem:[%s4647_s1 + $0x9d8] sm:$0xff] }
  0x82   :  { %2672 = vmatprep.subr.bf16.mxu0 %v2671_v46  ;;  %v2721_v46 = vpack.c.bf16 %v320_v38, %v319_v52  ;;  %v2723_v51 = vpack.c.bf16 %v338_v43, %v337_v41  ;;  %v2739_v52 = vpack.c.bf16 %v362_v30, %v361_v29  ;;  %v346_v38 = vld [vmem:[%s4647_s1 + $0xa18] sm:$0xff]  ;;  %v363_v43 = vld [vmem:[%s4647_s1 + $0xaa0] sm:$0xff] }
  0x83   :  { %2670 = vmatpush3.bf16.msra.mxu1 %v2669_v44  ;;  %v2689_v44 = vpack.c.bf16 %v288_v36, %v287_v35  ;;  %v2737_v35 = vpack.c.bf16 %v344_v25, %v343_v24  ;;  %v378_v41 = vld [vmem:[%s4647_s1 + $0xb18] sm:$0xff] }
  0x84   :  { %2704 = vmatprep.subr.bf16.mxu1 %v2703_v50  ;;  %1203 = vmatmul.mubr.f32.vlgmr.msra.gmra.mrb[6].mxu0 %v3628_v11  ;;  %v283_v11 = vld [vmem:[%s4647_s1 + $0x820] sm:$0xff]  ;;  %v321_v50 = vld [vmem:[%s4647_s1 + $0x950] sm:$0xff] }
  0x85   :  { %2674 = vmatpush3.bf16.msra.mxu0 %v2673_v45  ;;  %1342 = vmatprep.mubr.f32.mxu0 %v633_v3  ;;  %v2681_v20 = vpack.c.bf16 %v284_v10, %v283_v11  ;;  %v340_v45 = vld [vmem:[%s4647_s1 + $0x9e8] sm:$0xff]  ;;  %v310_v3 = vld [vmem:[%s4647_s1 + $0x8f8] sm:$0xff]  ;;  %v293_v11 = vld [vmem:[%s4647_s1 + $0x870] sm:$0xff] }
  0x86   :  { %1273 = vmatmul.mubr.f32.vlgmr.msra.gmra.mrb[6].mxu1 %v3637_v15  ;;  %2676 = vmatprep.subr.bf16.mxu0 %v2675_v59  ;;  %v316_v15 = vld [vmem:[%s4647_s1 + $0x928] sm:$0xff]  ;;  %v2725_v59 = vpack.c.bf16 %v322_v53, %v321_v50  ;;  %v2727_v0 = vpack.c.bf16 %v340_v45, %v339_v56  ;;  %v294_v10 = vld [vmem:[%s4647_s1 + $0x878] sm:$0xff]  ;;  %v365_v45 = vld [vmem:[%s4647_s1 + $0xab0] sm:$0xff] }
  0x87   :  { %2706 = vmatpush3.bf16.msra.mxu1 %v2705_v58  ;;  %1412 = vmatprep.mubr.f32.mxu1 %v634_v6  ;;  %v2713_v21 = vpack.c.bf16 %v316_v15, %v315_v12  ;;  %v2693_v58 = vpack.c.bf16 %v290_v49, %v289_v48  ;;  %v2697_v6 = vpack.c.bf16 %v292_v62, %v291_v61  ;;  %v325_v12 = vld [vmem:[%s4647_s1 + $0x970] sm:$0xff]  ;;  %v326_v15 = vld [vmem:[%s4647_s1 + $0x978] sm:$0xff]  ;;  %v396_v48 = vld [vmem:[%s4647_s1 + $0xba8] sm:$0xff] }
  0x88   :  { %2708 = vmatprep.subr.bf16.mxu1 %v2707_v63  ;;  %v323_v63 = vld [vmem:[%s4647_s1 + $0x960] sm:$0xff] }
  0x89   :  { %2678 = vmatpush3.bf16.msra.mxu0 %v2677_v7  ;;  %v20_v7 = vld [vmem:[%s4646_s0 + $0x28] sm:$0xff] }
  0x8a   :  { %2680 = vmatprep.subr.bf16.mxu0 %v2679_v9  ;;  %v2699_v9 = vpack.c.bf16 %v310_v3, %v309_v2  ;;  %v4042_v31 = vrot.slane %v20_v7, %v3133_v13  ;;  %v381_v2 = vld [vmem:[%s4647_s1 + $0xb30] sm:$0xff] }
  0x8b   :  { %2710 = vmatpush3.bf16.msra.mxu1 %v2709_v8  ;;  %v2729_v8 = vpack.c.bf16 %v324_v1, %v323_v63  ;;  %v350_v1 = vld [vmem:[%s4647_s1 + $0xa38] sm:$0xff] }
  0x8c   :  { %2712 = vmatprep.subr.bf16.mxu1 %v2711_v14  ;;  %v2731_v14 = vpack.c.bf16 %v342_v5, %v341_v4  ;;  %v382_v4 = vld [vmem:[%s4647_s1 + $0xb38] sm:$0xff]  ;;  %v367_v5 = vld [vmem:[%s4647_s1 + $0xac0] sm:$0xff] }
  0x8d   :  { %2682 = vmatpush3.bf16.msra.mxu0 %v2681_v20  ;;  %v635_v20 = vcombine.high %v20_v7, %v20_v7  ;;  %v399_v7 = vld [vmem:[%s4647_s1 + $0xbc0] sm:$0xff] }
  0x8e   :  { %2684 = vmatprep.subr.bf16.mxu0 %v2683_v22  ;;  %v2733_v22 = vpack.c.bf16 %v326_v15, %v325_v12  ;;  %v383_v15 = vld [vmem:[%s4647_s1 + $0xb40] sm:$0xff] }
  0x8f   :  { %2714 = vmatpush3.bf16.msra.mxu1 %v2713_v21  ;;  %v2701_v21 = vpack.c.bf16 %v294_v10, %v293_v11  ;;  %v351_v11 = vld [vmem:[%s4647_s1 + $0xa40] sm:$0xff]  ;;  %v2781_v10 = vpack.c.bf16 %v382_v4, %v381_v2 }
  0x90   :  { %2716 = vmatprep.subr.bf16.mxu1 %v2715_v26  ;;  %v375_v26 = vld [vmem:[%s4647_s1 + $0xb00] sm:$0xff] }
  0x91   :  { %2686 = vmatpush3.bf16.msra.mxu0 %v2685_v32  ;;  %v393_v32 = vld [vmem:[%s4647_s1 + $0xb90] sm:$0xff]  ;;  %v2769_v36 = vpack.c.bf16 %v376_v28, %v375_v26 }
  0x92   :  { %2688 = vmatprep.subr.bf16.mxu0 %v2687_v34  ;;  %v4051_v34 = vrot.slane %v635_v20, %v3133_v13 }
  0x93   :  { %2718 = vmatpush3.bf16.msra.mxu1 %v2717_v42  ;;  %v394_v42 = vld [vmem:[%s4647_s1 + $0xb98] sm:$0xff] }
  0x94   :  { %2720 = vmatprep.subr.bf16.mxu1 %v2719_v37  ;;  %v345_v37 = vld [vmem:[%s4647_s1 + $0xa10] sm:$0xff]  ;;  %v2771_v40 = vpack.c.bf16 %v394_v42, %v393_v32  ;;  %v651_v49 = vcombine.high %v4051_v34, %v4051_v34 }
  0x95   :  { %2690 = vmatpush3.bf16.msra.mxu0 %v2689_v44  ;;  %v364_v44 = vld [vmem:[%s4647_s1 + $0xaa8] sm:$0xff]  ;;  %v2741_v50 = vpack.c.bf16 %v346_v38, %v345_v37 }
  0x96   :  { %2692 = vmatprep.subr.bf16.mxu0 %v2691_v47  ;;  %v395_v47 = vld [vmem:[%s4647_s1 + $0xba0] sm:$0xff]  ;;  %v2743_v53 = vpack.c.bf16 %v364_v44, %v363_v43 }
  0x97   :  { %2722 = vmatpush3.bf16.msra.mxu1 %v2721_v46  ;;  %v650_v46 = vcombine.high %v4042_v31, %v4042_v31  ;;  %v2775_v56 = vpack.c.bf16 %v396_v48, %v395_v47 }
  0x98   :  { %2724 = vmatprep.subr.bf16.mxu1 %v2723_v51  ;;  %v2773_v51 = vpack.c.bf16 %v378_v41, %v377_v39 }
  0x99   :  { %2694 = vmatpush3.bf16.msra.mxu0 %v2693_v58  ;;  %v366_v58 = vld [vmem:[%s4647_s1 + $0xab8] sm:$0xff] }
  0x9a   :  { %2696 = vmatprep.subr.bf16.mxu0 %v2695_v60  ;;  %v398_v60 = vld [vmem:[%s4647_s1 + $0xbb8] sm:$0xff]  ;;  %v2747_v63 = vpack.c.bf16 %v366_v58, %v365_v45 }
  0x9b   :  { %2726 = vmatpush3.bf16.msra.mxu1 %v2725_v59  ;;  %v397_v59 = vld [vmem:[%s4647_s1 + $0xbb0] sm:$0xff] }
  0x9c   :  { %2728 = vmatprep.subr.bf16.mxu1 %v2727_v0  ;;  %v349_v0 = vld [vmem:[%s4647_s1 + $0xa30] sm:$0xff]  ;;  %v2779_v3 = vpack.c.bf16 %v398_v60, %v397_v59 }
  0x9d   :  { %2698 = vmatpush3.bf16.msra.mxu0 %v2697_v6  ;;  %v368_v6 = vld [vmem:[%s4647_s1 + $0xac8] sm:$0xff] }
  0x9e   :  { %2700 = vmatprep.subr.bf16.mxu0 %v2699_v9  ;;  %v2749_v9 = vpack.c.bf16 %v350_v1, %v349_v0  ;;  %v2751_v12 = vpack.c.bf16 %v368_v6, %v367_v5 }
  0x9f   :  { %2730 = vmatpush3.bf16.msra.mxu1 %v2729_v8  ;;  %v400_v8 = vld [vmem:[%s4647_s1 + $0xbc8] sm:$0xff] }
  0xa0   :  { %2732 = vmatprep.subr.bf16.mxu1 %v2731_v14  ;;  %v352_v14 = vld [vmem:[%s4647_s1 + $0xa48] sm:$0xff] }
  0xa1   :  { %2702 = vmatpush3.bf16.msra.mxu0 %v2701_v21 }
  0xa2   :  { %2736 = vmatprep.subr.bf16.mxu0 %v2735_v23 }
  0xa3   :  { %2734 = vmatpush3.bf16.msra.mxu1 %v2733_v22 }
  0xa4   :  { %2768 = vmatprep.subr.bf16.mxu1 %v2767_v27  ;;  %1343 = vmatmul.mubr.f32.vlgmr.msra.gmra.mrb[8].mxu0 %v3835_v54  ;;  %v347_v54 = vld [vmem:[%s4647_s1 + $0xa20] sm:$0xff] }
  0xa5   :  { %2738 = vmatpush3.bf16.msra.mxu0 %v2737_v35  ;;  %1482 = vmatprep.mubr.f32.mxu0 %v650_v46  ;;  %v2745_v61 = vpack.c.bf16 %v348_v33, %v347_v54 }
  0xa6   :  { %1413 = vmatmul.mubr.f32.vlgmr.msra.gmra.mrb[8].mxu1 %v3844_v57  ;;  %2740 = vmatprep.subr.bf16.mxu0 %v2739_v52  ;;  %v380_v57 = vld [vmem:[%s4647_s1 + $0xb28] sm:$0xff] }
  0xa7   :  { %2770 = vmatpush3.bf16.msra.mxu1 %v2769_v36  ;;  %1552 = vmatprep.mubr.f32.mxu1 %v651_v49  ;;  %v2777_v62 = vpack.c.bf16 %v380_v57, %v379_v55 }
  0xa8   :  { %2772 = vmatprep.subr.bf16.mxu1 %v2771_v40 }
  0xa9   :  { %2742 = vmatpush3.bf16.msra.mxu0 %v2741_v50 }
  0xaa   :  { %2744 = vmatprep.subr.bf16.mxu0 %v2743_v53 }
  0xab   :  { %2774 = vmatpush3.bf16.msra.mxu1 %v2773_v51 }
  0xac   :  { %2776 = vmatprep.subr.bf16.mxu1 %v2775_v56 }
  0xad   :  { %2746 = vmatpush3.bf16.msra.mxu0 %v2745_v61 }
  0xae   :  { %2748 = vmatprep.subr.bf16.mxu0 %v2747_v63 }
  0xaf   :  { %2778 = vmatpush3.bf16.msra.mxu1 %v2777_v62 }
  0xb0   :  { %8 = vsyncpa [#allocation3], 0  ;;  %2780 = vmatprep.subr.bf16.mxu1 %v2779_v3  ;;  %v2783_v16 = vpack.c.bf16 %v400_v8, %v399_v7  ;;  %v384_v17 = vld [vmem:[%s4647_s1 + $0xb48] sm:$0xff]  ;;  %v369_v18 = vld [vmem:[%s4647_s1 + $0xad0] sm:$0xff]  ;;  %v2753_v22 = vpack.c.bf16 %v352_v14, %v351_v11  ;;  %vm1838_vm0 = vcmask 74752  }
  0xb1   :  { %v370_v19 = vld [vmem:[%s4647_s1 + $0xad8] sm:$0xff]  ;;  %v401_v20 = vld [vmem:[%s4647_s1 + $0xbd0] sm:$0xff]  ;;  %2750 = vmatpush3.bf16.msra.mxu0 %v2749_v9  ;;  %v2785_v23 = vpack.c.bf16 %v384_v17, %v383_v15  ;;  %v371_v30 = vld [vmem:[%s4647_s1 + $0xae0] sm:$0xff] }
  0xb2   :  { %v402_v21 = vld [vmem:[%s4647_s1 + $0xbd8] sm:$0xff]  ;;  %2752 = vmatprep.subr.bf16.mxu0 %v2751_v12  ;;  %v2755_v24 = vpack.c.bf16 %v370_v19, %v369_v18  ;;  %v353_v25 = vld [vmem:[%s4647_s1 + $0xa50] sm:$0xff]  ;;  %v372_v32 = vld [vmem:[%s4647_s1 + $0xae8] sm:$0xff] }
  0xb3   :  { %2782 = vmatpush3.bf16.msra.mxu1 %v2781_v10  ;;  %v354_v26 = vld [vmem:[%s4647_s1 + $0xa58] sm:$0xff]  ;;  %v385_v27 = vld [vmem:[%s4647_s1 + $0xb50] sm:$0xff]  ;;  %v2787_v28 = vpack.c.bf16 %v402_v21, %v401_v20  ;;  %v403_v42 = vld [vmem:[%s4647_s1 + $0xbe0] sm:$0xff]  ;;  %v2759_v37 = vpack.c.bf16 %v372_v32, %v371_v30 }
  0xb4   :  { %2784 = vmatprep.subr.bf16.mxu1 %v2783_v16  ;;  %v386_v29 = vld [vmem:[%s4647_s1 + $0xb58] sm:$0xff]  ;;  %v404_v35 = vld [vmem:[%s4647_s1 + $0xbe8] sm:$0xff]  ;;  %v2757_v36 = vpack.c.bf16 %v354_v26, %v353_v25  ;;  %v355_v38 = vld [vmem:[%s4647_s1 + $0xa60] sm:$0xff] }
  0xb5   :  { %2754 = vmatpush3.bf16.msra.mxu0 %v2753_v22  ;;  %v2789_v52 = vpack.c.bf16 %v386_v29, %v385_v27  ;;  %v356_v39 = vld [vmem:[%s4647_s1 + $0xa68] sm:$0xff]  ;;  %v387_v40 = vld [vmem:[%s4647_s1 + $0xb60] sm:$0xff]  ;;  %v2791_v41 = vpack.c.bf16 %v404_v35, %v403_v42  ;;  %v373_v44 = vld [vmem:[%s4647_s1 + $0xaf0] sm:$0xff] }
  0xb6   :  { %2756 = vmatprep.subr.bf16.mxu0 %v2755_v24  ;;  %v388_v43 = vld [vmem:[%s4647_s1 + $0xb68] sm:$0xff]  ;;  %v374_v46 = vld [vmem:[%s4647_s1 + $0xaf8] sm:$0xff]  ;;  %v405_v47 = vld [vmem:[%s4647_s1 + $0xbf0] sm:$0xff]  ;;  %v2761_v49 = vpack.c.bf16 %v356_v39, %v355_v38 }
  0xb7   :  { %2786 = vmatpush3.bf16.msra.mxu1 %v2785_v23  ;;  %v406_v48 = vld [vmem:[%s4647_s1 + $0xbf8] sm:$0xff]  ;;  %v21_v50 = vld [vmem:[%s4646_s0 + $0x30] sm:$0xff]  ;;  %v2793_v51 = vpack.c.bf16 %v388_v43, %v387_v40  ;;  %v2763_v53 = vpack.c.bf16 %v374_v46, %v373_v44  ;;  %v423_v45 = vld [vmem:[%s4647_s1 + $0xc80] sm:$0xff] }
  0xb8   :  { %2788 = vmatprep.subr.bf16.mxu1 %v2787_v28  ;;  %v357_v54 = vld [vmem:[%s4647_s1 + $0xa70] sm:$0xff]  ;;  %v358_v33 = vld [vmem:[%s4647_s1 + $0xa78] sm:$0xff]  ;;  %v2795_v56 = vpack.c.bf16 %v406_v48, %v405_v47  ;;  %v424_v58 = vld [vmem:[%s4647_s1 + $0xc88] sm:$0xff]  ;;  %v652_v61 = vcombine.high %v21_v50, %v21_v50  ;;  %v4249_v8 = vrot.slane %v21_v50, %v3133_v13 }
  0xb9   :  { %2758 = vmatpush3.bf16.msra.mxu0 %v2757_v36  ;;  %v389_v55 = vld [vmem:[%s4647_s1 + $0xb70] sm:$0xff]  ;;  %v390_v57 = vld [vmem:[%s4647_s1 + $0xb78] sm:$0xff]  ;;  %v455_v59 = vld [vmem:[%s4647_s1 + $0xd80] sm:$0xff]  ;;  %v2765_v62 = vpack.c.bf16 %v358_v33, %v357_v54  ;;  %v2799_v0 = vpack.c.bf16 %v424_v58, %v423_v45 }
  0xba   :  { %2760 = vmatprep.subr.bf16.mxu0 %v2759_v37  ;;  %v456_v60 = vld [vmem:[%s4647_s1 + $0xd88] sm:$0xff]  ;;  %v2797_v63 = vpack.c.bf16 %v390_v57, %v389_v55  ;;  %v407_v1 = vld [vmem:[%s4647_s1 + $0xc00] sm:$0xff]  ;;  %v425_v6 = vld [vmem:[%s4647_s1 + $0xc90] sm:$0xff]  ;;  %v4258_v10 = vrot.slane %v652_v61, %v3133_v13  ;;  %v667_v23 = vcombine.high %v4249_v8, %v4249_v8 }
  0xbb   :  { %2790 = vmatpush3.bf16.msra.mxu1 %v2789_v52  ;;  %v408_v2 = vld [vmem:[%s4647_s1 + $0xc08] sm:$0xff]  ;;  %v439_v3 = vld [vmem:[%s4647_s1 + $0xd00] sm:$0xff]  ;;  %v2831_v4 = vpack.c.bf16 %v456_v60, %v455_v59  ;;  %v426_v7 = vld [vmem:[%s4647_s1 + $0xc98] sm:$0xff] }
  0xbc   :  { %2792 = vmatprep.subr.bf16.mxu1 %v2791_v41  ;;  %v440_v5 = vld [vmem:[%s4647_s1 + $0xd08] sm:$0xff]  ;;  %v457_v9 = vld [vmem:[%s4647_s1 + $0xd90] sm:$0xff]  ;;  %v458_v11 = vld [vmem:[%s4647_s1 + $0xd98] sm:$0xff]  ;;  %v2801_v12 = vpack.c.bf16 %v408_v2, %v407_v1  ;;  %v2803_v15 = vpack.c.bf16 %v426_v7, %v425_v6  ;;  %v668_v26 = vcombine.high %v4258_v10, %v4258_v10 }
  0xbd   :  { %2762 = vmatpush3.bf16.msra.mxu0 %v2761_v49  ;;  %v2833_v14 = vpack.c.bf16 %v440_v5, %v439_v3  ;;  %v409_v16 = vld [vmem:[%s4647_s1 + $0xc10] sm:$0xff]  ;;  %v410_v17 = vld [vmem:[%s4647_s1 + $0xc18] sm:$0xff]  ;;  %v2835_v19 = vpack.c.bf16 %v458_v11, %v457_v9  ;;  %v427_v21 = vld [vmem:[%s4647_s1 + $0xca0] sm:$0xff] }
  0xbe   :  { %2764 = vmatprep.subr.bf16.mxu0 %v2763_v53  ;;  %v441_v18 = vld [vmem:[%s4647_s1 + $0xd10] sm:$0xff]  ;;  %v442_v20 = vld [vmem:[%s4647_s1 + $0xd18] sm:$0xff]  ;;  %v428_v22 = vld [vmem:[%s4647_s1 + $0xca8] sm:$0xff]  ;;  %v2805_v27 = vpack.c.bf16 %v410_v17, %v409_v16 }
  0xbf   :  { %2794 = vmatpush3.bf16.msra.mxu1 %v2793_v51  ;;  %v459_v24 = vld [vmem:[%s4647_s1 + $0xda0] sm:$0xff]  ;;  %v460_v25 = vld [vmem:[%s4647_s1 + $0xda8] sm:$0xff]  ;;  %v2837_v28 = vpack.c.bf16 %v442_v20, %v441_v18  ;;  %v2807_v29 = vpack.c.bf16 %v428_v22, %v427_v21  ;;  %v429_v35 = vld [vmem:[%s4647_s1 + $0xcb0] sm:$0xff] }
  0xc0   :  { %2796 = vmatprep.subr.bf16.mxu1 %v2795_v56  ;;  %v412_v30 = vld [vmem:[%s4647_s1 + $0xc28] sm:$0xff]  ;;  %v443_v32 = vld [vmem:[%s4647_s1 + $0xd20] sm:$0xff]  ;;  %v2839_v42 = vpack.c.bf16 %v460_v25, %v459_v24  ;;  %v430_v36 = vld [vmem:[%s4647_s1 + $0xcb8] sm:$0xff] }
  0xc1   :  { %2766 = vmatpush3.bf16.msra.mxu0 %v2765_v62  ;;  %v461_v52 = vld [vmem:[%s4647_s1 + $0xdb0] sm:$0xff]  ;;  %v462_v37 = vld [vmem:[%s4647_s1 + $0xdb8] sm:$0xff]  ;;  %v2811_v40 = vpack.c.bf16 %v430_v36, %v429_v35  ;;  %v431_v48 = vld [vmem:[%s4647_s1 + $0xcc0] sm:$0xff] }
  0xc2   :  { %2800 = vmatprep.subr.bf16.mxu0 %v2799_v0  ;;  %v413_v41 = vld [vmem:[%s4647_s1 + $0xc30] sm:$0xff]  ;;  %v414_v43 = vld [vmem:[%s4647_s1 + $0xc38] sm:$0xff]  ;;  %v2843_v46 = vpack.c.bf16 %v462_v37, %v461_v52  ;;  %v432_v49 = vld [vmem:[%s4647_s1 + $0xcc8] sm:$0xff] }
  0xc3   :  { %2798 = vmatpush3.bf16.msra.mxu1 %v2797_v63  ;;  %v445_v44 = vld [vmem:[%s4647_s1 + $0xd30] sm:$0xff]  ;;  %v446_v47 = vld [vmem:[%s4647_s1 + $0xd38] sm:$0xff]  ;;  %v463_v50 = vld [vmem:[%s4647_s1 + $0xdc0] sm:$0xff]  ;;  %v2813_v53 = vpack.c.bf16 %v414_v43, %v413_v41  ;;  %v2815_v33 = vpack.c.bf16 %v432_v49, %v431_v48 }
  0xc4   :  { %2832 = vmatprep.subr.bf16.mxu1 %v2831_v4  ;;  %1483 = vmatmul.mubr.f32.vlgmr.msra.gmra.mrb[10].mxu0 %v4042_v31  ;;  %v411_v31 = vld [vmem:[%s4647_s1 + $0xc20] sm:$0xff]  ;;  %v464_v51 = vld [vmem:[%s4647_s1 + $0xdc8] sm:$0xff]  ;;  %v2845_v54 = vpack.c.bf16 %v446_v47, %v445_v44  ;;  %v433_v59 = vld [vmem:[%s4647_s1 + $0xcd0] sm:$0xff] }
  0xc5   :  { %2802 = vmatpush3.bf16.msra.mxu0 %v2801_v12  ;;  %1622 = vmatprep.mubr.f32.mxu0 %v667_v23  ;;  %v2809_v38 = vpack.c.bf16 %v412_v30, %v411_v31  ;;  %v415_v55 = vld [vmem:[%s4647_s1 + $0xc40] sm:$0xff]  ;;  %v416_v56 = vld [vmem:[%s4647_s1 + $0xc48] sm:$0xff]  ;;  %v2847_v45 = vpack.c.bf16 %v464_v51, %v463_v50  ;;  %v434_v60 = vld [vmem:[%s4647_s1 + $0xcd8] sm:$0xff] }
  0xc6   :  { %1553 = vmatmul.mubr.f32.vlgmr.msra.gmra.mrb[10].mxu1 %v4051_v34  ;;  %2804 = vmatprep.subr.bf16.mxu0 %v2803_v15  ;;  %v444_v34 = vld [vmem:[%s4647_s1 + $0xd28] sm:$0xff]  ;;  %v447_v57 = vld [vmem:[%s4647_s1 + $0xd40] sm:$0xff]  ;;  %v465_v61 = vld [vmem:[%s4647_s1 + $0xdd0] sm:$0xff]  ;;  %v2817_v63 = vpack.c.bf16 %v416_v56, %v415_v55  ;;  %v2819_v1 = vpack.c.bf16 %v434_v60, %v433_v59 }
  0xc7   :  { %2834 = vmatpush3.bf16.msra.mxu1 %v2833_v14  ;;  %1692 = vmatprep.mubr.f32.mxu1 %v668_v26  ;;  %v2841_v39 = vpack.c.bf16 %v444_v34, %v443_v32  ;;  %v448_v58 = vld [vmem:[%s4647_s1 + $0xd48] sm:$0xff]  ;;  %v466_v62 = vld [vmem:[%s4647_s1 + $0xdd8] sm:$0xff]  ;;  %v417_v2 = vld [vmem:[%s4647_s1 + $0xc50] sm:$0xff] }
  0xc8   :  { %2836 = vmatprep.subr.bf16.mxu1 %v2835_v19  ;;  %v2849_v0 = vpack.c.bf16 %v448_v58, %v447_v57  ;;  %v418_v3 = vld [vmem:[%s4647_s1 + $0xc58] sm:$0xff]  ;;  %v449_v4 = vld [vmem:[%s4647_s1 + $0xd50] sm:$0xff]  ;;  %v2851_v5 = vpack.c.bf16 %v466_v62, %v465_v61  ;;  %v435_v7 = vld [vmem:[%s4647_s1 + $0xce0] sm:$0xff] }
  0xc9   :  { %2806 = vmatpush3.bf16.msra.mxu0 %v2805_v27  ;;  %v450_v6 = vld [vmem:[%s4647_s1 + $0xd58] sm:$0xff]  ;;  %v436_v9 = vld [vmem:[%s4647_s1 + $0xce8] sm:$0xff]  ;;  %v467_v11 = vld [vmem:[%s4647_s1 + $0xde0] sm:$0xff]  ;;  %v2821_v14 = vpack.c.bf16 %v418_v3, %v417_v2 }
  0xca   :  { %2808 = vmatprep.subr.bf16.mxu0 %v2807_v29  ;;  %v468_v12 = vld [vmem:[%s4647_s1 + $0xde8] sm:$0xff]  ;;  %v2853_v15 = vpack.c.bf16 %v450_v6, %v449_v4  ;;  %v2823_v16 = vpack.c.bf16 %v436_v9, %v435_v7  ;;  %v419_v17 = vld [vmem:[%s4647_s1 + $0xc60] sm:$0xff]  ;;  %v437_v22 = vld [vmem:[%s4647_s1 + $0xcf0] sm:$0xff] }
  0xcb   :  { %2838 = vmatpush3.bf16.msra.mxu1 %v2837_v28  ;;  %v420_v18 = vld [vmem:[%s4647_s1 + $0xc68] sm:$0xff]  ;;  %v451_v19 = vld [vmem:[%s4647_s1 + $0xd60] sm:$0xff]  ;;  %v2855_v20 = vpack.c.bf16 %v468_v12, %v467_v11  ;;  %v438_v23 = vld [vmem:[%s4647_s1 + $0xcf8] sm:$0xff] }
  0xcc   :  { %2840 = vmatprep.subr.bf16.mxu1 %v2839_v42  ;;  %v452_v21 = vld [vmem:[%s4647_s1 + $0xd68] sm:$0xff]  ;;  %v469_v24 = vld [vmem:[%s4647_s1 + $0xdf0] sm:$0xff]  ;;  %v470_v25 = vld [vmem:[%s4647_s1 + $0xdf8] sm:$0xff]  ;;  %v2825_v26 = vpack.c.bf16 %v420_v18, %v419_v17  ;;  %v2827_v29 = vpack.c.bf16 %v438_v23, %v437_v22 }
  0xcd   :  { %2810 = vmatpush3.bf16.msra.mxu0 %v2809_v38  ;;  %v22_v27 = vld [vmem:[%s4646_s0 + $0x38] sm:$0xff]  ;;  %v2857_v28 = vpack.c.bf16 %v452_v21, %v451_v19  ;;  %v421_v31 = vld [vmem:[%s4647_s1 + $0xc70] sm:$0xff]  ;;  %v2859_v42 = vpack.c.bf16 %v470_v25, %v469_v24  ;;  %v487_v35 = vld [vmem:[%s4647_s1 + $0xe80] sm:$0xff] }
  0xce   :  { %2812 = vmatprep.subr.bf16.mxu0 %v2811_v40  ;;  %v422_v30 = vld [vmem:[%s4647_s1 + $0xc78] sm:$0xff]  ;;  %v453_v32 = vld [vmem:[%s4647_s1 + $0xd70] sm:$0xff]  ;;  %v488_v36 = vld [vmem:[%s4647_s1 + $0xe88] sm:$0xff]  ;;  %v669_v38 = vcombine.high %v22_v27, %v22_v27  ;;  %v4456_v51 = vrot.slane %v22_v27, %v3133_v13 }
  0xcf   :  { %2842 = vmatpush3.bf16.msra.mxu1 %v2841_v39  ;;  %v454_v34 = vld [vmem:[%s4647_s1 + $0xd78] sm:$0xff]  ;;  %v519_v52 = vld [vmem:[%s4647_s1 + $0xf80] sm:$0xff]  ;;  %v520_v37 = vld [vmem:[%s4647_s1 + $0xf88] sm:$0xff]  ;;  %v2829_v39 = vpack.c.bf16 %v422_v30, %v421_v31  ;;  %v2863_v41 = vpack.c.bf16 %v488_v36, %v487_v35 }
  0xd0   :  { %2844 = vmatprep.subr.bf16.mxu1 %v2843_v46  ;;  %v2861_v40 = vpack.c.bf16 %v454_v34, %v453_v32  ;;  %v471_v43 = vld [vmem:[%s4647_s1 + $0xe00] sm:$0xff]  ;;  %v472_v44 = vld [vmem:[%s4647_s1 + $0xe08] sm:$0xff]  ;;  %v2895_v47 = vpack.c.bf16 %v520_v37, %v519_v52  ;;  %v489_v49 = vld [vmem:[%s4647_s1 + $0xe90] sm:$0xff] }
  0xd1   :  { %2814 = vmatpush3.bf16.msra.mxu0 %v2813_v53  ;;  %v503_v46 = vld [vmem:[%s4647_s1 + $0xf00] sm:$0xff]  ;;  %v504_v48 = vld [vmem:[%s4647_s1 + $0xf08] sm:$0xff]  ;;  %v490_v50 = vld [vmem:[%s4647_s1 + $0xe98] sm:$0xff]  ;;  %v2865_v55 = vpack.c.bf16 %v472_v44, %v471_v43 }
  0xd2   :  { %2816 = vmatprep.subr.bf16.mxu0 %v2815_v33  ;;  %v521_v53 = vld [vmem:[%s4647_s1 + $0xf90] sm:$0xff]  ;;  %v4465_v33 = vrot.slane %v669_v38, %v3133_v13  ;;  %v2897_v56 = vpack.c.bf16 %v504_v48, %v503_v46  ;;  %v2867_v57 = vpack.c.bf16 %v490_v50, %v489_v49  ;;  %v474_v58 = vld [vmem:[%s4647_s1 + $0xe18] sm:$0xff]  ;;  %v491_v61 = vld [vmem:[%s4647_s1 + $0xea0] sm:$0xff] }
  0xd3   :  { %2846 = vmatpush3.bf16.msra.mxu1 %v2845_v54  ;;  %v522_v54 = vld [vmem:[%s4647_s1 + $0xf98] sm:$0xff]  ;;  %v505_v59 = vld [vmem:[%s4647_s1 + $0xf10] sm:$0xff]  ;;  %v492_v62 = vld [vmem:[%s4647_s1 + $0xea8] sm:$0xff] }
  0xd4   :  { %2848 = vmatprep.subr.bf16.mxu1 %v2847_v45  ;;  %v473_v45 = vld [vmem:[%s4647_s1 + $0xe10] sm:$0xff]  ;;  %v2899_v13 = vpack.c.bf16 %v522_v54, %v521_v53  ;;  %v506_v60 = vld [vmem:[%s4647_s1 + $0xf18] sm:$0xff]  ;;  %v685_v2 = vcombine.high %v4465_v33, %v4465_v33  ;;  %v476_v6 = vld [vmem:[%s4647_s1 + $0xe28] sm:$0xff] }
  0xd5   :  { %2818 = vmatpush3.bf16.msra.mxu0 %v2817_v63  ;;  %v684_v63 = vcombine.high %v4456_v51, %v4456_v51  ;;  %v2869_v3 = vpack.c.bf16 %v474_v58, %v473_v45  ;;  %v2901_v4 = vpack.c.bf16 %v506_v60, %v505_v59  ;;  %v507_v7 = vld [vmem:[%s4647_s1 + $0xf20] sm:$0xff]  ;;  %v493_v11 = vld [vmem:[%s4647_s1 + $0xeb0] sm:$0xff]  ;;  %v494_v12 = vld [vmem:[%s4647_s1 + $0xeb8] sm:$0xff] }
  0xd6   :  { %2820 = vmatprep.subr.bf16.mxu0 %v2819_v1  ;;  %v524_v1 = vld [vmem:[%s4647_s1 + $0xfa8] sm:$0xff]  ;;  %v2875_v18 = vpack.c.bf16 %v494_v12, %v493_v11  ;;  %v477_v19 = vld [vmem:[%s4647_s1 + $0xe30] sm:$0xff]  ;;  %v510_v23 = vld [vmem:[%s4647_s1 + $0xf38] sm:$0xff] }
  0xd7   :  { %2850 = vmatpush3.bf16.msra.mxu1 %v2849_v0  ;;  %v523_v0 = vld [vmem:[%s4647_s1 + $0xfa0] sm:$0xff]  ;;  %v509_v21 = vld [vmem:[%s4647_s1 + $0xf30] sm:$0xff]  ;;  %v496_v25 = vld [vmem:[%s4647_s1 + $0xec8] sm:$0xff] }
  0xd8   :  { %2852 = vmatprep.subr.bf16.mxu1 %v2851_v5  ;;  %v2871_v5 = vpack.c.bf16 %v492_v62, %v491_v61  ;;  %v2903_v9 = vpack.c.bf16 %v524_v1, %v523_v0  ;;  %v495_v24 = vld [vmem:[%s4647_s1 + $0xec0] sm:$0xff]  ;;  %v528_v27 = vld [vmem:[%s4647_s1 + $0xfc8] sm:$0xff]  ;;  %v497_v36 = vld [vmem:[%s4647_s1 + $0xed0] sm:$0xff] }
  0xd9   :  { %2822 = vmatpush3.bf16.msra.mxu0 %v2821_v14  ;;  %v525_v14 = vld [vmem:[%s4647_s1 + $0xfb0] sm:$0xff]  ;;  %v2879_v31 = vpack.c.bf16 %v496_v25, %v495_v24  ;;  %v479_v30 = vld [vmem:[%s4647_s1 + $0xe40] sm:$0xff]  ;;  %v480_v32 = vld [vmem:[%s4647_s1 + $0xe48] sm:$0xff] }
  0xda   :  { %2824 = vmatprep.subr.bf16.mxu0 %v2823_v16  ;;  %v512_v35 = vld [vmem:[%s4647_s1 + $0xf48] sm:$0xff]  ;;  %v498_v52 = vld [vmem:[%s4647_s1 + $0xed8] sm:$0xff]  ;;  %v529_v37 = vld [vmem:[%s4647_s1 + $0xfd0] sm:$0xff] }
  0xdb   :  { %2854 = vmatpush3.bf16.msra.mxu1 %v2853_v15  ;;  %v526_v15 = vld [vmem:[%s4647_s1 + $0xfb8] sm:$0xff]  ;;  %v481_v43 = vld [vmem:[%s4647_s1 + $0xe50] sm:$0xff]  ;;  %v499_v49 = vld [vmem:[%s4647_s1 + $0xee0] sm:$0xff] }
  0xdc   :  { %2856 = vmatprep.subr.bf16.mxu1 %v2855_v20  ;;  %v478_v20 = vld [vmem:[%s4647_s1 + $0xe38] sm:$0xff]  ;;  %v2907_v22 = vpack.c.bf16 %v526_v15, %v525_v14  ;;  %v513_v46 = vld [vmem:[%s4647_s1 + $0xf50] sm:$0xff]  ;;  %v500_v50 = vld [vmem:[%s4647_s1 + $0xee8] sm:$0xff] }
  0xdd   :  { %2826 = vmatpush3.bf16.msra.mxu0 %v2825_v26  ;;  %v527_v26 = vld [vmem:[%s4647_s1 + $0xfc0] sm:$0xff]  ;;  %v530_v38 = vld [vmem:[%s4647_s1 + $0xfd8] sm:$0xff]  ;;  %v532_v54 = vld [vmem:[%s4647_s1 + $0xfe8] sm:$0xff] }
  0xde   :  { %2828 = vmatprep.subr.bf16.mxu0 %v2827_v29  ;;  %v2909_v29 = vpack.c.bf16 %v510_v23, %v509_v21  ;;  %v2911_v34 = vpack.c.bf16 %v528_v27, %v527_v26  ;;  %v482_v44 = vld [vmem:[%s4647_s1 + $0xe58] sm:$0xff]  ;;  %v531_v53 = vld [vmem:[%s4647_s1 + $0xfe0] sm:$0xff]  ;;  %v484_v58 = vld [vmem:[%s4647_s1 + $0xe68] sm:$0xff] }
  0xdf   :  { %2858 = vmatpush3.bf16.msra.mxu1 %v2857_v28  ;;  %v2877_v28 = vpack.c.bf16 %v478_v20, %v477_v19  ;;  %v514_v48 = vld [vmem:[%s4647_s1 + $0xf58] sm:$0xff]  ;;  %v483_v45 = vld [vmem:[%s4647_s1 + $0xe60] sm:$0xff]  ;;  %v2919_v60 = vpack.c.bf16 %v532_v54, %v531_v53  ;;  %v516_v61 = vld [vmem:[%s4647_s1 + $0xf68] sm:$0xff] }
  0xe0   :  { %2860 = vmatprep.subr.bf16.mxu1 %v2859_v42  ;;  %v511_v42 = vld [vmem:[%s4647_s1 + $0xf40] sm:$0xff]  ;;  %v501_v62 = vld [vmem:[%s4647_s1 + $0xef0] sm:$0xff]  ;;  %v486_v12 = vld [vmem:[%s4647_s1 + $0xe78] sm:$0xff] }
  0xe1   :  { %2830 = vmatpush3.bf16.msra.mxu0 %v2829_v39  ;;  %v2881_v39 = vpack.c.bf16 %v480_v32, %v479_v30  ;;  %v515_v59 = vld [vmem:[%s4647_s1 + $0xf60] sm:$0xff]  ;;  %v485_v11 = vld [vmem:[%s4647_s1 + $0xe70] sm:$0xff] }
  0xe2   :  { %2864 = vmatprep.subr.bf16.mxu0 %v2863_v41  ;;  %v2883_v41 = vpack.c.bf16 %v498_v52, %v497_v36  ;;  %v1854_v0 = vld [vmem:[%s4648_s2] ss:$0 sm:$0xff]  ;;  %v2893_v19 = vpack.c.bf16 %v486_v12, %v485_v11 }
  0xe3   :  { %2862 = vmatpush3.bf16.msra.mxu1 %v2861_v40  ;;  %v2913_v40 = vpack.c.bf16 %v512_v35, %v511_v42 }
  0xe4   :  { %2896 = vmatprep.subr.bf16.mxu1 %v2895_v47  ;;  %1623 = vmatmul.mubr.f32.vlgmr.msra.gmra.mrb[12].mxu0 %v4249_v8  ;;  %v475_v8 = vld [vmem:[%s4647_s1 + $0xe20] sm:$0xff]  ;;  %v2915_v47 = vpack.c.bf16 %v530_v38, %v529_v37 }
  0xe5   :  { %2866 = vmatpush3.bf16.msra.mxu0 %v2865_v55  ;;  %1762 = vmatprep.mubr.f32.mxu0 %v684_v63  ;;  %v2873_v16 = vpack.c.bf16 %v476_v6, %v475_v8  ;;  %v2885_v55 = vpack.c.bf16 %v482_v44, %v481_v43  ;;  %v502_v63 = vld [vmem:[%s4647_s1 + $0xef8] sm:$0xff]  ;;  %v2889_v6 = vpack.c.bf16 %v484_v58, %v483_v45 }
  0xe6   :  { %1693 = vmatmul.mubr.f32.vlgmr.msra.gmra.mrb[12].mxu1 %v4258_v10  ;;  %2868 = vmatprep.subr.bf16.mxu0 %v2867_v57  ;;  %v508_v10 = vld [vmem:[%s4647_s1 + $0xf28] sm:$0xff]  ;;  %v2887_v57 = vpack.c.bf16 %v500_v50, %v499_v49 }
  0xe7   :  { %2898 = vmatpush3.bf16.msra.mxu1 %v2897_v56  ;;  %1832 = vmatprep.mubr.f32.mxu1 %v685_v2  ;;  %v2905_v17 = vpack.c.bf16 %v508_v10, %v507_v7  ;;  %v2917_v56 = vpack.c.bf16 %v514_v48, %v513_v46  ;;  %v2891_v10 = vpack.c.bf16 %v502_v63, %v501_v62 }
  0xe8   :  { %2900 = vmatprep.subr.bf16.mxu1 %v2899_v13 }
  0xe9   :  { %2870 = vmatpush3.bf16.msra.mxu0 %v2869_v3  ;;  %v533_v3 = vld [vmem:[%s4647_s1 + $0xff0] sm:$0xff] }
  0xea   :  { %2872 = vmatprep.subr.bf16.mxu0 %v2871_v5 }
  0xeb   :  { %2902 = vmatpush3.bf16.msra.mxu1 %v2901_v4  ;;  %v534_v4 = vld [vmem:[%s4647_s1 + $0xff8] sm:$0xff] }
  0xec   :  { %2904 = vmatprep.subr.bf16.mxu1 %v2903_v9  ;;  %v2921_v9 = vpack.c.bf16 %v516_v61, %v515_v59  ;;  %v2923_v15 = vpack.c.bf16 %v534_v4, %v533_v3 }
  0xed   :  { %2874 = vmatpush3.bf16.msra.mxu0 %v2873_v16  ;;  %v517_v16 = vld [vmem:[%s4647_s1 + $0xf70] sm:$0xff] }
  0xee   :  { %2876 = vmatprep.subr.bf16.mxu0 %v2875_v18 }
  0xef   :  { %2906 = vmatpush3.bf16.msra.mxu1 %v2905_v17  ;;  %v518_v17 = vld [vmem:[%s4647_s1 + $0xf78] sm:$0xff]  ;;  %s2962_s1 = smov [#allocation2]  }
  0xf0   :  { %2908 = vmatprep.subr.bf16.mxu1 %v2907_v22  ;;  %v2925_v20 = vpack.c.bf16 %v518_v17, %v517_v16  ;;  %s1846_s22 = sshll.u32 %s2962_s1, 4  ;;  %s1847_s22 = int_to_ptr.vmem [resolvable:$true] %s1846_s22 }
  0xf1   :  { %2878 = vmatpush3.bf16.msra.mxu0 %v2877_v28  ;;  %s2937_s23 = scalar_lea.vmem %s1847_s22, 32  ;;  %p2942_p1 = scmp.lt.s32.totalorder %s1847_s22, %s1847_s22 }
  0xf2   :  { %2880 = vmatprep.subr.bf16.mxu0 %v2879_v31  ;;  %p2938_p0 = scmp.ne.s32.totalorder %s1847_s22, %s2937_s23  ;;  %p2943_p2 = scmp.lt.s32.totalorder %s2937_s23, %s2937_s23 }
  0xf3   :  { %2910 = vmatpush3.bf16.msra.mxu1 %v2909_v29 }
  0xf4   :  { %2912 = vmatprep.subr.bf16.mxu1 %v2911_v34  ;;  %p2944_p3 = por %p2943_p2, %p2942_p1 }
  0xf5   :  { %2882 = vmatpush3.bf16.msra.mxu0 %v2881_v39 }
  0xf6   :  { %2884 = vmatprep.subr.bf16.mxu0 %v2883_v41  ;;  %p2945_p4 = pnand %p2944_p3, %p2938_p0 }
  0xf7   :  { %2914 = vmatpush3.bf16.msra.mxu1 %v2913_v40  ;;  %v1887_v13 = vpop.f32.mrb[0].mxu0 }
  0xf8   :  { %2916 = vmatprep.subr.bf16.mxu1 %v2915_v47  ;;  %v1888_v1 = vpop.f32.mrb[1].mxu0 }
  0xf9   :  { %v1922_v2 = vpop.f32.mrb[0].mxu1  ;;  %v1889_v5 = vadd.f32 %v1888_v1, %v1887_v13  ;;  %2886 = vmatpush3.bf16.msra.mxu0 %v2885_v55 }
  0xfa   :  { %v1923_v8 = vpop.f32.mrb[1].mxu1  ;;  %2888 = vmatprep.subr.bf16.mxu0 %v2887_v57 }
  0xfb   :  { %v1924_v7 = vadd.f32 %v1923_v8, %v1922_v2  ;;  %2918 = vmatpush3.bf16.msra.mxu1 %v2917_v56  ;;  %v785_v14 = vadd.f32 %v1889_v5, %v1854_v0 }
  0xfc   :  { %2920 = vmatprep.subr.bf16.mxu1 %v2919_v60 }
  0xfd   :  { %v855_v18 = vadd.f32 %v1924_v7, %v785_v14  ;;  %2890 = vmatpush3.bf16.msra.mxu0 %v2889_v6 }
  0xfe   :  { %2892 = vmatprep.subr.bf16.mxu0 %v2891_v10 }
  0xff   :  { %2922 = vmatpush3.bf16.msra.mxu1 %v2921_v9 }
 0x100   :  { %2924 = vmatprep.subr.bf16.mxu1 %v2923_v15 }
 0x101   :  { %2894 = vmatpush3.bf16.msra.mxu0 %v2893_v19 }
 0x103   :  { %2926 = vmatpush3.bf16.msra.mxu1 %v2925_v20 }
 0x104   :  { %1763 = vmatmul.mubr.f32.vlgmr.msra.gmra.mrb[14].mxu0 %v4456_v51 }
 0x106   :  { %1833 = vmatmul.mubr.f32.vlgmr.msra.gmra.mrb[14].mxu1 %v4465_v33 }
 0x117   :  { %v1957_v21 = vpop.f32.mrb[2].mxu0 }
 0x118   :  { %v1958_v22 = vpop.f32.mrb[3].mxu0 }
 0x119   :  { %v1992_v23 = vpop.f32.mrb[2].mxu1  ;;  %v1959_v24 = vadd.f32 %v1958_v22, %v1957_v21 }
 0x11a   :  { %v1993_v25 = vpop.f32.mrb[3].mxu1 }
 0x11b   :  { %v1994_v26 = vadd.f32 %v1993_v25, %v1992_v23  ;;  %v925_v27 = vadd.f32 %v1959_v24, %v855_v18 }
 0x11d   :  { %v995_v28 = vadd.f32 %v1994_v26, %v925_v27 }
 0x137   :  { %v2027_v29 = vpop.f32.mrb[4].mxu0 }
 0x138   :  { %v2028_v31 = vpop.f32.mrb[5].mxu0 }
 0x139   :  { %v2062_v30 = vpop.f32.mrb[4].mxu1  ;;  %v2029_v32 = vadd.f32 %v2028_v31, %v2027_v29 }
 0x13a   :  { %v2063_v42 = vpop.f32.mrb[5].mxu1 }
 0x13b   :  { %v2064_v34 = vadd.f32 %v2063_v42, %v2062_v30  ;;  %v1065_v35 = vadd.f32 %v2029_v32, %v995_v28 }
 0x13d   :  { %v1135_v36 = vadd.f32 %v2064_v34, %v1065_v35 }
 0x157   :  { %v2097_v52 = vpop.f32.mrb[6].mxu0 }
 0x158   :  { %v2098_v51 = vpop.f32.mrb[7].mxu0 }
 0x159   :  { %v2132_v37 = vpop.f32.mrb[6].mxu1  ;;  %v2099_v33 = vadd.f32 %v2098_v51, %v2097_v52 }
 0x15a   :  { %v2133_v38 = vpop.f32.mrb[7].mxu1 }
 0x15b   :  { %v2134_v39 = vadd.f32 %v2133_v38, %v2132_v37  ;;  %v1205_v40 = vadd.f32 %v2099_v33, %v1135_v36 }
 0x15d   :  { %v1275_v41 = vadd.f32 %v2134_v39, %v1205_v40 }
 0x177   :  { %v2167_v43 = vpop.f32.mrb[8].mxu0 }
 0x178   :  { %v2168_v44 = vpop.f32.mrb[9].mxu0 }
 0x179   :  { %v2202_v46 = vpop.f32.mrb[8].mxu1  ;;  %v2169_v47 = vadd.f32 %v2168_v44, %v2167_v43 }
 0x17a   :  { %v2203_v48 = vpop.f32.mrb[9].mxu1 }
 0x17b   :  { %v2204_v49 = vadd.f32 %v2203_v48, %v2202_v46  ;;  %v1345_v50 = vadd.f32 %v2169_v47, %v1275_v41 }
 0x17d   :  { %v1415_v53 = vadd.f32 %v2204_v49, %v1345_v50 }
 0x197   :  { %v2237_v54 = vpop.f32.mrb[10].mxu0 }
 0x198   :  { %v2238_v55 = vpop.f32.mrb[11].mxu0 }
 0x199   :  { %v2272_v56 = vpop.f32.mrb[10].mxu1  ;;  %v2239_v57 = vadd.f32 %v2238_v55, %v2237_v54 }
 0x19a   :  { %v2273_v45 = vpop.f32.mrb[11].mxu1 }
 0x19b   :  { %v2274_v58 = vadd.f32 %v2273_v45, %v2272_v56  ;;  %v1485_v59 = vadd.f32 %v2239_v57, %v1415_v53 }
 0x19d   :  { %v1555_v13 = vadd.f32 %v2274_v58, %v1485_v59 }
 0x1b7   :  { %v2307_v60 = vpop.f32.mrb[12].mxu0 }
 0x1b8   :  { %v2308_v61 = vpop.f32.mrb[13].mxu0 }
 0x1b9   :  { %v2342_v62 = vpop.f32.mrb[12].mxu1  ;;  %v2309_v63 = vadd.f32 %v2308_v61, %v2307_v60 }
 0x1ba   :  { %v2343_v0 = vpop.f32.mrb[13].mxu1 }
 0x1bb   :  { %v2344_v1 = vadd.f32 %v2343_v0, %v2342_v62  ;;  %v1625_v2 = vadd.f32 %v2309_v63, %v1555_v13 }
 0x1bd   :  { %v1695_v3 = vadd.f32 %v2344_v1, %v1625_v2 }
 0x1d7   :  { %v2377_v4 = vpop.f32.mrb[14].mxu0 }
 0x1d8   :  { %v2378_v5 = vpop.f32.mrb[15].mxu0 }
 0x1d9   :  { %v2412_v8 = vpop.f32.mrb[14].mxu1  ;;  %v2379_v6 = vadd.f32 %v2378_v5, %v2377_v4 }
 0x1da   :  { %v2413_v7 = vpop.f32.mrb[15].mxu1 }
 0x1db   :  { %v2414_v9 = vadd.f32 %v2413_v7, %v2412_v8  ;;  %v1765_v10 = vadd.f32 %v2379_v6, %v1695_v3 }
 0x1dd   :  { %v1835_v11 = vadd.f32 %v2414_v9, %v1765_v10 }
 0x1df   :  { %1839 = vst.msk [vmem:[#allocation2] sm:$0x3] %vm1838_vm0, %v1835_v11 }
 0x1e0   :  { %2948 = shalt.err (!%p2945_p4)
}
 0x1e1   :  { %s2949_s26 = scalar_lea.hbm %s4649_s3, 32 }
 0x1e2   :  { %p2950_p5 = scmp.ne.s32.totalorder %s4649_s3, %s2949_s26  ;;  %p2953_p6 = scmp.lt.u32.totalorder %s2949_s26, %s4649_s3 }
 0x1e4   :  { %p2955_p7 = pnand %p2953_p6, %p2950_p5 }
 0x1e6   :  { %2958 = shalt.err (!%p2955_p7)
}
 0x1e7   :  { %1849 = dma.vmem_to_hbm [thread:$0]  %s1847_s22, 32, %s4649_s3, [#allocation3]  }
 0x1e8   :  { %2959 = dma.done.wait [#allocation3], 32  }
 0x1e9   :  { %2960 = vsyncadd [#allocation3], 4294967264 }
 0x1ea   :  { %1853 = vsyncpa [#allocation3], 1 }

// kernel: cnn_kernel_7x7_forward.2
= control target key start
LH: loop header
LB: loop body
LE: loop exit
PB: predicated region body
PF: predicated region fallthrough
CT: control target
= control target key end

     0   :  { %s11516_s0 = inlined_call_operand.vmem [shape: f32[2,1,1280], index: 0, kind: input, shape index: {}]   ;;  %s11517_s1 = inlined_call_operand.hbm [shape: f32[16,49], index: 1, kind: input, shape index: {}]   ;;  %s11518_s2 = inlined_call_operand.vmem [shape: f32[16,1], index: 2, kind: input, shape index: {}]   ;;  %s11519_s3 = inlined_call_operand.hbm [shape: f32[912,512], index: 3, kind: input, shape index: {}]   ;;  %s11520_s4 = inlined_call_operand.hbm [shape: f32[32,784], index: 4, kind: input, shape index: {}]   ;;  %s11521_s5 = inlined_call_operand.vmem [shape: f32[32,1], index: 5, kind: input, shape index: {}]   ;;  %s11522_s6 = inlined_call_operand.hbm [shape: f32[256,128], index: 6, kind: input, shape index: {}]   ;;  %s11523_s7 = inlined_call_operand.vmem [shape: f32[2,32,128], index: 7, kind: output, shape index: {}]  }
   0x1   :  { %11843 = sst [smem:[#allocation145_spill]] %s11516_s0 }
   0x2   :  { %11844 = sst [smem:[#allocation146_spill]] %s11517_s1 }
   0x3   :  { %11845 = sst [smem:[#allocation147_spill]] %s11518_s2 }
   0x4   :  { %11846 = sst [smem:[#allocation148_spill]] %s11519_s3 }
   0x5   :  { %11847 = sst [smem:[#allocation149_spill]] %s11520_s4 }
   0x6   :  { %11848 = sst [smem:[#allocation150_spill]] %s11521_s5 }
   0x7   :  { %11849 = sst [smem:[#allocation151_spill]] %s11522_s6 }
   0x8   :  { %11850 = sst [smem:[#allocation152_spill]] %s11523_s7 }
   0x9   :  { %12 = vsyncpa [#allocation5], 0 }
   0xa   :  { %13 = vsyncpa [#allocation7], 0 }
   0xb   :  { %14 = vsyncpa [#allocation10], 0  ;;  %s8419_s24 = smov 0  }
   0xc LB: > { %11851 = sst [smem:[#allocation14_spill]] %s8289_s24  ;;  %s8291_s25 = smov [#allocation6]   ;;  %s8289_s24 = sphi %s8419_s24, %s20_s24  }
   0xd   : > { %s231_s26 = sshll.u32 %s8291_s25, 4  ;;  %s8425_s27 = sadd.s32 4294967295, %s8289_s24   ;;  %s8430_s26 = int_to_ptr.vmem [resolvable:$true] %s231_s26 }
   0xe   : > { %p5809_p0 = scmp.ge.s32.totalorder %s8289_s24, 1  ;;  %p203_p1 = scmp.lt.s32.totalorder %s8289_s24, 3 }
   0xf   : > { %p11524_p2 = scmp.eq.s32.totalorder %s8425_s27, 0  ;;  %s8292_s29 = smov [#allocation4]  }
  0x10   : > { %p8432_p3 = pnand %p5809_p0, %p203_p1  ;;  %s215_s30 = sshll.u32 %s8292_s29, 4  ;;  %s8438_s30 = int_to_ptr.vmem [resolvable:$true] %s215_s30 }
  0x11   : > { %s8293_s9 = smov [#allocation8]   ;;  %s11854_s3 = sld [smem:[#allocation148_spill]] }
  0x12   : > { %s11852_s28 = scalar_select %p8432_p3, 1, 0 }
  0x13   : > { %p6950_p4 = pneg %p8432_p3  ;;  %s8446_s10 = sshll.u32 %s8293_s9, 4  ;;  %s245_s10 = int_to_ptr.vmem [resolvable:$true] %s8446_s10 }
  0x15   : > { %p8442_p5 = pnand %p11524_p2, %p6950_p4 }
  0x17   : > { %s8159_s13 = scalar_lea.hbm %s11854_s3, 58368  ;;  %p8456_p7 = pneg %p8442_p5 }
  0x18   : > { %p8160_p6 = scmp.ne.s32.totalorder %s11854_s3, %s8159_s13  ;;  %p8166_p10 = scmp.lt.u32.totalorder %s8159_s13, %s11854_s3 }
  0x1a   : > { %p8162_p8 = pnand %p8456_p7, %p8160_p6 }
  0x1c   : > { %p8163_p9 = pneg %p8162_p8 }
  0x1e   : > { %p8168_p11 = pnand %p8166_p10, %p8163_p9 }
  0x20   : > { %8171 = shalt.err (!%p8168_p11)
}
  0x21   : > { %s8172_s19 = scalar_lea.vmem %s8430_s26, 58368  ;;  %p8180_p1 = scmp.lt.s32.totalorder %s8430_s26, %s8430_s26 }
  0x22   : > { %p8173_p12 = scmp.ne.s32.totalorder %s8430_s26, %s8172_s19  ;;  %p8181_p4 = scmp.lt.s32.totalorder %s8172_s19, %s8172_s19 }
  0x24   : > { %p8175_p13 = pnand %p8173_p12, %p8456_p7  ;;  %p8182_p6 = por %p8181_p4, %p8180_p1 }
  0x26   : > { %p8176_p0 = pneg %p8175_p13 }
  0x28   : > { %p8183_p8 = pnand %p8182_p6, %p8176_p0 }
  0x2a   : > { %8186 = shalt.err (!%p8183_p8)
}
  0x2b   : > { %s8294_s20 = smov 512   ;;  %s8295_s21 = smov 32  }
  0x2c   : > { %6956 = dma.hbm_to_vmem [thread:$0]  (!%p8442_p5), %s11854_s3, 58368, %s8430_s26, [#allocation7], %s8294_s20, %s8294_s20, %s8295_s21  }
  0x2d   : > { %s11856_s1 = sld [smem:[#allocation146_spill]] }
  0x33   : > { %s8187_s9 = scalar_lea.hbm %s11856_s1, 256 }
  0x34   : > { %p8188_p9 = scmp.ne.s32.totalorder %s11856_s1, %s8187_s9  ;;  %p8194_p12 = scmp.lt.u32.totalorder %s8187_s9, %s11856_s1 }
  0x36   : > { %p8190_p10 = pnand %p8188_p9, %p8456_p7 }
  0x38   : > { %p8191_p11 = pneg %p8190_p10 }
  0x3a   : > { %p8196_p13 = pnand %p8194_p12, %p8191_p11 }
  0x3c   : > { %8199 = shalt.err (!%p8196_p13)
}
  0x3d   : > { %s8200_s26 = scalar_lea.vmem %s8438_s30, 256  ;;  %p8208_p6 = scmp.lt.s32.totalorder %s8438_s30, %s8438_s30 }
  0x3e   : > { %p8201_p0 = scmp.ne.s32.totalorder %s8438_s30, %s8200_s26  ;;  %p8209_p8 = scmp.lt.s32.totalorder %s8200_s26, %s8200_s26 }
  0x40   : > { %p8203_p1 = pnand %p8201_p0, %p8456_p7  ;;  %p8210_p9 = por %p8209_p8, %p8208_p6 }
  0x42   : > { %p8204_p4 = pneg %p8203_p1 }
  0x44   : > { %p8211_p10 = pnand %p8210_p9, %p8204_p4 }
  0x46   : > { %8214 = shalt.err (!%p8211_p10)
}
  0x47   : > { %s8296_s15 = smov 128   ;;  %s8297_s17 = smov 8  }
  0x48   : > { %6953 = dma.hbm_to_vmem [thread:$0]  (!%p8442_p5), %s11856_s1, 256, %s8438_s30, [#allocation5], %s8296_s15, %s8296_s15, %s8297_s17  }
  0x49   : > { %s11857_s4 = sld [smem:[#allocation149_spill]] }
  0x4f   : > { %s8215_s22 = scalar_lea.hbm %s11857_s4, 3584 }
  0x50   : > { %p8216_p11 = scmp.ne.s32.totalorder %s11857_s4, %s8215_s22  ;;  %p8222_p0 = scmp.lt.u32.totalorder %s8215_s22, %s11857_s4 }
  0x52   : > { %p8218_p12 = pnand %p8216_p11, %p8456_p7 }
  0x54   : > { %p8219_p13 = pneg %p8218_p12 }
  0x56   : > { %p8224_p1 = pnand %p8222_p0, %p8219_p13 }
  0x58   : > { %8227 = shalt.err (!%p8224_p1)
}
  0x59   : > { %s8228_s11 = scalar_lea.vmem %s245_s10, 3584  ;;  %p8236_p9 = scmp.lt.s32.totalorder %s245_s10, %s245_s10 }
  0x5a   : > { %p8229_p4 = scmp.ne.s32.totalorder %s245_s10, %s8228_s11  ;;  %p8237_p10 = scmp.lt.s32.totalorder %s8228_s11, %s8228_s11 }
  0x5c   : > { %p8231_p6 = pnand %p8229_p4, %p8456_p7  ;;  %p8238_p2 = por %p8237_p10, %p8236_p9 }
  0x5e   : > { %p8232_p8 = pneg %p8231_p6 }
  0x60   : > { %p8239_p3 = pnand %p8238_p2, %p8232_p8 }
  0x62   : > { %8242 = shalt.err (!%p8239_p3)
}
  0x63   : > { %s8298_s30 = smov 896   ;;  %s8299_s12 = smov 56  }
  0x64   : > { %6959 = dma.hbm_to_vmem [thread:$0]  (!%p8442_p5), %s11857_s4, 3584, %s245_s10, [#allocation7], %s8298_s30, %s8298_s30, %s8299_s12  }
  0x65   : > { %s8300_s26 = smov [#allocation9]   ;;  %s11858_s6 = sld [smem:[#allocation151_spill]] }
  0x66   : > { %s260_s18 = sshll.u32 %s8300_s26, 4  ;;  %s261_s18 = int_to_ptr.vmem [resolvable:$true] %s260_s18 }
  0x6b   : > { %s8243_s21 = scalar_lea.hbm %s11858_s6, 4096 }
  0x6c   : > { %p8244_p2 = scmp.ne.s32.totalorder %s11858_s6, %s8243_s21  ;;  %p8250_p12 = scmp.lt.u32.totalorder %s8243_s21, %s11858_s6 }
  0x6e   : > { %p8246_p3 = pnand %p8244_p2, %p8456_p7 }
  0x70   : > { %p8247_p11 = pneg %p8246_p3 }
  0x72   : > { %p8252_p13 = pnand %p8250_p12, %p8247_p11 }
  0x74   : > { %8255 = shalt.err (!%p8252_p13)
}
  0x75   : > { %s8256_s10 = scalar_lea.vmem %s261_s18, 4096  ;;  %p8264_p6 = scmp.lt.s32.totalorder %s261_s18, %s261_s18 }
  0x76   : > { %p8257_p0 = scmp.ne.s32.totalorder %s261_s18, %s8256_s10  ;;  %p8265_p8 = scmp.lt.s32.totalorder %s8256_s10, %s8256_s10 }
  0x78   : > { %p8259_p1 = pnand %p8257_p0, %p8456_p7  ;;  %p8266_p9 = por %p8265_p8, %p8264_p6 }
  0x7a   : > { %p8260_p4 = pneg %p8259_p1 }
  0x7c   : > { %p8267_p10 = pnand %p8266_p9, %p8260_p4 }
  0x7e   : > { %8270 = shalt.err (!%p8267_p10)
}
  0x7f   : > { %6962 = dma.hbm_to_vmem [thread:$0]  (!%p8442_p5), %s11858_s6, 4096, %s261_s18, [#allocation10], %s8296_s15, %s8296_s15, %s8297_s17  }
  0x80   : > { %p11859_p2 = scmp.ne.s32.totalorder %s11852_s28, 0 }
  0x82   : > { %283 = sbr.rel (%p11859_p2) target bundleno = 2752 (0xac0), region = 48 }
  0x89   : > { %p11860_p7 = scmp.eq.s32.totalorder %s8425_s27, 0 }
  0x8b   : > { %8276 = dma.done.wait (%p11860_p7), [#allocation5], 256   ;;  %p11861_p3 = pmov %p11860_p7 }
  0x8d   : > { %8278 = vsyncadd (%p11861_p3), [#allocation5], 4294967040  ;;  %p11862_p11 = pmov %p11861_p3 }
  0x8e   : > { %p11863_p12 = pmov %p11861_p3 }
  0x8f   : > { %8280 = dma.done.wait (%p11862_p11), [#allocation7], 61952  }
  0x90   : > { %8282 = vsyncadd (%p11863_p12), [#allocation7], 4294905344  ;;  %p11864_p13 = pmov %p11861_p3 }
  0x91   : > { %p11865_p5 = pmov %p11861_p3 }
  0x92   : > { %8284 = dma.done.wait (%p11864_p13), [#allocation10], 4096  }
  0x93   : > { %8286 = vsyncadd (%p11865_p5), [#allocation10], 4294963200  ;;  %p326_p0 = scmp.lt.s32.totalorder %s8425_s27, 1  ;;  %s11867_s0 = sld [smem:[#allocation145_spill]]  ;;  %vm347_vm0 = vcmask 1046528   ;;  %vm11755_vm1 = vcmask 1031168  }
  0x94   : > { %s11587_s17 = smov 126   ;;  %s11613_s30 = smov 127   ;;  %vm11766_vm2 = vcmask 1039360   ;;  %vm11744_vm3 = vcmask 1022976   ;;  %vm11737_vm4 = vcmask 1014784   ;;  %vm11713_vm5 = vcmask 1006592  }
  0x95   : > { %s12617_s27 = smov (!%p326_p0, %s8425_s27), 1  ;;  %s11609_s12 = smov 125   ;;  %vm11725_vm6 = vcmask 998400   ;;  %vm427_vm7 = vcmask 769024   ;;  %vm440_vm8 = vcmask 760832   ;;  %vm453_vm9 = vcmask 752640  }
  0x96   : > { %11866 = sst [smem:[#allocation15_spill]] %s12617_s27  ;;  %s6933_s28 = smul.u32 10, %s12617_s27  ;;  %vm466_vm10 = vcmask 744448   ;;  %vm479_vm11 = vcmask 736256   ;;  %vm492_vm12 = vcmask 728064   ;;  %vm11777_vm13 = vcmask 719872  }
  0x97   : > { %s11591_s13 = smov 124   ;;  %s11543_s14 = smov 123   ;;  %vm518_vm14 = vcmask 490496   ;;  %vm531_vm15 = vcmask 482304  }
  0x98   : > { %s11595_s26 = smov 122   ;;  %s8307_s18 = smov 94  }
  0x99   : > { %s329_s15 = scalar_lea.vmem %s11867_s0, %s6933_s28  ;;  %s8308_s19 = smov 93  }
  0x9a   : > { %v8565_v0 = vld [vmem:[%s329_s15] sm:$0xff]  ;;  %v8573_v1 = vld [vmem:[%s329_s15 + $0x8] sm:$0x3]  ;;  %s8309_s20 = smov 92   ;;  %s8310_s21 = smov 91  }
  0x9b   : > { %355 = vrot.lane.b32.xlu1 %v8565_v0, %s11587_s17  ;;  %337 = vst [vmem:[#allocation2] ss:$8 sm:$0xf] %v8565_v0  ;;  %338 = vst [vmem:[#allocation2] ss:$8 sm:$0xf0] %v8565_v0  ;;  %341 = vrot.lane.b32.xlu0 %v8565_v0, %s11613_s30 }
  0x9c   : > { %s8311_s22 = smov 90   ;;  %s8312_s23 = smov 89  }
  0x9d   : > { %s11599_s25 = smov 88   ;;  %s8314_s29 = smov 60  }
  0x9e   : > { %s8315_s10 = smov 59   ;;  %s8316_s9 = smov 58  }
  0x9f   : > { %357 = vrot.lane.b32.xlu1 %v8573_v1, %s11587_s17  ;;  %343 = vrot.lane.b32.xlu0 %v8573_v1, %s11613_s30  ;;  %s8317_s11 = smov 57   ;;  %s8318_s28 = smov 56  }
  0xa0   : > { %s8319_s8 = smov 55   ;;  %s8320_s16 = smov 54  }
  0xa1   : > { %s11583_s15 = smov 26   ;;  %s11868_s2 = sld [smem:[#allocation147_spill]] }
  0xa2   : > { %s11894_s0 = smov 27   ;;  %s11895_s1 = smov 47  }
  0xa3   : > { %370 = vrot.lane.b32.xlu1 %v8573_v1, %s11609_s12  ;;  %368 = vrot.lane.b32.xlu0 %v8565_v0, %s11609_s12  ;;  %s11902_s3 = smov 7   ;;  %s11903_s4 = smov 28  }
  0xa4   : > { %s11905_s6 = smov 26   ;;  %s11907_s24 = smov 8  }
  0xa5   : > { %s11909_s7 = smov 127   ;;  %s11625_s27 = smov 6  }
  0xa6   : > { %s11914_s5 = smov 125  }
  0xa7   : > { %383 = vrot.lane.b32.xlu1 %v8573_v1, %s11591_s13  ;;  %381 = vrot.lane.b32.xlu0 %v8565_v0, %s11591_s13 }
  0xab   : > { %396 = vrot.lane.b32.xlu1 %v8573_v1, %s11543_s14  ;;  %394 = vrot.lane.b32.xlu0 %v8565_v0, %s11543_s14 }
  0xaf   : > { %409 = vrot.lane.b32.xlu1 %v8573_v1, %s11595_s26  ;;  %407 = vrot.lane.b32.xlu0 %v8565_v0, %s11595_s26 }
  0xb3   : > { %422 = vrot.lane.b32.xlu1 %v8573_v1, %s8307_s18  ;;  %420 = vrot.lane.b32.xlu0 %v8565_v0, %s8307_s18 }
  0xb7   : > { %435 = vrot.lane.b32.xlu1 %v8573_v1, %s8308_s19  ;;  %433 = vrot.lane.b32.xlu0 %v8565_v0, %s8308_s19  ;;  %s11528_s19 = smov 25  }
  0xbb   : > { %448 = vrot.lane.b32.xlu1 %v8573_v1, %s8309_s20  ;;  %446 = vrot.lane.b32.xlu0 %v8565_v0, %s8309_s20  ;;  %s11532_s20 = smov 24  }
  0xbf   : > { %461 = vrot.lane.b32.xlu1 %v8573_v1, %s8310_s21  ;;  %459 = vrot.lane.b32.xlu0 %v8565_v0, %s8310_s21  ;;  %s11526_s21 = smov 23  }
  0xc3   : > { %474 = vrot.lane.b32.xlu1 %v8573_v1, %s8311_s22  ;;  %472 = vrot.lane.b32.xlu0 %v8565_v0, %s8311_s22  ;;  %s11530_s22 = smov 22  }
  0xc7   : > { %487 = vrot.lane.b32.xlu1 %v8573_v1, %s8312_s23  ;;  %485 = vrot.lane.b32.xlu0 %v8565_v0, %s8312_s23  ;;  %s8326_s23 = smov 21  }
  0xcb   : > { %500 = vrot.lane.b32.xlu1 %v8573_v1, %s11599_s25  ;;  %498 = vrot.lane.b32.xlu0 %v8565_v0, %s11599_s25 }
  0xcf   : > { %513 = vrot.lane.b32.xlu1 %v8573_v1, %s8314_s29  ;;  %511 = vrot.lane.b32.xlu0 %v8565_v0, %s8314_s29  ;;  %s8327_s29 = smov 20  }
  0xd3   : > { %526 = vrot.lane.b32.xlu1 %v8573_v1, %s8315_s10  ;;  %524 = vrot.lane.b32.xlu0 %v8565_v0, %s8315_s10  ;;  %s8328_s10 = smov 120  }
  0xd7   : > { %539 = vrot.lane.b32.xlu1 %v8573_v1, %s8316_s9  ;;  %537 = vrot.lane.b32.xlu0 %v8565_v0, %s8316_s9  ;;  %s8329_s9 = smov 119  }
  0xdb   : > { %552 = vrot.lane.b32.xlu1 %v8573_v1, %s8317_s11  ;;  %550 = vrot.lane.b32.xlu0 %v8565_v0, %s8317_s11  ;;  %s8330_s11 = smov 118  }
  0xdf   : > { %565 = vrot.lane.b32.xlu1 %v8573_v1, %s8318_s28  ;;  %563 = vrot.lane.b32.xlu0 %v8565_v0, %s8318_s28  ;;  %s8331_s28 = smov 117  }
  0xe3   : > { %578 = vrot.lane.b32.xlu1 %v8573_v1, %s8319_s8  ;;  %576 = vrot.lane.b32.xlu0 %v8565_v0, %s8319_s8  ;;  %s8332_s8 = smov 116  }
  0xe7   : > { %591 = vrot.lane.b32.xlu1 %v8573_v1, %s8320_s16  ;;  %589 = vrot.lane.b32.xlu0 %v8565_v0, %s8320_s16  ;;  %s8333_s16 = smov 115  }
  0xeb   : > { %604 = vrot.lane.b32.xlu1 %v8573_v1, %s11583_s15  ;;  %602 = vrot.lane.b32.xlu0 %v8565_v0, %s11583_s15 }
  0xef   : > { %617 = vrot.lane.b32.xlu1 %v8573_v1, %s11528_s19  ;;  %615 = vrot.lane.b32.xlu0 %v8565_v0, %s11528_s19  ;;  %s11545_s19 = smov 108  }
  0xf3   : > { %630 = vrot.lane.b32.xlu1 %v8573_v1, %s11532_s20  ;;  %628 = vrot.lane.b32.xlu0 %v8565_v0, %s11532_s20  ;;  %s11601_s20 = smov 105  }
  0xf7   : > { %643 = vrot.lane.b32.xlu1 %v8573_v1, %s11526_s21  ;;  %641 = vrot.lane.b32.xlu0 %v8565_v0, %s11526_s21  ;;  %s11547_s21 = smov 106  }
  0xfb   : > { %656 = vrot.lane.b32.xlu1 %v8573_v1, %s11530_s22  ;;  %654 = vrot.lane.b32.xlu0 %v8565_v0, %s11530_s22  ;;  %s11597_s22 = smov 103  }
  0xff   : > { %669 = vrot.lane.b32.xlu1 %v8573_v1, %s8326_s23  ;;  %667 = vrot.lane.b32.xlu0 %v8565_v0, %s8326_s23  ;;  %s8334_s23 = smov 114  }
 0x103   : > { %682 = vrot.lane.b32.xlu1 %v8573_v1, %s8327_s29  ;;  %680 = vrot.lane.b32.xlu0 %v8565_v0, %s8327_s29  ;;  %s11553_s29 = smov 86  }
 0x107   : > { %695 = vrot.lane.b32.xlu1 %v8573_v1, %s8328_s10  ;;  %693 = vrot.lane.b32.xlu0 %v8565_v0, %s8328_s10  ;;  %s11555_s10 = smov 85  }
 0x10b   : > { %712 = vrot.lane.b32.xlu1 %v8573_v1, %s8329_s9  ;;  %710 = vrot.lane.b32.xlu0 %v8565_v0, %s8329_s9  ;;  %s11603_s9 = smov 84  }
 0x10d   : > { %v356_v2 = vpop.permute.xlu1 %355  ;;  %v342_v3 = vpop.permute.xlu0 %341 }
 0x10e   : > { %v359_v6 = vrot.slane %v356_v2, 1  ;;  %v345_v7 = vrot.slane %v342_v3, 1 }
 0x10f   : > { %728 = vrot.lane.b32.xlu1 %v8573_v1, %s8330_s11  ;;  %726 = vrot.lane.b32.xlu0 %v8565_v0, %s8330_s11  ;;  %s11559_s11 = smov 83  }
 0x111   : > { %v358_v4 = vpop.permute.xlu1 %357  ;;  %v344_v5 = vpop.permute.xlu0 %343 }
 0x112   : > { %v360_v8 = vrot.slane %v358_v4, 1  ;;  %v346_v9 = vrot.slane %v344_v5, 1 }
 0x113   : > { %744 = vrot.lane.b32.xlu1 %v8573_v1, %s8331_s28  ;;  %742 = vrot.lane.b32.xlu0 %v8565_v0, %s8331_s28  ;;  %s11557_s28 = smov 82  }
 0x114   : > { %v361_v10 = vsel %vm347_vm0, %v359_v6, %v360_v8  ;;  %v348_v11 = vsel %vm347_vm0, %v345_v7, %v346_v9 }
 0x115   : > { %v363_v12 = vsel %vm11755_vm1, %v356_v2, %v361_v10  ;;  %v350_v13 = vsel %vm11766_vm2, %v342_v3, %v348_v11  ;;  %v371_v14 = vpop.permute.xlu1 %370  ;;  %v369_v15 = vpop.permute.xlu0 %368 }
 0x116   : > { %366 = vst [vmem:[#allocation2 + $0x2] ss:$8 sm:$0xf] %v363_v12  ;;  %367 = vst [vmem:[#allocation2 + $0x2] ss:$8 sm:$0xf0] %v363_v12 }
 0x117   : > { %353 = vst [vmem:[#allocation2 + $0x1] ss:$8 sm:$0xf] %v350_v13  ;;  %354 = vst [vmem:[#allocation2 + $0x1] ss:$8 sm:$0xf0] %v350_v13  ;;  %760 = vrot.lane.b32.xlu1 %v8573_v1, %s8332_s8  ;;  %758 = vrot.lane.b32.xlu0 %v8565_v0, %s8332_s8 }
 0x118   : > { %v373_v16 = vrot.slane %v371_v14, 1  ;;  %v372_v17 = vrot.slane %v369_v15, 1  ;;  %s8340_s8 = smov 81  }
 0x119   : > { %v384_v20 = vpop.permute.xlu1 %383  ;;  %v382_v21 = vpop.permute.xlu0 %381 }
 0x11a   : > { %v374_v18 = vsel %vm347_vm0, %v372_v17, %v373_v16  ;;  %v386_v22 = vrot.slane %v384_v20, 1  ;;  %v385_v23 = vrot.slane %v382_v21, 1 }
 0x11b   : > { %v376_v19 = vsel %vm11744_vm3, %v369_v15, %v374_v18  ;;  %776 = vrot.lane.b32.xlu1 %v8573_v1, %s8333_s16  ;;  %774 = vrot.lane.b32.xlu0 %v8565_v0, %s8333_s16  ;;  %s8341_s16 = smov 80  }
 0x11c   : > { %379 = vst [vmem:[#allocation2 + $0x3] ss:$8 sm:$0xf] %v376_v19  ;;  %380 = vst [vmem:[#allocation2 + $0x3] ss:$8 sm:$0xf0] %v376_v19  ;;  %v387_v24 = vsel %vm347_vm0, %v385_v23, %v386_v22 }
 0x11d   : > { %v389_v25 = vsel %vm11737_vm4, %v382_v21, %v387_v24  ;;  %v397_v26 = vpop.permute.xlu1 %396  ;;  %v395_v27 = vpop.permute.xlu0 %394 }
 0x11e   : > { %392 = vst [vmem:[#allocation2 + $0x4] ss:$8 sm:$0xf] %v389_v25  ;;  %393 = vst [vmem:[#allocation2 + $0x4] ss:$8 sm:$0xf0] %v389_v25 }
 0x11f   : > { %v399_v28 = vrot.slane %v397_v26, 1  ;;  %v398_v29 = vrot.slane %v395_v27, 1  ;;  %792 = vrot.lane.b32.xlu1 %v8573_v1, %s8334_s23  ;;  %790 = vrot.lane.b32.xlu0 %v8565_v0, %s8334_s23  ;;  %s8342_s23 = smov 52  }
 0x121   : > { %v400_v30 = vsel %vm347_vm0, %v398_v29, %v399_v28  ;;  %v410_v32 = vpop.permute.xlu1 %409  ;;  %v408_v33 = vpop.permute.xlu0 %407 }
 0x122   : > { %v402_v31 = vsel %vm11713_vm5, %v395_v27, %v400_v30  ;;  %v412_v34 = vrot.slane %v410_v32, 1  ;;  %v411_v35 = vrot.slane %v408_v33, 1 }
 0x123   : > { %405 = vst [vmem:[#allocation2 + $0x5] ss:$8 sm:$0xf] %v402_v31  ;;  %406 = vst [vmem:[#allocation2 + $0x5] ss:$8 sm:$0xf0] %v402_v31  ;;  %808 = vrot.lane.b32.xlu1 %v8573_v1, %s11553_s29  ;;  %806 = vrot.lane.b32.xlu0 %v8565_v0, %s11553_s29 }
 0x124   : > { %v413_v36 = vsel %vm347_vm0, %v411_v35, %v412_v34 }
 0x125   : > { %v415_v37 = vsel %vm11725_vm6, %v408_v33, %v413_v36  ;;  %v423_v38 = vpop.permute.xlu1 %422  ;;  %v421_v39 = vpop.permute.xlu0 %420 }
 0x126   : > { %418 = vst [vmem:[#allocation2 + $0x6] ss:$8 sm:$0xf] %v415_v37  ;;  %419 = vst [vmem:[#allocation2 + $0x6] ss:$8 sm:$0xf0] %v415_v37 }
 0x127   : > { %v425_v40 = vrot.slane %v423_v38, 1  ;;  %v424_v41 = vrot.slane %v421_v39, 1  ;;  %824 = vrot.lane.b32.xlu1 %v8573_v1, %s11555_s10  ;;  %822 = vrot.lane.b32.xlu0 %v8565_v0, %s11555_s10 }
 0x129   : > { %v426_v42 = vsel %vm347_vm0, %v424_v41, %v425_v40  ;;  %v436_v44 = vpop.permute.xlu1 %435  ;;  %v434_v45 = vpop.permute.xlu0 %433 }
 0x12a   : > { %v428_v43 = vsel %vm427_vm7, %v421_v39, %v426_v42  ;;  %v438_v46 = vrot.slane %v436_v44, 1  ;;  %v437_v47 = vrot.slane %v434_v45, 1 }
 0x12b   : > { %431 = vst [vmem:[#allocation2 + $0x7] ss:$8 sm:$0xf] %v428_v43  ;;  %432 = vst [vmem:[#allocation2 + $0x7] ss:$8 sm:$0xf0] %v428_v43  ;;  %840 = vrot.lane.b32.xlu1 %v8573_v1, %s11603_s9  ;;  %838 = vrot.lane.b32.xlu0 %v8565_v0, %s11603_s9 }
 0x12c   : > { %v439_v48 = vsel %vm347_vm0, %v437_v47, %v438_v46 }
 0x12d   : > { %v441_v49 = vsel %vm440_vm8, %v434_v45, %v439_v48  ;;  %v449_v50 = vpop.permute.xlu1 %448  ;;  %v447_v51 = vpop.permute.xlu0 %446  ;;  %vm544_vm8 = vcmask 474112  }
 0x12e   : > { %444 = vst [vmem:[#allocation2 + $0x40] ss:$8 sm:$0xf] %v441_v49  ;;  %445 = vst [vmem:[#allocation2 + $0x40] ss:$8 sm:$0xf0] %v441_v49 }
 0x12f   : > { %v451_v52 = vrot.slane %v449_v50, 1  ;;  %v450_v53 = vrot.slane %v447_v51, 1  ;;  %856 = vrot.lane.b32.xlu1 %v8573_v1, %s11559_s11  ;;  %854 = vrot.lane.b32.xlu0 %v8565_v0, %s11559_s11 }
 0x131   : > { %v452_v54 = vsel %vm347_vm0, %v450_v53, %v451_v52  ;;  %v462_v56 = vpop.permute.xlu1 %461  ;;  %v460_v57 = vpop.permute.xlu0 %459 }
 0x132   : > { %v454_v55 = vsel %vm453_vm9, %v447_v51, %v452_v54  ;;  %v464_v58 = vrot.slane %v462_v56, 1  ;;  %v463_v59 = vrot.slane %v460_v57, 1  ;;  %vm557_vm9 = vcmask 465920   ;;  %v1033_v41 = vld [vmem:[#allocation2 + $0x8] sm:$0xff]  ;;  %v1035_v42 = vld [vmem:[#allocation2 + $0x18] sm:$0xff]  ;;  %v1032_v53 = vld [vmem:[#allocation2] sm:$0xff] }
 0x133   : > { %457 = vst [vmem:[#allocation2 + $0x41] ss:$8 sm:$0xf] %v454_v55  ;;  %458 = vst [vmem:[#allocation2 + $0x41] ss:$8 sm:$0xf0] %v454_v55  ;;  %872 = vrot.lane.b32.xlu1 %v8573_v1, %s11557_s28  ;;  %870 = vrot.lane.b32.xlu0 %v8565_v0, %s11557_s28 }
 0x134   : > { %v465_v60 = vsel %vm347_vm0, %v463_v59, %v464_v58  ;;  %v1034_v54 = vld [vmem:[#allocation2 + $0x10] sm:$0xff] }
 0x135   : > { %v467_v61 = vsel %vm466_vm10, %v460_v57, %v465_v60  ;;  %v475_v62 = vpop.permute.xlu1 %474  ;;  %v473_v63 = vpop.permute.xlu0 %472  ;;  %vm570_vm10 = vcmask 457728  }
 0x136   : > { %470 = vst [vmem:[#allocation2 + $0x42] ss:$8 sm:$0xf] %v467_v61  ;;  %471 = vst [vmem:[#allocation2 + $0x42] ss:$8 sm:$0xf0] %v467_v61 }
 0x137   : > { %v477_v2 = vrot.slane %v475_v62, 1  ;;  %v476_v3 = vrot.slane %v473_v63, 1  ;;  %888 = vrot.lane.b32.xlu1 %v8573_v1, %s8340_s8  ;;  %886 = vrot.lane.b32.xlu0 %v8565_v0, %s8340_s8  ;;  %s8343_s8 = smov 51  }
 0x139   : > { %v478_v4 = vsel %vm347_vm0, %v476_v3, %v477_v2  ;;  %v488_v6 = vpop.permute.xlu1 %487  ;;  %v486_v7 = vpop.permute.xlu0 %485 }
 0x13a   : > { %v480_v5 = vsel %vm479_vm11, %v473_v63, %v478_v4  ;;  %v490_v8 = vrot.slane %v488_v6, 1  ;;  %v489_v9 = vrot.slane %v486_v7, 1  ;;  %vm583_vm11 = vcmask 449536  }
 0x13b   : > { %483 = vst [vmem:[#allocation2 + $0x43] ss:$8 sm:$0xf] %v480_v5  ;;  %484 = vst [vmem:[#allocation2 + $0x43] ss:$8 sm:$0xf0] %v480_v5  ;;  %904 = vrot.lane.b32.xlu1 %v8573_v1, %s8341_s16  ;;  %902 = vrot.lane.b32.xlu0 %v8565_v0, %s8341_s16 }
 0x13c   : > { %v491_v10 = vsel %vm347_vm0, %v489_v9, %v490_v8  ;;  %s8344_s16 = smov 50   ;;  %v11639_v8 = vmov 0.0  }
 0x13d   : > { %v493_v11 = vsel %vm492_vm12, %v486_v7, %v491_v10  ;;  %v501_v12 = vpop.permute.xlu1 %500  ;;  %v499_v13 = vpop.permute.xlu0 %498  ;;  %vm596_vm12 = vcmask 441344   ;;  %1195 = vmatprep.mubr.f32.mxu0 %v11639_v8  ;;  %1272 = vmatprep.mubr.f32.mxu1 %v11639_v8 }
 0x13e   : > { %496 = vst [vmem:[#allocation2 + $0x44] ss:$8 sm:$0xf] %v493_v11  ;;  %497 = vst [vmem:[#allocation2 + $0x44] ss:$8 sm:$0xf0] %v493_v11 }
 0x13f   : > { %v503_v14 = vrot.slane %v501_v12, 1  ;;  %v502_v15 = vrot.slane %v499_v13, 1  ;;  %920 = vrot.lane.b32.xlu1 %v8573_v1, %s8342_s23  ;;  %918 = vrot.lane.b32.xlu0 %v8565_v0, %s8342_s23  ;;  %s8345_s23 = smov 49  }
 0x141   : > { %v504_v16 = vsel %vm347_vm0, %v502_v15, %v503_v14  ;;  %v514_v18 = vpop.permute.xlu1 %513  ;;  %v512_v19 = vpop.permute.xlu0 %511 }
 0x142   : > { %v506_v17 = vsel %vm11777_vm13, %v499_v13, %v504_v16  ;;  %v516_v20 = vrot.slane %v514_v18, 1  ;;  %v515_v21 = vrot.slane %v512_v19, 1 }
 0x143   : > { %509 = vst [vmem:[#allocation2 + $0x45] ss:$8 sm:$0xf] %v506_v17  ;;  %510 = vst [vmem:[#allocation2 + $0x45] ss:$8 sm:$0xf0] %v506_v17  ;;  %936 = vrot.lane.b32.xlu1 %v8573_v1, %s8343_s8  ;;  %934 = vrot.lane.b32.xlu0 %v8565_v0, %s8343_s8 }
 0x144   : > { %v517_v22 = vsel %vm347_vm0, %v515_v21, %v516_v20  ;;  %s11615_s8 = smov 48  }
 0x145   : > { %v519_v23 = vsel %vm518_vm14, %v512_v19, %v517_v22  ;;  %v527_v24 = vpop.permute.xlu1 %526  ;;  %v525_v25 = vpop.permute.xlu0 %524  ;;  %vm11536_vm14 = vcmask 211968  }
 0x146   : > { %522 = vst [vmem:[#allocation2 + $0x46] ss:$8 sm:$0xf] %v519_v23  ;;  %523 = vst [vmem:[#allocation2 + $0x46] ss:$8 sm:$0xf0] %v519_v23 }
 0x147   : > { %v529_v26 = vrot.slane %v527_v24, 1  ;;  %v528_v27 = vrot.slane %v525_v25, 1  ;;  %952 = vrot.lane.b32.xlu1 %v8573_v1, %s8344_s16  ;;  %950 = vrot.lane.b32.xlu0 %v8565_v0, %s8344_s16  ;;  %s11567_s16 = smov 47  }
 0x149   : > { %v530_v28 = vsel %vm347_vm0, %v528_v27, %v529_v26  ;;  %v540_v30 = vpop.permute.xlu1 %539  ;;  %v538_v31 = vpop.permute.xlu0 %537 }
 0x14a   : > { %v532_v29 = vsel %vm531_vm15, %v525_v25, %v530_v28  ;;  %v542_v32 = vrot.slane %v540_v30, 1  ;;  %v541_v33 = vrot.slane %v538_v31, 1  ;;  %vm11538_vm15 = vcmask 203776  }
 0x14b   : > { %535 = vst [vmem:[#allocation2 + $0x47] ss:$8 sm:$0xf] %v532_v29  ;;  %536 = vst [vmem:[#allocation2 + $0x47] ss:$8 sm:$0xf0] %v532_v29  ;;  %968 = vrot.lane.b32.xlu1 %v8573_v1, %s8345_s23  ;;  %966 = vrot.lane.b32.xlu0 %v8565_v0, %s8345_s23 }
 0x14c   : > { %v543_v34 = vsel %vm347_vm0, %v541_v33, %v542_v32  ;;  %s11575_s23 = smov 46  }
 0x14d   : > { %v545_v35 = vsel %vm544_vm8, %v538_v31, %v543_v34  ;;  %v553_v36 = vpop.permute.xlu1 %552  ;;  %v551_v37 = vpop.permute.xlu0 %550  ;;  %vm11534_vm8 = vcmask 195584  }
 0x14e   : > { %548 = vst [vmem:[#allocation2 + $0x80] ss:$8 sm:$0xf] %v545_v35  ;;  %549 = vst [vmem:[#allocation2 + $0x80] ss:$8 sm:$0xf0] %v545_v35 }
 0x14f   : > { %v555_v38 = vrot.slane %v553_v36, 1  ;;  %v554_v39 = vrot.slane %v551_v37, 1  ;;  %984 = vrot.lane.b32.xlu1 %v8573_v1, %s11615_s8  ;;  %982 = vrot.lane.b32.xlu0 %v8565_v0, %s11615_s8  ;;  %v1088_v35 = vld [vmem:[%s11868_s2] sm:$0xff]  ;;  %v1089_v36 = vld [vmem:[%s11868_s2 + $0x8] sm:$0xff]  ;;  %s11899_s2 = smov 43  }
 0x151   : > { %v556_v40 = vsel %vm347_vm0, %v554_v39, %v555_v38  ;;  %v566_v44 = vpop.permute.xlu1 %565  ;;  %v564_v45 = vpop.permute.xlu0 %563  ;;  %v8350_v39 = vmov 0  }
 0x152   : > { %v558_v43 = vsel %vm557_vm9, %v551_v37, %v556_v40  ;;  %v1041_v46 = vld [vmem:[#allocation2 + $0x48] sm:$0xff]  ;;  %v1043_v47 = vld [vmem:[#allocation2 + $0x58] sm:$0xff]  ;;  %v1040_v48 = vld [vmem:[#allocation2 + $0x40] sm:$0xff]  ;;  %v568_v49 = vrot.slane %v566_v44, 1  ;;  %v567_v50 = vrot.slane %v564_v45, 1  ;;  %vm11535_vm9 = vcmask 187392   ;;  %7067 = vset.pattern.permute.xlu0 %v8350_v39  ;;  %7068 = vset.pattern.permute.xlu1 %v8350_v39 }
 0x153   : > { %561 = vst [vmem:[#allocation2 + $0x81] ss:$8 sm:$0xf] %v558_v43  ;;  %562 = vst [vmem:[#allocation2 + $0x81] ss:$8 sm:$0xf0] %v558_v43  ;;  %v6045_v51 = vpack.c.bf16 %v1041_v46, %v1033_v41  ;;  %v6057_v52 = vpack.c.bf16 %v1043_v47, %v1035_v42  ;;  %1000 = vrot.lane.b32.xlu1 %v8573_v1, %s11567_s16  ;;  %998 = vrot.lane.b32.xlu0 %v8565_v0, %s11567_s16 }
 0x154   : > { %v1042_v55 = vld [vmem:[#allocation2 + $0x50] sm:$0xff]  ;;  %v6047_v56 = vpack.c.bf16 %v1040_v48, %v1032_v53  ;;  %v569_v58 = vsel %vm347_vm0, %v567_v50, %v568_v49 }
 0x155   : > { %v6059_v57 = vpack.c.bf16 %v1042_v55, %v1034_v54  ;;  %6046 = vmatprep.subr.bf16.mxu0 %v6045_v51  ;;  %6058 = vmatprep.subr.bf16.mxu1 %v6057_v52  ;;  %v571_v59 = vsel %vm570_vm10, %v564_v45, %v569_v58  ;;  %v579_v60 = vpop.permute.xlu1 %578  ;;  %v577_v61 = vpop.permute.xlu0 %576  ;;  %vm11537_vm10 = vcmask 179200  }
 0x156   : > { %6048 = vmatpush1.bf16.msra.mxu0 %v6047_v56  ;;  %574 = vst [vmem:[#allocation2 + $0x82] ss:$8 sm:$0xf] %v571_v59  ;;  %575 = vst [vmem:[#allocation2 + $0x82] ss:$8 sm:$0xf0] %v571_v59 }
 0x157   : > { %6060 = vmatpush1.bf16.msra.mxu1 %v6059_v57  ;;  %v581_v62 = vrot.slane %v579_v60, 1  ;;  %v580_v63 = vrot.slane %v577_v61, 1  ;;  %1016 = vrot.lane.b32.xlu1 %v8573_v1, %s11575_s23 }
 0x158   : > { %1014 = vrot.lane.b32.xlu0 %v8565_v0, %s11575_s23 }
 0x159   : > { %v582_v2 = vsel %vm347_vm0, %v580_v63, %v581_v62  ;;  %v592_v4 = vpop.permute.xlu1 %591  ;;  %v590_v5 = vpop.permute.xlu0 %589 }
 0x15a   : > { %v584_v3 = vsel %vm583_vm11, %v577_v61, %v582_v2  ;;  %v594_v6 = vrot.slane %v592_v4, 1  ;;  %v593_v7 = vrot.slane %v590_v5, 1  ;;  %vm674_vm11 = vcmask 171008  }
 0x15b   : > { %587 = vst [vmem:[#allocation2 + $0x83] ss:$8 sm:$0xf] %v584_v3  ;;  %588 = vst [vmem:[#allocation2 + $0x83] ss:$8 sm:$0xf0] %v584_v3  ;;  %1097 = vperm.xlu1 %7068, %v1089_v36  }
 0x15c   : > { %v595_v1 = vsel %vm347_vm0, %v593_v7, %v594_v6  ;;  %1092 = vperm.xlu0 %7067, %v1088_v35  }
 0x15d   : > { %v597_v9 = vsel %vm596_vm12, %v590_v5, %v595_v1  ;;  %v605_v10 = vpop.permute.xlu1 %604  ;;  %v603_v0 = vpop.permute.xlu0 %602  ;;  %vm687_vm12 = vcmask 162816  }
 0x15e   : > { %600 = vst [vmem:[#allocation2 + $0x84] ss:$8 sm:$0xf] %v597_v9  ;;  %601 = vst [vmem:[#allocation2 + $0x84] ss:$8 sm:$0xf0] %v597_v9 }
 0x15f   : > { %v607_v11 = vrot.slane %v605_v10, 1  ;;  %v606_v12 = vrot.slane %v603_v0, 1 }
 0x161   : > { %v608_v13 = vsel %vm347_vm0, %v606_v12, %v607_v11  ;;  %v618_v15 = vpop.permute.xlu1 %617  ;;  %v616_v16 = vpop.permute.xlu0 %615 }
 0x162   : > { %v610_v14 = vsel %vm11536_vm14, %v603_v0, %v608_v13  ;;  %v620_v17 = vrot.slane %v618_v15, 1  ;;  %v619_v18 = vrot.slane %v616_v16, 1  ;;  %vm11539_vm14 = vcmask 678912  }
 0x163   : > { %613 = vst [vmem:[#allocation2 + $0x85] ss:$8 sm:$0xf] %v610_v14  ;;  %614 = vst [vmem:[#allocation2 + $0x85] ss:$8 sm:$0xf0] %v610_v14 }
 0x164   : > { %v621_v19 = vsel %vm347_vm0, %v619_v18, %v620_v17 }
 0x165   : > { %v623_v20 = vsel %vm11538_vm15, %v616_v16, %v621_v19  ;;  %v631_v21 = vpop.permute.xlu1 %630  ;;  %v629_v22 = vpop.permute.xlu0 %628  ;;  %vm896_vm15 = vcmask 662528  }
 0x166   : > { %626 = vst [vmem:[#allocation2 + $0x86] ss:$8 sm:$0xf] %v623_v20  ;;  %627 = vst [vmem:[#allocation2 + $0x86] ss:$8 sm:$0xf0] %v623_v20 }
 0x167   : > { %v633_v23 = vrot.slane %v631_v21, 1  ;;  %v632_v24 = vrot.slane %v629_v22, 1 }
 0x169   : > { %v634_v25 = vsel %vm347_vm0, %v632_v24, %v633_v23  ;;  %v644_v27 = vpop.permute.xlu1 %643  ;;  %v642_v28 = vpop.permute.xlu0 %641 }
 0x16a   : > { %v636_v26 = vsel %vm11534_vm8, %v629_v22, %v634_v25  ;;  %v646_v29 = vrot.slane %v644_v27, 1  ;;  %v645_v30 = vrot.slane %v642_v28, 1  ;;  %vm702_vm8 = vcmask 1045504  }
 0x16b   : > { %639 = vst [vmem:[#allocation2 + $0x87] ss:$8 sm:$0xf] %v636_v26  ;;  %640 = vst [vmem:[#allocation2 + $0x87] ss:$8 sm:$0xf0] %v636_v26 }
 0x16c   : > { %v647_v31 = vsel %vm347_vm0, %v645_v30, %v646_v29 }
 0x16d   : > { %v649_v32 = vsel %vm11535_vm9, %v642_v28, %v647_v31  ;;  %v657_v33 = vpop.permute.xlu1 %656  ;;  %v655_v34 = vpop.permute.xlu0 %654  ;;  %vm704_vm9 = vcmask 982016  }
 0x16e   : > { %652 = vst [vmem:[#allocation2 + $0xc0] ss:$8 sm:$0xf] %v649_v32  ;;  %653 = vst [vmem:[#allocation2 + $0xc0] ss:$8 sm:$0xf0] %v649_v32 }
 0x16f   : > { %v659_v37 = vrot.slane %v657_v33, 1  ;;  %v658_v38 = vrot.slane %v655_v34, 1 }
 0x171   : > { %v660_v40 = vsel %vm347_vm0, %v658_v38, %v659_v37  ;;  %v670_v42 = vpop.permute.xlu1 %669  ;;  %v668_v43 = vpop.permute.xlu0 %667 }
 0x172   : > { %v662_v41 = vsel %vm11537_vm10, %v655_v34, %v660_v40  ;;  %v672_v44 = vrot.slane %v670_v42, 1  ;;  %v671_v45 = vrot.slane %v668_v43, 1  ;;  %vm11541_vm10 = vcmask 670720  }
 0x173   : > { %665 = vst [vmem:[#allocation2 + $0xc1] ss:$8 sm:$0xf] %v662_v41  ;;  %666 = vst [vmem:[#allocation2 + $0xc1] ss:$8 sm:$0xf0] %v662_v41 }
 0x174   : > { %v673_v46 = vsel %vm347_vm0, %v671_v45, %v672_v44  ;;  %v1049_v44 = vld [vmem:[#allocation2 + $0x88] sm:$0xff]  ;;  %v1051_v45 = vld [vmem:[#allocation2 + $0x98] sm:$0xff] }
 0x175   : > { %v675_v47 = vsel %vm674_vm11, %v668_v43, %v673_v46  ;;  %v683_v48 = vpop.permute.xlu1 %682  ;;  %v681_v49 = vpop.permute.xlu0 %680  ;;  %vm720_vm11 = vcmask 973824   ;;  %v1048_v46 = vld [vmem:[#allocation2 + $0x80] sm:$0xff] }
 0x176   : > { %678 = vst [vmem:[#allocation2 + $0xc2] ss:$8 sm:$0xf] %v675_v47  ;;  %679 = vst [vmem:[#allocation2 + $0xc2] ss:$8 sm:$0xf0] %v675_v47 }
 0x177   : > { %v685_v50 = vrot.slane %v683_v48, 1  ;;  %v684_v51 = vrot.slane %v681_v49, 1 }
 0x179   : > { %v686_v52 = vsel %vm347_vm0, %v684_v51, %v685_v50  ;;  %v696_v54 = vpop.permute.xlu1 %695  ;;  %v694_v55 = vpop.permute.xlu0 %693 }
 0x17a   : > { %v688_v53 = vsel %vm687_vm12, %v681_v49, %v686_v52  ;;  %v698_v56 = vrot.slane %v696_v54, 1  ;;  %v700_v57 = vrot.slane %v696_v54, 2  ;;  %v697_v58 = vrot.slane %v694_v55, 1 }
 0x17b   : > { %691 = vst [vmem:[#allocation2 + $0xc3] ss:$8 sm:$0xf] %v688_v53  ;;  %692 = vst [vmem:[#allocation2 + $0xc3] ss:$8 sm:$0xf0] %v688_v53 }
 0x17c   : > { %v699_v59 = vrot.slane %v694_v55, 2  ;;  %v701_v60 = vsel %vm347_vm0, %v697_v58, %v698_v56  ;;  %vm736_vm12 = vcmask 965632  }
 0x17d   : > { %v713_v63 = vpop.permute.xlu1 %712  ;;  %v711_v2 = vpop.permute.xlu0 %710 }
 0x17e   : > { %v703_v61 = vsel %vm702_vm8, %v699_v59, %v700_v57  ;;  %v715_v3 = vrot.slane %v713_v63, 1  ;;  %v717_v4 = vrot.slane %v713_v63, 2  ;;  %v714_v5 = vrot.slane %v711_v2, 1  ;;  %v1050_v57 = vld [vmem:[#allocation2 + $0x90] sm:$0xff] }
 0x17f   : > { %v705_v62 = vsel %vm704_vm9, %v701_v60, %v703_v61  ;;  %v716_v6 = vrot.slane %v711_v2, 2  ;;  %vm752_vm9 = vcmask 957440  }
 0x180   : > { %708 = vst [vmem:[#allocation2 + $0xc4] ss:$8 sm:$0xf] %v705_v62  ;;  %709 = vst [vmem:[#allocation2 + $0xc4] ss:$8 sm:$0xf0] %v705_v62  ;;  %v718_v7 = vsel %vm347_vm0, %v714_v5, %v715_v3 }
 0x181   : > { %v719_v1 = vsel %vm702_vm8, %v716_v6, %v717_v4  ;;  %v729_v10 = vpop.permute.xlu1 %728  ;;  %v727_v0 = vpop.permute.xlu0 %726 }
 0x182   : > { %v721_v9 = vsel %vm720_vm11, %v718_v7, %v719_v1  ;;  %v731_v11 = vrot.slane %v729_v10, 1  ;;  %v733_v12 = vrot.slane %v729_v10, 2  ;;  %v730_v13 = vrot.slane %v727_v0, 1 }
 0x183   : > { %724 = vst [vmem:[#allocation2 + $0xc5] ss:$8 sm:$0xf] %v721_v9  ;;  %725 = vst [vmem:[#allocation2 + $0xc5] ss:$8 sm:$0xf0] %v721_v9 }
 0x184   : > { %v732_v14 = vrot.slane %v727_v0, 2  ;;  %v734_v15 = vsel %vm347_vm0, %v730_v13, %v731_v11  ;;  %vm768_vm11 = vcmask 949248  }
 0x185   : > { %v745_v18 = vpop.permute.xlu1 %744  ;;  %v743_v19 = vpop.permute.xlu0 %742 }
 0x186   : > { %v735_v16 = vsel %vm702_vm8, %v732_v14, %v733_v12  ;;  %v747_v20 = vrot.slane %v745_v18, 1  ;;  %v749_v21 = vrot.slane %v745_v18, 2  ;;  %v746_v22 = vrot.slane %v743_v19, 1 }
 0x187   : > { %v737_v17 = vsel %vm736_vm12, %v734_v15, %v735_v16  ;;  %v748_v23 = vrot.slane %v743_v19, 2  ;;  %vm784_vm12 = vcmask 941056  }
 0x188   : > { %740 = vst [vmem:[#allocation2 + $0xc6] ss:$8 sm:$0xf] %v737_v17  ;;  %741 = vst [vmem:[#allocation2 + $0xc6] ss:$8 sm:$0xf0] %v737_v17  ;;  %v750_v24 = vsel %vm347_vm0, %v746_v22, %v747_v20 }
 0x189   : > { %v751_v25 = vsel %vm702_vm8, %v748_v23, %v749_v21  ;;  %v761_v27 = vpop.permute.xlu1 %760  ;;  %v759_v28 = vpop.permute.xlu0 %758 }
 0x18a   : > { %v753_v26 = vsel %vm752_vm9, %v750_v24, %v751_v25  ;;  %v763_v29 = vrot.slane %v761_v27, 1  ;;  %v765_v30 = vrot.slane %v761_v27, 2  ;;  %v762_v31 = vrot.slane %v759_v28, 1 }
 0x18b   : > { %756 = vst [vmem:[#allocation2 + $0xc7] ss:$8 sm:$0xf] %v753_v26  ;;  %757 = vst [vmem:[#allocation2 + $0xc7] ss:$8 sm:$0xf0] %v753_v26 }
 0x18c   : > { %v764_v32 = vrot.slane %v759_v28, 2  ;;  %v766_v33 = vsel %vm347_vm0, %v762_v31, %v763_v29  ;;  %vm800_vm9 = vcmask 932864  }
 0x18d   : > { %v777_v36 = vpop.permute.xlu1 %776  ;;  %v775_v37 = vpop.permute.xlu0 %774 }
 0x18e   : > { %v767_v34 = vsel %vm702_vm8, %v764_v32, %v765_v30  ;;  %v779_v38 = vrot.slane %v777_v36, 1  ;;  %v781_v39 = vrot.slane %v777_v36, 2  ;;  %v778_v40 = vrot.slane %v775_v37, 1 }
 0x18f   : > { %v769_v35 = vsel %vm768_vm11, %v766_v33, %v767_v34  ;;  %v780_v41 = vrot.slane %v775_v37, 2  ;;  %vm11786_vm11 = vcmask 703488  }
 0x190   : > { %772 = vst [vmem:[#allocation2 + $0x100] ss:$8 sm:$0xf] %v769_v35  ;;  %773 = vst [vmem:[#allocation2 + $0x100] ss:$8 sm:$0xf0] %v769_v35  ;;  %v782_v42 = vsel %vm347_vm0, %v778_v40, %v779_v38 }
 0x191   : > { %v783_v43 = vsel %vm702_vm8, %v780_v41, %v781_v39  ;;  %v793_v48 = vpop.permute.xlu1 %792  ;;  %v791_v49 = vpop.permute.xlu0 %790 }
 0x192   : > { %v785_v47 = vsel %vm784_vm12, %v782_v42, %v783_v43  ;;  %v1057_v50 = vld [vmem:[#allocation2 + $0xc8] sm:$0xff]  ;;  %v1059_v51 = vld [vmem:[#allocation2 + $0xd8] sm:$0xff]  ;;  %v1056_v52 = vld [vmem:[#allocation2 + $0xc0] sm:$0xff]  ;;  %v795_v53 = vrot.slane %v793_v48, 1  ;;  %v797_v54 = vrot.slane %v793_v48, 2  ;;  %v794_v55 = vrot.slane %v791_v49, 1 }
 0x193   : > { %788 = vst [vmem:[#allocation2 + $0x101] ss:$8 sm:$0xf] %v785_v47  ;;  %789 = vst [vmem:[#allocation2 + $0x101] ss:$8 sm:$0xf0] %v785_v47  ;;  %v6049_v59 = vpack.c.bf16 %v1057_v50, %v1049_v44  ;;  %v6061_v60 = vpack.c.bf16 %v1059_v51, %v1051_v45  ;;  %v6051_v61 = vpack.c.bf16 %v1056_v52, %v1048_v46 }
 0x194   : > { %v796_v56 = vrot.slane %v791_v49, 2  ;;  %v1058_v58 = vld [vmem:[#allocation2 + $0xd0] sm:$0xff]  ;;  %v798_v63 = vsel %vm347_vm0, %v794_v55, %v795_v53  ;;  %vm11540_vm12 = vcmask 695296  }
 0x195   : > { %v6063_v62 = vpack.c.bf16 %v1058_v58, %v1050_v57  ;;  %6050 = vmatprep.subr.bf16.mxu0 %v6049_v59  ;;  %6062 = vmatprep.subr.bf16.mxu1 %v6061_v60  ;;  %v809_v4 = vpop.permute.xlu1 %808  ;;  %v807_v5 = vpop.permute.xlu0 %806 }
 0x196   : > { %v799_v2 = vsel %vm702_vm8, %v796_v56, %v797_v54  ;;  %v811_v6 = vrot.slane %v809_v4, 1  ;;  %v813_v7 = vrot.slane %v809_v4, 2  ;;  %v810_v1 = vrot.slane %v807_v5, 1  ;;  %6052 = vmatpush1.bf16.msra.mxu0 %v6051_v61 }
 0x197   : > { %v801_v3 = vsel %vm800_vm9, %v798_v63, %v799_v2  ;;  %v812_v9 = vrot.slane %v807_v5, 2  ;;  %6064 = vmatpush1.bf16.msra.mxu1 %v6063_v62  ;;  %vm11808_vm9 = vcmask 687104  }
 0x198   : > { %804 = vst [vmem:[#allocation2 + $0x102] ss:$8 sm:$0xf] %v801_v3  ;;  %805 = vst [vmem:[#allocation2 + $0x102] ss:$8 sm:$0xf0] %v801_v3  ;;  %v814_v10 = vsel %vm347_vm0, %v810_v1, %v811_v6 }
 0x199   : > { %v815_v0 = vsel %vm702_vm8, %v812_v9, %v813_v7  ;;  %v825_v12 = vpop.permute.xlu1 %824  ;;  %v823_v13 = vpop.permute.xlu0 %822 }
 0x19a   : > { %v817_v11 = vsel %vm11786_vm11, %v814_v10, %v815_v0  ;;  %v827_v14 = vrot.slane %v825_v12, 1  ;;  %v829_v15 = vrot.slane %v825_v12, 2  ;;  %v826_v16 = vrot.slane %v823_v13, 1 }
 0x19b   : > { %820 = vst [vmem:[#allocation2 + $0x103] ss:$8 sm:$0xf] %v817_v11  ;;  %821 = vst [vmem:[#allocation2 + $0x103] ss:$8 sm:$0xf0] %v817_v11 }
 0x19c   : > { %v828_v17 = vrot.slane %v823_v13, 2  ;;  %v830_v18 = vsel %vm347_vm0, %v826_v16, %v827_v14 }
 0x19d   : > { %v841_v21 = vpop.permute.xlu1 %840  ;;  %v839_v22 = vpop.permute.xlu0 %838 }
 0x19e   : > { %v831_v19 = vsel %vm702_vm8, %v828_v17, %v829_v15  ;;  %v843_v23 = vrot.slane %v841_v21, 1  ;;  %v845_v24 = vrot.slane %v841_v21, 2  ;;  %v842_v25 = vrot.slane %v839_v22, 1 }
 0x19f   : > { %v833_v20 = vsel %vm11540_vm12, %v830_v18, %v831_v19  ;;  %v844_v26 = vrot.slane %v839_v22, 2  ;;  %vm928_vm12 = vcmask 424960  }
 0x1a0   : > { %836 = vst [vmem:[#allocation2 + $0x104] ss:$8 sm:$0xf] %v833_v20  ;;  %837 = vst [vmem:[#allocation2 + $0x104] ss:$8 sm:$0xf0] %v833_v20  ;;  %v846_v27 = vsel %vm347_vm0, %v842_v25, %v843_v23 }
 0x1a1   : > { %v847_v28 = vsel %vm702_vm8, %v844_v26, %v845_v24  ;;  %v857_v30 = vpop.permute.xlu1 %856  ;;  %v855_v31 = vpop.permute.xlu0 %854 }
 0x1a2   : > { %v849_v29 = vsel %vm11808_vm9, %v846_v27, %v847_v28  ;;  %v859_v32 = vrot.slane %v857_v30, 1  ;;  %v861_v33 = vrot.slane %v857_v30, 2  ;;  %v858_v34 = vrot.slane %v855_v31, 1 }
 0x1a3   : > { %852 = vst [vmem:[#allocation2 + $0x105] ss:$8 sm:$0xf] %v849_v29  ;;  %853 = vst [vmem:[#allocation2 + $0x105] ss:$8 sm:$0xf0] %v849_v29 }
 0x1a4   : > { %v860_v35 = vrot.slane %v855_v31, 2  ;;  %v862_v36 = vsel %vm347_vm0, %v858_v34, %v859_v32 }
 0x1a5   : > { %v873_v39 = vpop.permute.xlu1 %872  ;;  %v871_v40 = vpop.permute.xlu0 %870 }
 0x1a6   : > { %v863_v37 = vsel %vm702_vm8, %v860_v35, %v861_v33  ;;  %v875_v41 = vrot.slane %v873_v39, 1  ;;  %v877_v42 = vrot.slane %v873_v39, 2  ;;  %v874_v43 = vrot.slane %v871_v40, 1 }
 0x1a7   : > { %v865_v38 = vsel %vm11539_vm14, %v862_v36, %v863_v37  ;;  %v876_v44 = vrot.slane %v871_v40, 2  ;;  %vm912_vm14 = vcmask 654336  }
 0x1a8   : > { %868 = vst [vmem:[#allocation2 + $0x106] ss:$8 sm:$0xf] %v865_v38  ;;  %869 = vst [vmem:[#allocation2 + $0x106] ss:$8 sm:$0xf0] %v865_v38  ;;  %v878_v45 = vsel %vm347_vm0, %v874_v43, %v875_v41 }
 0x1a9   : > { %v879_v46 = vsel %vm702_vm8, %v876_v44, %v877_v42  ;;  %v889_v48 = vpop.permute.xlu1 %888  ;;  %v887_v49 = vpop.permute.xlu0 %886 }
 0x1aa   : > { %v881_v47 = vsel %vm11541_vm10, %v878_v45, %v879_v46  ;;  %v891_v50 = vrot.slane %v889_v48, 1  ;;  %v893_v51 = vrot.slane %v889_v48, 2  ;;  %v890_v52 = vrot.slane %v887_v49, 1 }
 0x1ab   : > { %884 = vst [vmem:[#allocation2 + $0x107] ss:$8 sm:$0xf] %v881_v47  ;;  %885 = vst [vmem:[#allocation2 + $0x107] ss:$8 sm:$0xf0] %v881_v47 }
 0x1ac   : > { %v892_v53 = vrot.slane %v887_v49, 2  ;;  %v894_v54 = vsel %vm347_vm0, %v890_v52, %v891_v50  ;;  %vm11793_vm10 = vcmask 375808  }
 0x1ad   : > { %v905_v57 = vpop.permute.xlu1 %904  ;;  %v903_v58 = vpop.permute.xlu0 %902 }
 0x1ae   : > { %v895_v55 = vsel %vm702_vm8, %v892_v53, %v893_v51  ;;  %v907_v59 = vrot.slane %v905_v57, 1  ;;  %v909_v60 = vrot.slane %v905_v57, 2  ;;  %v906_v61 = vrot.slane %v903_v58, 1 }
 0x1af   : > { %v897_v56 = vsel %vm896_vm15, %v894_v54, %v895_v55  ;;  %v908_v62 = vrot.slane %v903_v58, 2  ;;  %vm944_vm15 = vcmask 416768  }
 0x1b0   : > { %900 = vst [vmem:[#allocation2 + $0x140] ss:$8 sm:$0xf] %v897_v56  ;;  %901 = vst [vmem:[#allocation2 + $0x140] ss:$8 sm:$0xf0] %v897_v56  ;;  %v910_v63 = vsel %vm347_vm0, %v906_v61, %v907_v59 }
 0x1b1   : > { %v911_v2 = vsel %vm702_vm8, %v908_v62, %v909_v60  ;;  %v921_v4 = vpop.permute.xlu1 %920  ;;  %v919_v5 = vpop.permute.xlu0 %918 }
 0x1b2   : > { %v913_v3 = vsel %vm912_vm14, %v910_v63, %v911_v2  ;;  %v923_v6 = vrot.slane %v921_v4, 1  ;;  %v925_v7 = vrot.slane %v921_v4, 2  ;;  %v922_v1 = vrot.slane %v919_v5, 1  ;;  %v1065_v4 = vld [vmem:[#allocation2 + $0x108] sm:$0xff] }
 0x1b3   : > { %916 = vst [vmem:[#allocation2 + $0x141] ss:$8 sm:$0xf] %v913_v3  ;;  %917 = vst [vmem:[#allocation2 + $0x141] ss:$8 sm:$0xf0] %v913_v3 }
 0x1b4   : > { %v924_v9 = vrot.slane %v919_v5, 2  ;;  %v926_v10 = vsel %vm347_vm0, %v922_v1, %v923_v6  ;;  %vm960_vm14 = vcmask 408576   ;;  %v1067_v5 = vld [vmem:[#allocation2 + $0x118] sm:$0xff]  ;;  %v1064_v6 = vld [vmem:[#allocation2 + $0x100] sm:$0xff] }
 0x1b5   : > { %v937_v12 = vpop.permute.xlu1 %936  ;;  %v935_v13 = vpop.permute.xlu0 %934 }
 0x1b6   : > { %v927_v0 = vsel %vm702_vm8, %v924_v9, %v925_v7  ;;  %v939_v14 = vrot.slane %v937_v12, 1  ;;  %v941_v15 = vrot.slane %v937_v12, 2  ;;  %v938_v16 = vrot.slane %v935_v13, 1  ;;  %v1066_v12 = vld [vmem:[#allocation2 + $0x110] sm:$0xff] }
 0x1b7   : > { %v929_v11 = vsel %vm928_vm12, %v926_v10, %v927_v0  ;;  %v940_v17 = vrot.slane %v935_v13, 2  ;;  %vm976_vm12 = vcmask 400384  }
 0x1b8   : > { %932 = vst [vmem:[#allocation2 + $0x142] ss:$8 sm:$0xf] %v929_v11  ;;  %933 = vst [vmem:[#allocation2 + $0x142] ss:$8 sm:$0xf0] %v929_v11  ;;  %v942_v18 = vsel %vm347_vm0, %v938_v16, %v939_v14 }
 0x1b9   : > { %v943_v19 = vsel %vm702_vm8, %v940_v17, %v941_v15  ;;  %v953_v21 = vpop.permute.xlu1 %952  ;;  %v951_v22 = vpop.permute.xlu0 %950  ;;  %v1045_v17 = vld [vmem:[#allocation2 + $0x68] sm:$0xff] }
 0x1ba   : > { %v945_v20 = vsel %vm944_vm15, %v942_v18, %v943_v19  ;;  %v955_v23 = vrot.slane %v953_v21, 1  ;;  %v957_v24 = vrot.slane %v953_v21, 2  ;;  %v954_v25 = vrot.slane %v951_v22, 1  ;;  %v1047_v21 = vld [vmem:[#allocation2 + $0x78] sm:$0xff] }
 0x1bb   : > { %948 = vst [vmem:[#allocation2 + $0x143] ss:$8 sm:$0xf] %v945_v20  ;;  %949 = vst [vmem:[#allocation2 + $0x143] ss:$8 sm:$0xf0] %v945_v20 }
 0x1bc   : > { %v956_v26 = vrot.slane %v951_v22, 2  ;;  %v958_v27 = vsel %vm347_vm0, %v954_v25, %v955_v23  ;;  %vm992_vm15 = vcmask 392192   ;;  %v1037_v20 = vld [vmem:[#allocation2 + $0x28] sm:$0xff]  ;;  %v8812_v22 = vld [vmem:[#allocation4] sm:$0xff]  ;;  %v1039_v25 = vld [vmem:[#allocation2 + $0x38] sm:$0xff] }
 0x1bd   : > { %v969_v30 = vpop.permute.xlu1 %968  ;;  %v967_v31 = vpop.permute.xlu0 %966  ;;  %v1044_v23 = vld [vmem:[#allocation2 + $0x60] sm:$0xff] }
 0x1be   : > { %v959_v28 = vsel %vm702_vm8, %v956_v26, %v957_v24  ;;  %v971_v32 = vrot.slane %v969_v30, 1  ;;  %v973_v33 = vrot.slane %v969_v30, 2  ;;  %v970_v34 = vrot.slane %v967_v31, 1  ;;  %v1046_v24 = vld [vmem:[#allocation2 + $0x70] sm:$0xff]  ;;  %v1061_v26 = vld [vmem:[#allocation2 + $0xe8] sm:$0xff]  ;;  %v1036_v30 = vld [vmem:[#allocation2 + $0x20] sm:$0xff] }
 0x1bf   : > { %v961_v29 = vsel %vm960_vm14, %v958_v27, %v959_v28  ;;  %v972_v35 = vrot.slane %v967_v31, 2  ;;  %vm11542_vm14 = vcmask 384000   ;;  %v1063_v27 = vld [vmem:[#allocation2 + $0xf8] sm:$0xff]  ;;  %v6069_v28 = vpack.c.bf16 %v1045_v17, %v1037_v20  ;;  %v1038_v31 = vld [vmem:[#allocation2 + $0x30] sm:$0xff] }
 0x1c0   : > { %964 = vst [vmem:[#allocation2 + $0x144] ss:$8 sm:$0xf] %v961_v29  ;;  %965 = vst [vmem:[#allocation2 + $0x144] ss:$8 sm:$0xf0] %v961_v29  ;;  %v974_v36 = vsel %vm347_vm0, %v970_v34, %v971_v32  ;;  %v6081_v29 = vpack.c.bf16 %v1047_v21, %v1039_v25  ;;  %v6071_v32 = vpack.c.bf16 %v1044_v23, %v1036_v30 }
 0x1c1   : > { %v975_v37 = vsel %vm702_vm8, %v972_v35, %v973_v33  ;;  %v985_v39 = vpop.permute.xlu1 %984  ;;  %v983_v40 = vpop.permute.xlu0 %982  ;;  %v6083_v33 = vpack.c.bf16 %v1046_v24, %v1038_v31  ;;  %v1053_v34 = vld [vmem:[#allocation2 + $0xa8] sm:$0xff]  ;;  %v1055_v35 = vld [vmem:[#allocation2 + $0xb8] sm:$0xff] }
 0x1c2   : > { %v977_v38 = vsel %vm976_vm12, %v974_v36, %v975_v37  ;;  %v987_v41 = vrot.slane %v985_v39, 1  ;;  %v989_v42 = vrot.slane %v985_v39, 2  ;;  %v986_v43 = vrot.slane %v983_v40, 1  ;;  %v1062_v39 = vld [vmem:[#allocation2 + $0xf0] sm:$0xff]  ;;  %v2028_v25 = vld [vmem:[#allocation6 + $0xc08] sm:$0xff] }
 0x1c3   : > { %980 = vst [vmem:[#allocation2 + $0x145] ss:$8 sm:$0xf] %v977_v38  ;;  %981 = vst [vmem:[#allocation2 + $0x145] ss:$8 sm:$0xf0] %v977_v38  ;;  %v6073_v36 = vpack.c.bf16 %v1061_v26, %v1053_v34  ;;  %v6085_v37 = vpack.c.bf16 %v1063_v27, %v1055_v35 }
 0x1c4   : > { %v988_v44 = vrot.slane %v983_v40, 2  ;;  %v990_v45 = vsel %vm347_vm0, %v986_v43, %v987_v41  ;;  %v1060_v38 = vld [vmem:[#allocation2 + $0xe0] sm:$0xff]  ;;  %v2032_v26 = vld [vmem:[#allocation6 + $0xc28] sm:$0xff]  ;;  %v2027_v27 = vld [vmem:[#allocation6 + $0xc00] sm:$0xff] }
 0x1c5   : > { %v1001_v48 = vpop.permute.xlu1 %1000  ;;  %v999_v49 = vpop.permute.xlu0 %998  ;;  %v1052_v43 = vld [vmem:[#allocation2 + $0xa0] sm:$0xff]  ;;  %v2036_v30 = vld [vmem:[#allocation6 + $0xc48] sm:$0xff]  ;;  %v2035_v34 = vld [vmem:[#allocation6 + $0xc40] sm:$0xff] }
 0x1c6   : > { %v991_v46 = vsel %vm702_vm8, %v988_v44, %v989_v42  ;;  %v1003_v50 = vrot.slane %v1001_v48, 1  ;;  %v1005_v51 = vrot.slane %v1001_v48, 2  ;;  %v1002_v52 = vrot.slane %v999_v49, 1  ;;  %v1031_v42 = vld [vmem:[#allocation4 + $0x8] sm:$0xff]  ;;  %v1054_v44 = vld [vmem:[#allocation2 + $0xb0] sm:$0xff]  ;;  %v1071_v48 = vld [vmem:[#allocation2 + $0x138] sm:$0xff] }
 0x1c7   : > { %v993_v47 = vsel %vm992_vm15, %v990_v45, %v991_v46  ;;  %v1004_v53 = vrot.slane %v999_v49, 2  ;;  %v6075_v45 = vpack.c.bf16 %v1060_v38, %v1052_v43  ;;  %v6087_v46 = vpack.c.bf16 %v1062_v39, %v1054_v44  ;;  %v2040_v31 = vld [vmem:[#allocation6 + $0xc68] sm:$0xff]  ;;  %v2039_v35 = vld [vmem:[#allocation6 + $0xc60] sm:$0xff] }
 0x1c8   : > { %996 = vst [vmem:[#allocation2 + $0x146] ss:$8 sm:$0xf] %v993_v47  ;;  %997 = vst [vmem:[#allocation2 + $0x146] ss:$8 sm:$0xf0] %v993_v47  ;;  %v1006_v54 = vsel %vm347_vm0, %v1002_v52, %v1003_v50  ;;  %v6291_v38 = vpack.c.bf16 %v2039_v35, %v2035_v34 }
 0x1c9   : > { %v1007_v55 = vsel %vm702_vm8, %v1004_v53, %v1005_v51  ;;  %v1017_v57 = vpop.permute.xlu1 %1016  ;;  %v1069_v47 = vld [vmem:[#allocation2 + $0x128] sm:$0xff]  ;;  %v1068_v53 = vld [vmem:[#allocation2 + $0x120] sm:$0xff]  ;;  %v2056_v43 = vld [vmem:[#allocation6 + $0xce8] sm:$0xff] }
 0x1ca   : > { %v1009_v56 = vsel %vm11542_vm14, %v1006_v54, %v1007_v55  ;;  %v1015_v58 = vpop.permute.xlu0 %1014  ;;  %v1019_v59 = vrot.slane %v1017_v57, 1  ;;  %v1021_v60 = vrot.slane %v1017_v57, 2  ;;  %vm1106_vm14 = vcmask 1040384   ;;  %v1070_v54 = vld [vmem:[#allocation2 + $0x130] sm:$0xff] }
 0x1cb   : > { %1012 = vst [vmem:[#allocation2 + $0x147] ss:$8 sm:$0xf] %v1009_v56  ;;  %1013 = vst [vmem:[#allocation2 + $0x147] ss:$8 sm:$0xf0] %v1009_v56 }
 0x1cc   : > { %v1018_v61 = vrot.slane %v1015_v58, 1  ;;  %v1020_v62 = vrot.slane %v1015_v58, 2 }
 0x1ce   : > { %v1022_v63 = vsel %vm347_vm0, %v1018_v61, %v1019_v59  ;;  %v1023_v2 = vsel %vm702_vm8, %v1020_v62, %v1021_v60  ;;  %vm11712_vm0 = vcmask 130048   ;;  %vm11721_vm8 = vcmask 883712  }
 0x1cf   : > { %v1025_v3 = vsel %vm11793_vm10, %v1022_v63, %v1023_v2 }
 0x1d0   : > { %1028 = vst [vmem:[#allocation2 + $0x180] ss:$8 sm:$0xf] %v1025_v3  ;;  %1029 = vst [vmem:[#allocation2 + $0x180] ss:$8 sm:$0xf0] %v1025_v3 }
 0x1d2   : > { %v1073_v7 = vld [vmem:[#allocation2 + $0x148] sm:$0xff]  ;;  %v1075_v1 = vld [vmem:[#allocation2 + $0x158] sm:$0xff]  ;;  %v1072_v9 = vld [vmem:[#allocation2 + $0x140] sm:$0xff] }
 0x1d3   : > { %v6053_v10 = vpack.c.bf16 %v1073_v7, %v1065_v4  ;;  %v6065_v0 = vpack.c.bf16 %v1075_v1, %v1067_v5  ;;  %v6055_v11 = vpack.c.bf16 %v1072_v9, %v1064_v6  ;;  %v1074_v13 = vld [vmem:[#allocation2 + $0x150] sm:$0xff]  ;;  %v1077_v40 = vld [vmem:[#allocation2 + $0x168] sm:$0xff]  ;;  %v1079_v41 = vld [vmem:[#allocation2 + $0x178] sm:$0xff] }
 0x1d4   : > { %v6067_v14 = vpack.c.bf16 %v1074_v13, %v1066_v12  ;;  %v6077_v49 = vpack.c.bf16 %v1077_v40, %v1069_v47  ;;  %v6089_v50 = vpack.c.bf16 %v1079_v41, %v1071_v48  ;;  %v1076_v51 = vld [vmem:[#allocation2 + $0x160] sm:$0xff]  ;;  %v1078_v52 = vld [vmem:[#allocation2 + $0x170] sm:$0xff]  ;;  %v2060_v48 = vld [vmem:[#allocation6 + $0xd08] sm:$0xff] }
 0x1d5   : > { %6054 = vmatprep.subr.bf16.mxu0 %v6053_v10  ;;  %6066 = vmatprep.subr.bf16.mxu1 %v6065_v0  ;;  %v6079_v55 = vpack.c.bf16 %v1076_v51, %v1068_v53  ;;  %v6091_v56 = vpack.c.bf16 %v1078_v52, %v1070_v54  ;;  %v2043_v40 = vld [vmem:[#allocation6 + $0xc80] sm:$0xff] }
 0x1d6   : > { %6056 = vmatpush1.bf16.msra.mxu0 %v6055_v11  ;;  %6068 = vmatpush1.bf16.msra.mxu1 %v6067_v14  ;;  %v2047_v41 = vld [vmem:[#allocation6 + $0xca0] sm:$0xff] }
 0x1d7   : > { %v1081_v15 = vld [vmem:[#allocation2 + $0x188] sm:$0x1]  ;;  %v1083_v16 = vld [vmem:[#allocation2 + $0x198] sm:$0x1]  ;;  %v1080_v18 = vld [vmem:[#allocation2 + $0x180] sm:$0x1]  ;;  %v6295_v44 = vpack.c.bf16 %v2047_v41, %v2043_v40 }
 0x1d8   : > { %5822 = vmatprep.subr.msk.mxu0 %vm1106_vm14, %v1081_v15  ;;  %5826 = vmatprep.subr.msk.mxu1 %vm1106_vm14, %v1083_v16  ;;  %v1082_v19 = vld [vmem:[#allocation2 + $0x190] sm:$0x1]  ;;  %v1085_v57 = vld [vmem:[#allocation2 + $0x1a8] sm:$0x1]  ;;  %v1087_v58 = vld [vmem:[#allocation2 + $0x1b8] sm:$0x1] }
 0x1d9   : > { %v1084_v59 = vld [vmem:[#allocation2 + $0x1a0] sm:$0x1]  ;;  %v1086_v60 = vld [vmem:[#allocation2 + $0x1b0] sm:$0x1] }
 0x1da   : > { %5823 = vmatpush1.msk.msra.mxu0 %vm1106_vm14, %v1080_v18  ;;  %5827 = vmatpush1.msk.msra.mxu1 %vm1106_vm14, %v1082_v19  ;;  %v8863_v12 = vpop.permute.xlu1 %1097  ;;  %v2055_v47 = vld [vmem:[#allocation6 + $0xce0] sm:$0xff] }
 0x1db   : > { %5824 = vmatmul.mubr.msk.f32.vlgmr.msra.gmra.mrb[0].mxu0 %vm976_vm12, %v8812_v22  ;;  %5828 = vmatmul.mubr.msk.f32.vlgmr.msra.gmra.mrb[0].mxu1 %vm976_vm12, %v8812_v22  ;;  %v8854_v7 = vpop.permute.xlu0 %1092  ;;  %v2059_v52 = vld [vmem:[#allocation6 + $0xd00] sm:$0xff] }
 0x1dc   : > { %6070 = vmatprep.subr.bf16.mxu0 %v6069_v28  ;;  %6082 = vmatprep.subr.bf16.mxu1 %v6081_v29  ;;  %v6285_v28 = vpack.c.bf16 %v2032_v26, %v2028_v25  ;;  %v2031_v29 = vld [vmem:[#allocation6 + $0xc20] sm:$0xff] }
 0x1dd   : > { %6072 = vmatpush1.bf16.msra.mxu0 %v6071_v32  ;;  %6084 = vmatpush1.bf16.msra.mxu1 %v6083_v33  ;;  %v6287_v32 = vpack.c.bf16 %v2031_v29, %v2027_v27  ;;  %v6289_v33 = vpack.c.bf16 %v2040_v31, %v2036_v30  ;;  %v2063_v53 = vld [vmem:[#allocation6 + $0xd20] sm:$0xff]  ;;  %v2088_v29 = vld [vmem:[#allocation6 + $0xde8] sm:$0xff] }
 0x1de   : > { %6074 = vmatprep.subr.bf16.mxu0 %v6073_v36  ;;  %6086 = vmatprep.subr.bf16.mxu1 %v6085_v37  ;;  %v2044_v36 = vld [vmem:[#allocation6 + $0xc88] sm:$0xff]  ;;  %v6303_v54 = vpack.c.bf16 %v2063_v53, %v2059_v52  ;;  %v2083_v31 = vld [vmem:[#allocation6 + $0xdc0] sm:$0xff] }
 0x1df   : > { %1201 = vmatprep.mubr.f32.mxu0 %v11639_v8  ;;  %1278 = vmatprep.mubr.f32.mxu1 %v11639_v8  ;;  %v2048_v37 = vld [vmem:[#allocation6 + $0xca8] sm:$0xff]  ;;  %v2091_v41 = vld [vmem:[#allocation6 + $0xe00] sm:$0xff] }
 0x1e0   : > { %5825 = vmatmul.mubr.msk.f32.gmra.mrb[2].mxu0 %vm976_vm12, %v1031_v42  ;;  %5829 = vmatmul.mubr.msk.f32.gmra.mrb[2].mxu1 %vm976_vm12, %v1031_v42  ;;  %v6293_v39 = vpack.c.bf16 %v2048_v37, %v2044_v36 }
 0x1e1   : > { %6076 = vmatpush1.bf16.msra.mxu0 %v6075_v45  ;;  %6088 = vmatpush1.bf16.msra.mxu1 %v6087_v46  ;;  %v2051_v46 = vld [vmem:[#allocation6 + $0xcc0] sm:$0xff] }
 0x1e2   : > { %6078 = vmatprep.subr.bf16.mxu0 %v6077_v49  ;;  %6090 = vmatprep.subr.bf16.mxu1 %v6089_v50  ;;  %v2064_v49 = vld [vmem:[#allocation6 + $0xd28] sm:$0xff]  ;;  %v6299_v50 = vpack.c.bf16 %v2055_v47, %v2051_v46 }
 0x1e3   : > { %1349 = vmatprep.mubr.f32.mxu0 %v11639_v8  ;;  %1426 = vmatprep.mubr.f32.mxu1 %v11639_v8  ;;  %v6301_v51 = vpack.c.bf16 %v2064_v49, %v2060_v48 }
 0x1e5   : > { %6080 = vmatpush1.bf16.msra.mxu0 %v6079_v55  ;;  %6092 = vmatpush1.bf16.msra.mxu1 %v6091_v56  ;;  %v2068_v55 = vld [vmem:[#allocation6 + $0xd48] sm:$0xff] }
 0x1e6   : > { %5830 = vmatprep.subr.msk.mxu0 %vm1106_vm14, %v1085_v57  ;;  %5834 = vmatprep.subr.msk.mxu1 %vm1106_vm14, %v1087_v58  ;;  %v2072_v56 = vld [vmem:[#allocation6 + $0xd68] sm:$0xff]  ;;  %v2067_v57 = vld [vmem:[#allocation6 + $0xd40] sm:$0xff] }
 0x1e7   : > { %v6305_v58 = vpack.c.bf16 %v2072_v56, %v2068_v55 }
 0x1e9   : > { %5831 = vmatpush1.msk.msra.mxu0 %vm1106_vm14, %v1084_v59  ;;  %5835 = vmatpush1.msk.msra.mxu1 %vm1106_vm14, %v1086_v60  ;;  %v2071_v59 = vld [vmem:[#allocation6 + $0xd60] sm:$0xff]  ;;  %vm11765_vm14 = vcmask 842752  }
 0x1ea   : > { %5832 = vmatmul.mubr.msk.f32.vlgmr.msra.gmra.mrb[4].mxu0 %vm976_vm12, %v8812_v22  ;;  %5836 = vmatmul.mubr.msk.f32.vlgmr.msra.gmra.mrb[4].mxu1 %vm976_vm12, %v8812_v22  ;;  %v6307_v60 = vpack.c.bf16 %v2071_v59, %v2067_v57  ;;  %v1644_v57 = vld [vmem:[#allocation6 + $0x8] sm:$0xff]  ;;  %v1646_v59 = vld [vmem:[#allocation6 + $0x18] sm:$0xff] }
 0x1eb   : > { %1355 = vmatprep.mubr.f32.mxu0 %v11639_v8  ;;  %1432 = vmatprep.mubr.f32.mxu1 %v11639_v8 }
 0x1ec   : > { %6286 = vmatprep.subr.bf16.mxu1 %v6285_v28  ;;  %v2084_v28 = vld [vmem:[#allocation6 + $0xdc8] sm:$0xff] }
 0x1ed   : > { %6288 = vmatpush1.bf16.msra.mxu1 %v6287_v32  ;;  %v6313_v30 = vpack.c.bf16 %v2088_v29, %v2084_v28  ;;  %v2087_v32 = vld [vmem:[#allocation6 + $0xde0] sm:$0xff] }
 0x1ee   : > { %5833 = vmatmul.mubr.msk.f32.gmra.mrb[6].mxu0 %vm976_vm12, %v1031_v42  ;;  %5837 = vmatmul.mubr.msk.f32.gmra.mrb[6].mxu1 %vm976_vm12, %v1031_v42  ;;  %v2052_v42 = vld [vmem:[#allocation6 + $0xcc8] sm:$0xff]  ;;  %v6315_v35 = vpack.c.bf16 %v2087_v32, %v2083_v31  ;;  %v1655_v28 = vld [vmem:[#allocation6 + $0x60] sm:$0xff]  ;;  %vm11745_vm12 = vcmask 859136  }
 0x1ef   : > { %6290 = vmatprep.subr.bf16.mxu1 %v6289_v33  ;;  %v6297_v45 = vpack.c.bf16 %v2056_v43, %v2052_v42  ;;  %v2095_v42 = vld [vmem:[#allocation6 + $0xe20] sm:$0xff]  ;;  %v1664_v31 = vld [vmem:[#allocation6 + $0xa8] sm:$0xff] }
 0x1f1   : > { %6292 = vmatpush1.bf16.msra.mxu1 %v6291_v38  ;;  %v2092_v38 = vld [vmem:[#allocation6 + $0xe08] sm:$0xff] }
 0x1f2   : > { %6294 = vmatprep.subr.bf16.mxu1 %v6293_v39  ;;  %v2096_v39 = vld [vmem:[#allocation6 + $0xe28] sm:$0xff] }
 0x1f3   : > { %v6317_v40 = vpack.c.bf16 %v2096_v39, %v2092_v38  ;;  %v1668_v39 = vld [vmem:[#allocation6 + $0xc8] sm:$0xff] }
 0x1f5   : > { %6296 = vmatpush1.bf16.msra.mxu1 %v6295_v44 }
 0x1f6   : > { %6298 = vmatprep.subr.bf16.mxu1 %v6297_v45 }
 0x1f9   : > { %6300 = vmatpush1.bf16.msra.mxu1 %v6299_v50 }
 0x1fa   : > { %6302 = vmatprep.subr.bf16.mxu1 %v6301_v51 }
 0x1fd   : > { %6304 = vmatpush1.bf16.msra.mxu1 %v6303_v54 }
 0x1fe   : > { %6306 = vmatprep.subr.bf16.mxu1 %v6305_v58  ;;  %v1648_v58 = vld [vmem:[#allocation6 + $0x28] sm:$0xff] }
 0x201   : > { %6308 = vmatpush1.bf16.msra.mxu1 %v6307_v60  ;;  %v1650_v60 = vld [vmem:[#allocation6 + $0x38] sm:$0xff] }
 0x2ae   : > { %v8838_v61 = vpop.f32.mrb[0].mxu0  ;;  %v8840_v62 = vpop.f32.mrb[0].mxu1 }
 0x2af   : > { %v8842_v63 = vpop.f32.mrb[1].mxu0  ;;  %v8844_v2 = vpop.f32.mrb[1].mxu1  ;;  %v8895_v25 = vadd.f32 %v8838_v61, %v8854_v7  ;;  %v8937_v48 = vadd.f32 %v8840_v62, %v8854_v7 }
 0x2b0   : > { %v8899_v27 = vadd.f32 %v8844_v2, %v8854_v7  ;;  %v8933_v47 = vadd.f32 %v8842_v63, %v8854_v7 }
 0x2b1   : > { %v1439_v33 = vmax.f32 %v8895_v25, 0.0  ;;  %v1441_v53 = vmax.f32 %v8937_v48, 0.0 }
 0x2b2   : > { %v1442_v36 = vmax.f32 %v8899_v27, 0.0  ;;  %v1440_v62 = vmax.f32 %v8933_v47, 0.0  ;;  %v1670_v47 = vld [vmem:[#allocation6 + $0xd8] sm:$0xff] }
 0x2b3   : > { %v8846_v3 = vpop.f32.mrb[2].mxu0  ;;  %v8848_v4 = vpop.f32.mrb[2].mxu1 }
 0x2b4   : > { %v8850_v5 = vpop.f32.mrb[3].mxu0  ;;  %v8852_v6 = vpop.f32.mrb[3].mxu1  ;;  %v8909_v2 = vadd.f32 %v8848_v4, %v8863_v12  ;;  %v7084_v4 = vpack.i.bf16 %v1439_v33, %v1442_v36 }
 0x2b5   : > { %v8905_v61 = vadd.f32 %v8850_v5, %v8863_v12  ;;  %v6319_v5 = vpack.c.bf16 %v2095_v42, %v2091_v41  ;;  %v1667_v42 = vld [vmem:[#allocation6 + $0xc0] sm:$0xff] }
 0x2bd   : > { %v1428_v1 = vpop.f32.mrb[4].mxu1  ;;  %v8856_v9 = vpop.f32.mrb[4].mxu0 }
 0x2be   : > { %v1430_v10 = vpop.f32.mrb[5].mxu1  ;;  %v8858_v0 = vpop.f32.mrb[5].mxu0  ;;  %v8866_v13 = vadd.f32 %v1428_v1, %v8854_v7  ;;  %v2076_v1 = vld [vmem:[#allocation6 + $0xd88] sm:$0xff] }
 0x2bf   : > { %v8861_v11 = vadd.f32 %v1430_v10, %v8854_v7  ;;  %v2080_v10 = vld [vmem:[#allocation6 + $0xda8] sm:$0xff] }
 0x2c0   : > { %v1445_v20 = vmax.f32 %v8866_v13, 0.0  ;;  %v7079_v13 = vpack.i.bf16 %v1441_v53, %v1440_v62 }
 0x2c1   : > { %v1446_v14 = vmax.f32 %v8861_v11, 0.0  ;;  %v8869_v15 = vpop.f32.mrb[6].mxu0  ;;  %v1434_v16 = vpop.f32.mrb[6].mxu1  ;;  %v1448_v11 = vmax.f32 %v8905_v61, 0.0 }
 0x2c2   : > { %v8872_v17 = vadd.f32 %v1434_v16, %v8863_v12  ;;  %v8874_v18 = vpop.f32.mrb[7].mxu0  ;;  %v1436_v19 = vpop.f32.mrb[7].mxu1  ;;  %v2075_v16 = vld [vmem:[#allocation6 + $0xd80] sm:$0xff]  ;;  %v9054_v48 = vadd.f32 %v8869_v15, %v8863_v12 }
 0x2c3   : > { %1485 = vrot.lane.b32.xlu0 %v1446_v14, %s11613_s30  ;;  %v8886_v23 = vadd.f32 %v1436_v19, %v8863_v12  ;;  %v6309_v19 = vpack.c.bf16 %v2080_v10, %v2076_v1  ;;  %v1647_v1 = vld [vmem:[#allocation6 + $0x20] sm:$0xff]  ;;  %v6321_v10 = vpack.c.bf16 %v1650_v60, %v1646_v59 }
 0x2c4   : > { %v1453_v21 = vmax.f32 %v8872_v17, 0.0  ;;  %v8966_v17 = vadd.f32 %v8846_v3, %v8863_v12  ;;  %v6093_v3 = vpack.c.bf16 %v1648_v58, %v1644_v57  ;;  %v1688_v57 = vld [vmem:[#allocation6 + $0x168] sm:$0xff]  ;;  %v1687_v60 = vld [vmem:[#allocation6 + $0x160] sm:$0xff] }
 0x2c5   : > { %v1454_v24 = vmax.f32 %v8886_v23, 0.0  ;;  %6310 = vmatprep.subr.bf16.mxu1 %v6309_v19  ;;  %v1652_v19 = vld [vmem:[#allocation6 + $0x48] sm:$0xff] }
 0x2c6   : > { %v7069_v22 = vpack.i.bf16 %v1453_v21, %v1445_v20  ;;  %6094 = vmatprep.subr.bf16.mxu0 %v6093_v3  ;;  %v1683_v3 = vld [vmem:[#allocation6 + $0x140] sm:$0xff] }
 0x2c8   : > { %7070 = vrot.lane.b32.xlu1 %v7069_v22, %s11613_s30  ;;  %v2079_v22 = vld [vmem:[#allocation6 + $0xda0] sm:$0xff] }
 0x2c9   : > { %v6311_v26 = vpack.c.bf16 %v2079_v22, %v2075_v16 }
 0x2cb   : > { %6312 = vmatpush1.bf16.msra.mxu1 %v6311_v26  ;;  %v1651_v26 = vld [vmem:[#allocation6 + $0x40] sm:$0xff] }
 0x2cc   : > { %1501 = vrot.lane.b32.xlu1 %v1454_v24, %s11613_s30  ;;  %6314 = vmatprep.subr.bf16.mxu1 %v6313_v30  ;;  %v6099_v29 = vpack.c.bf16 %v1655_v28, %v1651_v26  ;;  %v1660_v30 = vld [vmem:[#allocation6 + $0x88] sm:$0xff] }
 0x2cd   : > { %v6101_v32 = vpack.c.bf16 %v1664_v31, %v1660_v30  ;;  %v1703_v30 = vld [vmem:[#allocation6 + $0x1e0] sm:$0xff]  ;;  %v1708_v31 = vld [vmem:[#allocation6 + $0x208] sm:$0xff] }
 0x2cf   : > { %6316 = vmatpush1.bf16.msra.mxu1 %v6315_v35  ;;  %v1663_v35 = vld [vmem:[#allocation6 + $0xa0] sm:$0xff] }
 0x2d0   : > { %6318 = vmatprep.subr.bf16.mxu1 %v6317_v40  ;;  %v1672_v40 = vld [vmem:[#allocation6 + $0xe8] sm:$0xff] }
 0x2d1   : > { %v6105_v41 = vpack.c.bf16 %v1672_v40, %v1668_v39  ;;  %v1711_v39 = vld [vmem:[#allocation6 + $0x220] sm:$0xff]  ;;  %v1716_v40 = vld [vmem:[#allocation6 + $0x248] sm:$0xff] }
 0x2d3   : > { %6320 = vmatpush1.bf16.msra.mxu1 %v6319_v5  ;;  %v1671_v5 = vld [vmem:[#allocation6 + $0xe0] sm:$0xff] }
 0x2d4   : > { %6322 = vmatprep.subr.bf16.mxu1 %v6321_v10  ;;  %v6115_v10 = vpack.c.bf16 %v1687_v60, %v1683_v3 }
 0x335   : > { %v1486_v34 = vpop.permute.xlu0 %1485 }
 0x336   : > { %v8913_v37 = vmax.f32 %v1446_v14, %v1486_v34  ;;  %v1449_v14 = vmax.f32 %v8909_v2, 0.0 }
 0x338   : > { %1579 = vrot.lane.b32.xlu1 %v8913_v37, %s8307_s18  ;;  %v7089_v49 = vpack.i.bf16 %v1449_v14, %v1448_v11 }
 0x33a   : > { %v8923_v43 = vpop.permute.xlu1 %7070 }
 0x33b   : > { %v7072_v44 = vunpack.i.l.bf16 %v8923_v43  ;;  %v7073_v45 = vunpack.i.h.bf16 %v8923_v43 }
 0x33c   : > { %7085 = vrot.lane.b32.xlu1 %v7084_v4, %s11613_s30  ;;  %v1676_v4 = vld [vmem:[#allocation6 + $0x108] sm:$0xff] }
 0x33d   : > { %v1509_v46 = vsel %vm11766_vm2, %v7072_v44, %v1486_v34  ;;  %v1659_v34 = vld [vmem:[#allocation6 + $0x80] sm:$0xff] }
 0x33e   : > { %v1502_v50 = vpop.permute.xlu1 %1501  ;;  %v8948_v52 = vmax.f32 %v1445_v20, %v1509_v46  ;;  %v8970_v20 = vadd.f32 %v8852_v6, %v8863_v12  ;;  %v1643_v6 = vld [vmem:[#allocation6] sm:$0xff]  ;;  %v6103_v38 = vpack.c.bf16 %v1663_v35, %v1659_v34  ;;  %v1680_v46 = vld [vmem:[#allocation6 + $0x128] sm:$0xff] }
 0x33f   : > { %v1516_v51 = vsel %vm11766_vm2, %v7073_v45, %v1502_v50  ;;  %v8977_v56 = vmax.f32 %v1454_v24, %v1502_v50  ;;  %v6095_v16 = vpack.c.bf16 %v1647_v1, %v1643_v6  ;;  %v1656_v24 = vld [vmem:[#allocation6 + $0x68] sm:$0xff]  ;;  %v6109_v50 = vpack.c.bf16 %v1680_v46, %v1676_v4  ;;  %v1715_v4 = vld [vmem:[#allocation6 + $0x240] sm:$0xff] }
 0x340   : > { %v8952_v63 = vmax.f32 %v1453_v21, %v1516_v51  ;;  %7090 = vrot.lane.b32.xlu1 %v7089_v49, %s11613_s30  ;;  %v1447_v21 = vmax.f32 %v8966_v17, 0.0  ;;  %v1450_v55 = vmax.f32 %v8970_v20, 0.0  ;;  %v6097_v22 = vpack.c.bf16 %v1656_v24, %v1652_v19  ;;  %v1675_v51 = vld [vmem:[#allocation6 + $0x100] sm:$0xff]  ;;  %v1692_v6 = vld [vmem:[#allocation6 + $0x188] sm:$0xff] }
 0x341   : > { %6096 = vmatpush1.bf16.msra.mxu0 %v6095_v16  ;;  %v6107_v49 = vpack.c.bf16 %v1671_v5, %v1667_v42  ;;  %v1696_v1 = vld [vmem:[#allocation6 + $0x1a8] sm:$0xff]  ;;  %v1691_v19 = vld [vmem:[#allocation6 + $0x180] sm:$0xff] }
 0x342   : > { %v7074_v54 = vpack.i.bf16 %v8952_v63, %v8948_v52  ;;  %v7094_v23 = vpack.i.bf16 %v1447_v21, %v1450_v55  ;;  %6098 = vmatprep.subr.bf16.mxu0 %v6097_v22  ;;  %v6117_v16 = vpack.c.bf16 %v1696_v1, %v1692_v6  ;;  %v1700_v24 = vld [vmem:[#allocation6 + $0x1c8] sm:$0xff]  ;;  %v1719_v46 = vld [vmem:[#allocation6 + $0x260] sm:$0xff] }
 0x343   : > { %v1704_v22 = vld [vmem:[#allocation6 + $0x1e8] sm:$0xff]  ;;  %v1731_v6 = vld [vmem:[#allocation6 + $0x2c0] sm:$0xff] }
 0x344   : > { %7075 = vrot.lane.b32.xlu0 %v7074_v54, %s8307_s18  ;;  %v1679_v54 = vld [vmem:[#allocation6 + $0x120] sm:$0xff]  ;;  %v6121_v28 = vpack.c.bf16 %v1704_v22, %v1700_v24 }
 0x345   : > { %6100 = vmatpush1.bf16.msra.mxu0 %v6099_v29  ;;  %v6111_v58 = vpack.c.bf16 %v1679_v54, %v1675_v51  ;;  %v1699_v29 = vld [vmem:[#allocation6 + $0x1c0] sm:$0xff]  ;;  %v6131_v51 = vpack.c.bf16 %v1719_v46, %v1715_v4 }
 0x346   : > { %6102 = vmatprep.subr.bf16.mxu0 %v6101_v32  ;;  %v1712_v32 = vld [vmem:[#allocation6 + $0x228] sm:$0xff]  ;;  %v6123_v34 = vpack.c.bf16 %v1703_v30, %v1699_v29  ;;  %v1735_v1 = vld [vmem:[#allocation6 + $0x2e0] sm:$0xff] }
 0x347   : > { %v6125_v35 = vpack.c.bf16 %v1712_v32, %v1708_v31  ;;  %v1739_v24 = vld [vmem:[#allocation6 + $0x300] sm:$0xff] }
 0x348   : > { %7080 = vrot.lane.b32.xlu0 %v7079_v13, %s11613_s30  ;;  %v1684_v13 = vld [vmem:[#allocation6 + $0x148] sm:$0xff]  ;;  %v1743_v22 = vld [vmem:[#allocation6 + $0x320] sm:$0xff] }
 0x349   : > { %6104 = vmatpush1.bf16.msra.mxu0 %v6103_v38  ;;  %v6113_v59 = vpack.c.bf16 %v1688_v57, %v1684_v13  ;;  %v1707_v38 = vld [vmem:[#allocation6 + $0x200] sm:$0xff]  ;;  %v6143_v29 = vpack.c.bf16 %v1743_v22, %v1739_v24  ;;  %v1653_v22 = vld [vmem:[#allocation6 + $0x50] sm:$0xff] }
 0x34a   : > { %6106 = vmatprep.subr.bf16.mxu0 %v6105_v41  ;;  %v1720_v41 = vld [vmem:[#allocation6 + $0x268] sm:$0xff]  ;;  %v6127_v42 = vpack.c.bf16 %v1711_v39, %v1707_v38  ;;  %v1723_v13 = vld [vmem:[#allocation6 + $0x280] sm:$0xff] }
 0x34b   : > { %v6129_v5 = vpack.c.bf16 %v1720_v41, %v1716_v40  ;;  %v1727_v57 = vld [vmem:[#allocation6 + $0x2a0] sm:$0xff] }
 0x34c   : > { %1595 = vrot.lane.b32.xlu0 %v8977_v56, %s8307_s18  ;;  %v6135_v3 = vpack.c.bf16 %v1727_v57, %v1723_v13  ;;  %v1747_v31 = vld [vmem:[#allocation6 + $0x340] sm:$0xff]  ;;  %v1654_v13 = vld [vmem:[#allocation6 + $0x58] sm:$0xff]  ;;  %v1764_v57 = vld [vmem:[#allocation6 + $0x3c8] sm:$0xff] }
 0x34d   : > { %6108 = vmatpush1.bf16.msra.mxu0 %v6107_v49  ;;  %v1724_v49 = vld [vmem:[#allocation6 + $0x288] sm:$0xff]  ;;  %v1751_v32 = vld [vmem:[#allocation6 + $0x360] sm:$0xff] }
 0x34e   : > { %6110 = vmatprep.subr.bf16.mxu0 %v6109_v50  ;;  %v1728_v50 = vld [vmem:[#allocation6 + $0x2a8] sm:$0xff]  ;;  %v6147_v38 = vpack.c.bf16 %v1751_v32, %v1747_v31  ;;  %v1755_v40 = vld [vmem:[#allocation6 + $0x380] sm:$0xff] }
 0x34f   : > { %v6133_v54 = vpack.c.bf16 %v1728_v50, %v1724_v49  ;;  %v1759_v41 = vld [vmem:[#allocation6 + $0x3a0] sm:$0xff]  ;;  %v1645_v50 = vld [vmem:[#allocation6 + $0x10] sm:$0xff] }
 0x350   : > { %7095 = vrot.lane.b32.xlu0 %v7094_v23, %s11613_s30  ;;  %v1695_v23 = vld [vmem:[#allocation6 + $0x1a0] sm:$0xff] }
 0x351   : > { %6112 = vmatpush1.bf16.msra.mxu0 %v6111_v58  ;;  %v6119_v26 = vpack.c.bf16 %v1695_v23, %v1691_v19  ;;  %v1732_v58 = vld [vmem:[#allocation6 + $0x2c8] sm:$0xff]  ;;  %v6139_v19 = vpack.c.bf16 %v1735_v1, %v1731_v6  ;;  %v1763_v1 = vld [vmem:[#allocation6 + $0x3c0] sm:$0xff] }
 0x352   : > { %6114 = vmatprep.subr.bf16.mxu0 %v6113_v59  ;;  %v1736_v59 = vld [vmem:[#allocation6 + $0x2e8] sm:$0xff] }
 0x353   : > { %v6137_v60 = vpack.c.bf16 %v1736_v59, %v1732_v58  ;;  %v1768_v58 = vld [vmem:[#allocation6 + $0x3e8] sm:$0xff] }
 0x354   : > { %v6153_v6 = vpack.c.bf16 %v1768_v58, %v1764_v57 }
 0x355   : > { %6116 = vmatpush1.bf16.msra.mxu0 %v6115_v10  ;;  %v1740_v10 = vld [vmem:[#allocation6 + $0x308] sm:$0xff] }
 0x356   : > { %6118 = vmatprep.subr.bf16.mxu0 %v6117_v16  ;;  %v1744_v16 = vld [vmem:[#allocation6 + $0x328] sm:$0xff] }
 0x357   : > { %v6141_v23 = vpack.c.bf16 %v1744_v16, %v1740_v10  ;;  %v1767_v10 = vld [vmem:[#allocation6 + $0x3e0] sm:$0xff]  ;;  %v9002_v16 = vadd.f32 %v8856_v9, %v8854_v7 }
 0x359   : > { %6120 = vmatpush1.bf16.msra.mxu0 %v6119_v26  ;;  %v1748_v26 = vld [vmem:[#allocation6 + $0x348] sm:$0xff] }
 0x35a   : > { %6122 = vmatprep.subr.bf16.mxu0 %v6121_v28  ;;  %v1752_v28 = vld [vmem:[#allocation6 + $0x368] sm:$0xff] }
 0x35b   : > { %v6145_v30 = vpack.c.bf16 %v1752_v28, %v1748_v26  ;;  %v1657_v26 = vld [vmem:[#allocation6 + $0x70] sm:$0xff]  ;;  %v9009_v28 = vadd.f32 %v8858_v0, %v8854_v7  ;;  %v1443_v7 = vmax.f32 %v9002_v16, 0.0 }
 0x35c   : > { %v6327_v0 = vpack.c.bf16 %v1657_v26, %v1653_v22 }
 0x35d   : > { %6124 = vmatpush1.bf16.msra.mxu0 %v6123_v34  ;;  %v1756_v34 = vld [vmem:[#allocation6 + $0x388] sm:$0xff]  ;;  %v1444_v61 = vmax.f32 %v9009_v28, 0.0 }
 0x35e   : > { %6126 = vmatprep.subr.bf16.mxu0 %v6125_v35  ;;  %v1760_v35 = vld [vmem:[#allocation6 + $0x3a8] sm:$0xff] }
 0x35f   : > { %v6149_v39 = vpack.c.bf16 %v1760_v35, %v1756_v34 }
 0x361   : > { %6128 = vmatpush1.bf16.msra.mxu0 %v6127_v42  ;;  %v6151_v42 = vpack.c.bf16 %v1759_v41, %v1755_v40 }
 0x362   : > { %6130 = vmatprep.subr.bf16.mxu0 %v6129_v5 }
 0x365   : > { %6132 = vmatpush1.bf16.msra.mxu0 %v6131_v51  ;;  %v1649_v51 = vld [vmem:[#allocation6 + $0x30] sm:$0xff] }
 0x366   : > { %6134 = vmatprep.subr.bf16.mxu0 %v6133_v54  ;;  %v6323_v24 = vpack.c.bf16 %v1649_v51, %v1645_v50 }
 0x369   : > { %6136 = vmatpush1.bf16.msra.mxu0 %v6135_v3 }
 0x36a   : > { %6138 = vmatprep.subr.bf16.mxu0 %v6137_v60  ;;  %v1658_v60 = vld [vmem:[#allocation6 + $0x78] sm:$0xff] }
 0x36b   : > { %v6325_v31 = vpack.c.bf16 %v1658_v60, %v1654_v13  ;;  %v1661_v60 = vld [vmem:[#allocation6 + $0x90] sm:$0xff] }
 0x36d   : > { %6140 = vmatpush1.bf16.msra.mxu0 %v6139_v19  ;;  %v6155_v19 = vpack.c.bf16 %v1767_v10, %v1763_v1 }
 0x36e   : > { %6142 = vmatprep.subr.bf16.mxu0 %v6141_v23 }
 0x371   : > { %6144 = vmatpush1.bf16.msra.mxu0 %v6143_v29 }
 0x372   : > { %6146 = vmatprep.subr.bf16.mxu0 %v6145_v30 }
 0x375   : > { %6148 = vmatpush1.bf16.msra.mxu0 %v6147_v38 }
 0x376   : > { %6150 = vmatprep.subr.bf16.mxu0 %v6149_v39  ;;  %v1666_v39 = vld [vmem:[#allocation6 + $0xb8] sm:$0xff] }
 0x379   : > { %6152 = vmatpush1.bf16.msra.mxu0 %v6151_v42 }
 0x37a   : > { %6154 = vmatprep.subr.bf16.mxu0 %v6153_v6  ;;  %v1665_v6 = vld [vmem:[#allocation6 + $0xb0] sm:$0xff] }
 0x37d   : > { %6156 = vmatpush1.bf16.msra.mxu0 %v6155_v19  ;;  %v6331_v19 = vpack.c.bf16 %v1665_v6, %v1661_v60  ;;  %v1689_v6 = vld [vmem:[#allocation6 + $0x170] sm:$0xff] }
 0x3aa   : > { %v1580_v5 = vpop.permute.xlu1 %1579 }
 0x3ab   : > { %v8987_v4 = vmax.f32 %v8913_v37, %v1580_v5 }
 0x3ad   : > { %5838 = vmatprep.mubr.msk.f32.mxu1 %vm11712_vm0, %v8987_v4 }
 0x3ae   : > { %v8991_v46 = vpop.permute.xlu1 %7085 }
 0x3af   : > { %v7088_v29 = vunpack.i.h.bf16 %v8991_v46  ;;  %v7087_v32 = vunpack.i.l.bf16 %v8991_v46 }
 0x3b2   : > { %v8993_v49 = vpop.permute.xlu1 %7090 }
 0x3b3   : > { %v7093_v59 = vunpack.i.h.bf16 %v8993_v49  ;;  %v7092_v3 = vunpack.i.l.bf16 %v8993_v49  ;;  %v1686_v49 = vld [vmem:[#allocation6 + $0x158] sm:$0xff] }
 0x3b5   : > { %v1511_v34 = vsel %vm11766_vm2, %v7092_v3, %v7093_v59 }
 0x3b6   : > { %v8995_v54 = vpop.permute.xlu0 %7075  ;;  %v9031_v50 = vmax.f32 %v1448_v11, %v1511_v34 }
 0x3b7   : > { %v7077_v37 = vunpack.i.l.bf16 %v8995_v54  ;;  %v7078_v40 = vunpack.i.h.bf16 %v8995_v54  ;;  %v2046_v54 = vld [vmem:[#allocation6 + $0xc98] sm:$0xff] }
 0x3b9   : > { %v1603_v23 = vsel %vm427_vm7, %v7077_v37, %v1580_v5 }
 0x3ba   : > { %v9013_v30 = vmax.f32 %v8948_v52, %v1603_v23  ;;  %v7081_v9 = vpop.permute.xlu0 %7080  ;;  %v1662_v52 = vld [vmem:[#allocation6 + $0x98] sm:$0xff]  ;;  %v1669_v23 = vld [vmem:[#allocation6 + $0xd0] sm:$0xff] }
 0x3bb   : > { %v7083_v35 = vunpack.i.h.bf16 %v7081_v9  ;;  %v7082_v38 = vunpack.i.l.bf16 %v7081_v9  ;;  %v6329_v11 = vpack.c.bf16 %v1666_v39, %v1662_v52  ;;  %v1451_v9 = vmax.f32 %v9054_v48, 0.0  ;;  %v1776_v52 = vld [vmem:[#allocation6 + $0x428] sm:$0xff] }
 0x3bc   : > { %2402 = vmatmul.mubr.f32.vlgmr.msra.gmra.mrb[8].mxu1 %v9013_v30 }
 0x3bd   : > { %v1503_v41 = vsel %vm11766_vm2, %v7088_v29, %v7082_v38  ;;  %v1504_v42 = vsel %vm11766_vm2, %v7082_v38, %v7083_v35  ;;  %v1505_v5 = vsel %vm11766_vm2, %v7083_v35, %v7087_v32  ;;  %6324 = vmatpush1.bf16.msra.mxu1 %v6323_v24  ;;  %v1673_v24 = vld [vmem:[#allocation6 + $0xf0] sm:$0xff]  ;;  %v7109_v29 = vpack.i.bf16 %v1444_v61, %v1443_v7 }
 0x3be   : > { %v9035_v51 = vmax.f32 %v1439_v33, %v1503_v41  ;;  %v9039_v13 = vmax.f32 %v1440_v62, %v1504_v42  ;;  %v9043_v57 = vmax.f32 %v1441_v53, %v1505_v5  ;;  %v1596_v58 = vpop.permute.xlu0 %1595  ;;  %6326 = vmatprep.subr.bf16.mxu1 %v6325_v31  ;;  %v1674_v62 = vld [vmem:[#allocation6 + $0xf8] sm:$0xff]  ;;  %v6335_v38 = vpack.c.bf16 %v1673_v24, %v1669_v23  ;;  %v1677_v42 = vld [vmem:[#allocation6 + $0x110] sm:$0xff] }
 0x3bf   : > { %v1610_v25 = vsel %vm427_vm7, %v7078_v40, %v1596_v58  ;;  %v9050_v33 = vmax.f32 %v8977_v56, %v1596_v58  ;;  %v9065_v56 = vadd.f32 %v8874_v18, %v8863_v12  ;;  %v1678_v12 = vld [vmem:[#allocation6 + $0x118] sm:$0xff]  ;;  %v1681_v5 = vld [vmem:[#allocation6 + $0x130] sm:$0xff] }
 0x3c0   : > { %v9057_v53 = vmax.f32 %v8952_v63, %v1610_v25  ;;  %v7104_v1 = vpack.i.bf16 %v9031_v50, %v9035_v51  ;;  %v7099_v10 = vpack.i.bf16 %v9043_v57, %v9039_v13  ;;  %v6333_v63 = vpack.c.bf16 %v1674_v62, %v1670_v47  ;;  %v1682_v18 = vld [vmem:[#allocation6 + $0x138] sm:$0xff] }
 0x3c1   : > { %5839 = vmatprep.mubr.msk.f32.mxu1 %vm11712_vm0, %v9050_v33  ;;  %6328 = vmatpush1.bf16.msra.mxu1 %v6327_v0  ;;  %v1452_v31 = vmax.f32 %v9065_v56, 0.0  ;;  %v1772_v0 = vld [vmem:[#allocation6 + $0x408] sm:$0xff]  ;;  %v1694_v25 = vld [vmem:[#allocation6 + $0x198] sm:$0xff] }
 0x3c2   : > { %2408 = vmatmul.mubr.f32.gmra.mrb[10].mxu1 %v9057_v53  ;;  %v9070_v15 = vpop.permute.xlu0 %7095  ;;  %7105 = vrot.lane.b32.xlu0 %v7104_v1, %s8307_s18  ;;  %v6157_v58 = vpack.c.bf16 %v1776_v52, %v1772_v0  ;;  %v1693_v1 = vld [vmem:[#allocation6 + $0x190] sm:$0xff]  ;;  %v1718_v52 = vld [vmem:[#allocation6 + $0x258] sm:$0xff] }
 0x3c3   : > { %v7098_v22 = vunpack.i.h.bf16 %v9070_v15  ;;  %v7097_v26 = vunpack.i.l.bf16 %v9070_v15  ;;  %7100 = vrot.lane.b32.xlu1 %v7099_v10, %s8307_s18  ;;  %6330 = vmatprep.subr.bf16.mxu1 %v6329_v11  ;;  %v7119_v2 = vpack.i.bf16 %v1452_v31, %v1451_v9  ;;  %v1698_v11 = vld [vmem:[#allocation6 + $0x1b8] sm:$0xff]  ;;  %v1697_v10 = vld [vmem:[#allocation6 + $0x1b0] sm:$0xff] }
 0x3c4   : > { %6158 = vmatprep.subr.bf16.mxu0 %v6157_v58  ;;  %v6345_v62 = vpack.c.bf16 %v1698_v11, %v1694_v25  ;;  %v6347_v23 = vpack.c.bf16 %v1697_v10, %v1693_v1  ;;  %v1713_v0 = vld [vmem:[#allocation6 + $0x230] sm:$0xff]  ;;  %v1738_v25 = vld [vmem:[#allocation6 + $0x2f8] sm:$0xff] }
 0x3c5   : > { %v1510_v34 = vsel %vm11766_vm2, %v7098_v22, %v7092_v3  ;;  %v1512_v35 = vsel %vm11766_vm2, %v7093_v59, %v7097_v26  ;;  %6332 = vmatpush1.bf16.msra.mxu1 %v6331_v19  ;;  %v6337_v3 = vpack.c.bf16 %v1682_v18, %v1678_v12  ;;  %v1690_v59 = vld [vmem:[#allocation6 + $0x178] sm:$0xff]  ;;  %v1701_v22 = vld [vmem:[#allocation6 + $0x1d0] sm:$0xff] }
 0x3c6   : > { %v9092_v39 = vmax.f32 %v1447_v21, %v1510_v34  ;;  %v9096_v41 = vmax.f32 %v1449_v14, %v1512_v35  ;;  %6334 = vmatprep.subr.bf16.mxu1 %v6333_v63  ;;  %v6339_v14 = vpack.c.bf16 %v1681_v5, %v1677_v42  ;;  %v6341_v17 = vpack.c.bf16 %v1690_v59, %v1686_v49  ;;  %v1685_v21 = vld [vmem:[#allocation6 + $0x150] sm:$0xff]  ;;  %v1702_v19 = vld [vmem:[#allocation6 + $0x1d8] sm:$0xff] }
 0x3c7   : > { %7110 = vrot.lane.b32.xlu1 %v7109_v29, %s11613_s30  ;;  %v6343_v47 = vpack.c.bf16 %v1689_v6, %v1685_v21  ;;  %v1706_v63 = vld [vmem:[#allocation6 + $0x1f8] sm:$0xff]  ;;  %v1705_v12 = vld [vmem:[#allocation6 + $0x1f0] sm:$0xff] }
 0x3c8   : > { %v7114_v60 = vpack.i.bf16 %v9092_v39, %v9096_v41  ;;  %v6349_v24 = vpack.c.bf16 %v1706_v63, %v1702_v19  ;;  %v1710_v18 = vld [vmem:[#allocation6 + $0x218] sm:$0xff]  ;;  %v6351_v34 = vpack.c.bf16 %v1705_v12, %v1701_v22  ;;  %v1717_v58 = vld [vmem:[#allocation6 + $0x250] sm:$0xff] }
 0x3c9   : > { %6336 = vmatpush1.bf16.msra.mxu1 %v6335_v38  ;;  %v1714_v29 = vld [vmem:[#allocation6 + $0x238] sm:$0xff]  ;;  %v1709_v38 = vld [vmem:[#allocation6 + $0x210] sm:$0xff] }
 0x3ca   : > { %7115 = vrot.lane.b32.xlu0 %v7114_v60, %s8307_s18  ;;  %6338 = vmatprep.subr.bf16.mxu1 %v6337_v3  ;;  %v6353_v35 = vpack.c.bf16 %v1714_v29, %v1710_v18  ;;  %v1722_v3 = vld [vmem:[#allocation6 + $0x278] sm:$0xff]  ;;  %v6355_v42 = vpack.c.bf16 %v1713_v0, %v1709_v38  ;;  %v1721_v49 = vld [vmem:[#allocation6 + $0x270] sm:$0xff] }
 0x3cb   : > { %7120 = vrot.lane.b32.xlu1 %v7119_v2, %s11613_s30  ;;  %v6357_v5 = vpack.c.bf16 %v1722_v3, %v1718_v52  ;;  %v1726_v59 = vld [vmem:[#allocation6 + $0x298] sm:$0xff]  ;;  %v6359_v2 = vpack.c.bf16 %v1721_v49, %v1717_v58  ;;  %v1729_v21 = vld [vmem:[#allocation6 + $0x2b0] sm:$0xff] }
 0x3cc   : > { %v1730_v60 = vld [vmem:[#allocation6 + $0x2b8] sm:$0xff]  ;;  %v1737_v1 = vld [vmem:[#allocation6 + $0x2f0] sm:$0xff] }
 0x3cd   : > { %6340 = vmatpush1.bf16.msra.mxu1 %v6339_v14  ;;  %v6361_v14 = vpack.c.bf16 %v1730_v60, %v1726_v59  ;;  %v1734_v6 = vld [vmem:[#allocation6 + $0x2d8] sm:$0xff]  ;;  %v1745_v22 = vld [vmem:[#allocation6 + $0x330] sm:$0xff] }
 0x3ce   : > { %6342 = vmatprep.subr.bf16.mxu1 %v6341_v17  ;;  %v1725_v17 = vld [vmem:[#allocation6 + $0x290] sm:$0xff]  ;;  %v1742_v10 = vld [vmem:[#allocation6 + $0x318] sm:$0xff] }
 0x3cf   : > { %v6363_v11 = vpack.c.bf16 %v1729_v21, %v1725_v17  ;;  %v1746_v19 = vld [vmem:[#allocation6 + $0x338] sm:$0xff]  ;;  %v1753_v38 = vld [vmem:[#allocation6 + $0x370] sm:$0xff] }
 0x3d0   : > { %v1750_v12 = vld [vmem:[#allocation6 + $0x358] sm:$0xff]  ;;  %v1761_v58 = vld [vmem:[#allocation6 + $0x3b0] sm:$0xff] }
 0x3d1   : > { %6344 = vmatpush1.bf16.msra.mxu1 %v6343_v47  ;;  %v6365_v47 = vpack.c.bf16 %v1738_v25, %v1734_v6  ;;  %v1754_v18 = vld [vmem:[#allocation6 + $0x378] sm:$0xff]  ;;  %v1769_v17 = vld [vmem:[#allocation6 + $0x3f0] sm:$0xff] }
 0x3d2   : > { %6346 = vmatprep.subr.bf16.mxu1 %v6345_v62  ;;  %v1733_v62 = vld [vmem:[#allocation6 + $0x2d0] sm:$0xff]  ;;  %v1758_v0 = vld [vmem:[#allocation6 + $0x398] sm:$0xff] }
 0x3d3   : > { %v6367_v63 = vpack.c.bf16 %v1737_v1, %v1733_v62  ;;  %v1762_v52 = vld [vmem:[#allocation6 + $0x3b8] sm:$0xff] }
 0x3d4   : > { %v1766_v49 = vld [vmem:[#allocation6 + $0x3d8] sm:$0xff] }
 0x3d5   : > { %6348 = vmatpush1.bf16.msra.mxu1 %v6347_v23  ;;  %v6369_v23 = vpack.c.bf16 %v1746_v19, %v1742_v10  ;;  %v1770_v59 = vld [vmem:[#allocation6 + $0x3f8] sm:$0xff]  ;;  %v1771_v10 = vld [vmem:[#allocation6 + $0x400] sm:$0xff] }
 0x3d6   : > { %6350 = vmatprep.subr.bf16.mxu1 %v6349_v24  ;;  %v1741_v24 = vld [vmem:[#allocation6 + $0x310] sm:$0xff]  ;;  %v1774_v21 = vld [vmem:[#allocation6 + $0x418] sm:$0xff]  ;;  %v1775_v19 = vld [vmem:[#allocation6 + $0x420] sm:$0xff] }
 0x3d7   : > { %v6371_v29 = vpack.c.bf16 %v1745_v22, %v1741_v24  ;;  %v1778_v6 = vld [vmem:[#allocation6 + $0x438] sm:$0xff]  ;;  %v1773_v24 = vld [vmem:[#allocation6 + $0x410] sm:$0xff] }
 0x3d8   : > { %v1777_v22 = vld [vmem:[#allocation6 + $0x430] sm:$0xff] }
 0x3d9   : > { %6352 = vmatpush1.bf16.msra.mxu1 %v6351_v34  ;;  %v6373_v34 = vpack.c.bf16 %v1754_v18, %v1750_v12  ;;  %v1780_v12 = vld [vmem:[#allocation6 + $0x448] sm:$0xff] }
 0x3da   : > { %6354 = vmatprep.subr.bf16.mxu1 %v6353_v35  ;;  %v1749_v35 = vld [vmem:[#allocation6 + $0x350] sm:$0xff]  ;;  %v1784_v18 = vld [vmem:[#allocation6 + $0x468] sm:$0xff] }
 0x3db   : > { %v6375_v3 = vpack.c.bf16 %v1753_v38, %v1749_v35 }
 0x3dd   : > { %6356 = vmatpush1.bf16.msra.mxu1 %v6355_v42  ;;  %v6377_v42 = vpack.c.bf16 %v1762_v52, %v1758_v0  ;;  %v1779_v0 = vld [vmem:[#allocation6 + $0x440] sm:$0xff] }
 0x3de   : > { %6358 = vmatprep.subr.bf16.mxu1 %v6357_v5  ;;  %v1757_v5 = vld [vmem:[#allocation6 + $0x390] sm:$0xff]  ;;  %v1783_v52 = vld [vmem:[#allocation6 + $0x460] sm:$0xff] }
 0x3df   : > { %v6379_v60 = vpack.c.bf16 %v1761_v58, %v1757_v5  ;;  %v6159_v58 = vpack.c.bf16 %v1775_v19, %v1771_v10  ;;  %v1792_v10 = vld [vmem:[#allocation6 + $0x4a8] sm:$0xff] }
 0x3e1   : > { %6360 = vmatpush1.bf16.msra.mxu1 %v6359_v2  ;;  %v6381_v2 = vpack.c.bf16 %v1770_v59, %v1766_v49  ;;  %v6387_v49 = vpack.c.bf16 %v1777_v22, %v1773_v24 }
 0x3e2   : > { %6362 = vmatprep.subr.bf16.mxu1 %v6361_v14  ;;  %v1765_v14 = vld [vmem:[#allocation6 + $0x3d0] sm:$0xff] }
 0x3e3   : > { %v6383_v25 = vpack.c.bf16 %v1769_v17, %v1765_v14  ;;  %v6163_v17 = vpack.c.bf16 %v1783_v52, %v1779_v0  ;;  %v1789_v52 = vld [vmem:[#allocation6 + $0x490] sm:$0xff] }
 0x3e5   : > { %6364 = vmatpush1.bf16.msra.mxu1 %v6363_v11  ;;  %v6385_v11 = vpack.c.bf16 %v1778_v6, %v1774_v21  ;;  %v1781_v21 = vld [vmem:[#allocation6 + $0x450] sm:$0xff] }
 0x3e6   : > { %6366 = vmatprep.subr.bf16.mxu1 %v6365_v47  ;;  %v1785_v6 = vld [vmem:[#allocation6 + $0x470] sm:$0xff] }
 0x3e9   : > { %6368 = vmatpush1.bf16.msra.mxu1 %v6367_v63 }
 0x3ea   : > { %6370 = vmatprep.subr.bf16.mxu1 %v6369_v23 }
 0x3ed   : > { %6372 = vmatpush1.bf16.msra.mxu1 %v6371_v29  ;;  %v1782_v29 = vld [vmem:[#allocation6 + $0x458] sm:$0xff] }
 0x3ee   : > { %6374 = vmatprep.subr.bf16.mxu1 %v6373_v34  ;;  %v1786_v34 = vld [vmem:[#allocation6 + $0x478] sm:$0xff] }
 0x3ef   : > { %v6389_v14 = vpack.c.bf16 %v1786_v34, %v1782_v29  ;;  %v1794_v29 = vld [vmem:[#allocation6 + $0x4b8] sm:$0xff]  ;;  %v1787_v34 = vld [vmem:[#allocation6 + $0x480] sm:$0xff] }
 0x3f1   : > { %6376 = vmatpush1.bf16.msra.mxu1 %v6375_v3 }
 0x3f2   : > { %6378 = vmatprep.subr.bf16.mxu1 %v6377_v42 }
 0x3f5   : > { %6380 = vmatpush1.bf16.msra.mxu1 %v6379_v60 }
 0x3f6   : > { %6382 = vmatprep.subr.bf16.mxu1 %v6381_v2  ;;  %v6161_v2 = vpack.c.bf16 %v1784_v18, %v1780_v12  ;;  %v1790_v18 = vld [vmem:[#allocation6 + $0x498] sm:$0xff] }
 0x3f7   : > { %v6393_v56 = vpack.c.bf16 %v1794_v29, %v1790_v18  ;;  %v1814_v18 = vld [vmem:[#allocation6 + $0x558] sm:$0xff]  ;;  %v1811_v29 = vld [vmem:[#allocation6 + $0x540] sm:$0xff] }
 0x3f9   : > { %6384 = vmatpush1.bf16.msra.mxu1 %v6383_v25 }
 0x3fa   : > { %6386 = vmatprep.subr.bf16.mxu1 %v6385_v11 }
 0x434   : > { %v9107_v47 = vpop.permute.xlu0 %7105 }
 0x435   : > { %v7107_v62 = vunpack.i.l.bf16 %v9107_v47  ;;  %v9110_v1 = vpop.permute.xlu1 %7100  ;;  %v7108_v19 = vunpack.i.h.bf16 %v9107_v47  ;;  %v6391_v47 = vpack.c.bf16 %v1785_v6, %v1781_v21  ;;  %v1808_v21 = vld [vmem:[#allocation6 + $0x528] sm:$0xff]  ;;  %v1806_v6 = vld [vmem:[#allocation6 + $0x518] sm:$0xff] }
 0x436   : > { %v7103_v63 = vunpack.i.h.bf16 %v9110_v1  ;;  %v7102_v23 = vunpack.i.l.bf16 %v9110_v1 }
 0x438   : > { %v1597_v35 = vsel %vm427_vm7, %v7107_v62, %v7102_v23  ;;  %v1598_v38 = vsel %vm427_vm7, %v7102_v23, %v7103_v63  ;;  %v1788_v62 = vld [vmem:[#allocation6 + $0x488] sm:$0xff] }
 0x439   : > { %v1627_v3 = vmax.f32 %v9035_v51, %v1597_v35  ;;  %v7111_v42 = vpop.permute.xlu1 %7110  ;;  %v1628_v5 = vmax.f32 %v9039_v13, %v1598_v38  ;;  %v1791_v35 = vld [vmem:[#allocation6 + $0x4a0] sm:$0xff] }
 0x43a   : > { %v7113_v59 = vunpack.i.h.bf16 %v7111_v42  ;;  %v7112_v60 = vunpack.i.l.bf16 %v7111_v42  ;;  %v1796_v42 = vld [vmem:[#allocation6 + $0x4c8] sm:$0xff] }
 0x43b   : > { %2170 = vmatprep.mubr.f32.mxu0 %v1628_v5  ;;  %2478 = vmatprep.mubr.f32.mxu1 %v1628_v5 }
 0x43c   : > { %v1508_v25 = vsel %vm11766_vm2, %v7113_v59, %v7072_v44  ;;  %v1506_v51 = vsel %vm11766_vm2, %v7087_v32, %v7112_v60  ;;  %v1507_v13 = vsel %vm11766_vm2, %v7112_v60, %v7113_v59  ;;  %2171 = vmatmul.mubr.f32.vlgmr.msra.gmra.mrb[8].mxu0 %v1627_v3  ;;  %2479 = vmatmul.mubr.f32.vlgmr.msra.gmra.mrb[12].mxu1 %v1627_v3  ;;  %v9127_v11 = vpop.permute.xlu0 %7115  ;;  %v1793_v3 = vld [vmem:[#allocation6 + $0x4b0] sm:$0xff] }
 0x43d   : > { %v9132_v23 = vmax.f32 %v1442_v36, %v1506_v51  ;;  %v9136_v44 = vmax.f32 %v1443_v7, %v1507_v13  ;;  %v7118_v46 = vunpack.i.h.bf16 %v9127_v11  ;;  %v7121_v32 = vpop.permute.xlu1 %7120  ;;  %6160 = vmatpush1.bf16.msra.mxu0 %v6159_v58  ;;  %6388 = vmatpush1.bf16.msra.mxu1 %v6387_v49  ;;  %v7117_v24 = vunpack.i.l.bf16 %v9127_v11  ;;  %v1798_v58 = vld [vmem:[#allocation6 + $0x4d8] sm:$0xff] }
 0x43e   : > { %v7123_v22 = vunpack.i.h.bf16 %v7121_v32  ;;  %v7122_v12 = vunpack.i.l.bf16 %v7121_v32  ;;  %6162 = vmatprep.subr.bf16.mxu0 %v6161_v2  ;;  %6390 = vmatprep.subr.bf16.mxu1 %v6389_v14  ;;  %v9142_v27 = vmax.f32 %v1444_v61, %v1508_v25  ;;  %v6165_v7 = vpack.c.bf16 %v1792_v10, %v1788_v62  ;;  %v1802_v49 = vld [vmem:[#allocation6 + $0x4f8] sm:$0xff]  ;;  %v1801_v14 = vld [vmem:[#allocation6 + $0x4f0] sm:$0xff]  ;;  %v1803_v62 = vld [vmem:[#allocation6 + $0x500] sm:$0xff] }
 0x43f   : > { %v7124_v36 = vpack.i.bf16 %v9136_v44, %v9132_v23  ;;  %v1604_v16 = vsel %vm427_vm7, %v7118_v46, %v7108_v19  ;;  %v1605_v61 = vsel %vm427_vm7, %v7108_v19, %v7117_v24  ;;  %v6395_v48 = vpack.c.bf16 %v1793_v3, %v1789_v52  ;;  %v1810_v25 = vld [vmem:[#allocation6 + $0x538] sm:$0xff]  ;;  %v1807_v10 = vld [vmem:[#allocation6 + $0x520] sm:$0xff]  ;;  %v1805_v32 = vld [vmem:[#allocation6 + $0x510] sm:$0xff] }
 0x440   : > { %v1515_v38 = vsel %vm11766_vm2, %v7123_v22, %v7073_v45  ;;  %v1513_v0 = vsel %vm11766_vm2, %v7097_v26, %v7122_v12  ;;  %v1514_v28 = vsel %vm11766_vm2, %v7122_v12, %v7123_v22  ;;  %v1636_v15 = vmax.f32 %v9031_v50, %v1605_v61  ;;  %v1800_v26 = vld [vmem:[#allocation6 + $0x4e8] sm:$0xff]  ;;  %v1799_v50 = vld [vmem:[#allocation6 + $0x4e0] sm:$0xff]  ;;  %v1809_v22 = vld [vmem:[#allocation6 + $0x530] sm:$0xff] }
 0x441   : > { %v9159_v5 = vmax.f32 %v1452_v31, %v1515_v38  ;;  %v9163_v43 = vmax.f32 %v1450_v55, %v1513_v0  ;;  %v9167_v45 = vmax.f32 %v1451_v9, %v1514_v28  ;;  %7125 = vrot.lane.b32.xlu0 %v7124_v36, %s8307_s18  ;;  %v1635_v59 = vmax.f32 %v9092_v39, %v1604_v16  ;;  %v1795_v9 = vld [vmem:[#allocation6 + $0x4c0] sm:$0xff]  ;;  %v1797_v39 = vld [vmem:[#allocation6 + $0x4d0] sm:$0xff]  ;;  %v1812_v12 = vld [vmem:[#allocation6 + $0x548] sm:$0xff] }
 0x442   : > { %6164 = vmatpush1.bf16.msra.mxu0 %v6163_v17  ;;  %6392 = vmatpush1.bf16.msra.mxu1 %v6391_v47  ;;  %v6167_v31 = vpack.c.bf16 %v1791_v35, %v1787_v34  ;;  %v6169_v60 = vpack.c.bf16 %v1800_v26, %v1796_v42  ;;  %v6397_v2 = vpack.c.bf16 %v1802_v49, %v1798_v58  ;;  %v1804_v17 = vld [vmem:[#allocation6 + $0x508] sm:$0xff]  ;;  %v1818_v36 = vld [vmem:[#allocation6 + $0x578] sm:$0xff]  ;;  %v1815_v34 = vld [vmem:[#allocation6 + $0x560] sm:$0xff] }
 0x443   : > { %2176 = vmatprep.mubr.f32.mxu0 %v1636_v15  ;;  %2484 = vmatprep.mubr.f32.mxu1 %v1636_v15  ;;  %v7129_v20 = vpack.i.bf16 %v9167_v45, %v9163_v43  ;;  %v7134_v55 = vpack.i.bf16 %v9159_v5, %v9142_v27  ;;  %v6171_v51 = vpack.c.bf16 %v1799_v50, %v1795_v9  ;;  %v1816_v47 = vld [vmem:[#allocation6 + $0x568] sm:$0xff]  ;;  %v1813_v0 = vld [vmem:[#allocation6 + $0x550] sm:$0xff]  ;;  %v1822_v3 = vld [vmem:[#allocation6 + $0x598] sm:$0xff] }
 0x444   : > { %2177 = vmatmul.mubr.f32.gmra.mrb[10].mxu0 %v1635_v59  ;;  %2485 = vmatmul.mubr.f32.gmra.mrb[14].mxu1 %v1635_v59  ;;  %v6399_v13 = vpack.c.bf16 %v1801_v14, %v1797_v39  ;;  %v6173_v19 = vpack.c.bf16 %v1808_v21, %v1804_v17  ;;  %v6401_v46 = vpack.c.bf16 %v1810_v25, %v1806_v6  ;;  %v1817_v28 = vld [vmem:[#allocation6 + $0x570] sm:$0xff]  ;;  %v1820_v61 = vld [vmem:[#allocation6 + $0x588] sm:$0xff]  ;;  %v1826_v42 = vld [vmem:[#allocation6 + $0x5b8] sm:$0xff] }
 0x445   : > { %7130 = vrot.lane.b32.xlu1 %v7129_v20, %s8307_s18  ;;  %7135 = vrot.lane.b32.xlu0 %v7134_v55, %s8307_s18  ;;  %v6175_v16 = vpack.c.bf16 %v1807_v10, %v1803_v62  ;;  %v6177_v35 = vpack.c.bf16 %v1816_v47, %v1812_v12  ;;  %v6405_v38 = vpack.c.bf16 %v1818_v36, %v1814_v18  ;;  %v1824_v52 = vld [vmem:[#allocation6 + $0x5a8] sm:$0xff]  ;;  %v1819_v58 = vld [vmem:[#allocation6 + $0x580] sm:$0xff]  ;;  %v1825_v20 = vld [vmem:[#allocation6 + $0x5b0] sm:$0xff]  ;;  %s11593_s18 = smov 107  }
 0x446   : > { %6166 = vmatprep.subr.bf16.mxu0 %v6165_v7  ;;  %6394 = vmatprep.subr.bf16.mxu1 %v6393_v56  ;;  %v6403_v7 = vpack.c.bf16 %v1809_v22, %v1805_v32  ;;  %v6179_v15 = vpack.c.bf16 %v1815_v34, %v1811_v29  ;;  %v6407_v26 = vpack.c.bf16 %v1817_v28, %v1813_v0  ;;  %v1823_v49 = vld [vmem:[#allocation6 + $0x5a0] sm:$0xff]  ;;  %v1828_v55 = vld [vmem:[#allocation6 + $0x5c8] sm:$0xff]  ;;  %v1830_v9 = vld [vmem:[#allocation6 + $0x5d8] sm:$0xff] }
 0x447   : > { %6168 = vmatpush1.bf16.msra.mxu0 %v6167_v31  ;;  %6396 = vmatpush1.bf16.msra.mxu1 %v6395_v48  ;;  %v6181_v59 = vpack.c.bf16 %v1824_v52, %v1820_v61  ;;  %v6409_v56 = vpack.c.bf16 %v1826_v42, %v1822_v3  ;;  %v1821_v31 = vld [vmem:[#allocation6 + $0x590] sm:$0xff]  ;;  %v1832_v48 = vld [vmem:[#allocation6 + $0x5e8] sm:$0xff]  ;;  %v1834_v50 = vld [vmem:[#allocation6 + $0x5f8] sm:$0xff] }
 0x448   : > { %6170 = vmatprep.subr.bf16.mxu0 %v6169_v60  ;;  %6398 = vmatprep.subr.bf16.mxu1 %v6397_v2  ;;  %v6183_v60 = vpack.c.bf16 %v1823_v49, %v1819_v58  ;;  %v6411_v2 = vpack.c.bf16 %v1825_v20, %v1821_v31  ;;  %v1827_v39 = vld [vmem:[#allocation6 + $0x5c0] sm:$0xff]  ;;  %v6185_v17 = vpack.c.bf16 %v1832_v48, %v1828_v55  ;;  %v1829_v6 = vld [vmem:[#allocation6 + $0x5d0] sm:$0xff]  ;;  %v1838_v62 = vld [vmem:[#allocation6 + $0x618] sm:$0xff] }
 0x449   : > { %v1831_v14 = vld [vmem:[#allocation6 + $0x5e0] sm:$0xff]  ;;  %v6413_v21 = vpack.c.bf16 %v1834_v50, %v1830_v9  ;;  %v1833_v25 = vld [vmem:[#allocation6 + $0x5f0] sm:$0xff]  ;;  %v1842_v10 = vld [vmem:[#allocation6 + $0x638] sm:$0xff] }
 0x44a   : > { %v1835_v32 = vld [vmem:[#allocation6 + $0x600] sm:$0xff]  ;;  %v6417_v47 = vpack.c.bf16 %v1842_v10, %v1838_v62  ;;  %v1837_v18 = vld [vmem:[#allocation6 + $0x610] sm:$0xff]  ;;  %v1846_v29 = vld [vmem:[#allocation6 + $0x658] sm:$0xff] }
 0x44b   : > { %6172 = vmatpush1.bf16.msra.mxu0 %v6171_v51  ;;  %6400 = vmatpush1.bf16.msra.mxu1 %v6399_v13  ;;  %v1836_v51 = vld [vmem:[#allocation6 + $0x608] sm:$0xff]  ;;  %v1839_v22 = vld [vmem:[#allocation6 + $0x620] sm:$0xff]  ;;  %v1841_v36 = vld [vmem:[#allocation6 + $0x630] sm:$0xff] }
 0x44c   : > { %6174 = vmatprep.subr.bf16.mxu0 %v6173_v19  ;;  %6402 = vmatprep.subr.bf16.mxu1 %v6401_v46  ;;  %v1840_v13 = vld [vmem:[#allocation6 + $0x628] sm:$0xff]  ;;  %v6187_v19 = vpack.c.bf16 %v1831_v14, %v1827_v39  ;;  %v6415_v46 = vpack.c.bf16 %v1833_v25, %v1829_v6  ;;  %v1850_v34 = vld [vmem:[#allocation6 + $0x678] sm:$0xff]  ;;  %v1843_v0 = vld [vmem:[#allocation6 + $0x640] sm:$0xff] }
 0x44d   : > { %v6189_v12 = vpack.c.bf16 %v1840_v13, %v1836_v51  ;;  %v1847_v28 = vld [vmem:[#allocation6 + $0x660] sm:$0xff]  ;;  %v6421_v52 = vpack.c.bf16 %v1850_v34, %v1846_v29  ;;  %v1845_v3 = vld [vmem:[#allocation6 + $0x650] sm:$0xff]  ;;  %v1854_v58 = vld [vmem:[#allocation6 + $0x698] sm:$0xff] }
 0x44e   : > { %v1849_v42 = vld [vmem:[#allocation6 + $0x670] sm:$0xff]  ;;  %v1858_v49 = vld [vmem:[#allocation6 + $0x6b8] sm:$0xff]  ;;  %v1851_v31 = vld [vmem:[#allocation6 + $0x680] sm:$0xff] }
 0x44f   : > { %6176 = vmatpush1.bf16.msra.mxu0 %v6175_v16  ;;  %6404 = vmatpush1.bf16.msra.mxu1 %v6403_v7  ;;  %v1844_v16 = vld [vmem:[#allocation6 + $0x648] sm:$0xff]  ;;  %v1855_v20 = vld [vmem:[#allocation6 + $0x6a0] sm:$0xff]  ;;  %v6425_v48 = vpack.c.bf16 %v1858_v49, %v1854_v58  ;;  %v1853_v9 = vld [vmem:[#allocation6 + $0x690] sm:$0xff] }
 0x450   : > { %6178 = vmatprep.subr.bf16.mxu0 %v6177_v35  ;;  %6406 = vmatprep.subr.bf16.mxu1 %v6405_v38  ;;  %v1848_v7 = vld [vmem:[#allocation6 + $0x668] sm:$0xff]  ;;  %v6191_v35 = vpack.c.bf16 %v1839_v22, %v1835_v32  ;;  %v6419_v38 = vpack.c.bf16 %v1841_v36, %v1837_v18  ;;  %v1857_v50 = vld [vmem:[#allocation6 + $0x6b0] sm:$0xff]  ;;  %v1862_v39 = vld [vmem:[#allocation6 + $0x6d8] sm:$0xff] }
 0x451   : > { %v6193_v61 = vpack.c.bf16 %v1848_v7, %v1844_v16  ;;  %v1866_v14 = vld [vmem:[#allocation6 + $0x6f8] sm:$0xff]  ;;  %v1859_v6 = vld [vmem:[#allocation6 + $0x6c0] sm:$0xff]  ;;  %v1861_v62 = vld [vmem:[#allocation6 + $0x6d0] sm:$0xff] }
 0x452   : > { %v1863_v25 = vld [vmem:[#allocation6 + $0x6e0] sm:$0xff]  ;;  %v6429_v13 = vpack.c.bf16 %v1866_v14, %v1862_v39  ;;  %v1865_v10 = vld [vmem:[#allocation6 + $0x6f0] sm:$0xff]  ;;  %v1870_v32 = vld [vmem:[#allocation6 + $0x718] sm:$0xff] }
 0x453   : > { %6180 = vmatpush1.bf16.msra.mxu0 %v6179_v15  ;;  %6408 = vmatpush1.bf16.msra.mxu1 %v6407_v26  ;;  %v1852_v15 = vld [vmem:[#allocation6 + $0x688] sm:$0xff]  ;;  %v1874_v22 = vld [vmem:[#allocation6 + $0x738] sm:$0xff]  ;;  %v1867_v18 = vld [vmem:[#allocation6 + $0x700] sm:$0xff] }
 0x454   : > { %6182 = vmatprep.subr.bf16.mxu0 %v6181_v59  ;;  %6410 = vmatprep.subr.bf16.mxu1 %v6409_v56  ;;  %v1856_v26 = vld [vmem:[#allocation6 + $0x6a8] sm:$0xff]  ;;  %v6195_v59 = vpack.c.bf16 %v1847_v28, %v1843_v0  ;;  %v6423_v56 = vpack.c.bf16 %v1849_v42, %v1845_v3  ;;  %v1871_v36 = vld [vmem:[#allocation6 + $0x720] sm:$0xff]  ;;  %v6433_v7 = vpack.c.bf16 %v1874_v22, %v1870_v32  ;;  %v1869_v29 = vld [vmem:[#allocation6 + $0x710] sm:$0xff] }
 0x455   : > { %v6197_v55 = vpack.c.bf16 %v1856_v26, %v1852_v15  ;;  %v1873_v34 = vld [vmem:[#allocation6 + $0x730] sm:$0xff]  ;;  %v1878_v0 = vld [vmem:[#allocation6 + $0x758] sm:$0xff]  ;;  %v1875_v3 = vld [vmem:[#allocation6 + $0x740] sm:$0xff] }
 0x456   : > { %v1882_v28 = vld [vmem:[#allocation6 + $0x778] sm:$0xff]  ;;  %v1879_v42 = vld [vmem:[#allocation6 + $0x760] sm:$0xff]  ;;  %v1877_v58 = vld [vmem:[#allocation6 + $0x750] sm:$0xff] }
 0x457   : > { %6184 = vmatpush1.bf16.msra.mxu0 %v6183_v60  ;;  %6412 = vmatpush1.bf16.msra.mxu1 %v6411_v2  ;;  %v1860_v60 = vld [vmem:[#allocation6 + $0x6c8] sm:$0xff]  ;;  %v6437_v26 = vpack.c.bf16 %v1882_v28, %v1878_v0  ;;  %v1881_v49 = vld [vmem:[#allocation6 + $0x770] sm:$0xff] }
 0x458   : > { %6186 = vmatprep.subr.bf16.mxu0 %v6185_v17  ;;  %6414 = vmatprep.subr.bf16.mxu1 %v6413_v21  ;;  %v1864_v2 = vld [vmem:[#allocation6 + $0x6e8] sm:$0xff]  ;;  %v6199_v17 = vpack.c.bf16 %v1855_v20, %v1851_v31  ;;  %v6427_v21 = vpack.c.bf16 %v1857_v50, %v1853_v9  ;;  %v1886_v31 = vld [vmem:[#allocation6 + $0x798] sm:$0xff]  ;;  %v1883_v9 = vld [vmem:[#allocation6 + $0x780] sm:$0xff] }
 0x459   : > { %v6201_v51 = vpack.c.bf16 %v1864_v2, %v1860_v60  ;;  %v1890_v20 = vld [vmem:[#allocation6 + $0x7b8] sm:$0xff]  ;;  %v1887_v50 = vld [vmem:[#allocation6 + $0x7a0] sm:$0xff]  ;;  %v1885_v39 = vld [vmem:[#allocation6 + $0x790] sm:$0xff] }
 0x45a   : > { %v6441_v2 = vpack.c.bf16 %v1890_v20, %v1886_v31  ;;  %v1889_v14 = vld [vmem:[#allocation6 + $0x7b0] sm:$0xff]  ;;  %v1914_v31 = vld [vmem:[#allocation6 + $0x878] sm:$0xff] }
 0x45b   : > { %6188 = vmatpush1.bf16.msra.mxu0 %v6187_v19  ;;  %6416 = vmatpush1.bf16.msra.mxu1 %v6415_v46  ;;  %v1868_v19 = vld [vmem:[#allocation6 + $0x708] sm:$0xff]  ;;  %v1893_v32 = vld [vmem:[#allocation6 + $0x7d0] sm:$0xff] }
 0x45c   : > { %6190 = vmatprep.subr.bf16.mxu0 %v6189_v12  ;;  %6418 = vmatprep.subr.bf16.mxu1 %v6417_v47  ;;  %v1872_v46 = vld [vmem:[#allocation6 + $0x728] sm:$0xff]  ;;  %v6203_v12 = vpack.c.bf16 %v1863_v25, %v1859_v6  ;;  %v6431_v47 = vpack.c.bf16 %v1865_v10, %v1861_v62  ;;  %v1894_v6 = vld [vmem:[#allocation6 + $0x7d8] sm:$0xff]  ;;  %v1891_v62 = vld [vmem:[#allocation6 + $0x7c0] sm:$0xff] }
 0x45d   : > { %v6205_v16 = vpack.c.bf16 %v1872_v46, %v1868_v19  ;;  %v1898_v25 = vld [vmem:[#allocation6 + $0x7f8] sm:$0xff]  ;;  %v1895_v10 = vld [vmem:[#allocation6 + $0x7e0] sm:$0xff]  ;;  %v1897_v22 = vld [vmem:[#allocation6 + $0x7f0] sm:$0xff] }
 0x45e   : > { %v6445_v46 = vpack.c.bf16 %v1898_v25, %v1894_v6 }
 0x45f   : > { %6192 = vmatpush1.bf16.msra.mxu0 %v6191_v35  ;;  %6420 = vmatpush1.bf16.msra.mxu1 %v6419_v38  ;;  %v1876_v35 = vld [vmem:[#allocation6 + $0x748] sm:$0xff] }
 0x460   : > { %6194 = vmatprep.subr.bf16.mxu0 %v6193_v61  ;;  %6422 = vmatprep.subr.bf16.mxu1 %v6421_v52  ;;  %v1880_v38 = vld [vmem:[#allocation6 + $0x768] sm:$0xff]  ;;  %v6207_v61 = vpack.c.bf16 %v1871_v36, %v1867_v18  ;;  %v6435_v52 = vpack.c.bf16 %v1873_v34, %v1869_v29  ;;  %v1902_v18 = vld [vmem:[#allocation6 + $0x818] sm:$0xff] }
 0x461   : > { %v6209_v15 = vpack.c.bf16 %v1880_v38, %v1876_v35  ;;  %v1906_v36 = vld [vmem:[#allocation6 + $0x838] sm:$0xff] }
 0x462   : > { %v6449_v34 = vpack.c.bf16 %v1906_v36, %v1902_v18  ;;  %v1915_v18 = vld [vmem:[#allocation6 + $0x880] sm:$0xff] }
 0x463   : > { %6196 = vmatpush1.bf16.msra.mxu0 %v6195_v59  ;;  %6424 = vmatpush1.bf16.msra.mxu1 %v6423_v56  ;;  %v1884_v59 = vld [vmem:[#allocation6 + $0x788] sm:$0xff]  ;;  %v1919_v36 = vld [vmem:[#allocation6 + $0x8a0] sm:$0xff] }
 0x464   : > { %6198 = vmatprep.subr.bf16.mxu0 %v6197_v55  ;;  %6426 = vmatprep.subr.bf16.mxu1 %v6425_v48  ;;  %v1888_v56 = vld [vmem:[#allocation6 + $0x7a8] sm:$0xff]  ;;  %v6211_v55 = vpack.c.bf16 %v1879_v42, %v1875_v3  ;;  %v6439_v48 = vpack.c.bf16 %v1881_v49, %v1877_v58  ;;  %v1903_v3 = vld [vmem:[#allocation6 + $0x820] sm:$0xff]  ;;  %v1901_v42 = vld [vmem:[#allocation6 + $0x810] sm:$0xff] }
 0x465   : > { %v6213_v60 = vpack.c.bf16 %v1888_v56, %v1884_v59  ;;  %v1905_v58 = vld [vmem:[#allocation6 + $0x830] sm:$0xff]  ;;  %v1908_v49 = vld [vmem:[#allocation6 + $0x848] sm:$0xff]  ;;  %v1910_v56 = vld [vmem:[#allocation6 + $0x858] sm:$0xff] }
 0x466   : > { %v1912_v59 = vld [vmem:[#allocation6 + $0x868] sm:$0xff]  ;;  %v6453_v25 = vpack.c.bf16 %v1914_v31, %v1910_v56  ;;  %v1925_v56 = vld [vmem:[#allocation6 + $0x8d0] sm:$0xff] }
 0x467   : > { %6200 = vmatpush1.bf16.msra.mxu0 %v6199_v17  ;;  %6428 = vmatpush1.bf16.msra.mxu1 %v6427_v21  ;;  %v1892_v17 = vld [vmem:[#allocation6 + $0x7c8] sm:$0xff]  ;;  %v1929_v31 = vld [vmem:[#allocation6 + $0x8f0] sm:$0xff] }
 0x468   : > { %6202 = vmatprep.subr.bf16.mxu0 %v6201_v51  ;;  %6430 = vmatprep.subr.bf16.mxu1 %v6429_v13  ;;  %v1896_v21 = vld [vmem:[#allocation6 + $0x7e8] sm:$0xff]  ;;  %v6215_v51 = vpack.c.bf16 %v1887_v50, %v1883_v9  ;;  %v6443_v13 = vpack.c.bf16 %v1889_v14, %v1885_v39  ;;  %v6451_v39 = vpack.c.bf16 %v1905_v58, %v1901_v42  ;;  %v1923_v58 = vld [vmem:[#allocation6 + $0x8c0] sm:$0xff] }
 0x469   : > { %v6217_v19 = vpack.c.bf16 %v1896_v21, %v1892_v17  ;;  %v6225_v14 = vpack.c.bf16 %v1912_v59, %v1908_v49  ;;  %v1907_v17 = vld [vmem:[#allocation6 + $0x840] sm:$0xff]  ;;  %v6231_v42 = vpack.c.bf16 %v1919_v36, %v1915_v18  ;;  %v1948_v18 = vld [vmem:[#allocation6 + $0x988] sm:$0xff] }
 0x46a   : > { %v1911_v21 = vld [vmem:[#allocation6 + $0x860] sm:$0xff]  ;;  %v1952_v36 = vld [vmem:[#allocation6 + $0x9a8] sm:$0xff] }
 0x46b   : > { %6204 = vmatpush1.bf16.msra.mxu0 %v6203_v12  ;;  %6432 = vmatpush1.bf16.msra.mxu1 %v6431_v47  ;;  %v1900_v12 = vld [vmem:[#allocation6 + $0x808] sm:$0xff] }
 0x46c   : > { %6206 = vmatprep.subr.bf16.mxu0 %v6205_v16  ;;  %6434 = vmatprep.subr.bf16.mxu1 %v6433_v7  ;;  %v1904_v47 = vld [vmem:[#allocation6 + $0x828] sm:$0xff]  ;;  %v6219_v16 = vpack.c.bf16 %v1895_v10, %v1891_v62  ;;  %v6447_v7 = vpack.c.bf16 %v1897_v22, %v1893_v32  ;;  %v6227_v10 = vpack.c.bf16 %v1911_v21, %v1907_v17  ;;  %v1922_v32 = vld [vmem:[#allocation6 + $0x8b8] sm:$0xff] }
 0x46d   : > { %v6221_v29 = vpack.c.bf16 %v1904_v47, %v1900_v12 }
 0x46f   : > { %6208 = vmatpush1.bf16.msra.mxu0 %v6207_v61  ;;  %6436 = vmatpush1.bf16.msra.mxu1 %v6435_v52  ;;  %v1899_v52 = vld [vmem:[#allocation6 + $0x800] sm:$0xff] }
 0x470   : > { %6210 = vmatprep.subr.bf16.mxu0 %v6209_v15  ;;  %6438 = vmatprep.subr.bf16.mxu1 %v6437_v26 }
 0x473   : > { %6212 = vmatpush1.bf16.msra.mxu0 %v6211_v55  ;;  %6440 = vmatpush1.bf16.msra.mxu1 %v6439_v48  ;;  %v6223_v48 = vpack.c.bf16 %v1903_v3, %v1899_v52  ;;  %v1930_v52 = vld [vmem:[#allocation6 + $0x8f8] sm:$0xff] }
 0x474   : > { %6214 = vmatprep.subr.bf16.mxu0 %v6213_v60  ;;  %6442 = vmatprep.subr.bf16.mxu1 %v6441_v2 }
 0x477   : > { %6216 = vmatpush1.bf16.msra.mxu0 %v6215_v51  ;;  %6444 = vmatpush1.bf16.msra.mxu1 %v6443_v13  ;;  %v1909_v51 = vld [vmem:[#allocation6 + $0x850] sm:$0xff] }
 0x478   : > { %6218 = vmatprep.subr.bf16.mxu0 %v6217_v19  ;;  %6446 = vmatprep.subr.bf16.mxu1 %v6445_v46  ;;  %v1913_v13 = vld [vmem:[#allocation6 + $0x870] sm:$0xff]  ;;  %v1920_v19 = vld [vmem:[#allocation6 + $0x8a8] sm:$0xff]  ;;  %v1918_v46 = vld [vmem:[#allocation6 + $0x898] sm:$0xff] }
 0x479   : > { %v6455_v47 = vpack.c.bf16 %v1913_v13, %v1909_v51  ;;  %v1940_v51 = vld [vmem:[#allocation6 + $0x948] sm:$0xff] }
 0x47a   : > { %v1944_v13 = vld [vmem:[#allocation6 + $0x968] sm:$0xff] }
 0x47b   : > { %6220 = vmatpush1.bf16.msra.mxu0 %v6219_v16  ;;  %6448 = vmatpush1.bf16.msra.mxu1 %v6447_v7  ;;  %v1921_v16 = vld [vmem:[#allocation6 + $0x8b0] sm:$0xff]  ;;  %v1924_v7 = vld [vmem:[#allocation6 + $0x8c8] sm:$0xff] }
 0x47c   : > { %6222 = vmatprep.subr.bf16.mxu0 %v6221_v29  ;;  %6450 = vmatprep.subr.bf16.mxu1 %v6449_v34  ;;  %v1928_v34 = vld [vmem:[#allocation6 + $0x8e8] sm:$0xff] }
 0x47d   : > { %v6233_v49 = vpack.c.bf16 %v1928_v34, %v1924_v7  ;;  %v6245_v34 = vpack.c.bf16 %v1952_v36, %v1948_v18 }
 0x48f   : > { %v9178_v35 = vpop.f32.mrb[8].mxu1 }
 0x490   : > { %v9180_v38 = vpop.f32.mrb[9].mxu1 }
 0x495   : > { %v9182_v0 = vpop.f32.mrb[10].mxu1 }
 0x496   : > { %v9184_v28 = vpop.f32.mrb[11].mxu1 }
 0x4b3   : > { %v9186_v61 = vpop.permute.xlu0 %7125 }
 0x4b4   : > { %v7128_v15 = vunpack.i.h.bf16 %v9186_v61  ;;  %v7127_v26 = vunpack.i.l.bf16 %v9186_v61 }
 0x4b6   : > { %v1599_v20 = vsel %vm427_vm7, %v7103_v63, %v7127_v26  ;;  %v1600_v55 = vsel %vm427_vm7, %v7127_v26, %v7128_v15 }
 0x4b7   : > { %v1629_v9 = vmax.f32 %v9043_v57, %v1599_v20  ;;  %v9197_v50 = vpop.permute.xlu1 %7130  ;;  %v9199_v60 = vpop.permute.xlu0 %7135  ;;  %v1630_v2 = vmax.f32 %v9132_v23, %v1600_v55  ;;  %v1916_v57 = vld [vmem:[#allocation6 + $0x888] sm:$0xff] }
 0x4b8   : > { %v7133_v1 = vunpack.i.h.bf16 %v9197_v50  ;;  %v7132_v63 = vunpack.i.l.bf16 %v9197_v50  ;;  %v7137_v6 = vunpack.i.l.bf16 %v9199_v60  ;;  %v6229_v29 = vpack.c.bf16 %v1920_v19, %v1916_v57  ;;  %v1932_v20 = vld [vmem:[#allocation6 + $0x908] sm:$0xff]  ;;  %v1942_v57 = vld [vmem:[#allocation6 + $0x958] sm:$0xff]  ;;  %v1939_v19 = vld [vmem:[#allocation6 + $0x940] sm:$0xff] }
 0x4b9   : > { %2247 = vmatprep.mubr.f32.mxu0 %v1630_v2  ;;  %2555 = vmatprep.mubr.f32.mxu1 %v1630_v2  ;;  %v1936_v55 = vld [vmem:[#allocation6 + $0x928] sm:$0xff]  ;;  %v6463_v2 = vpack.c.bf16 %v1929_v31, %v1925_v56  ;;  %v1955_v56 = vld [vmem:[#allocation6 + $0x9c0] sm:$0xff]  ;;  %v2054_v50 = vld [vmem:[#allocation6 + $0xcd8] sm:$0xff] }
 0x4ba   : > { %2248 = vmatmul.mubr.f32.vlgmr.msra.gmra.mrb[8].mxu0 %v1629_v9  ;;  %2556 = vmatmul.mubr.f32.vlgmr.msra.gmra.mrb[12].mxu1 %v1629_v9  ;;  %v1607_v23 = vsel %vm427_vm7, %v7132_v63, %v7133_v1  ;;  %v1606_v62 = vsel %vm427_vm7, %v7117_v24, %v7132_v63  ;;  %v1602_v11 = vsel %vm427_vm7, %v7137_v6, %v7077_v37  ;;  %v1917_v24 = vld [vmem:[#allocation6 + $0x890] sm:$0xff]  ;;  %v1927_v37 = vld [vmem:[#allocation6 + $0x8e0] sm:$0xff]  ;;  %v1938_v9 = vld [vmem:[#allocation6 + $0x938] sm:$0xff] }
 0x4bb   : > { %6224 = vmatpush1.bf16.msra.mxu0 %v6223_v48  ;;  %6452 = vmatpush1.bf16.msra.mxu1 %v6451_v39  ;;  %v1638_v22 = vmax.f32 %v9163_v43, %v1607_v23  ;;  %v1637_v12 = vmax.f32 %v9096_v41, %v1606_v62  ;;  %v6457_v43 = vpack.c.bf16 %v1922_v32, %v1918_v46  ;;  %v1926_v41 = vld [vmem:[#allocation6 + $0x8d8] sm:$0xff]  ;;  %v1931_v39 = vld [vmem:[#allocation6 + $0x900] sm:$0xff]  ;;  %v1933_v63 = vld [vmem:[#allocation6 + $0x910] sm:$0xff] }
 0x4bc   : > { %6226 = vmatprep.subr.bf16.mxu0 %v6225_v14  ;;  %6454 = vmatprep.subr.bf16.mxu1 %v6453_v25  ;;  %v1632_v3 = vmax.f32 %v9142_v27, %v1602_v11  ;;  %v6459_v26 = vpack.c.bf16 %v1921_v16, %v1917_v24  ;;  %v6461_v59 = vpack.c.bf16 %v1930_v52, %v1926_v41  ;;  %v1934_v48 = vld [vmem:[#allocation6 + $0x918] sm:$0xff]  ;;  %v1935_v14 = vld [vmem:[#allocation6 + $0x920] sm:$0xff]  ;;  %v1937_v25 = vld [vmem:[#allocation6 + $0x930] sm:$0xff] }
 0x4bd   : > { %2253 = vmatprep.mubr.f32.mxu0 %v1638_v22  ;;  %2561 = vmatprep.mubr.f32.mxu1 %v1638_v22  ;;  %v6235_v27 = vpack.c.bf16 %v1927_v37, %v1923_v58  ;;  %v6237_v17 = vpack.c.bf16 %v1936_v55, %v1932_v20  ;;  %v6465_v21 = vpack.c.bf16 %v1938_v9, %v1934_v48  ;;  %v1946_v23 = vld [vmem:[#allocation6 + $0x978] sm:$0xff]  ;;  %v1943_v46 = vld [vmem:[#allocation6 + $0x960] sm:$0xff]  ;;  %v1949_v52 = vld [vmem:[#allocation6 + $0x990] sm:$0xff] }
 0x4be   : > { %2254 = vmatmul.mubr.f32.gmra.mrb[10].mxu0 %v1637_v12  ;;  %2562 = vmatmul.mubr.f32.gmra.mrb[14].mxu1 %v1637_v12  ;;  %v6239_v62 = vpack.c.bf16 %v1935_v14, %v1931_v39  ;;  %v6241_v32 = vpack.c.bf16 %v1944_v13, %v1940_v51  ;;  %v6469_v22 = vpack.c.bf16 %v1946_v23, %v1942_v57  ;;  %v1941_v12 = vld [vmem:[#allocation6 + $0x950] sm:$0xff]  ;;  %v1950_v11 = vld [vmem:[#allocation6 + $0x998] sm:$0xff]  ;;  %v1959_v31 = vld [vmem:[#allocation6 + $0x9e0] sm:$0xff] }
 0x4bf   : > { %6228 = vmatpush1.bf16.msra.mxu0 %v6227_v10  ;;  %6456 = vmatpush1.bf16.msra.mxu1 %v6455_v47  ;;  %v6467_v10 = vpack.c.bf16 %v1937_v25, %v1933_v63  ;;  %v1945_v47 = vld [vmem:[#allocation6 + $0x970] sm:$0xff]  ;;  %v1954_v24 = vld [vmem:[#allocation6 + $0x9b8] sm:$0xff]  ;;  %v6243_v16 = vpack.c.bf16 %v1943_v46, %v1939_v19  ;;  %v1963_v63 = vld [vmem:[#allocation6 + $0xa00] sm:$0xff] }
 0x4c0   : > { %2324 = vmatprep.mubr.f32.mxu0 %v1632_v3  ;;  %2632 = vmatprep.mubr.f32.mxu1 %v1632_v3  ;;  %v6471_v7 = vpack.c.bf16 %v1945_v47, %v1941_v12  ;;  %v6473_v41 = vpack.c.bf16 %v1954_v24, %v1950_v11  ;;  %v1953_v3 = vld [vmem:[#allocation6 + $0x9b0] sm:$0xff]  ;;  %v1958_v58 = vld [vmem:[#allocation6 + $0x9d8] sm:$0xff]  ;;  %v1967_v25 = vld [vmem:[#allocation6 + $0xa20] sm:$0xff] }
 0x4c1   : > { %6230 = vmatprep.subr.bf16.mxu0 %v6229_v29  ;;  %6458 = vmatprep.subr.bf16.mxu1 %v6457_v43  ;;  %v1947_v29 = vld [vmem:[#allocation6 + $0x980] sm:$0xff]  ;;  %v1962_v37 = vld [vmem:[#allocation6 + $0x9f8] sm:$0xff]  ;;  %v1957_v48 = vld [vmem:[#allocation6 + $0x9d0] sm:$0xff] }
 0x4c2   : > { %v1951_v43 = vld [vmem:[#allocation6 + $0x9a0] sm:$0xff]  ;;  %v6477_v55 = vpack.c.bf16 %v1962_v37, %v1958_v58  ;;  %v1961_v9 = vld [vmem:[#allocation6 + $0x9f0] sm:$0xff]  ;;  %v1966_v39 = vld [vmem:[#allocation6 + $0xa18] sm:$0xff] }
 0x4c3   : > { %6232 = vmatpush1.bf16.msra.mxu0 %v6231_v42  ;;  %6460 = vmatpush1.bf16.msra.mxu1 %v6459_v26  ;;  %v1956_v42 = vld [vmem:[#allocation6 + $0x9c8] sm:$0xff]  ;;  %v1970_v14 = vld [vmem:[#allocation6 + $0xa38] sm:$0xff]  ;;  %v1965_v57 = vld [vmem:[#allocation6 + $0xa10] sm:$0xff] }
 0x4c4   : > { %6234 = vmatprep.subr.bf16.mxu0 %v6233_v49  ;;  %6462 = vmatprep.subr.bf16.mxu1 %v6461_v59  ;;  %v1960_v26 = vld [vmem:[#allocation6 + $0x9e8] sm:$0xff]  ;;  %v6247_v49 = vpack.c.bf16 %v1951_v43, %v1947_v29  ;;  %v6475_v59 = vpack.c.bf16 %v1953_v3, %v1949_v52  ;;  %v6481_v13 = vpack.c.bf16 %v1970_v14, %v1966_v39  ;;  %v1969_v23 = vld [vmem:[#allocation6 + $0xa30] sm:$0xff]  ;;  %v1974_v19 = vld [vmem:[#allocation6 + $0xa58] sm:$0xff] }
 0x4c5   : > { %v6249_v20 = vpack.c.bf16 %v1960_v26, %v1956_v42  ;;  %v1978_v46 = vld [vmem:[#allocation6 + $0xa78] sm:$0xff]  ;;  %v1971_v12 = vld [vmem:[#allocation6 + $0xa40] sm:$0xff]  ;;  %v1973_v11 = vld [vmem:[#allocation6 + $0xa50] sm:$0xff] }
 0x4c6   : > { %v1975_v47 = vld [vmem:[#allocation6 + $0xa60] sm:$0xff]  ;;  %v6485_v36 = vpack.c.bf16 %v1978_v46, %v1974_v19  ;;  %v1977_v24 = vld [vmem:[#allocation6 + $0xa70] sm:$0xff]  ;;  %v1982_v29 = vld [vmem:[#allocation6 + $0xa98] sm:$0xff] }
 0x4c7   : > { %6236 = vmatpush1.bf16.msra.mxu0 %v6235_v27  ;;  %6464 = vmatpush1.bf16.msra.mxu1 %v6463_v2  ;;  %v1964_v27 = vld [vmem:[#allocation6 + $0xa08] sm:$0xff]  ;;  %v1986_v43 = vld [vmem:[#allocation6 + $0xab8] sm:$0xff]  ;;  %v1979_v52 = vld [vmem:[#allocation6 + $0xa80] sm:$0xff] }
 0x4c8   : > { %6238 = vmatprep.subr.bf16.mxu0 %v6237_v17  ;;  %6466 = vmatprep.subr.bf16.mxu1 %v6465_v21  ;;  %v1968_v2 = vld [vmem:[#allocation6 + $0xa28] sm:$0xff]  ;;  %v6251_v17 = vpack.c.bf16 %v1959_v31, %v1955_v56  ;;  %v6479_v21 = vpack.c.bf16 %v1961_v9, %v1957_v48  ;;  %v1983_v3 = vld [vmem:[#allocation6 + $0xaa0] sm:$0xff]  ;;  %v6489_v26 = vpack.c.bf16 %v1986_v43, %v1982_v29  ;;  %v1981_v58 = vld [vmem:[#allocation6 + $0xa90] sm:$0xff] }
 0x4c9   : > { %v6253_v51 = vpack.c.bf16 %v1968_v2, %v1964_v27  ;;  %v1985_v37 = vld [vmem:[#allocation6 + $0xab0] sm:$0xff]  ;;  %v1990_v56 = vld [vmem:[#allocation6 + $0xad8] sm:$0xff]  ;;  %v1987_v48 = vld [vmem:[#allocation6 + $0xac0] sm:$0xff] }
 0x4ca   : > { %v1994_v31 = vld [vmem:[#allocation6 + $0xaf8] sm:$0xff]  ;;  %v1991_v9 = vld [vmem:[#allocation6 + $0xae0] sm:$0xff]  ;;  %v1989_v39 = vld [vmem:[#allocation6 + $0xad0] sm:$0xff] }
 0x4cb   : > { %6240 = vmatpush1.bf16.msra.mxu0 %v6239_v62  ;;  %6468 = vmatpush1.bf16.msra.mxu1 %v6467_v10  ;;  %v1972_v62 = vld [vmem:[#allocation6 + $0xa48] sm:$0xff]  ;;  %v6493_v2 = vpack.c.bf16 %v1994_v31, %v1990_v56  ;;  %v1993_v14 = vld [vmem:[#allocation6 + $0xaf0] sm:$0xff] }
 0x4cc   : > { %6242 = vmatprep.subr.bf16.mxu0 %v6241_v32  ;;  %6470 = vmatprep.subr.bf16.mxu1 %v6469_v22  ;;  %v1976_v10 = vld [vmem:[#allocation6 + $0xa68] sm:$0xff]  ;;  %v6255_v32 = vpack.c.bf16 %v1967_v25, %v1963_v63  ;;  %v6483_v22 = vpack.c.bf16 %v1969_v23, %v1965_v57  ;;  %v1998_v63 = vld [vmem:[#allocation6 + $0xb18] sm:$0xff]  ;;  %v1995_v57 = vld [vmem:[#allocation6 + $0xb00] sm:$0xff] }
 0x4cd   : > { %v6257_v18 = vpack.c.bf16 %v1976_v10, %v1972_v62  ;;  %v2002_v25 = vld [vmem:[#allocation6 + $0xb38] sm:$0xff]  ;;  %v1999_v23 = vld [vmem:[#allocation6 + $0xb20] sm:$0xff]  ;;  %v1997_v19 = vld [vmem:[#allocation6 + $0xb10] sm:$0xff] }
 0x4ce   : > { %v6497_v10 = vpack.c.bf16 %v2002_v25, %v1998_v63  ;;  %v2001_v46 = vld [vmem:[#allocation6 + $0xb30] sm:$0xff] }
 0x4cf   : > { %6244 = vmatpush1.bf16.msra.mxu0 %v6243_v16  ;;  %6472 = vmatpush1.bf16.msra.mxu1 %v6471_v7  ;;  %v1980_v16 = vld [vmem:[#allocation6 + $0xa88] sm:$0xff]  ;;  %v2005_v29 = vld [vmem:[#allocation6 + $0xb50] sm:$0xff] }
 0x4d0   : > { %6246 = vmatprep.subr.bf16.mxu0 %v6245_v34  ;;  %6474 = vmatprep.subr.bf16.mxu1 %v6473_v41  ;;  %v1984_v7 = vld [vmem:[#allocation6 + $0xaa8] sm:$0xff]  ;;  %v6259_v34 = vpack.c.bf16 %v1975_v47, %v1971_v12  ;;  %v6487_v41 = vpack.c.bf16 %v1977_v24, %v1973_v11  ;;  %v2006_v12 = vld [vmem:[#allocation6 + $0xb58] sm:$0xff]  ;;  %v2003_v11 = vld [vmem:[#allocation6 + $0xb40] sm:$0xff] }
 0x4d1   : > { %v6261_v42 = vpack.c.bf16 %v1984_v7, %v1980_v16  ;;  %v2010_v47 = vld [vmem:[#allocation6 + $0xb78] sm:$0xff]  ;;  %v2007_v24 = vld [vmem:[#allocation6 + $0xb60] sm:$0xff]  ;;  %v2009_v43 = vld [vmem:[#allocation6 + $0xb70] sm:$0xff] }
 0x4d2   : > { %v6501_v7 = vpack.c.bf16 %v2010_v47, %v2006_v12  ;;  %v2013_v56 = vld [vmem:[#allocation6 + $0xb90] sm:$0xff]  ;;  %v2038_v12 = vld [vmem:[#allocation6 + $0xc58] sm:$0xff] }
 0x4d3   : > { %6248 = vmatpush1.bf16.msra.mxu0 %v6247_v49  ;;  %6476 = vmatpush1.bf16.msra.mxu1 %v6475_v59  ;;  %v1988_v49 = vld [vmem:[#allocation6 + $0xac8] sm:$0xff]  ;;  %v2017_v31 = vld [vmem:[#allocation6 + $0xbb0] sm:$0xff]  ;;  %v2042_v47 = vld [vmem:[#allocation6 + $0xc78] sm:$0xff] }
 0x4d4   : > { %6250 = vmatprep.subr.bf16.mxu0 %v6249_v20  ;;  %6478 = vmatprep.subr.bf16.mxu1 %v6477_v55  ;;  %v1992_v59 = vld [vmem:[#allocation6 + $0xae8] sm:$0xff]  ;;  %v6263_v20 = vpack.c.bf16 %v1983_v3, %v1979_v52  ;;  %v6491_v55 = vpack.c.bf16 %v1985_v37, %v1981_v58  ;;  %v2014_v52 = vld [vmem:[#allocation6 + $0xb98] sm:$0xff]  ;;  %v2011_v58 = vld [vmem:[#allocation6 + $0xb80] sm:$0xff] }
 0x4d5   : > { %v6265_v27 = vpack.c.bf16 %v1992_v59, %v1988_v49  ;;  %v2018_v3 = vld [vmem:[#allocation6 + $0xbb8] sm:$0xff]  ;;  %v2015_v37 = vld [vmem:[#allocation6 + $0xba0] sm:$0xff]  ;;  %v2021_v63 = vld [vmem:[#allocation6 + $0xbd0] sm:$0xff] }
 0x4d6   : > { %v6505_v59 = vpack.c.bf16 %v2018_v3, %v2014_v52  ;;  %v2025_v25 = vld [vmem:[#allocation6 + $0xbf0] sm:$0xff]  ;;  %v2062_v52 = vld [vmem:[#allocation6 + $0xd18] sm:$0xff] }
 0x4d7   : > { %6252 = vmatpush1.bf16.msra.mxu0 %v6251_v17  ;;  %6480 = vmatpush1.bf16.msra.mxu1 %v6479_v21  ;;  %v1996_v17 = vld [vmem:[#allocation6 + $0xb08] sm:$0xff] }
 0x4d8   : > { %6254 = vmatprep.subr.bf16.mxu0 %v6253_v51  ;;  %6482 = vmatprep.subr.bf16.mxu1 %v6481_v13  ;;  %v2000_v21 = vld [vmem:[#allocation6 + $0xb28] sm:$0xff]  ;;  %v6267_v51 = vpack.c.bf16 %v1991_v9, %v1987_v48  ;;  %v6495_v13 = vpack.c.bf16 %v1993_v14, %v1989_v39  ;;  %v2022_v48 = vld [vmem:[#allocation6 + $0xbd8] sm:$0xff]  ;;  %v2019_v39 = vld [vmem:[#allocation6 + $0xbc0] sm:$0xff] }
 0x4d9   : > { %v6269_v62 = vpack.c.bf16 %v2000_v21, %v1996_v17  ;;  %v2026_v9 = vld [vmem:[#allocation6 + $0xbf8] sm:$0xff]  ;;  %v2023_v21 = vld [vmem:[#allocation6 + $0xbe0] sm:$0xff] }
 0x4da   : > { %v6509_v17 = vpack.c.bf16 %v2026_v9, %v2022_v48 }
 0x4db   : > { %6256 = vmatpush1.bf16.msra.mxu0 %v6255_v32  ;;  %6484 = vmatpush1.bf16.msra.mxu1 %v6483_v22  ;;  %v2004_v32 = vld [vmem:[#allocation6 + $0xb48] sm:$0xff] }
 0x4dc   : > { %6258 = vmatprep.subr.bf16.mxu0 %v6257_v18  ;;  %6486 = vmatprep.subr.bf16.mxu1 %v6485_v36  ;;  %v2008_v22 = vld [vmem:[#allocation6 + $0xb68] sm:$0xff]  ;;  %v6271_v18 = vpack.c.bf16 %v1999_v23, %v1995_v57  ;;  %v6499_v36 = vpack.c.bf16 %v2001_v46, %v1997_v19  ;;  %v7138_v57 = vunpack.i.h.bf16 %v9199_v60  ;;  %v6283_v23 = vpack.c.bf16 %v2023_v21, %v2019_v39  ;;  %v2029_v46 = vld [vmem:[#allocation6 + $0xc10] sm:$0xff]  ;;  %v2086_v39 = vld [vmem:[#allocation6 + $0xdd8] sm:$0xff] }
 0x4dd   : > { %v6273_v16 = vpack.c.bf16 %v2008_v22, %v2004_v32  ;;  %v1601_v19 = vsel %vm427_vm7, %v7128_v15, %v7137_v6  ;;  %v2033_v32 = vld [vmem:[#allocation6 + $0xc30] sm:$0xff]  ;;  %v6517_v15 = vpack.c.bf16 %v2042_v47, %v2038_v12 }
 0x4de   : > { %v1609_v22 = vsel %vm427_vm7, %v7138_v57, %v7078_v40  ;;  %v1608_v61 = vsel %vm427_vm7, %v7133_v1, %v7138_v57  ;;  %v2037_v6 = vld [vmem:[#allocation6 + $0xc50] sm:$0xff]  ;;  %v2050_v40 = vld [vmem:[#allocation6 + $0xcb8] sm:$0xff]  ;;  %vm2991_vm7 = vcmask 875520  }
 0x4df   : > { %6260 = vmatpush1.bf16.msra.mxu0 %v6259_v34  ;;  %6488 = vmatpush1.bf16.msra.mxu1 %v6487_v41  ;;  %v2012_v34 = vld [vmem:[#allocation6 + $0xb88] sm:$0xff]  ;;  %v1640_v60 = vmax.f32 %v9159_v5, %v1609_v22  ;;  %v2045_v5 = vld [vmem:[#allocation6 + $0xc90] sm:$0xff]  ;;  %v2058_v1 = vld [vmem:[#allocation6 + $0xcf8] sm:$0xff] }
 0x4e0   : > { %6262 = vmatprep.subr.bf16.mxu0 %v6261_v42  ;;  %6490 = vmatprep.subr.bf16.mxu1 %v6489_v26  ;;  %v2016_v41 = vld [vmem:[#allocation6 + $0xba8] sm:$0xff]  ;;  %v6275_v42 = vpack.c.bf16 %v2007_v24, %v2003_v11  ;;  %v6503_v26 = vpack.c.bf16 %v2009_v43, %v2005_v29  ;;  %v2041_v11 = vld [vmem:[#allocation6 + $0xc70] sm:$0xff]  ;;  %v6525_v43 = vpack.c.bf16 %v2058_v1, %v2054_v50 }
 0x4e1   : > { %v6277_v49 = vpack.c.bf16 %v2016_v41, %v2012_v34  ;;  %v6519_v24 = vpack.c.bf16 %v2041_v11, %v2037_v6  ;;  %v2053_v34 = vld [vmem:[#allocation6 + $0xcd0] sm:$0xff] }
 0x4e2   : > { %v2057_v41 = vld [vmem:[#allocation6 + $0xcf0] sm:$0xff] }
 0x4e3   : > { %6264 = vmatpush1.bf16.msra.mxu0 %v6263_v20  ;;  %6492 = vmatpush1.bf16.msra.mxu1 %v6491_v55  ;;  %v2020_v20 = vld [vmem:[#allocation6 + $0xbc8] sm:$0xff]  ;;  %v6527_v3 = vpack.c.bf16 %v2057_v41, %v2053_v34 }
 0x4e4   : > { %6266 = vmatprep.subr.bf16.mxu0 %v6265_v27  ;;  %6494 = vmatprep.subr.bf16.mxu1 %v6493_v2  ;;  %v2024_v55 = vld [vmem:[#allocation6 + $0xbe8] sm:$0xff]  ;;  %v6279_v27 = vpack.c.bf16 %v2015_v37, %v2011_v58  ;;  %v6507_v2 = vpack.c.bf16 %v2017_v31, %v2013_v56  ;;  %v2065_v58 = vld [vmem:[#allocation6 + $0xd30] sm:$0xff]  ;;  %v2070_v37 = vld [vmem:[#allocation6 + $0xd58] sm:$0xff] }
 0x4e5   : > { %v6281_v14 = vpack.c.bf16 %v2024_v55, %v2020_v20  ;;  %v2069_v56 = vld [vmem:[#allocation6 + $0xd50] sm:$0xff]  ;;  %v2078_v20 = vld [vmem:[#allocation6 + $0xd98] sm:$0xff] }
 0x4e6   : > { %v2073_v31 = vld [vmem:[#allocation6 + $0xd70] sm:$0xff]  ;;  %v2082_v55 = vld [vmem:[#allocation6 + $0xdb8] sm:$0xff] }
 0x4e7   : > { %6268 = vmatpush1.bf16.msra.mxu0 %v6267_v51  ;;  %6496 = vmatpush1.bf16.msra.mxu1 %v6495_v13  ;;  %v2030_v51 = vld [vmem:[#allocation6 + $0xc18] sm:$0xff]  ;;  %v6535_v48 = vpack.c.bf16 %v2073_v31, %v2069_v56  ;;  %v6537_v9 = vpack.c.bf16 %v2082_v55, %v2078_v20 }
 0x4e8   : > { %6270 = vmatprep.subr.bf16.mxu0 %v6269_v62  ;;  %6498 = vmatprep.subr.bf16.mxu1 %v6497_v10  ;;  %v2034_v13 = vld [vmem:[#allocation6 + $0xc38] sm:$0xff]  ;;  %v6511_v62 = vpack.c.bf16 %v2025_v25, %v2021_v63  ;;  %v2085_v63 = vld [vmem:[#allocation6 + $0xdd0] sm:$0xff] }
 0x4e9   : > { %v6513_v10 = vpack.c.bf16 %v2034_v13, %v2030_v51  ;;  %v2089_v25 = vld [vmem:[#allocation6 + $0xdf0] sm:$0xff]  ;;  %v2094_v51 = vld [vmem:[#allocation6 + $0xe18] sm:$0xff] }
 0x4ea   : > { %v2098_v13 = vld [vmem:[#allocation6 + $0xe38] sm:$0xff]  ;;  %v6543_v57 = vpack.c.bf16 %v2089_v25, %v2085_v63 }
 0x4eb   : > { %6272 = vmatpush1.bf16.msra.mxu0 %v6271_v18  ;;  %6500 = vmatpush1.bf16.msra.mxu1 %v6499_v36  ;;  %v1631_v18 = vmax.f32 %v9136_v44, %v1601_v19  ;;  %v6515_v36 = vpack.c.bf16 %v2033_v32, %v2029_v46  ;;  %v1639_v44 = vmax.f32 %v9167_v45, %v1608_v61  ;;  %v2066_v45 = vld [vmem:[#allocation6 + $0xd38] sm:$0xff] }
 0x4ec   : > { %6274 = vmatprep.subr.bf16.mxu0 %v6273_v16  ;;  %6502 = vmatprep.subr.bf16.mxu1 %v6501_v7  ;;  %v6521_v16 = vpack.c.bf16 %v2050_v40, %v2046_v54  ;;  %v2049_v7 = vld [vmem:[#allocation6 + $0xcb0] sm:$0xff] }
 0x4ed   : > { %v6523_v29 = vpack.c.bf16 %v2049_v7, %v2045_v5 }
 0x4ef   : > { %6276 = vmatpush1.bf16.msra.mxu0 %v6275_v42  ;;  %6504 = vmatpush1.bf16.msra.mxu1 %v6503_v26  ;;  %v6529_v42 = vpack.c.bf16 %v2066_v45, %v2062_v52  ;;  %v2061_v26 = vld [vmem:[#allocation6 + $0xd10] sm:$0xff] }
 0x4f0   : > { %6278 = vmatprep.subr.bf16.mxu0 %v6277_v49  ;;  %6506 = vmatprep.subr.bf16.mxu1 %v6505_v59  ;;  %v2074_v49 = vld [vmem:[#allocation6 + $0xd78] sm:$0xff]  ;;  %v6531_v59 = vpack.c.bf16 %v2065_v58, %v2061_v26 }
 0x4f3   : > { %6280 = vmatpush1.bf16.msra.mxu0 %v6279_v27  ;;  %6508 = vmatpush1.bf16.msra.mxu1 %v6507_v2  ;;  %v2077_v27 = vld [vmem:[#allocation6 + $0xd90] sm:$0xff] }
 0x4f4   : > { %6282 = vmatprep.subr.bf16.mxu0 %v6281_v14  ;;  %6510 = vmatprep.subr.bf16.mxu1 %v6509_v17  ;;  %v2081_v2 = vld [vmem:[#allocation6 + $0xdb0] sm:$0xff]  ;;  %v2090_v14 = vld [vmem:[#allocation6 + $0xdf8] sm:$0xff] }
 0x4f5   : > { %v6539_v17 = vpack.c.bf16 %v2081_v2, %v2077_v27  ;;  %v6541_v21 = vpack.c.bf16 %v2090_v14, %v2086_v39 }
 0x4f7   : > { %6284 = vmatpush1.bf16.msra.mxu0 %v6283_v23  ;;  %6512 = vmatpush1.bf16.msra.mxu1 %v6511_v62  ;;  %v6545_v23 = vpack.c.bf16 %v2098_v13, %v2094_v51  ;;  %v2093_v62 = vld [vmem:[#allocation6 + $0xe10] sm:$0xff] }
 0x4f8   : > { %6514 = vmatprep.subr.bf16.mxu1 %v6513_v10  ;;  %v2097_v10 = vld [vmem:[#allocation6 + $0xe30] sm:$0xff] }
 0x4f9   : > { %v6547_v19 = vpack.c.bf16 %v2097_v10, %v2093_v62 }
 0x4fa   : > { %2325 = vmatmul.mubr.f32.vlgmr.msra.gmra.mrb[8].mxu0 %v1631_v18  ;;  %2633 = vmatmul.mubr.f32.vlgmr.msra.gmra.mrb[12].mxu1 %v1631_v18 }
 0x4fb   : > { %2330 = vmatprep.mubr.f32.mxu0 %v1640_v60  ;;  %2638 = vmatprep.mubr.f32.mxu1 %v1640_v60 }
 0x4fc   : > { %6516 = vmatpush1.bf16.msra.mxu1 %v6515_v36 }
 0x4fd   : > { %6518 = vmatprep.subr.bf16.mxu1 %v6517_v15 }
 0x4fe   : > { %2331 = vmatmul.mubr.f32.gmra.mrb[10].mxu0 %v1639_v44  ;;  %2639 = vmatmul.mubr.f32.gmra.mrb[14].mxu1 %v1639_v44 }
 0x4ff   : > { %5840 = vmatprep.mubr.msk.f32.mxu1 %vm11712_vm0, %v8987_v4  ;;  %v6533_v4 = vpack.c.bf16 %v2074_v49, %v2070_v37 }
 0x500   : > { %6520 = vmatpush1.bf16.msra.mxu1 %v6519_v24 }
 0x501   : > { %6522 = vmatprep.subr.bf16.mxu1 %v6521_v16 }
 0x504   : > { %6524 = vmatpush1.bf16.msra.mxu1 %v6523_v29 }
 0x505   : > { %6526 = vmatprep.subr.bf16.mxu1 %v6525_v43 }
 0x508   : > { %6528 = vmatpush1.bf16.msra.mxu1 %v6527_v3 }
 0x509   : > { %6530 = vmatprep.subr.bf16.mxu1 %v6529_v42 }
 0x50c   : > { %6532 = vmatpush1.bf16.msra.mxu1 %v6531_v59 }
 0x50d   : > { %6534 = vmatprep.subr.bf16.mxu1 %v6533_v4 }
 0x510   : > { %6536 = vmatpush1.bf16.msra.mxu1 %v6535_v48 }
 0x511   : > { %6538 = vmatprep.subr.bf16.mxu1 %v6537_v9 }
 0x514   : > { %6540 = vmatpush1.bf16.msra.mxu1 %v6539_v17 }
 0x515   : > { %6542 = vmatprep.subr.bf16.mxu1 %v6541_v21 }
 0x518   : > { %6544 = vmatpush1.bf16.msra.mxu1 %v6543_v57 }
 0x519   : > { %6546 = vmatprep.subr.bf16.mxu1 %v6545_v23 }
 0x51c   : > { %6548 = vmatpush1.bf16.msra.mxu1 %v6547_v19 }
 0x51f   : > { %2710 = vmatmul.mubr.f32.vlgmr.msra.gmra.mrb[12].mxu1 %v9013_v30 }
 0x520   : > { %5841 = vmatprep.mubr.msk.f32.mxu1 %vm11712_vm0, %v9050_v33  ;;  %vm11757_vm0 = vcmask 867328  }
 0x523   : > { %2716 = vmatmul.mubr.f32.gmra.mrb[14].mxu1 %v9057_v53 }
 0x5cd   : > { %v2326_v46 = vpop.f32.mrb[8].mxu0 }
 0x5ce   : > { %v6877_v32 = vadd.f32 %v9178_v35, %v2326_v46  ;;  %v2328_v22 = vpop.f32.mrb[9].mxu0 }
 0x5cf   : > { %v9242_v12 = vadd.f32 %v9180_v38, %v2328_v22 }
 0x5d1   : > { %v2332_v47 = vpop.f32.mrb[10].mxu0 }
 0x5d2   : > { %v6879_v18 = vadd.f32 %v9182_v0, %v2332_v47  ;;  %v2334_v36 = vpop.f32.mrb[11].mxu0 }
 0x5d3   : > { %v9246_v60 = vadd.f32 %v9184_v28, %v2334_v36 }
 0x5d4   : > { %v9248_v30 = vpack.i.bf16 %v6879_v18, %v6877_v32  ;;  %v6551_v61 = vpack.c.bf16 %v6879_v18, %v6877_v32 }
 0x5d5   : > { %v6549_v33 = vpack.c.bf16 %v9246_v60, %v9242_v12 }
 0x5d6   : > { %11869 = vst [vmem:[#allocation16_spill] sm:$0xff] %v9248_v30  ;;  %7145 = vrot.lane.b32.xlu0 %v9248_v30, %s11587_s17  ;;  %7140 = vrot.lane.b32.xlu1 %v9248_v30, %s11613_s30 }
 0x5d7   : > { %6550 = vmatprep.subr.bf16.mxu0 %v6549_v33 }
 0x5d8   : > { %6552 = vmatpush1.bf16.msra.mxu0 %v6551_v61 }
 0x5da   : > { %7155 = vrot.lane.b32.xlu0 %v9248_v30, %s11591_s13  ;;  %7150 = vrot.lane.b32.xlu1 %v9248_v30, %s11609_s12 }
 0x5de   : > { %7165 = vrot.lane.b32.xlu0 %v9248_v30, %s11595_s26  ;;  %7160 = vrot.lane.b32.xlu1 %v9248_v30, %s11543_s14  ;;  %s11605_s14 = smov 104  }
 0x5e2   : > { %7175 = vrot.lane.b32.xlu0 %v9248_v30, %s11593_s18  ;;  %7170 = vrot.lane.b32.xlu1 %v9248_v30, %s11545_s19  ;;  %s11549_s19 = smov 102  }
 0x5e6   : > { %7185 = vrot.lane.b32.xlu0 %v9248_v30, %s11601_s20  ;;  %7180 = vrot.lane.b32.xlu1 %v9248_v30, %s11547_s21  ;;  %s11551_s21 = smov 87  }
 0x5ea   : > { %7195 = vrot.lane.b32.xlu0 %v9248_v30, %s11597_s22  ;;  %7190 = vrot.lane.b32.xlu1 %v9248_v30, %s11605_s14 }
 0x5ee   : > { %7205 = vrot.lane.b32.xlu0 %v9248_v30, %s11599_s25  ;;  %7200 = vrot.lane.b32.xlu1 %v9248_v30, %s11549_s19  ;;  %s11607_s19 = smov 67  }
 0x5f2   : > { %v9280_v53 = vpop.f32.mrb[12].mxu1  ;;  %7215 = vrot.lane.b32.xlu0 %v9248_v30, %s11553_s29  ;;  %7210 = vrot.lane.b32.xlu1 %v9248_v30, %s11551_s21  ;;  %s11561_s21 = smov 68   ;;  %s11563_s29 = smov 64  }
 0x5f3   : > { %11870 = vst [vmem:[#allocation17_spill] sm:$0xff] %v9280_v53  ;;  %v9286_v35 = vpop.f32.mrb[13].mxu1  ;;  %v9352_v11 = vpack.i.bf16 %v9280_v53, %v9242_v12 }
 0x5f4   : > { %v9488_v55 = vpack.i.bf16 %v9246_v60, %v9286_v35 }
 0x5f5   : > { %11877 = vst [vmem:[#allocation20_spill] sm:$0xff] %v9352_v11 }
 0x5f6   : > { %v9288_v38 = vpop.f32.mrb[14].mxu1  ;;  %7225 = vrot.lane.b32.xlu0 %v9248_v30, %s11603_s9  ;;  %7220 = vrot.lane.b32.xlu1 %v9248_v30, %s11555_s10  ;;  %s11581_s10 = smov 66   ;;  %11904 = vst [vmem:[#allocation25_spill] sm:$0xff] %v9488_v55 }
 0x5f7   : > { %11871 = vst [vmem:[#allocation18_spill] sm:$0xff] %v9288_v38  ;;  %v2719_v0 = vpop.f32.mrb[15].mxu1  ;;  %v9508_v39 = vpack.i.bf16 %v9288_v38, %v9246_v60 }
 0x5f8   : > { %v9315_v28 = vpack.i.bf16 %v2719_v0, %v9286_v35  ;;  %v9326_v15 = vpack.i.bf16 %v2719_v0, %v9288_v38 }
 0x5fa   : > { %7235 = vrot.lane.b32.xlu0 %v9248_v30, %s11557_s28  ;;  %7230 = vrot.lane.b32.xlu1 %v9248_v30, %s11559_s11  ;;  %s11565_s28 = smov 62   ;;  %s11569_s11 = smov 65   ;;  %11872 = vst [vmem:[#allocation19_spill] sm:$0xff] %v9326_v15 }
 0x5fe   : > { %7245 = vrot.lane.b32.xlu0 %v9248_v30, %s11607_s19  ;;  %7240 = vrot.lane.b32.xlu1 %v9248_v30, %s11561_s21  ;;  %s11611_s21 = smov 63  }
 0x602   : > { %7260 = vrot.lane.b32.xlu0 %v9248_v30, %s11563_s29  ;;  %7250 = vrot.lane.b32.xlu1 %v9248_v30, %s11581_s10  ;;  %s11573_s29 = smov 45   ;;  %s11617_s10 = smov 7  }
 0x606   : > { %7270 = vrot.lane.b32.xlu0 %v9248_v30, %s11565_s28  ;;  %7255 = vrot.lane.b32.xlu1 %v9248_v30, %s11569_s11  ;;  %s11571_s28 = smov 43   ;;  %s11579_s11 = smov 44  }
 0x60a   : > { %7280 = vrot.lane.b32.xlu0 %v9248_v30, %s11567_s16  ;;  %7265 = vrot.lane.b32.xlu1 %v9248_v30, %s11611_s21  ;;  %s11577_s16 = smov 28  }
 0x60e   : > { %7290 = vrot.lane.b32.xlu0 %v9248_v30, %s11573_s29  ;;  %7275 = vrot.lane.b32.xlu1 %v9248_v30, %s11615_s8  ;;  %s11873_s29 = smov 24  }
 0x612   : > { %7300 = vrot.lane.b32.xlu0 %v9248_v30, %s11571_s28  ;;  %7285 = vrot.lane.b32.xlu1 %v9248_v30, %s11575_s23  ;;  %s11619_s28 = smov 42   ;;  %s11585_s23 = smov 27  }
 0x616   : > { %7310 = vrot.lane.b32.xlu0 %v9248_v30, %s11577_s16  ;;  %7295 = vrot.lane.b32.xlu1 %v9248_v30, %s11579_s11  ;;  %s11874_s16 = smov 22   ;;  %s11875_s11 = smov 25  }
 0x61a   : > { %7320 = vrot.lane.b32.xlu0 %v9248_v30, %s11583_s15  ;;  %7305 = vrot.lane.b32.xlu1 %v9248_v30, %s11619_s28  ;;  %s11876_s15 = smov 23  }
 0x61e   : > { %7330 = vrot.lane.b32.xlu0 %v9248_v30, %s11873_s29  ;;  %7315 = vrot.lane.b32.xlu1 %v9248_v30, %s11585_s23  ;;  %s11589_s23 = smov 8  }
 0x622   : > { %7340 = vrot.lane.b32.xlu0 %v9248_v30, %s11874_s16  ;;  %7325 = vrot.lane.b32.xlu1 %v9248_v30, %s11875_s11 }
 0x626   : > { %7350 = vrot.lane.b32.xlu0 %v9248_v30, %s11617_s10  ;;  %7335 = vrot.lane.b32.xlu1 %v9248_v30, %s11876_s15  ;;  %s11893_s10 = smov 62  }
 0x62a   : > { %7360 = vrot.lane.b32.xlu0 %v9352_v11, %s11587_s17  ;;  %7345 = vrot.lane.b32.xlu1 %v9248_v30, %s11589_s23  ;;  %s11878_s17 = smov 123   ;;  %s11879_s23 = smov 108  }
 0x62e   : > { %7370 = vrot.lane.b32.xlu0 %v9352_v11, %s11591_s13  ;;  %7355 = vrot.lane.b32.xlu1 %v9352_v11, %s11613_s30  ;;  %s11880_s13 = smov 106   ;;  %s11891_s30 = smov 44  }
 0x632   : > { %7380 = vrot.lane.b32.xlu0 %v9352_v11, %s11595_s26  ;;  %7365 = vrot.lane.b32.xlu1 %v9352_v11, %s11609_s12  ;;  %s11882_s26 = smov 102   ;;  %s11889_s12 = smov 46  }
 0x636   : > { %7390 = vrot.lane.b32.xlu0 %v9352_v11, %s11593_s18  ;;  %7375 = vrot.lane.b32.xlu1 %v9352_v11, %s11878_s17  ;;  %s11881_s18 = smov 86  }
 0x63a   : > { %7400 = vrot.lane.b32.xlu0 %v9352_v11, %s11601_s20  ;;  %7385 = vrot.lane.b32.xlu1 %v9352_v11, %s11879_s23  ;;  %s11885_s20 = smov 85  }
 0x63e   : > { %7410 = vrot.lane.b32.xlu0 %v9352_v11, %s11597_s22  ;;  %7395 = vrot.lane.b32.xlu1 %v9352_v11, %s11880_s13  ;;  %s11883_s22 = smov 87  }
 0x642   : > { %7420 = vrot.lane.b32.xlu0 %v9352_v11, %s11599_s25  ;;  %7405 = vrot.lane.b32.xlu1 %v9352_v11, %s11605_s14  ;;  %s11884_s25 = smov 82   ;;  %s11887_s14 = smov 68  }
 0x646   : > { %7430 = vrot.lane.b32.xlu0 %v9352_v11, %s11881_s18  ;;  %7415 = vrot.lane.b32.xlu1 %v9352_v11, %s11882_s26 }
 0x648   : > { %v9386_v54 = vpop.permute.xlu0 %7145  ;;  %v9388_v40 = vpop.permute.xlu1 %7140 }
 0x64a   : > { %7440 = vrot.lane.b32.xlu0 %v9352_v11, %s11603_s9  ;;  %7425 = vrot.lane.b32.xlu1 %v9352_v11, %s11883_s22  ;;  %s11886_s9 = smov 83  }
 0x64c   : > { %v9394_v44 = vpop.permute.xlu0 %7155  ;;  %v9396_v24 = vpop.permute.xlu1 %7150 }
 0x64e   : > { %7450 = vrot.lane.b32.xlu0 %v9352_v11, %s11884_s25  ;;  %7435 = vrot.lane.b32.xlu1 %v9352_v11, %s11885_s20 }
 0x650   : > { %v9402_v16 = vpop.permute.xlu0 %7165  ;;  %v9404_v5 = vpop.permute.xlu1 %7160 }
 0x652   : > { %7460 = vrot.lane.b32.xlu0 %v9352_v11, %s11607_s19  ;;  %7445 = vrot.lane.b32.xlu1 %v9352_v11, %s11886_s9  ;;  %s11888_s19 = smov 66  }
 0x654   : > { %v9410_v7 = vpop.permute.xlu0 %7175  ;;  %v9412_v50 = vpop.permute.xlu1 %7170 }
 0x656   : > { %7480 = vrot.lane.b32.xlu0 %v9352_v11, %s11611_s21  ;;  %7455 = vrot.lane.b32.xlu1 %v9352_v11, %s11887_s14  ;;  %s11890_s21 = smov 65  }
 0x658   : > { %v9418_v1 = vpop.permute.xlu0 %7185  ;;  %v9420_v29 = vpop.permute.xlu1 %7180 }
 0x65a   : > { %7490 = vrot.lane.b32.xlu0 %v9352_v11, %s11615_s8  ;;  %7465 = vrot.lane.b32.xlu1 %v9352_v11, %s11888_s19  ;;  %s11892_s8 = smov 64  }
 0x65c   : > { %v9426_v43 = vpop.permute.xlu0 %7195  ;;  %v9428_v34 = vpop.permute.xlu1 %7190 }
 0x65e   : > { %7500 = vrot.lane.b32.xlu0 %v9352_v11, %s11889_s12  ;;  %7470 = vrot.lane.b32.xlu1 %v9352_v11, %s11890_s21 }
 0x660   : > { %v9434_v41 = vpop.permute.xlu0 %7205  ;;  %v9436_v52 = vpop.permute.xlu1 %7200 }
 0x662   : > { %7510 = vrot.lane.b32.xlu0 %v9352_v11, %s11891_s30  ;;  %7475 = vrot.lane.b32.xlu1 %v9352_v11, %s11892_s8 }
 0x664   : > { %v9442_v45 = vpop.permute.xlu0 %7215  ;;  %v9444_v3 = vpop.permute.xlu1 %7210 }
 0x666   : > { %7520 = vrot.lane.b32.xlu0 %v9352_v11, %s11619_s28  ;;  %7485 = vrot.lane.b32.xlu1 %v9352_v11, %s11893_s10  ;;  %s11897_s28 = smov 45  }
 0x668   : > { %v9450_v42 = vpop.permute.xlu0 %7225  ;;  %v9452_v26 = vpop.permute.xlu1 %7220 }
 0x66a   : > { %7530 = vrot.lane.b32.xlu0 %v9352_v11, %s11894_s0  ;;  %7495 = vrot.lane.b32.xlu1 %v9352_v11, %s11895_s1 }
 0x66c   : > { %v9458_v58 = vpop.permute.xlu0 %7235  ;;  %v9460_v37 = vpop.permute.xlu1 %7230 }
 0x66d   : > { %11896 = vst [vmem:[#allocation21_spill] sm:$0xff] %v9458_v58 }
 0x66e   : > { %7540 = vrot.lane.b32.xlu0 %v9352_v11, %s11875_s11  ;;  %7505 = vrot.lane.b32.xlu1 %v9352_v11, %s11897_s28 }
 0x670   : > { %v9466_v49 = vpop.permute.xlu0 %7245  ;;  %v9468_v59 = vpop.permute.xlu1 %7240 }
 0x671   : > { %11898 = vst [vmem:[#allocation22_spill] sm:$0xff] %v9466_v49 }
 0x672   : > { %7555 = vrot.lane.b32.xlu0 %v9352_v11, %s11874_s16  ;;  %7515 = vrot.lane.b32.xlu1 %v9352_v11, %s11899_s2 }
 0x674   : > { %v9474_v4 = vpop.permute.xlu0 %7260  ;;  %v9476_v56 = vpop.permute.xlu1 %7250 }
 0x675   : > { %11900 = vst [vmem:[#allocation23_spill] sm:$0xff] %v9474_v4  ;;  %11901 = vst [vmem:[#allocation24_spill] sm:$0xff] %v9476_v56 }
 0x676   : > { %7565 = vrot.lane.b32.xlu0 %v9352_v11, %s11902_s3  ;;  %7525 = vrot.lane.b32.xlu1 %v9352_v11, %s11903_s4 }
 0x678   : > { %v9482_v31 = vpop.permute.xlu0 %7270  ;;  %v9484_v20 = vpop.permute.xlu1 %7255 }
 0x67a   : > { %7535 = vrot.lane.b32.xlu1 %v9352_v11, %s11905_s6  ;;  %7570 = vrot.lane.b32.xlu0 %v9488_v55, %s11876_s15 }
 0x67c   : > { %v9494_v48 = vpop.permute.xlu0 %7280  ;;  %v9496_v9 = vpop.permute.xlu1 %7265 }
 0x67d   : > { %11906 = vst [vmem:[#allocation26_spill] sm:$0xff] %v9496_v9 }
 0x67e   : > { %7545 = vrot.lane.b32.xlu1 %v9352_v11, %s11873_s29  ;;  %7580 = vrot.lane.b32.xlu0 %v9488_v55, %s11907_s24 }
 0x680   : > { %v9502_v27 = vpop.permute.xlu0 %7290  ;;  %v9504_v2 = vpop.permute.xlu1 %7275 }
 0x681   : > { %11908 = vst [vmem:[#allocation27_spill] sm:$0xff] %v9504_v2 }
 0x682   : > { %7550 = vrot.lane.b32.xlu1 %v9352_v11, %s11876_s15  ;;  %7590 = vrot.lane.b32.xlu0 %v9508_v39, %s11909_s7  ;;  %s11634_s15 = smov 4  }
 0x684   : > { %v9514_v14 = vpop.permute.xlu0 %7300  ;;  %v9516_v17 = vpop.permute.xlu1 %7285 }
 0x685   : > { %11910 = vst [vmem:[#allocation28_spill] sm:$0xff] %v9514_v14  ;;  %11911 = vst [vmem:[#allocation29_spill] sm:$0xff] %v9516_v17 }
 0x686   : > { %7560 = vrot.lane.b32.xlu1 %v9352_v11, %s11907_s24  ;;  %7605 = vrot.lane.b32.xlu0 %v9488_v55, %s11625_s27  ;;  %s11630_s24 = smov 5   ;;  %s11919_s27 = smov 126  }
 0x688   : > { %v9522_v21 = vpop.permute.xlu0 %7310  ;;  %v9524_v63 = vpop.permute.xlu1 %7295 }
 0x689   : > { %11912 = vst [vmem:[#allocation30_spill] sm:$0xff] %v9522_v21  ;;  %11913 = vst [vmem:[#allocation31_spill] sm:$0xff] %v9524_v63 }
 0x68a   : > { %7575 = vrot.lane.b32.xlu1 %v9488_v55, %s11874_s16  ;;  %7610 = vrot.lane.b32.xlu0 %v9508_v39, %s11914_s5  ;;  %s11921_s16 = smov 6  }
 0x68c   : > { %v9530_v25 = vpop.permute.xlu0 %7320  ;;  %v9532_v51 = vpop.permute.xlu1 %7305 }
 0x68d   : > { %11915 = vst [vmem:[#allocation32_spill] sm:$0xff] %v9530_v25  ;;  %11916 = vst [vmem:[#allocation33_spill] sm:$0xff] %v9532_v51 }
 0x68e   : > { %7585 = vrot.lane.b32.xlu1 %v9488_v55, %s11902_s3  ;;  %7625 = vrot.lane.b32.xlu0 %v9352_v11, %s11630_s24  ;;  %s11924_s3 = smov 124  }
 0x690   : > { %v9538_v13 = vpop.permute.xlu0 %7330  ;;  %v9540_v57 = vpop.permute.xlu1 %7315 }
 0x691   : > { %11917 = vst [vmem:[#allocation34_spill] sm:$0xff] %v9538_v13  ;;  %11918 = vst [vmem:[#allocation35_spill] sm:$0xff] %v9540_v57 }
 0x692   : > { %7595 = vrot.lane.b32.xlu1 %v9508_v39, %s11919_s27  ;;  %7630 = vrot.lane.b32.xlu0 %v9508_v39, %s11878_s17  ;;  %s11939_s17 = smov 4  }
 0x694   : > { %v9546_v23 = vpop.permute.xlu0 %7340  ;;  %v9548_v62 = vpop.permute.xlu1 %7325 }
 0x695   : > { %11920 = vst [vmem:[#allocation36_spill] sm:$0xff] %v9548_v62 }
 0x696   : > { %7600 = vrot.lane.b32.xlu1 %v9352_v11, %s11921_s16  ;;  %7645 = vrot.lane.b32.xlu0 %v9248_v30, %s11630_s24  ;;  %s11929_s24 = smov 122  }
 0x698   : > { %v9554_v10 = vpop.permute.xlu0 %7350  ;;  %v9556_v19 = vpop.permute.xlu1 %7335 }
 0x699   : > { %11922 = vst [vmem:[#allocation37_spill] sm:$0xff] %v9554_v10  ;;  %11923 = vst [vmem:[#allocation38_spill] sm:$0xff] %v9556_v19 }
 0x69a   : > { %7615 = vrot.lane.b32.xlu1 %v9508_v39, %s11924_s3  ;;  %7650 = vrot.lane.b32.xlu0 %v9508_v39, %s11879_s23  ;;  %s11932_s23 = smov 5  }
 0x69c   : > { %v9562_v46 = vpop.permute.xlu0 %7360  ;;  %v9564_v32 = vpop.permute.xlu1 %7345 }
 0x69d   : > { %11925 = vst [vmem:[#allocation39_spill] sm:$0xff] %v9562_v46  ;;  %11926 = vst [vmem:[#allocation40_spill] sm:$0xff] %v9564_v32 }
 0x69e   : > { %7620 = vrot.lane.b32.xlu1 %v9248_v30, %s11921_s16  ;;  %7665 = vrot.lane.b32.xlu0 %v9488_v55, %s11634_s15  ;;  %s11637_s16 = smov 3   ;;  %s11935_s15 = smov 107  }
 0x6a0   : > { %v9570_v22 = vpop.permute.xlu0 %7370  ;;  %v9572_v12 = vpop.permute.xlu1 %7355 }
 0x6a1   : > { %11927 = vst [vmem:[#allocation41_spill] sm:$0xff] %v9570_v22  ;;  %11928 = vst [vmem:[#allocation42_spill] sm:$0xff] %v9572_v12 }
 0x6a2   : > { %7635 = vrot.lane.b32.xlu1 %v9508_v39, %s11929_s24  ;;  %7670 = vrot.lane.b32.xlu0 %v9508_v39, %s11880_s13  ;;  %s11936_s24 = smov 104  }
 0x6a4   : > { %v9578_v47 = vpop.permute.xlu0 %7380  ;;  %v9580_v18 = vpop.permute.xlu1 %7365 }
 0x6a5   : > { %11930 = vst [vmem:[#allocation43_spill] sm:$0xff] %v9578_v47  ;;  %11931 = vst [vmem:[#allocation44_spill] sm:$0xff] %v9580_v18 }
 0x6a6   : > { %7640 = vrot.lane.b32.xlu1 %v9488_v55, %s11932_s23  ;;  %7685 = vrot.lane.b32.xlu0 %v9352_v11, %s11637_s16  ;;  %s11942_s16 = smov 105   ;;  %s11947_s23 = smov 103  }
 0x6a8   : > { %v9586_v36 = vpop.permute.xlu0 %7390  ;;  %v9588_v60 = vpop.permute.xlu1 %7375 }
 0x6a9   : > { %11933 = vst [vmem:[#allocation45_spill] sm:$0xff] %v9586_v36  ;;  %11934 = vst [vmem:[#allocation46_spill] sm:$0xff] %v9588_v60 }
 0x6aa   : > { %7655 = vrot.lane.b32.xlu1 %v9508_v39, %s11935_s15  ;;  %7690 = vrot.lane.b32.xlu0 %v9508_v39, %s11936_s24 }
 0x6ac   : > { %v9594_v61 = vpop.permute.xlu0 %7400  ;;  %v9596_v33 = vpop.permute.xlu1 %7385 }
 0x6ad   : > { %11937 = vst [vmem:[#allocation47_spill] sm:$0xff] %v9594_v61  ;;  %11938 = vst [vmem:[#allocation48_spill] sm:$0xff] %v9596_v33 }
 0x6ae   : > { %7660 = vrot.lane.b32.xlu1 %v9352_v11, %s11939_s17  ;;  %7700 = vrot.lane.b32.xlu0 %v9508_v39, %s11882_s26 }
 0x6b0   : > { %v9602_v35 = vpop.permute.xlu0 %7410  ;;  %v9604_v0 = vpop.permute.xlu1 %7395 }
 0x6b1   : > { %11940 = vst [vmem:[#allocation49_spill] sm:$0xff] %v9602_v35  ;;  %11941 = vst [vmem:[#allocation50_spill] sm:$0xff] %v9604_v0 }
 0x6b2   : > { %7675 = vrot.lane.b32.xlu1 %v9508_v39, %s11942_s16  ;;  %7710 = vrot.lane.b32.xlu0 %v9508_v39, %s11883_s22  ;;  %s11950_s22 = smov 88  }
 0x6b4   : > { %v9610_v8 = vpop.permute.xlu0 %7420  ;;  %v9612_v6 = vpop.permute.xlu1 %7405 }
 0x6b5   : > { %11943 = vst [vmem:[#allocation51_spill] sm:$0xff] %v9610_v8  ;;  %11944 = vst [vmem:[#allocation52_spill] sm:$0xff] %v9612_v6  ;;  %v11984_v6 = vunpack.i.h.bf16 %v9572_v12 }
 0x6b6   : > { %7680 = vrot.lane.b32.xlu1 %v9248_v30, %s11939_s17  ;;  %7720 = vrot.lane.b32.xlu0 %v9508_v39, %s11885_s20  ;;  %s11955_s17 = smov 84  }
 0x6b8   : > { %v9618_v53 = vpop.permute.xlu0 %7430  ;;  %v9620_v38 = vpop.permute.xlu1 %7415 }
 0x6b9   : > { %11945 = vst [vmem:[#allocation53_spill] sm:$0xff] %v9618_v53  ;;  %11946 = vst [vmem:[#allocation54_spill] sm:$0xff] %v9620_v38  ;;  %v7143_v53 = vunpack.i.h.bf16 %v9388_v40 }
 0x6ba   : > { %7695 = vrot.lane.b32.xlu1 %v9508_v39, %s11947_s23  ;;  %7730 = vrot.lane.b32.xlu0 %v9508_v39, %s11886_s9 }
 0x6bc   : > { %v9626_v11 = vpop.permute.xlu0 %7440  ;;  %v9628_v55 = vpop.permute.xlu1 %7425 }
 0x6bd   : > { %11948 = vst [vmem:[#allocation55_spill] sm:$0xff] %v9626_v11  ;;  %11949 = vst [vmem:[#allocation56_spill] sm:$0xff] %v9628_v55  ;;  %v4397_v55 = vld [vmem:[#allocation8 + $0x8] sm:$0xff] }
 0x6be   : > { %7705 = vrot.lane.b32.xlu1 %v9508_v39, %s11950_s22  ;;  %7740 = vrot.lane.b32.xlu0 %v9508_v39, %s11887_s14  ;;  %s11963_s14 = smov 63  }
 0x6bf   : > { %4818 = vmatprep.mubr.f32.mxu0 %v4397_v55  ;;  %5174 = vmatprep.mubr.f32.mxu1 %v4397_v55 }
 0x6c0   : > { %v9634_v30 = vpop.permute.xlu0 %7450  ;;  %v9636_v15 = vpop.permute.xlu1 %7435 }
 0x6c1   : > { %11951 = vst [vmem:[#allocation57_spill] sm:$0xff] %v9634_v30  ;;  %11952 = vst [vmem:[#allocation58_spill] sm:$0xff] %v9636_v15 }
 0x6c2   : > { %7715 = vrot.lane.b32.xlu1 %v9508_v39, %s11881_s18  ;;  %7750 = vrot.lane.b32.xlu0 %v9508_v39, %s11888_s19  ;;  %s11960_s19 = smov 67  }
 0x6c4   : > { %v9642_v38 = vpop.permute.xlu0 %7460  ;;  %v9644_v11 = vpop.permute.xlu1 %7445 }
 0x6c5   : > { %11953 = vst [vmem:[#allocation59_spill] sm:$0xff] %v9642_v38  ;;  %11954 = vst [vmem:[#allocation60_spill] sm:$0xff] %v9644_v11 }
 0x6c6   : > { %7725 = vrot.lane.b32.xlu1 %v9508_v39, %s11955_s17  ;;  %7755 = vrot.lane.b32.xlu0 %v9508_v39, %s11890_s21 }
 0x6c8   : > { %v9650_v15 = vpop.permute.xlu0 %7480  ;;  %v9652_v30 = vpop.permute.xlu1 %7455 }
 0x6c9   : > { %11956 = vst [vmem:[#allocation61_spill] sm:$0xff] %v9650_v15  ;;  %11957 = vst [vmem:[#allocation62_spill] sm:$0xff] %v9652_v30 }
 0x6ca   : > { %7735 = vrot.lane.b32.xlu1 %v9508_v39, %s11884_s25  ;;  %7760 = vrot.lane.b32.xlu0 %v9508_v39, %s11892_s8  ;;  %s11966_s25 = smov 48  }
 0x6cc   : > { %v9658_v11 = vpop.permute.xlu0 %7490  ;;  %v9660_v38 = vpop.permute.xlu1 %7465 }
 0x6cd   : > { %11958 = vst [vmem:[#allocation63_spill] sm:$0xff] %v9658_v11  ;;  %11959 = vst [vmem:[#allocation64_spill] sm:$0xff] %v9660_v38 }
 0x6ce   : > { %7745 = vrot.lane.b32.xlu1 %v9508_v39, %s11960_s19  ;;  %7770 = vrot.lane.b32.xlu0 %v9508_v39, %s11893_s10 }
 0x6d0   : > { %v9666_v55 = vpop.permute.xlu0 %7500  ;;  %v9668_v15 = vpop.permute.xlu1 %7470 }
 0x6d1   : > { %11961 = vst [vmem:[#allocation65_spill] sm:$0xff] %v9666_v55  ;;  %11962 = vst [vmem:[#allocation66_spill] sm:$0xff] %v9668_v15 }
 0x6d2   : > { %7765 = vrot.lane.b32.xlu1 %v9508_v39, %s11963_s14  ;;  %7780 = vrot.lane.b32.xlu0 %v9508_v39, %s11895_s1 }
 0x6d4   : > { %v9674_v30 = vpop.permute.xlu0 %7510  ;;  %v9676_v11 = vpop.permute.xlu1 %7475 }
 0x6d5   : > { %11964 = vst [vmem:[#allocation67_spill] sm:$0xff] %v9674_v30  ;;  %11965 = vst [vmem:[#allocation68_spill] sm:$0xff] %v9676_v11 }
 0x6d6   : > { %7775 = vrot.lane.b32.xlu1 %v9508_v39, %s11966_s25  ;;  %7790 = vrot.lane.b32.xlu0 %v9508_v39, %s11897_s28  ;;  %s11973_s28 = smov 42  }
 0x6d8   : > { %v9682_v38 = vpop.permute.xlu0 %7520  ;;  %v9684_v55 = vpop.permute.xlu1 %7485 }
 0x6d9   : > { %11967 = vst [vmem:[#allocation69_spill] sm:$0xff] %v9682_v38  ;;  %11968 = vst [vmem:[#allocation70_spill] sm:$0xff] %v9684_v55 }
 0x6da   : > { %7785 = vrot.lane.b32.xlu1 %v9508_v39, %s11889_s12  ;;  %7800 = vrot.lane.b32.xlu0 %v9508_v39, %s11899_s2 }
 0x6dc   : > { %v9690_v15 = vpop.permute.xlu0 %7530  ;;  %v9692_v30 = vpop.permute.xlu1 %7495 }
 0x6dd   : > { %11969 = vst [vmem:[#allocation71_spill] sm:$0xff] %v9690_v15  ;;  %11970 = vst [vmem:[#allocation72_spill] sm:$0xff] %v9692_v30 }
 0x6de   : > { %7795 = vrot.lane.b32.xlu1 %v9508_v39, %s11891_s30  ;;  %7810 = vrot.lane.b32.xlu0 %v9508_v39, %s11903_s4 }
 0x6e0   : > { %v9698_v11 = vpop.permute.xlu0 %7540  ;;  %v9700_v38 = vpop.permute.xlu1 %7505 }
 0x6e1   : > { %11971 = vst [vmem:[#allocation73_spill] sm:$0xff] %v9698_v11  ;;  %11972 = vst [vmem:[#allocation74_spill] sm:$0xff] %v9700_v38 }
 0x6e2   : > { %7805 = vrot.lane.b32.xlu1 %v9508_v39, %s11973_s28  ;;  %7820 = vrot.lane.b32.xlu0 %v9508_v39, %s11905_s6 }
 0x6e4   : > { %v9706_v55 = vpop.permute.xlu0 %7555  ;;  %v9708_v15 = vpop.permute.xlu1 %7515 }
 0x6e5   : > { %11974 = vst [vmem:[#allocation75_spill] sm:$0xff] %v9706_v55  ;;  %11975 = vst [vmem:[#allocation76_spill] sm:$0xff] %v9708_v15 }
 0x6e6   : > { %7815 = vrot.lane.b32.xlu1 %v9508_v39, %s11894_s0  ;;  %7830 = vrot.lane.b32.xlu0 %v9508_v39, %s11873_s29 }
 0x6e8   : > { %v9714_v30 = vpop.permute.xlu0 %7565  ;;  %v9716_v11 = vpop.permute.xlu1 %7525 }
 0x6e9   : > { %11976 = vst [vmem:[#allocation77_spill] sm:$0xff] %v9714_v30  ;;  %11977 = vst [vmem:[#allocation78_spill] sm:$0xff] %v9716_v11 }
 0x6ea   : > { %7825 = vrot.lane.b32.xlu1 %v9508_v39, %s11875_s11  ;;  %7835 = vrot.lane.b32.xlu0 %v9315_v28, %s11935_s15  ;;  %s8378_s15 = smov 2  }
 0x6ec   : > { %v9722_v38 = vpop.permute.xlu1 %7535  ;;  %v9724_v55 = vpop.permute.xlu0 %7570 }
 0x6ed   : > { %11978 = vst [vmem:[#allocation79_spill] sm:$0xff] %v9722_v38  ;;  %11979 = vst [vmem:[#allocation80_spill] sm:$0xff] %v9724_v55  ;;  %v7357_v55 = vunpack.i.l.bf16 %v9572_v12 }
 0x6ee   : > { %7845 = vrot.lane.b32.xlu1 %v9315_v28, %s11909_s7  ;;  %7840 = vrot.lane.b32.xlu0 %v9315_v28, %s11880_s13  ;;  %s12040_s13 = smov 68  }
 0x6ef   : > { %v2753_v8 = vsel %vm11766_vm2, %v7357_v55, %v11984_v6 }
 0x6f0   : > { %v9730_v15 = vpop.permute.xlu1 %7545  ;;  %v9732_v30 = vpop.permute.xlu0 %7580 }
 0x6f1   : > { %11980 = vst [vmem:[#allocation81_spill] sm:$0xff] %v9730_v15  ;;  %11981 = vst [vmem:[#allocation82_spill] sm:$0xff] %v9732_v30  ;;  %v7142_v15 = vunpack.i.l.bf16 %v9388_v40 }
 0x6f2   : > { %7850 = vrot.lane.b32.xlu1 %v9315_v28, %s11942_s16  ;;  %7855 = vrot.lane.b32.xlu0 %v9315_v28, %s11919_s27  ;;  %s11996_s27 = smov 87  }
 0x6f3   : > { %v2752_v39 = vsel %vm11766_vm2, %v7142_v15, %v7357_v55 }
 0x6f4   : > { %v9740_v38 = vpop.permute.xlu1 %7550  ;;  %v9742_v11 = vpop.permute.xlu0 %7590 }
 0x6f5   : > { %11982 = vst [vmem:[#allocation83_spill] sm:$0xff] %v9740_v38  ;;  %11983 = vst [vmem:[#allocation84_spill] sm:$0xff] %v9742_v11  ;;  %v11695_v30 = vunpack.i.h.bf16 %v9742_v11  ;;  %v7592_v32 = vunpack.i.l.bf16 %v9742_v11 }
 0x6f6   : > { %7865 = vrot.lane.b32.xlu1 %v9315_v28, %s11914_s5  ;;  %7860 = vrot.lane.b32.xlu0 %v9315_v28, %s11936_s24  ;;  %s11992_s5 = smov 122   ;;  %s11995_s24 = smov 108  }
 0x6f7   : > { %v2755_v38 = vsel %vm11766_vm2, %v7143_v53, %v7592_v32  ;;  %v2756_v40 = vsel %vm11766_vm2, %v7592_v32, %v11695_v30  ;;  %v7362_v53 = vunpack.i.l.bf16 %v9562_v46  ;;  %vm3580_vm2 = vcmask 523264  }
 0x6f8   : > { %v9760_v0 = vpop.permute.xlu1 %7560  ;;  %v9762_v35 = vpop.permute.xlu0 %7605  ;;  %v6553_v61 = vpack.c.bf16 %v2756_v40, %v2753_v8  ;;  %v6555_v19 = vpack.c.bf16 %v2755_v38, %v2752_v39  ;;  %v11998_v40 = vunpack.i.h.bf16 %v9386_v54 }
 0x6f9   : > { %11985 = vst [vmem:[#allocation85_spill] sm:$0xff] %v9760_v0  ;;  %11986 = vst [vmem:[#allocation86_spill] sm:$0xff] %v9762_v35 }
 0x6fa   : > { %7870 = vrot.lane.b32.xlu1 %v9315_v28, %s11947_s23  ;;  %7875 = vrot.lane.b32.xlu0 %v9315_v28, %s11924_s3  ;;  %s11989_s3 = smov 123  }
 0x6fb   : > { %6554 = vmatprep.subr.bf16.mxu0 %v6553_v61  ;;  %v11997_v61 = vunpack.i.l.bf16 %v9386_v54 }
 0x6fc   : > { %6556 = vmatpush1.bf16.msra.mxu0 %v6555_v19  ;;  %v9783_v55 = vpop.permute.xlu1 %7575  ;;  %v9785_v6 = vpop.permute.xlu0 %7610  ;;  %v11999_v19 = vunpack.i.h.bf16 %v9562_v46  ;;  %v12011_v46 = vunpack.i.h.bf16 %v9570_v22 }
 0x6fd   : > { %11987 = vst [vmem:[#allocation87_spill] sm:$0xff] %v9783_v55  ;;  %11988 = vst [vmem:[#allocation88_spill] sm:$0xff] %v9785_v6  ;;  %v7612_v12 = vunpack.i.l.bf16 %v9785_v6  ;;  %v2786_v39 = vsel %vm11755_vm1, %v11997_v61, %v7362_v53  ;;  %v12003_v54 = vunpack.i.h.bf16 %v9785_v6 }
 0x6fe   : > { %7885 = vrot.lane.b32.xlu1 %v9315_v28, %s11989_s3  ;;  %7880 = vrot.lane.b32.xlu0 %v9315_v28, %s11882_s26  ;;  %v2787_v30 = vsel %vm11755_vm1, %v7362_v53, %v11999_v19  ;;  %s12123_s26 = smov 7  }
 0x700   : > { %v9807_v8 = vpop.permute.xlu1 %7585  ;;  %v9809_v38 = vpop.permute.xlu0 %7625 }
 0x701   : > { %11990 = vst [vmem:[#allocation89_spill] sm:$0xff] %v9807_v8  ;;  %11991 = vst [vmem:[#allocation90_spill] sm:$0xff] %v9809_v38  ;;  %v7367_v38 = vunpack.i.l.bf16 %v9580_v18 }
 0x702   : > { %7890 = vrot.lane.b32.xlu1 %v9315_v28, %s11950_s22  ;;  %7895 = vrot.lane.b32.xlu0 %v9315_v28, %s11992_s5  ;;  %s12614_s22 = sld [smem:[#allocation152_spill]] }
 0x704   : > { %v9831_v10 = vpop.permute.xlu1 %7595  ;;  %v9833_v15 = vpop.permute.xlu0 %7630 }
 0x705   : > { %11993 = vst [vmem:[#allocation91_spill] sm:$0xff] %v9831_v10  ;;  %11994 = vst [vmem:[#allocation92_spill] sm:$0xff] %v9833_v15  ;;  %v7597_v35 = vunpack.i.l.bf16 %v9831_v10  ;;  %v12000_v8 = vunpack.i.h.bf16 %v9831_v10  ;;  %v7632_v53 = vunpack.i.l.bf16 %v9833_v15  ;;  %v12047_v10 = vunpack.i.l.bf16 %v9418_v1 }
 0x706   : > { %7905 = vrot.lane.b32.xlu1 %v9315_v28, %s11995_s24  ;;  %7900 = vrot.lane.b32.xlu0 %v9315_v28, %s11996_s27 }
 0x707   : > { %v2789_v32 = vsel %vm11755_vm1, %v11998_v40, %v7597_v35  ;;  %v2790_v11 = vsel %vm11755_vm1, %v7597_v35, %v12000_v8  ;;  %v2824_v40 = vsel %vm11744_vm3, %v7612_v12, %v12003_v54  ;;  %v12005_v54 = vunpack.i.h.bf16 %v9396_v24 }
 0x708   : > { %v9860_v0 = vpop.permute.xlu1 %7600  ;;  %v9862_v4 = vpop.permute.xlu0 %7645  ;;  %v6557_v56 = vpack.c.bf16 %v2790_v11, %v2787_v30  ;;  %v6559_v61 = vpack.c.bf16 %v2789_v32, %v2786_v39  ;;  %v12004_v30 = vunpack.i.h.bf16 %v9580_v18  ;;  %v7372_v39 = vunpack.i.l.bf16 %v9570_v22 }
 0x709   : > { %12001 = vst [vmem:[#allocation93_spill] sm:$0xff] %v9860_v0  ;;  %12002 = vst [vmem:[#allocation94_spill] sm:$0xff] %v9862_v4  ;;  %v2823_v19 = vsel %vm11744_vm3, %v12005_v54, %v7612_v12  ;;  %v12008_v4 = vunpack.i.l.bf16 %v9396_v24  ;;  %vm3510_vm1 = vcmask 539648  }
 0x70a   : > { %7910 = vrot.lane.b32.xlu1 %v9315_v28, %s11890_s21  ;;  %7915 = vrot.lane.b32.xlu0 %v9315_v28, %s11881_s18  ;;  %v2821_v11 = vsel %vm11744_vm3, %v7367_v38, %v12004_v30  ;;  %v2855_v8 = vsel %vm11737_vm4, %v7372_v39, %v12011_v46 }
 0x70b   : > { %6558 = vmatprep.subr.bf16.mxu0 %v6557_v56  ;;  %v6561_v0 = vpack.c.bf16 %v2824_v40, %v2821_v11  ;;  %v2820_v56 = vsel %vm11744_vm3, %v12008_v4, %v7367_v38  ;;  %v12009_v4 = vunpack.i.l.bf16 %v9394_v44  ;;  %vm11780_vm3 = vcmask 515072  }
 0x70c   : > { %6560 = vmatpush1.bf16.msra.mxu0 %v6559_v61  ;;  %v9890_v30 = vpop.permute.xlu1 %7615  ;;  %v9892_v55 = vpop.permute.xlu0 %7650  ;;  %v7377_v61 = vunpack.i.l.bf16 %v9588_v60  ;;  %v6563_v24 = vpack.c.bf16 %v2823_v19, %v2820_v56  ;;  %v12082_v19 = vunpack.i.h.bf16 %v9428_v34 }
 0x70d   : > { %12006 = vst [vmem:[#allocation95_spill] sm:$0xff] %v9890_v30  ;;  %12007 = vst [vmem:[#allocation96_spill] sm:$0xff] %v9892_v55  ;;  %v11710_v12 = vunpack.i.h.bf16 %v9890_v30  ;;  %v7617_v40 = vunpack.i.l.bf16 %v9890_v30  ;;  %6562 = vmatprep.subr.bf16.mxu0 %v6561_v0  ;;  %v2854_v38 = vsel %vm11737_vm4, %v12009_v4, %v7372_v39  ;;  %v12010_v0 = vunpack.i.h.bf16 %v9394_v44 }
 0x70e   : > { %7925 = vrot.lane.b32.xlu1 %v9315_v28, %s11885_s20  ;;  %7920 = vrot.lane.b32.xlu0 %v9315_v28, %s11892_s8  ;;  %v12014_v44 = vunpack.i.h.bf16 %v9833_v15  ;;  %v7652_v46 = vunpack.i.l.bf16 %v9892_v55 }
 0x70f   : > { %v2857_v11 = vsel %vm11737_vm4, %v12010_v0, %v7617_v40  ;;  %v2858_v32 = vsel %vm11737_vm4, %v7617_v40, %v11710_v12  ;;  %v7382_v40 = vunpack.i.l.bf16 %v9578_v47  ;;  %vm3475_vm4 = vcmask 547840  }
 0x710   : > { %6564 = vmatpush1.bf16.msra.mxu0 %v6563_v24  ;;  %v9920_v56 = vpop.permute.xlu1 %7620  ;;  %v9922_v4 = vpop.permute.xlu0 %7665  ;;  %v6565_v54 = vpack.c.bf16 %v2858_v32, %v2855_v8  ;;  %v6567_v35 = vpack.c.bf16 %v2857_v11, %v2854_v38  ;;  %v2892_v0 = vsel %vm11713_vm5, %v7632_v53, %v12014_v44  ;;  %v12015_v8 = vunpack.i.h.bf16 %v9588_v60 }
 0x711   : > { %12012 = vst [vmem:[#allocation97_spill] sm:$0xff] %v9920_v56  ;;  %12013 = vst [vmem:[#allocation98_spill] sm:$0xff] %v9922_v4  ;;  %v12016_v44 = vunpack.i.h.bf16 %v9404_v5  ;;  %v12019_v38 = vunpack.i.l.bf16 %v9402_v16  ;;  %v7387_v24 = vunpack.i.l.bf16 %v9596_v33 }
 0x712   : > { %7930 = vrot.lane.b32.xlu1 %v9315_v28, %s11963_s14  ;;  %7935 = vrot.lane.b32.xlu0 %v9315_v28, %s11955_s17  ;;  %v2889_v32 = vsel %vm11713_vm5, %v7377_v61, %v12015_v8  ;;  %s12029_s17 = smov 82   ;;  %s12077_s14 = smov 23  }
 0x713   : > { %v2891_v39 = vsel %vm11713_vm5, %v12016_v44, %v7632_v53  ;;  %6566 = vmatprep.subr.bf16.mxu0 %v6565_v54  ;;  %v6569_v12 = vpack.c.bf16 %v2892_v0, %v2889_v32  ;;  %v2922_v4 = vsel %vm11725_vm6, %v12019_v38, %v7382_v40  ;;  %v12020_v53 = vunpack.i.l.bf16 %v9404_v5 }
 0x714   : > { %6568 = vmatpush1.bf16.msra.mxu0 %v6567_v35  ;;  %v9950_v8 = vpop.permute.xlu1 %7635  ;;  %v9952_v11 = vpop.permute.xlu0 %7670  ;;  %v7392_v44 = vunpack.i.l.bf16 %v9586_v36 }
 0x715   : > { %12017 = vst [vmem:[#allocation99_spill] sm:$0xff] %v9950_v8  ;;  %12018 = vst [vmem:[#allocation100_spill] sm:$0xff] %v9952_v11  ;;  %v2888_v54 = vsel %vm11713_vm5, %v12020_v53, %v7377_v61  ;;  %v11715_v0 = vunpack.i.h.bf16 %v9950_v8  ;;  %v7637_v32 = vunpack.i.l.bf16 %v9950_v8  ;;  %6570 = vmatprep.subr.bf16.mxu0 %v6569_v12  ;;  %v12021_v12 = vunpack.i.h.bf16 %v9402_v16 }
 0x716   : > { %7945 = vrot.lane.b32.xlu1 %v9315_v28, %s11886_s9  ;;  %7940 = vrot.lane.b32.xlu0 %v9315_v28, %s11893_s10  ;;  %v6571_v5 = vpack.c.bf16 %v2891_v39, %v2888_v54  ;;  %v12022_v53 = vunpack.i.h.bf16 %v9578_v47  ;;  %vm11756_vm5 = vcmask 850944   ;;  %v12046_v18 = vunpack.i.h.bf16 %v9952_v11  ;;  %s12259_s9 = sld [smem:[#allocation150_spill]] }
 0x717   : > { %v2925_v38 = vsel %vm11725_vm6, %v12021_v12, %v7637_v32  ;;  %v2926_v35 = vsel %vm11725_vm6, %v7637_v32, %v11715_v0  ;;  %v12025_v12 = vunpack.i.h.bf16 %v9892_v55 }
 0x718   : > { %v2923_v22 = vsel %vm11725_vm6, %v7382_v40, %v12022_v53  ;;  %6572 = vmatpush1.bf16.msra.mxu0 %v6571_v5  ;;  %v9980_v39 = vpop.permute.xlu1 %7640  ;;  %v9982_v54 = vpop.permute.xlu0 %7685  ;;  %v6575_v16 = vpack.c.bf16 %v2925_v38, %v2922_v4  ;;  %v12030_v4 = vunpack.i.h.bf16 %v9596_v33  ;;  %v12031_v38 = vld [vmem:[#allocation47_spill] sm:$0xff]  ;;  %v12032_v40 = vunpack.i.h.bf16 %v9412_v50 }
 0x719   : > { %12023 = vst [vmem:[#allocation101_spill] sm:$0xff] %v9980_v39  ;;  %12024 = vst [vmem:[#allocation102_spill] sm:$0xff] %v9982_v54  ;;  %v6573_v61 = vpack.c.bf16 %v2926_v35, %v2923_v22  ;;  %v2961_v56 = vsel %vm11721_vm8, %v7652_v46, %v12025_v12  ;;  %v12028_v54 = vunpack.i.l.bf16 %v9410_v7  ;;  %v7402_v0 = vunpack.i.l.bf16 %v12031_v38 }
 0x71a   : > { %7950 = vrot.lane.b32.xlu1 %v9315_v28, %s11966_s25  ;;  %7955 = vrot.lane.b32.xlu0 %v9315_v28, %s12029_s17  ;;  %v2958_v35 = vsel %vm11721_vm8, %v7387_v24, %v12030_v4  ;;  %v2960_v39 = vsel %vm11721_vm8, %v12032_v40, %v7652_v46  ;;  %v12034_v53 = vunpack.i.l.bf16 %v9412_v50  ;;  %v7672_v12 = vunpack.i.l.bf16 %v9952_v11  ;;  %v12038_v50 = vld [vmem:[#allocation50_spill] sm:$0xff]  ;;  %s12187_s25 = smov 3  }
 0x71b   : > { %v2992_v22 = vsel %vm2991_vm7, %v12028_v54, %v7392_v44  ;;  %6574 = vmatprep.subr.bf16.mxu0 %v6573_v61  ;;  %v6577_v5 = vpack.c.bf16 %v2961_v56, %v2958_v35  ;;  %v12033_v54 = vunpack.i.h.bf16 %v9586_v36  ;;  %v12037_v56 = vld [vmem:[#allocation49_spill] sm:$0xff]  ;;  %vm11791_vm6 = vcmask 711680  }
 0x71c   : > { %v2957_v55 = vsel %vm11721_vm8, %v12034_v53, %v7387_v24  ;;  %6576 = vmatpush1.bf16.msra.mxu0 %v6575_v16  ;;  %v10016_v33 = vpop.permute.xlu1 %7655  ;;  %v10018_v46 = vpop.permute.xlu0 %7690  ;;  %v7412_v40 = vunpack.i.l.bf16 %v12037_v56  ;;  %v7397_v53 = vunpack.i.l.bf16 %v12038_v50  ;;  %vm11772_vm8 = vcmask 834560  }
 0x71d   : > { %v2993_v32 = vsel %vm2991_vm7, %v7392_v44, %v12033_v54  ;;  %12035 = vst [vmem:[#allocation103_spill] sm:$0xff] %v10016_v33  ;;  %12036 = vst [vmem:[#allocation104_spill] sm:$0xff] %v10018_v46  ;;  %v7657_v35 = vunpack.i.l.bf16 %v10016_v33  ;;  %6578 = vmatprep.subr.bf16.mxu0 %v6577_v5  ;;  %v12039_v54 = vld [vmem:[#allocation51_spill] sm:$0xff]  ;;  %v6579_v16 = vpack.c.bf16 %v2960_v39, %v2957_v55  ;;  %v12041_v44 = vld [vmem:[#allocation52_spill] sm:$0xff]  ;;  %v12042_v5 = vunpack.i.h.bf16 %v9410_v7 }
 0x71e   : > { %7965 = vrot.lane.b32.xlu1 %v9315_v28, %s12040_s13  ;;  %7960 = vrot.lane.b32.xlu0 %v9315_v28, %s11895_s1  ;;  %v7422_v61 = vunpack.i.l.bf16 %v12039_v54  ;;  %v7407_v8 = vunpack.i.l.bf16 %v12041_v44  ;;  %v12043_v15 = vunpack.i.h.bf16 %v10016_v33  ;;  %v3031_v7 = vsel %vm11757_vm0, %v7672_v12, %v12046_v18  ;;  %v12063_v33 = vld [vmem:[#allocation55_spill] sm:$0xff]  ;;  %s12064_s1 = smov 66  }
 0x71f   : > { %v2995_v24 = vsel %vm2991_vm7, %v12042_v5, %v7657_v35  ;;  %v12049_v60 = vunpack.i.h.bf16 %v12031_v38  ;;  %v12051_v18 = vunpack.i.l.bf16 %v9420_v29  ;;  %v12053_v5 = vunpack.i.h.bf16 %v12037_v56 }
 0x720   : > { %v2996_v4 = vsel %vm2991_vm7, %v7657_v35, %v12043_v15  ;;  %6580 = vmatpush1.bf16.msra.mxu0 %v6579_v16  ;;  %v10040_v30 = vpop.permute.xlu1 %7660  ;;  %v10042_v6 = vpop.permute.xlu0 %7700  ;;  %v6583_v39 = vpack.c.bf16 %v2995_v24, %v2992_v22  ;;  %v10051_v15 = vsel %vm11745_vm12, %v12047_v10, %v7402_v0  ;;  %v12048_v35 = vunpack.i.l.bf16 %v9426_v43 }
 0x721   : > { %12044 = vst [vmem:[#allocation105_spill] sm:$0xff] %v10040_v30  ;;  %12045 = vst [vmem:[#allocation106_spill] sm:$0xff] %v10042_v6  ;;  %v6581_v55 = vpack.c.bf16 %v2996_v4, %v2993_v32  ;;  %v3063_v32 = vsel %vm11745_vm12, %v7402_v0, %v12049_v60  ;;  %v3027_v24 = vsel %vm11757_vm0, %v12051_v18, %v7397_v53  ;;  %v12052_v10 = vunpack.i.h.bf16 %v12038_v50 }
 0x722   : > { %v10056_v16 = vsel %vm11765_vm14, %v12048_v35, %v7412_v40  ;;  %7970 = vrot.lane.b32.xlu1 %v9315_v28, %s11889_s12  ;;  %7975 = vrot.lane.b32.xlu0 %v9315_v28, %s11960_s19  ;;  %v10075_v60 = vsel %vm11765_vm14, %v7412_v40, %v12053_v5  ;;  %v12054_v0 = vunpack.i.l.bf16 %v9434_v41  ;;  %v12055_v18 = vunpack.i.l.bf16 %v9428_v34  ;;  %s12065_s12 = smov 45  }
 0x723   : > { %v3028_v35 = vsel %vm11757_vm0, %v7397_v53, %v12052_v10  ;;  %v12056_v38 = vunpack.i.h.bf16 %v9420_v29  ;;  %6582 = vmatprep.subr.bf16.mxu0 %v6581_v55  ;;  %v7692_v40 = vunpack.i.l.bf16 %v10018_v46  ;;  %v12059_v56 = vunpack.i.h.bf16 %v12041_v44  ;;  %v12062_v55 = vld [vmem:[#allocation54_spill] sm:$0xff] }
 0x724   : > { %v10080_v4 = vsel %vm11777_vm13, %v12054_v0, %v7422_v61  ;;  %v10085_v30 = vsel %vm11756_vm5, %v12055_v18, %v7407_v8  ;;  %v6585_v53 = vpack.c.bf16 %v3031_v7, %v3028_v35  ;;  %6584 = vmatpush1.bf16.msra.mxu0 %v6583_v39  ;;  %v10092_v5 = vpop.permute.xlu1 %7675  ;;  %v10094_v0 = vpop.permute.xlu0 %7710  ;;  %v12060_v50 = vunpack.i.h.bf16 %v12039_v54 }
 0x725   : > { %v3030_v11 = vsel %vm11757_vm0, %v12056_v38, %v7672_v12  ;;  %12057 = vst [vmem:[#allocation107_spill] sm:$0xff] %v10092_v5  ;;  %12058 = vst [vmem:[#allocation108_spill] sm:$0xff] %v10094_v0  ;;  %v3098_v18 = vsel %vm11756_vm5, %v7407_v8, %v12059_v56  ;;  %v12061_v38 = vld [vmem:[#allocation53_spill] sm:$0xff]  ;;  %v7417_v7 = vunpack.i.l.bf16 %v12062_v55  ;;  %v7677_v39 = vunpack.i.l.bf16 %v10092_v5 }
 0x726   : > { %v10102_v29 = vsel %vm11777_vm13, %v7422_v61, %v12060_v50  ;;  %v7432_v12 = vunpack.i.l.bf16 %v12061_v38  ;;  %6586 = vmatprep.subr.bf16.mxu0 %v6585_v53  ;;  %v7442_v8 = vunpack.i.l.bf16 %v12063_v33  ;;  %7985 = vrot.lane.b32.xlu1 %v9315_v28, %s12064_s1  ;;  %v6587_v56 = vpack.c.bf16 %v3030_v11, %v3027_v24  ;;  %v12066_v50 = vld [vmem:[#allocation56_spill] sm:$0xff] }
 0x727   : > { %7980 = vrot.lane.b32.xlu0 %v9315_v28, %s12065_s12  ;;  %v7427_v35 = vunpack.i.l.bf16 %v12066_v50  ;;  %v12067_v53 = vunpack.i.h.bf16 %v9418_v1  ;;  %v12068_v44 = vunpack.i.h.bf16 %v10092_v5  ;;  %v12071_v61 = vunpack.i.h.bf16 %v10018_v46 }
 0x728   : > { %6588 = vmatpush1.bf16.msra.mxu0 %v6587_v56  ;;  %v10125_v47 = vpop.permute.xlu1 %7680  ;;  %v10127_v11 = vpop.permute.xlu0 %7720  ;;  %v12075_v56 = vld [vmem:[#allocation58_spill] sm:$0xff]  ;;  %v12080_v46 = vunpack.i.h.bf16 %v12061_v38  ;;  %v3100_v14 = vsel %vm11756_vm5, %v12082_v19, %v7692_v40  ;;  %v12086_v34 = vunpack.i.h.bf16 %v12063_v33  ;;  %vm12091_vm0 = vcmask 695296   ;;  %v12093_v33 = vld [vmem:[#allocation60_spill] sm:$0xff] }
 0x729   : > { %v3065_v10 = vsel %vm11745_vm12, %v12067_v53, %v7677_v39  ;;  %v3066_v54 = vsel %vm11745_vm12, %v7677_v39, %v12068_v44  ;;  %12069 = vst [vmem:[#allocation109_spill] sm:$0xff] %v10125_v47  ;;  %12070 = vst [vmem:[#allocation110_spill] sm:$0xff] %v10127_v11  ;;  %v3101_v1 = vsel %vm11756_vm5, %v7692_v40, %v12071_v61  ;;  %v12072_v53 = vunpack.i.l.bf16 %v9442_v45 }
 0x72a   : > { %v6591_v13 = vpack.c.bf16 %v3065_v10, %v10051_v15  ;;  %v6589_v24 = vpack.c.bf16 %v3066_v54, %v3063_v32  ;;  %v12073_v44 = vunpack.i.l.bf16 %v9436_v52  ;;  %v12074_v15 = vld [vmem:[#allocation57_spill] sm:$0xff]  ;;  %v7437_v36 = vunpack.i.l.bf16 %v12075_v56 }
 0x72b   : > { %v10135_v5 = vsel %vm11786_vm11, %v12072_v53, %v7432_v12  ;;  %v7452_v10 = vunpack.i.l.bf16 %v12074_v15  ;;  %v12076_v54 = vunpack.i.l.bf16 %v9450_v42  ;;  %vm3440_vm12 = vcmask 556032   ;;  %v12078_v53 = vld [vmem:[#allocation19_spill] sm:$0xff]  ;;  %7995 = vrot.lane.b32.xlu0 %v9315_v28, %s11891_s30  ;;  %s12094_s30 = smov 22  }
 0x72c   : > { %v10140_v39 = vsel %vm11772_vm8, %v12073_v44, %v7417_v7  ;;  %7990 = vrot.lane.b32.xlu1 %v12078_v53, %s12077_s14  ;;  %v12079_v44 = vunpack.i.h.bf16 %v12062_v55  ;;  %v12081_v61 = vunpack.i.l.bf16 %v9444_v3  ;;  %6590 = vmatprep.subr.bf16.mxu0 %v6589_v24  ;;  %v6593_v55 = vpack.c.bf16 %v3101_v1, %v3098_v18 }
 0x72d   : > { %v10147_v32 = vsel %vm11808_vm9, %v12076_v54, %v7442_v8  ;;  %v10162_v54 = vsel %vm11786_vm11, %v7432_v12, %v12080_v46  ;;  %6592 = vmatpush1.bf16.msra.mxu0 %v6591_v13  ;;  %v10175_v46 = vpop.permute.xlu1 %7695  ;;  %v10177_v12 = vpop.permute.xlu0 %7730  ;;  %v10187_v19 = vsel %vm11808_vm9, %v7442_v8, %v12086_v34  ;;  %v12087_v40 = vunpack.i.l.bf16 %v9458_v58 }
 0x72e   : > { %v10157_v47 = vsel %vm11772_vm8, %v7417_v7, %v12079_v44  ;;  %v10167_v25 = vsel %vm11791_vm6, %v12081_v61, %v7427_v35  ;;  %v7702_v44 = vunpack.i.l.bf16 %v10042_v6  ;;  %12083 = vst [vmem:[#allocation19_spill] sm:$0xff] %v10175_v46  ;;  %12084 = vst [vmem:[#allocation111_spill] sm:$0xff] %v10177_v12  ;;  %v12085_v61 = vunpack.i.h.bf16 %v12066_v50  ;;  %6594 = vmatprep.subr.bf16.mxu0 %v6593_v55 }
 0x72f   : > { %vm12088_vm5 = vcmask 670720   ;;  %v12090_v13 = vunpack.i.l.bf16 %v9452_v26  ;;  %v7447_v8 = vunpack.i.l.bf16 %v12093_v33  ;;  %8000 = vrot.lane.b32.xlu0 %v12078_v53, %s12094_s30  ;;  %v6595_v34 = vpack.c.bf16 %v3100_v14, %v10085_v30 }
 0x730   : > { %v10182_v21 = vsel %vm11791_vm6, %v7427_v35, %v12085_v61  ;;  %v10192_v18 = vsel %vm12088_vm5, %v12087_v40, %v7452_v10  ;;  %v7697_v35 = vunpack.i.l.bf16 %v10175_v46  ;;  %v12092_v61 = vld [vmem:[#allocation59_spill] sm:$0xff]  ;;  %8005 = vrot.lane.b32.xlu1 %v9315_v28, %s11899_s2  ;;  %v12095_v40 = vunpack.i.h.bf16 %v12075_v56  ;;  %vm12096_vm5 = vmmov %vm12091_vm0  ;;  %s12112_s2 = smov 8  }
 0x731   : > { %12089 = vst [vmem:[#allocation112_spill] sm:$0xff] %v10192_v18  ;;  %v10197_v24 = vsel %vm12091_vm0, %v12090_v13, %v7437_v36  ;;  %v7462_v7 = vunpack.i.l.bf16 %v12092_v61  ;;  %v12097_v55 = vunpack.i.h.bf16 %v9426_v43  ;;  %v12098_v50 = vunpack.i.h.bf16 %v10175_v46  ;;  %6596 = vmatpush1.bf16.msra.mxu0 %v6595_v34  ;;  %v10227_v30 = vpop.permute.xlu1 %7705 }
 0x732   : > { %v10211_v13 = vsel %vm12096_vm5, %v7437_v36, %v12095_v40  ;;  %v12099_v58 = vunpack.i.h.bf16 %v12074_v15  ;;  %vm12100_vm0 = vcmask 670720   ;;  %12102 = vst [vmem:[#allocation114_spill] sm:$0xff] %v10227_v30  ;;  %v10229_v40 = vpop.permute.xlu0 %7740  ;;  %v12106_v15 = vld [vmem:[#allocation62_spill] sm:$0xff]  ;;  %v7707_v14 = vunpack.i.l.bf16 %v10227_v30 }
 0x733   : > { %v3135_v38 = vsel %vm11765_vm14, %v12097_v55, %v7697_v35  ;;  %v3136_v18 = vsel %vm11765_vm14, %v7697_v35, %v12098_v50  ;;  %12103 = vst [vmem:[#allocation115_spill] sm:$0xff] %v10229_v40  ;;  %v12104_v55 = vunpack.i.h.bf16 %v10042_v6  ;;  %v12105_v35 = vld [vmem:[#allocation61_spill] sm:$0xff]  ;;  %v12109_v34 = vunpack.i.l.bf16 %v9460_v37  ;;  %8015 = vrot.lane.b32.xlu0 %v9315_v28, %s11973_s28 }
 0x734   : > { %v10223_v22 = vsel %vm12100_vm0, %v7452_v10, %v12099_v58  ;;  %v6599_v36 = vpack.c.bf16 %v3135_v38, %v10056_v16  ;;  %v6597_v43 = vpack.c.bf16 %v3136_v18, %v10075_v60  ;;  %v7482_v1 = vunpack.i.l.bf16 %v12105_v35  ;;  %8010 = vrot.lane.b32.xlu1 %v12078_v53, %s12112_s2  ;;  %v12113_v10 = vld [vmem:[#allocation63_spill] sm:$0xff] }
 0x735   : > { %12101 = vst [vmem:[#allocation113_spill] sm:$0xff] %v10223_v22  ;;  %v3171_v50 = vsel %vm11772_vm8, %v7702_v44, %v12104_v55  ;;  %v7457_v58 = vunpack.i.l.bf16 %v12106_v15  ;;  %v12107_v16 = vunpack.i.l.bf16 %v9466_v49  ;;  %vm12110_vm5 = vcmask 678912   ;;  %v10263_v49 = vpop.permute.xlu1 %7715 }
 0x736   : > { %v10247_v60 = vsel %vm12110_vm5, %v12109_v34, %v7447_v8  ;;  %vm3545_vm0 = vcmask 531456   ;;  %v7492_v56 = vunpack.i.l.bf16 %v12113_v10  ;;  %vm11792_vm14 = vcmask 359424   ;;  %6598 = vmatprep.subr.bf16.mxu0 %v6597_v43  ;;  %12116 = vst [vmem:[#allocation118_spill] sm:$0xff] %v10263_v49  ;;  %v10265_v22 = vpop.permute.xlu0 %7750 }
 0x737   : > { %v10242_v38 = vsel %vm3475_vm4, %v12107_v16, %v7462_v7  ;;  %12111 = vst [vmem:[#allocation117_spill] sm:$0xff] %v10247_v60  ;;  %v12114_v16 = vld [vmem:[#allocation64_spill] sm:$0xff]  ;;  %v12115_v34 = vunpack.i.h.bf16 %v9436_v52  ;;  %v6601_v18 = vpack.c.bf16 %v3171_v50, %v10157_v47  ;;  %6600 = vmatpush1.bf16.msra.mxu0 %v6599_v36  ;;  %v12117_v60 = vunpack.i.h.bf16 %v10227_v30  ;;  %8020 = vrot.lane.b32.xlu0 %v12078_v53, %s12123_s26 }
 0x738   : > { %12108 = vst [vmem:[#allocation116_spill] sm:$0xff] %v10242_v38  ;;  %v7467_v6 = vunpack.i.l.bf16 %v12114_v16  ;;  %v7712_v38 = vunpack.i.l.bf16 %v10094_v0  ;;  %v12118_v52 = vunpack.i.h.bf16 %v12093_v33  ;;  %v12119_v47 = vunpack.i.l.bf16 %v9496_v9  ;;  %8025 = vrot.lane.b32.xlu1 %v9315_v28, %s11903_s4  ;;  %s12139_s4 = smov 6  }
 0x739   : > { %v3170_v46 = vsel %vm11772_vm8, %v12115_v34, %v7702_v44  ;;  %v3205_v40 = vsel %vm11777_vm13, %v7707_v14, %v12117_v60  ;;  %v12121_v36 = vunpack.i.l.bf16 %v9468_v59  ;;  %6602 = vmatprep.subr.bf16.mxu0 %v6601_v18  ;;  %v12122_v60 = vunpack.i.h.bf16 %v12092_v61  ;;  %v12129_v34 = vld [vmem:[#allocation24_spill] sm:$0xff] }
 0x73a   : > { %v10273_v44 = vsel %vm12110_vm5, %v7447_v8, %v12118_v52  ;;  %v10278_v43 = vsel %vm11780_vm3, %v12119_v47, %v7482_v1  ;;  %vm11797_vm5 = vcmask 343040   ;;  %v6603_v52 = vpack.c.bf16 %v3170_v46, %v10140_v39 }
 0x73b   : > { %12120 = vst [vmem:[#allocation119_spill] sm:$0xff] %v10278_v43  ;;  %v10283_v50 = vsel %vm3440_vm12, %v12121_v36, %v7457_v58  ;;  %v10289_v55 = vsel %vm3475_vm4, %v7462_v7, %v12122_v60  ;;  %v12124_v47 = vunpack.i.h.bf16 %v12106_v15  ;;  %v12125_v36 = vunpack.i.h.bf16 %v12105_v35  ;;  %v10326_v35 = vpop.permute.xlu0 %7755  ;;  %8035 = vrot.lane.b32.xlu0 %v9315_v28, %s11894_s0  ;;  %s12157_s0 = smov 5  }
 0x73c   : > { %v12127_v60 = vunpack.i.l.bf16 %v9504_v2  ;;  %v12130_v61 = vunpack.i.l.bf16 %v12129_v34  ;;  %vm3650_vm8 = vcmask 506880   ;;  %v12131_v39 = vunpack.i.h.bf16 %v9434_v41  ;;  %6604 = vmatpush1.bf16.msra.mxu0 %v6603_v52  ;;  %v12137_v52 = vld [vmem:[#allocation67_spill] sm:$0xff]  ;;  %v12138_v2 = vld [vmem:[#allocation68_spill] sm:$0xff]  ;;  %8030 = vrot.lane.b32.xlu1 %v12078_v53, %s12139_s4 }
 0x73d   : > { %v10300_v18 = vsel %vm3440_vm12, %v7457_v58, %v12124_v47  ;;  %v10305_v7 = vsel %vm11780_vm3, %v7482_v1, %v12125_v36  ;;  %v6605_v58 = vpack.c.bf16 %v3205_v40, %v10102_v29  ;;  %v12132_v47 = vld [vmem:[#allocation65_spill] sm:$0xff]  ;;  %v7717_v15 = vunpack.i.l.bf16 %v10263_v49 }
 0x73e   : > { %12126 = vst [vmem:[#allocation120_spill] sm:$0xff] %v10305_v7  ;;  %v10310_v8 = vsel %vm992_vm15, %v12127_v60, %v7492_v56  ;;  %v10315_v33 = vsel %vm3510_vm1, %v12130_v61, %v7467_v6  ;;  %v3204_v46 = vsel %vm11777_vm13, %v12131_v39, %v7707_v14  ;;  %v7502_v1 = vunpack.i.l.bf16 %v12132_v47  ;;  %v10324_v60 = vpop.permute.xlu1 %7725  ;;  %v12135_v14 = vld [vmem:[#allocation66_spill] sm:$0xff] }
 0x73f   : > { %12128 = vst [vmem:[#allocation121_spill] sm:$0xff] %v10310_v8  ;;  %12133 = vst [vmem:[#allocation24_spill] sm:$0xff] %v10324_v60  ;;  %v12134_v61 = vunpack.i.h.bf16 %v10094_v0  ;;  %v7472_v29 = vunpack.i.l.bf16 %v12135_v14  ;;  %6606 = vmatprep.subr.bf16.mxu0 %v6605_v58  ;;  %v12136_v40 = vunpack.i.h.bf16 %v12114_v16  ;;  %v7512_v8 = vunpack.i.l.bf16 %v12137_v52  ;;  %8040 = vrot.lane.b32.xlu0 %v12078_v53, %s12157_s0 }
 0x740   : > { %v7477_v43 = vunpack.i.l.bf16 %v12138_v2  ;;  %vm11807_vm13 = vcmask 220160   ;;  %v6607_v0 = vpack.c.bf16 %v3204_v46, %v10080_v4  ;;  %v12140_v58 = vunpack.i.h.bf16 %v12113_v10  ;;  %8045 = vrot.lane.b32.xlu1 %v9315_v28, %s11905_s6  ;;  %s12172_s6 = smov 4  }
 0x741   : > { %v3240_v30 = vsel %vm11791_vm6, %v7712_v38, %v12134_v61  ;;  %v10337_v36 = vsel %vm3510_vm1, %v7467_v6, %v12136_v40  ;;  %v12142_v41 = vunpack.i.h.bf16 %v9444_v3  ;;  %v12143_v46 = vunpack.i.l.bf16 %v9516_v17  ;;  %v10366_v6 = vpop.permute.xlu0 %7760 }
 0x742   : > { %v10349_v61 = vsel %vm992_vm15, %v7492_v56, %v12140_v58  ;;  %v6609_v4 = vpack.c.bf16 %v3240_v30, %v10182_v21  ;;  %vm3787_vm3 = vcmask 367616   ;;  %v7722_v56 = vunpack.i.l.bf16 %v10127_v11  ;;  %6608 = vmatpush1.bf16.msra.mxu0 %v6607_v0  ;;  %v10364_v58 = vpop.permute.xlu1 %7735 }
 0x743   : > { %12141 = vst [vmem:[#allocation122_spill] sm:$0xff] %v10349_v61  ;;  %v3239_v39 = vsel %vm11791_vm6, %v12142_v41, %v7712_v38  ;;  %v10360_v16 = vsel %vm11793_vm10, %v12143_v46, %v7502_v1  ;;  %12145 = vst [vmem:[#allocation124_spill] sm:$0xff] %v10364_v58  ;;  %v12146_v3 = vunpack.i.h.bf16 %v10263_v49  ;;  %v12147_v21 = vunpack.i.l.bf16 %v9484_v20  ;;  %v12148_v41 = vld [vmem:[#allocation69_spill] sm:$0xff]  ;;  %8060 = vrot.lane.b32.xlu0 %v9315_v28, %s11875_s11 }
 0x744   : > { %12144 = vst [vmem:[#allocation123_spill] sm:$0xff] %v10360_v16  ;;  %v7522_v46 = vunpack.i.l.bf16 %v12148_v41  ;;  %6610 = vmatprep.subr.bf16.mxu0 %v6609_v4  ;;  %v12149_v10 = vunpack.i.h.bf16 %v12135_v14  ;;  %v12150_v40 = vunpack.i.h.bf16 %v12132_v47  ;;  %v12156_v4 = vld [vmem:[#allocation70_spill] sm:$0xff]  ;;  %v12160_v47 = vunpack.i.h.bf16 %v12137_v52  ;;  %8050 = vrot.lane.b32.xlu1 %v12078_v53, %s12172_s6 }
 0x745   : > { %v3274_v38 = vsel %vm11786_vm11, %v7717_v15, %v12146_v3  ;;  %v10374_v30 = vsel %vm3545_vm0, %v12147_v21, %v7472_v29  ;;  %v12152_v3 = vunpack.i.l.bf16 %v9524_v63  ;;  %v12154_v21 = vld [vmem:[#allocation23_spill] sm:$0xff]  ;;  %v7487_v14 = vunpack.i.l.bf16 %v12156_v4 }
 0x746   : > { %v10380_v0 = vsel %vm3545_vm0, %v7472_v29, %v12149_v10  ;;  %v10385_v16 = vsel %vm11793_vm10, %v7502_v1, %v12150_v40  ;;  %v12155_v17 = vunpack.i.l.bf16 %v12154_v21  ;;  %v6611_v10 = vpack.c.bf16 %v3239_v39, %v10167_v25  ;;  %v12168_v39 = vld [vmem:[#allocation71_spill] sm:$0xff] }
 0x747   : > { %12151 = vst [vmem:[#allocation125_spill] sm:$0xff] %v10385_v16  ;;  %v10390_v49 = vsel %vm11792_vm14, %v12152_v3, %v7512_v8  ;;  %v12158_v1 = vunpack.i.h.bf16 %v9442_v45  ;;  %v6613_v40 = vpack.c.bf16 %v3274_v38, %v10162_v54  ;;  %v12159_v3 = vunpack.i.h.bf16 %v12138_v2  ;;  %v10422_v54 = vpop.permute.xlu0 %7770  ;;  %v10424_v38 = vld [vmem:[#allocation8] sm:$0xff]  ;;  %8065 = vrot.lane.b32.xlu0 %v12078_v53, %s12187_s25 }
 0x748   : > { %12153 = vst [vmem:[#allocation126_spill] sm:$0xff] %v10390_v49  ;;  %v10395_v61 = vsel %vm3580_vm2, %v12155_v17, %v7477_v43  ;;  %v10415_v25 = vsel %vm11792_vm14, %v7512_v8, %v12160_v47  ;;  %v7727_v45 = vunpack.i.l.bf16 %v10324_v60  ;;  %6612 = vmatpush1.bf16.msra.mxu0 %v6611_v10  ;;  %12163 = vst [vmem:[#allocation128_spill] sm:$0xff] %v10424_v38  ;;  %v12166_v47 = vunpack.i.l.bf16 %v9532_v51  ;;  %v12169_v10 = vld [vmem:[#allocation72_spill] sm:$0xff]  ;;  %v12175_v51 = vld [vmem:[#allocation74_spill] sm:$0xff] }
 0x749   : > { %v3273_v29 = vsel %vm11786_vm11, %v12158_v1, %v7717_v15  ;;  %v10410_v17 = vsel %vm3580_vm2, %v7477_v43, %v12159_v3  ;;  %12161 = vst [vmem:[#allocation23_spill] sm:$0xff] %v10415_v25  ;;  %v10420_v15 = vpop.permute.xlu1 %7745  ;;  %v12164_v43 = vunpack.i.h.bf16 %v10127_v11  ;;  %vm12165_vm11 = vcmask 695296   ;;  %6614 = vmatprep.subr.bf16.mxu0 %v6613_v40  ;;  %v12174_v40 = vld [vmem:[#allocation73_spill] sm:$0xff] }
 0x74a   : > { %12162 = vst [vmem:[#allocation127_spill] sm:$0xff] %v10420_v15  ;;  %v10433_v3 = vsel %vm11797_vm5, %v12166_v47, %v7522_v46  ;;  %v7532_v49 = vunpack.i.l.bf16 %v12168_v39  ;;  %v7497_v52 = vunpack.i.l.bf16 %v12169_v10  ;;  %v12170_v2 = vunpack.i.l.bf16 %v9482_v31  ;;  %v10449_v47 = vld [vmem:[#allocation8 + $0x40] sm:$0xff] }
 0x74b   : > { %v3308_v1 = vsel %vm12165_vm11, %v7722_v56, %v12164_v43  ;;  %12167 = vst [vmem:[#allocation129_spill] sm:$0xff] %v10433_v3  ;;  %vm3857_vm11 = vcmask 351232   ;;  %v6615_v8 = vpack.c.bf16 %v3273_v29, %v10135_v5  ;;  %12173 = vst [vmem:[#allocation131_spill] sm:$0xff] %v10449_v47  ;;  %v7542_v3 = vunpack.i.l.bf16 %v12174_v40  ;;  %4819 = vmatmul.mubr.f32.vlgmr.msra.gmra.mrb[12].mxu0 %v10424_v38 }
 0x74c   : > { %v10440_v25 = vsel %vm3650_vm8, %v12170_v2, %v7487_v14  ;;  %v7507_v2 = vunpack.i.l.bf16 %v12175_v51  ;;  %vm4202_vm6 = vcmask 56320   ;;  %vm3927_vm14 = vcmask 228352   ;;  %4824 = vmatprep.mubr.f32.mxu0 %v10449_v47 }
 0x74d   : > { %12171 = vst [vmem:[#allocation130_spill] sm:$0xff] %v10440_v25  ;;  %v12176_v11 = vunpack.i.h.bf16 %v9452_v26  ;;  %vm12177_vm10 = vcmask 695296   ;;  %v6617_v5 = vpack.c.bf16 %v3308_v1, %v10211_v13  ;;  %v7732_v63 = vunpack.i.l.bf16 %v10177_v12  ;;  %6616 = vmatpush1.bf16.msra.mxu0 %v6615_v8  ;;  %v10460_v16 = vpop.permute.xlu1 %7765  ;;  %v10462_v25 = vpop.permute.xlu0 %7780 }
 0x74e   : > { %v12178_v7 = vunpack.i.h.bf16 %v10324_v60  ;;  %v12179_v26 = vunpack.i.h.bf16 %v12156_v4  ;;  %v12181_v13 = vunpack.i.l.bf16 %v9540_v57  ;;  %v12183_v8 = vunpack.i.l.bf16 %v9494_v48  ;;  %v10502_v60 = vld [vmem:[#allocation8 + $0x78] sm:$0xff] }
 0x74f   : > { %v3307_v43 = vsel %vm12177_vm10, %v12176_v11, %v7722_v56  ;;  %v10472_v56 = vld [vmem:[#allocation8 + $0x38] sm:$0xff]  ;;  %vm12184_vm10 = vcmask 384000   ;;  %6618 = vmatprep.subr.bf16.mxu0 %v6617_v5 }
 0x750   : > { %v3342_v9 = vsel %vm11808_vm9, %v7727_v45, %v12178_v7  ;;  %v10470_v11 = vsel %vm3650_vm8, %v7487_v14, %v12179_v26  ;;  %12180 = vst [vmem:[#allocation132_spill] sm:$0xff] %v10472_v56  ;;  %v10477_v1 = vsel %vm11807_vm13, %v12181_v13, %v7532_v49  ;;  %v10482_v29 = vsel %vm12184_vm10, %v12183_v8, %v7497_v52 }
 0x751   : > { %12182 = vst [vmem:[#allocation133_spill] sm:$0xff] %v10477_v1  ;;  %v12185_v7 = vunpack.i.h.bf16 %v12148_v41  ;;  %v6619_v13 = vpack.c.bf16 %v3307_v43, %v10197_v24  ;;  %v12188_v1 = vld [vmem:[#allocation25_spill] sm:$0xff]  ;;  %v12189_v8 = vunpack.i.h.bf16 %v12169_v10  ;;  %v12193_v24 = vunpack.i.l.bf16 %v9548_v62  ;;  %4825 = vmatmul.mubr.f32.gmra.mrb[14].mxu0 %v10472_v56  ;;  %v12206_v56 = vld [vmem:[#allocation78_spill] sm:$0xff] }
 0x752   : > { %8055 = vrot.lane.b32.xlu1 %v12188_v1, %s12187_s25  ;;  %12190 = vst [vmem:[#allocation25_spill] sm:$0xff] %v10502_v60  ;;  %v12196_v26 = vunpack.i.l.bf16 %v9502_v27  ;;  %v6621_v10 = vpack.c.bf16 %v3342_v9, %v10187_v19  ;;  %v12202_v19 = vld [vmem:[#allocation76_spill] sm:$0xff]  ;;  %4830 = vmatprep.mubr.f32.mxu0 %v10502_v60  ;;  %v12212_v60 = vunpack.i.h.bf16 %v9460_v37  ;;  %v12218_v37 = vunpack.i.h.bf16 %v10364_v58 }
 0x753   : > { %v10489_v14 = vsel %vm11797_vm5, %v7522_v46, %v12185_v7  ;;  %v10500_v5 = vsel %vm12184_vm10, %v7497_v52, %v12189_v8  ;;  %v12191_v46 = vunpack.i.h.bf16 %v12168_v39  ;;  %vm12194_vm5 = vcmask 203776   ;;  %6620 = vmatpush1.bf16.msra.mxu0 %v6619_v13  ;;  %v12207_v9 = vld [vmem:[#allocation16_spill] sm:$0xff] }
 0x754   : > { %12186 = vst [vmem:[#allocation134_spill] sm:$0xff] %v10489_v14  ;;  %v10512_v43 = vsel %vm12194_vm5, %v12193_v24, %v7542_v3  ;;  %v10517_v41 = vsel %vm3787_vm3, %v12196_v26, %v7507_v2  ;;  %v12197_v52 = vunpack.i.h.bf16 %v9450_v42  ;;  %v7737_v24 = vunpack.i.l.bf16 %v10364_v58  ;;  %6622 = vmatprep.subr.bf16.mxu0 %v6621_v10  ;;  %v12205_v14 = vld [vmem:[#allocation77_spill] sm:$0xff]  ;;  %8075 = vrot.lane.b32.xlu0 %v12207_v9, %s12187_s25  ;;  %v10552_v10 = vld [vmem:[#allocation8 + $0xb0] sm:$0xff] }
 0x755   : > { %v10507_v7 = vsel %vm11807_vm13, %v7532_v49, %v12191_v46  ;;  %12195 = vst [vmem:[#allocation136_spill] sm:$0xff] %v10512_v43  ;;  %v12198_v49 = vld [vmem:[#allocation75_spill] sm:$0xff]  ;;  %v10527_v43 = vpop.permute.xlu1 %7775  ;;  %v12199_v26 = vunpack.i.h.bf16 %v10177_v12  ;;  %vm12200_vm5 = vcmask 678912   ;;  %v7517_v4 = vunpack.i.l.bf16 %v12202_v19  ;;  %12208 = vst [vmem:[#allocation16_spill] sm:$0xff] %v10552_v10 }
 0x756   : > { %12192 = vst [vmem:[#allocation135_spill] sm:$0xff] %v10507_v7  ;;  %v3341_v8 = vsel %vm11808_vm9, %v12197_v52, %v7727_v45  ;;  %v7557_v46 = vunpack.i.l.bf16 %v12198_v49  ;;  %v10529_v7 = vpop.permute.xlu0 %7790  ;;  %v10534_v45 = vld [vmem:[#allocation8 + $0x70] sm:$0xff]  ;;  %v12203_v13 = vunpack.i.h.bf16 %v12175_v51  ;;  %v7567_v12 = vunpack.i.l.bf16 %v12205_v14  ;;  %8070 = vrot.lane.b32.xlu1 %v9315_v28, %s11873_s29 }
 0x757   : > { %v3376_v42 = vsel %vm12200_vm5, %v7732_v63, %v12199_v26  ;;  %12201 = vst [vmem:[#allocation75_spill] sm:$0xff] %v10534_v45  ;;  %v7527_v26 = vunpack.i.l.bf16 %v12206_v56  ;;  %vm11834_vm10 = vcmask 64512   ;;  %v6623_v47 = vpack.c.bf16 %v3341_v8, %v10147_v32  ;;  %4831 = vmatmul.mubr.f32.gmra.mrb[16].mxu0 %v10534_v45 }
 0x758   : > { %v10543_v39 = vsel %vm3787_vm3, %v7507_v2, %v12203_v13  ;;  %v12209_v52 = vunpack.i.h.bf16 %v12174_v40  ;;  %vm12210_vm5 = vcmask 203776   ;;  %vm12213_vm13 = vcmask 678912   ;;  %v12217_v40 = vld [vmem:[#allocation115_spill] sm:$0xff]  ;;  %4836 = vmatprep.mubr.f32.mxu0 %v10552_v10  ;;  %8085 = vrot.lane.b32.xlu0 %v12188_v1, %s8378_s15 }
 0x759   : > { %12204 = vst [vmem:[#allocation137_spill] sm:$0xff] %v10543_v39  ;;  %v3375_v32 = vsel %vm12213_vm13, %v12212_v60, %v7732_v63  ;;  %v6625_v28 = vpack.c.bf16 %v3376_v42, %v10273_v44  ;;  %v12214_v8 = vunpack.i.l.bf16 %v9546_v23  ;;  %vm12215_vm9 = vcmask 179200   ;;  %6624 = vmatpush1.bf16.msra.mxu0 %v6623_v47  ;;  %v10573_v13 = vpop.permute.xlu1 %7785  ;;  %v10580_v44 = vld [vmem:[#allocation8 + $0xa8] sm:$0xff]  ;;  %v12221_v60 = vld [vmem:[#allocation40_spill] sm:$0xff]  ;;  %v10589_v47 = vld [vmem:[#allocation8 + $0x18] sm:$0xff] }
 0x75a   : > { %v10557_v2 = vsel %vm12210_vm5, %v7542_v3, %v12209_v52  ;;  %v7742_v52 = vunpack.i.l.bf16 %v12217_v40  ;;  %v10575_v51 = vpop.permute.xlu0 %7800  ;;  %vm12219_vm13 = vcmask 670720   ;;  %12220 = vst [vmem:[#allocation140_spill] sm:$0xff] %v10580_v44  ;;  %v12226_v3 = vunpack.i.h.bf16 %v12202_v19  ;;  %v12230_v42 = vld [vmem:[#allocation37_spill] sm:$0xff] }
 0x75b   : > { %12211 = vst [vmem:[#allocation138_spill] sm:$0xff] %v10557_v2  ;;  %v10569_v62 = vsel %vm12215_vm9, %v12214_v8, %v7557_v46  ;;  %v3410_v63 = vsel %vm12219_vm13, %v7737_v24, %v12218_v37  ;;  %v12222_v2 = vld [vmem:[#allocation28_spill] sm:$0xff]  ;;  %6626 = vmatprep.subr.bf16.mxu0 %v6625_v28  ;;  %v12228_v37 = vunpack.i.h.bf16 %v12198_v49  ;;  %v12231_v57 = vunpack.i.l.bf16 %v12230_v42  ;;  %v12233_v28 = vld [vmem:[#allocation30_spill] sm:$0xff]  ;;  %v12237_v39 = vld [vmem:[#allocation117_spill] sm:$0xff]  ;;  %4837 = vmatmul.mubr.f32.gmra.mrb[18].mxu0 %v10580_v44 }
 0x75c   : > { %12216 = vst [vmem:[#allocation139_spill] sm:$0xff] %v10569_v62  ;;  %v12223_v8 = vunpack.i.l.bf16 %v12222_v2  ;;  %12225 = vst [vmem:[#allocation28_spill] sm:$0xff] %v10589_v47  ;;  %v10594_v58 = vsel %vm3857_vm11, %v7517_v4, %v12226_v3  ;;  %v12234_v38 = vunpack.i.l.bf16 %v12233_v28  ;;  %v12238_v3 = vld [vmem:[#allocation20_spill] sm:$0xff]  ;;  %4907 = vmatprep.mubr.f32.mxu0 %v10589_v47  ;;  %v12255_v44 = vld [vmem:[#allocation83_spill] sm:$0xff]  ;;  %8095 = vrot.lane.b32.xlu0 %v12207_v9, %s8378_s15 }
 0x75d   : > { %12227 = vst [vmem:[#allocation141_spill] sm:$0xff] %v10594_v58  ;;  %v10599_v45 = vsel %vm12215_vm9, %v7557_v46, %v12228_v37  ;;  %8080 = vrot.lane.b32.xlu1 %v12238_v3, %s8378_s15  ;;  %v12239_v46 = vld [vmem:[#allocation21_spill] sm:$0xff]  ;;  %vm12241_vm5 = vmmov %vm12219_vm13  ;;  %v12247_v3 = vld [vmem:[#allocation80_spill] sm:$0xff]  ;;  %vm12253_vm13 = vcmask 211968   ;;  %vm12263_vm9 = vcmask 187392  }
 0x75e   : > { %v10586_v62 = vsel %vm3857_vm11, %v12223_v8, %v7517_v4  ;;  %12229 = vst [vmem:[#allocation142_spill] sm:$0xff] %v10599_v45  ;;  %v10604_v8 = vsel %vm4202_vm6, %v12231_v57, %v7567_v12  ;;  %v10609_v10 = vsel %vm3927_vm14, %v12234_v38, %v7527_v26  ;;  %v6627_v4 = vpack.c.bf16 %v3375_v32, %v12237_v39  ;;  %v12242_v57 = vld [vmem:[#allocation113_spill] sm:$0xff]  ;;  %v12261_v9 = vld [vmem:[#allocation38_spill] sm:$0xff] }
 0x75f   : > { %12224 = vst [vmem:[#allocation40_spill] sm:$0xff] %v10586_v62  ;;  %12232 = vst [vmem:[#allocation143_spill] sm:$0xff] %v10604_v8  ;;  %v12236_v62 = vld [vmem:[#allocation79_spill] sm:$0xff]  ;;  %v12240_v37 = vunpack.i.h.bf16 %v12239_v46  ;;  %v6629_v8 = vpack.c.bf16 %v3410_v63, %v12242_v57  ;;  %v12243_v38 = vunpack.i.h.bf16 %v12206_v56  ;;  %v12245_v39 = vunpack.i.h.bf16 %v12205_v14  ;;  %v10633_v63 = vpop.permute.xlu1 %7795  ;;  %v12250_v46 = vld [vmem:[#allocation82_spill] sm:$0xff] }
 0x760   : > { %12235 = vst [vmem:[#allocation144_spill] sm:$0xff] %v10609_v10  ;;  %v7537_v19 = vunpack.i.l.bf16 %v12236_v62  ;;  %6628 = vmatpush1.bf16.msra.mxu0 %v6627_v4  ;;  %v12248_v57 = vunpack.i.h.bf16 %v12217_v40  ;;  %v12251_v4 = vld [vmem:[#allocation32_spill] sm:$0xff]  ;;  %v12257_v42 = vld [vmem:[#allocation85_spill] sm:$0xff]  ;;  %v4718_v40 = vld [vmem:[%s12259_s9] sm:$0xff] }
 0x761   : > { %v3409_v45 = vsel %vm12241_vm5, %v12240_v37, %v7737_v24  ;;  %v10623_v10 = vsel %vm3927_vm14, %v7527_v26, %v12243_v38  ;;  %v10628_v32 = vsel %vm4202_vm6, %v7567_v12, %v12245_v39  ;;  %v7747_v24 = vunpack.i.l.bf16 %v10420_v15  ;;  %v10635_v37 = vpop.permute.xlu0 %7810  ;;  %v12249_v39 = vld [vmem:[#allocation81_spill] sm:$0xff]  ;;  %6630 = vmatprep.subr.bf16.mxu0 %v6629_v8  ;;  %8090 = vrot.lane.b32.xlu1 %v12078_v53, %s8378_s15  ;;  %v4719_v53 = vld [vmem:[%s12259_s9 + $0x8] sm:$0xff]  ;;  %v12266_v58 = vld [vmem:[#allocation34_spill] sm:$0xff] }
 0x762   : > { %12244 = vst [vmem:[#allocation117_spill] sm:$0xff] %v10623_v10  ;;  %12246 = vst [vmem:[#allocation20_spill] sm:$0xff] %v10628_v32  ;;  %v3445_v26 = vsel %vm3440_vm12, %v7742_v52, %v12248_v57  ;;  %v7572_v38 = vunpack.i.l.bf16 %v12247_v3  ;;  %v7547_v1 = vunpack.i.l.bf16 %v12249_v39  ;;  %v12252_v56 = vunpack.i.l.bf16 %v12251_v4  ;;  %v12256_v10 = vld [vmem:[#allocation112_spill] sm:$0xff]  ;;  %4729 = vperm.xlu0 %7067, %v4719_v53  }
 0x763   : > { %v7552_v57 = vunpack.i.l.bf16 %v12255_v44  ;;  %v6631_v47 = vpack.c.bf16 %v3409_v45, %v12256_v10  ;;  %v7553_v12 = vunpack.i.h.bf16 %v12255_v44  ;;  %v7562_v32 = vunpack.i.l.bf16 %v12257_v42 }
 0x764   : > { %v10648_v14 = vsel %vm12253_vm13, %v12252_v56, %v7537_v19  ;;  %v12258_v8 = vunpack.i.h.bf16 %v9468_v59  ;;  %v6633_v56 = vpack.c.bf16 %v3445_v26, %v10300_v18  ;;  %v12260_v45 = vunpack.i.h.bf16 %v12247_v3  ;;  %v10676_v18 = vpop.permute.xlu1 %7805 }
 0x765   : > { %12254 = vst [vmem:[#allocation21_spill] sm:$0xff] %v10648_v14  ;;  %v12262_v10 = vunpack.i.h.bf16 %v12261_v9  ;;  %6632 = vmatpush1.bf16.msra.mxu0 %v6631_v47  ;;  %v10678_v26 = vpop.permute.xlu0 %7820  ;;  %v12267_v3 = vunpack.i.l.bf16 %v12266_v58  ;;  %vm12268_vm5 = vcmask 195584   ;;  %v7582_v47 = vunpack.i.l.bf16 %v12250_v46  ;;  %4724 = vperm.xlu1 %7068, %v4718_v40   ;;  %v4721_v40 = vld [vmem:[%s12259_s9 + $0x18] sm:$0xff] }
 0x766   : > { %v3444_v4 = vsel %vm3440_vm12, %v12258_v8, %v7742_v52  ;;  %v7752_v52 = vunpack.i.l.bf16 %v10265_v22  ;;  %12264 = vst [vmem:[#allocation113_spill] sm:$0xff] %v10678_v26  ;;  %v12265_v8 = vunpack.i.h.bf16 %v10420_v15  ;;  %6634 = vmatprep.subr.bf16.mxu0 %v6633_v56  ;;  %v12273_v26 = vunpack.i.h.bf16 %v12236_v62  ;;  %4739 = vperm.xlu0 %7067, %v4721_v40  }
 0x767   : > { %v10672_v44 = vsel %vm12263_vm9, %v12262_v10, %v12260_v45  ;;  %v10686_v28 = vsel %vm12268_vm5, %v12267_v3, %v7547_v1  ;;  %v12270_v45 = vunpack.i.h.bf16 %v12250_v46  ;;  %v12271_v10 = vunpack.i.h.bf16 %v12221_v60 }
 0x768   : > { %v3480_v14 = vsel %vm3475_vm4, %v7747_v24, %v12265_v8  ;;  %12269 = vst [vmem:[#allocation82_spill] sm:$0xff] %v10686_v28  ;;  %v10699_v15 = vsel %vm12253_vm13, %v7537_v19, %v12273_v26  ;;  %v12274_v8 = vunpack.i.l.bf16 %v12261_v9  ;;  %v7563_v28 = vunpack.i.h.bf16 %v12257_v42  ;;  %v12278_v9 = vld [vmem:[#allocation22_spill] sm:$0xff]  ;;  %vm12280_vm13 = vmmov %vm12263_vm9 }
 0x769   : > { %v10693_v59 = vsel %vm11834_vm10, %v12271_v10, %v12270_v45  ;;  %v6635_v58 = vpack.c.bf16 %v3444_v4, %v10283_v50  ;;  %v12275_v45 = vunpack.i.h.bf16 %v12249_v39  ;;  %v12276_v10 = vunpack.i.l.bf16 %v12221_v60  ;;  %v4720_v50 = vld [vmem:[%s12259_s9 + $0x10] sm:$0xff]  ;;  %v12281_v60 = vld [vmem:[#allocation87_spill] sm:$0xff] }
 0x76a   : > { %12272 = vst [vmem:[#allocation83_spill] sm:$0xff] %v10693_v59  ;;  %v10704_v3 = vsel %vm12263_vm9, %v12274_v8, %v7552_v57  ;;  %v12279_v26 = vunpack.i.h.bf16 %v12278_v9  ;;  %v6637_v42 = vpack.c.bf16 %v3480_v14, %v10289_v55  ;;  %v10736_v55 = vpop.permute.xlu0 %7830  ;;  %v12282_v14 = vunpack.i.h.bf16 %v10265_v22  ;;  %v12284_v39 = vld [vmem:[#allocation116_spill] sm:$0xff]  ;;  %4734 = vperm.xlu1 %7068, %v4720_v50  }
 0x76b   : > { %v10711_v56 = vsel %vm12268_vm5, %v7547_v1, %v12275_v45  ;;  %v10716_v19 = vsel %vm11834_vm10, %v12276_v10, %v7562_v32  ;;  %v10729_v1 = vsel %vm12280_vm13, %v7552_v57, %v7553_v12  ;;  %v7757_v45 = vunpack.i.l.bf16 %v10326_v35  ;;  %6636 = vmatpush1.bf16.msra.mxu0 %v6635_v58 }
 0x76c   : > { %12277 = vst [vmem:[#allocation112_spill] sm:$0xff] %v10716_v19  ;;  %v3479_v8 = vsel %vm3475_vm4, %v12279_v26, %v7747_v24  ;;  %v10734_v24 = vpop.permute.xlu1 %7815  ;;  %v3515_v10 = vsel %vm3510_vm1, %v7752_v52, %v12282_v14  ;;  %v12283_v9 = vunpack.i.h.bf16 %v12129_v34  ;;  %v11832_v26 = vunpack.i.h.bf16 %v10366_v6  ;;  %6638 = vmatprep.subr.bf16.mxu0 %v6637_v42 }
 0x76d   : > { %v7762_v4 = vunpack.i.l.bf16 %v10366_v6  ;;  %v10747_v53 = vsel %vm12263_vm9, %v7553_v12, %v7572_v38  ;;  %v7343_v58 = vunpack.i.h.bf16 %v9546_v23  ;;  %v6639_v62 = vpack.c.bf16 %v3479_v8, %v12284_v39 }
 0x76e   : > { %v3514_v57 = vsel %vm3510_vm1, %v12283_v9, %v7752_v52  ;;  %v10754_v34 = vsel %vm11834_vm10, %v7562_v32, %v7563_v28  ;;  %v7577_v52 = vunpack.i.l.bf16 %v12281_v60  ;;  %v6641_v9 = vpack.c.bf16 %v3515_v10, %v10337_v36  ;;  %v7836_v36 = vpop.permute.xlu0 %7835 }
 0x76f   : > { %v10759_v42 = vsel %vm11834_vm10, %v7563_v28, %v7582_v47  ;;  %v12285_v12 = vunpack.i.h.bf16 %v12281_v60  ;;  %vm12286_vm5 = vcmask 179200   ;;  %v6643_v39 = vpack.c.bf16 %v3514_v57, %v10315_v33  ;;  %6640 = vmatpush1.bf16.msra.mxu0 %v6639_v62 }
 0x770   : > { %v12287_v32 = vunpack.i.h.bf16 %v9484_v20  ;;  %v10772_v50 = vpop.permute.xlu1 %7825  ;;  %v12288_v28 = vunpack.i.h.bf16 %v10326_v35  ;;  %v12289_v40 = vunpack.i.h.bf16 %v12154_v21  ;;  %6642 = vmatprep.subr.bf16.mxu0 %v6641_v9  ;;  %v3585_v20 = vsel %vm3580_vm2, %v7762_v4, %v11832_v26  ;;  %v12290_v21 = vld [vmem:[#allocation45_spill] sm:$0xff]  ;;  %vm12295_vm13 = vmmov %vm12286_vm5 }
 0x771   : > { %v10766_v38 = vsel %vm12286_vm5, %v7343_v58, %v12285_v12  ;;  %v7838_v58 = vunpack.i.h.bf16 %v7836_v36  ;;  %v7837_v12 = vunpack.i.l.bf16 %v7836_v36  ;;  %v7772_v33 = vunpack.i.l.bf16 %v10422_v54  ;;  %v12292_v36 = vld [vmem:[#allocation103_spill] sm:$0xff] }
 0x772   : > { %v3549_v8 = vsel %vm3545_vm0, %v12287_v32, %v7757_v45  ;;  %v3550_v47 = vsel %vm3545_vm0, %v7757_v45, %v12288_v28  ;;  %v3584_v10 = vsel %vm3580_vm2, %v12289_v40, %v7762_v4  ;;  %v7767_v32 = vunpack.i.l.bf16 %v10460_v16 }
 0x773   : > { %v6645_v45 = vpack.c.bf16 %v3550_v47, %v10380_v0  ;;  %v12291_v28 = vunpack.i.h.bf16 %v12290_v21  ;;  %v12293_v9 = vunpack.i.h.bf16 %v12292_v36  ;;  %v12294_v4 = vunpack.i.h.bf16 %v12198_v49  ;;  %6644 = vmatpush1.bf16.msra.mxu0 %v6643_v39  ;;  %v7841_v0 = vpop.permute.xlu0 %7840 }
 0x774   : > { %v6647_v26 = vpack.c.bf16 %v3549_v8, %v10374_v30  ;;  %v6651_v62 = vpack.c.bf16 %v3584_v10, %v10395_v61  ;;  %v7846_v57 = vpop.permute.xlu1 %7845  ;;  %v6649_v21 = vpack.c.bf16 %v3585_v20, %v10410_v17  ;;  %v7843_v36 = vunpack.i.h.bf16 %v7841_v0  ;;  %v12300_v8 = vld [vmem:[#allocation42_spill] sm:$0xff]  ;;  %v12303_v20 = vld [vmem:[#allocation84_spill] sm:$0xff] }
 0x775   : > { %v2994_v40 = vsel %vm2991_vm7, %v12291_v28, %v7837_v12  ;;  %v2997_v23 = vsel %vm2991_vm7, %v12293_v9, %v7838_v58  ;;  %v10797_v14 = vsel %vm12295_vm13, %v12294_v4, %v7577_v52  ;;  %v7848_v12 = vunpack.i.h.bf16 %v7846_v57  ;;  %6646 = vmatprep.subr.bf16.mxu0 %v6645_v45  ;;  %v12306_v45 = vld [vmem:[#allocation18_spill] sm:$0xff] }
 0x776   : > { %v6745_v47 = vpack.c.bf16 %v2997_v23, %v2994_v40  ;;  %v7847_v28 = vunpack.i.l.bf16 %v7846_v57  ;;  %v7842_v19 = vunpack.i.l.bf16 %v7841_v0  ;;  %v12296_v49 = vunpack.i.h.bf16 %v9482_v31  ;;  %v12307_v40 = vld [vmem:[#allocation17_spill] sm:$0xff]  ;;  %v12309_v4 = vld [vmem:[#allocation50_spill] sm:$0xff] }
 0x777   : > { %v7782_v30 = vunpack.i.l.bf16 %v10462_v25  ;;  %v12297_v61 = vunpack.i.h.bf16 %v10460_v16  ;;  %vm12298_vm7 = vcmask 515072   ;;  %v12299_v23 = vunpack.i.h.bf16 %v10422_v54  ;;  %6648 = vmatpush1.bf16.msra.mxu0 %v6647_v26 }
 0x778   : > { %v10805_v52 = vsel %vm3650_vm8, %v12296_v49, %v7772_v33  ;;  %6746 = vmatprep.subr.bf16.mxu1 %v6745_v47  ;;  %v12301_v10 = vunpack.i.h.bf16 %v12300_v8  ;;  %vm12302_vm9 = vcmask 1039360   ;;  %v12304_v31 = vunpack.i.h.bf16 %v12303_v20  ;;  %v12312_v49 = vld [vmem:[#allocation100_spill] sm:$0xff]  ;;  %6650 = vmatprep.subr.bf16.mxu0 %v6649_v21 }
 0x779   : > { %v3620_v39 = vsel %vm12298_vm7, %v7767_v32, %v12297_v61  ;;  %v3655_v17 = vsel %vm3650_vm8, %v7772_v33, %v12299_v23  ;;  %vm12305_vm5 = vmmov %vm12302_vm9  ;;  %v12308_v9 = vpack.c.bf16 %v12306_v45, %v12307_v40  ;;  %v12310_v0 = vunpack.i.h.bf16 %v12309_v4  ;;  %v12315_v23 = vld [vmem:[#allocation26_spill] sm:$0xff] }
 0x77a   : > { %v2754_v58 = vsel %vm12302_vm9, %v12301_v10, %v7847_v28  ;;  %v2757_v57 = vsel %vm12305_vm5, %v12304_v31, %v7848_v12  ;;  %vm12311_vm13 = vcmask 867328   ;;  %v12313_v61 = vunpack.i.h.bf16 %v12312_v49  ;;  %v7851_v12 = vpop.permute.xlu1 %7850  ;;  %v7856_v31 = vpop.permute.xlu0 %7855 }
 0x77b   : > { %6748 = vmatpush3.bf16.msra.mxu1 %v12308_v9  ;;  %v3029_v47 = vsel %vm12311_vm13, %v12310_v0, %v7842_v19  ;;  %vm12314_vm7 = vmmov %vm12311_vm13  ;;  %v12316_v8 = vunpack.i.h.bf16 %v12315_v23  ;;  %vm12317_vm10 = vcmask 515072   ;;  %v11836_v10 = vunpack.i.h.bf16 %v10462_v25  ;;  %6652 = vmatpush1.bf16.msra.mxu0 %v6651_v62 }
 0x77c   : > { %v3032_v33 = vsel %vm12314_vm7, %v12313_v61, %v7843_v36  ;;  %v6751_v20 = vpack.c.bf16 %v2757_v57, %v2754_v58  ;;  %v7853_v40 = vunpack.i.h.bf16 %v7851_v12  ;;  %v7852_v9 = vunpack.i.l.bf16 %v7851_v12  ;;  %v12320_v58 = vld [vmem:[#allocation120_spill] sm:$0xff]  ;;  %v12321_v57 = vld [vmem:[#allocation91_spill] sm:$0xff] }
 0x77d   : > { %v3619_v28 = vsel %vm12317_vm10, %v12316_v8, %v7767_v32  ;;  %v6749_v45 = vpack.c.bf16 %v3032_v33, %v3029_v47  ;;  %v7858_v4 = vunpack.i.h.bf16 %v7856_v31  ;;  %v7857_v59 = vunpack.i.l.bf16 %v7856_v31  ;;  %v12324_v61 = vld [vmem:[#allocation39_spill] sm:$0xff] }
 0x77e   : > { %v12318_v19 = vunpack.i.h.bf16 %v9494_v48  ;;  %vm12319_vm9 = vcmask 384000   ;;  %v7778_v0 = vunpack.i.h.bf16 %v10527_v43  ;;  %v7777_v32 = vunpack.i.l.bf16 %v10527_v43  ;;  %v12327_v48 = vld [vmem:[#allocation47_spill] sm:$0xff] }
 0x77f   : > { %6750 = vmatprep.subr.bf16.mxu1 %v6749_v45  ;;  %v6653_v26 = vpack.c.bf16 %v3620_v39, %v12320_v58  ;;  %v12322_v49 = vunpack.i.h.bf16 %v12321_v57  ;;  %vm12323_vm10 = vcmask 1031168   ;;  %v12325_v33 = vunpack.i.h.bf16 %v12324_v61  ;;  %v12330_v12 = vld [vmem:[#allocation107_spill] sm:$0xff]  ;;  %v12333_v45 = vld [vmem:[#allocation130_spill] sm:$0xff]  ;;  %v7866_v57 = vpop.permute.xlu1 %7865 }
 0x780   : > { %v10836_v36 = vsel %vm12319_vm9, %v12318_v19, %v7782_v30  ;;  %vm12326_vm5 = vmmov %vm12323_vm10  ;;  %6752 = vmatpush3.bf16.msra.mxu1 %v6751_v20  ;;  %v12328_v23 = vunpack.i.h.bf16 %v12327_v48  ;;  %vm12329_vm13 = vcmask 859136   ;;  %v12331_v31 = vunpack.i.h.bf16 %v12330_v12 }
 0x781   : > { %v2791_v47 = vsel %vm12323_vm10, %v12322_v49, %v7858_v4  ;;  %v2788_v21 = vsel %vm12326_vm5, %v12325_v33, %v7857_v59  ;;  %vm12332_vm7 = vmmov %vm12329_vm13  ;;  %v6659_v39 = vpack.c.bf16 %v10805_v52, %v12333_v45  ;;  %v7861_v4 = vpop.permute.xlu0 %7860  ;;  %v6657_v61 = vpack.c.bf16 %v3655_v17, %v10470_v11  ;;  %6654 = vmatprep.subr.bf16.mxu0 %v6653_v26  ;;  %v12335_v11 = vld [vmem:[#allocation44_spill] sm:$0xff] }
 0x782   : > { %v3064_v8 = vsel %vm12329_vm13, %v12328_v23, %v7852_v9  ;;  %v3067_v19 = vsel %vm12332_vm7, %v12331_v31, %v7853_v40  ;;  %v6755_v58 = vpack.c.bf16 %v2791_v47, %v2788_v21  ;;  %v7868_v59 = vunpack.i.h.bf16 %v7866_v57  ;;  %v12334_v9 = vld [vmem:[#allocation119_spill] sm:$0xff]  ;;  %v12338_v21 = vld [vmem:[#allocation88_spill] sm:$0xff] }
 0x783   : > { %v6753_v49 = vpack.c.bf16 %v3067_v19, %v3064_v8  ;;  %v7867_v20 = vunpack.i.l.bf16 %v7866_v57  ;;  %v7863_v33 = vunpack.i.h.bf16 %v7861_v4  ;;  %v7862_v48 = vunpack.i.l.bf16 %v7861_v4  ;;  %v12341_v8 = vld [vmem:[#allocation52_spill] sm:$0xff] }
 0x784   : > { %v6655_v23 = vpack.c.bf16 %v3619_v28, %v12334_v9  ;;  %v6667_v40 = vpack.c.bf16 %v10836_v36, %v10482_v29  ;;  %v3689_v62 = vsel %vm992_vm15, %v7777_v32, %v7778_v0  ;;  %v3723_v52 = vsel %vm12319_vm9, %v7782_v30, %v11836_v10  ;;  %v12344_v19 = vld [vmem:[#allocation104_spill] sm:$0xff] }
 0x785   : > { %6754 = vmatprep.subr.bf16.mxu1 %v6753_v49  ;;  %v12336_v17 = vunpack.i.h.bf16 %v12335_v11  ;;  %vm12337_vm10 = vcmask 1022976   ;;  %v12339_v26 = vunpack.i.h.bf16 %v12338_v21  ;;  %v12342_v12 = vunpack.i.h.bf16 %v12341_v8  ;;  %v7876_v9 = vpop.permute.xlu0 %7875 }
 0x786   : > { %vm12340_vm5 = vmmov %vm12337_vm10  ;;  %6756 = vmatpush3.bf16.msra.mxu1 %v6755_v58  ;;  %vm12343_vm13 = vcmask 850944   ;;  %v12345_v45 = vunpack.i.h.bf16 %v12344_v19  ;;  %v11841_v4 = vunpack.i.h.bf16 %v10529_v7  ;;  %v7792_v30 = vunpack.i.l.bf16 %v10529_v7  ;;  %6656 = vmatpush1.bf16.msra.mxu0 %v6655_v23  ;;  %v12349_v19 = vld [vmem:[#allocation122_spill] sm:$0xff]  ;;  %v12350_v23 = vld [vmem:[#allocation95_spill] sm:$0xff] }
 0x787   : > { %v2822_v47 = vsel %vm12337_vm10, %v12336_v17, %v7867_v20  ;;  %v2825_v28 = vsel %vm12340_vm5, %v12339_v26, %v7868_v59  ;;  %v3099_v31 = vsel %vm12343_vm13, %v12342_v12, %v7862_v48  ;;  %vm12346_vm7 = vmmov %vm12343_vm13  ;;  %v7871_v20 = vpop.permute.xlu1 %7870  ;;  %v7878_v58 = vunpack.i.h.bf16 %v7876_v9  ;;  %6658 = vmatprep.subr.bf16.mxu0 %v6657_v61  ;;  %v12347_v26 = vld [vmem:[#allocation27_spill] sm:$0xff]  ;;  %v12356_v61 = vld [vmem:[#allocation49_spill] sm:$0xff] }
 0x788   : > { %v3102_v57 = vsel %vm12346_vm7, %v12345_v45, %v7863_v33  ;;  %v6759_v49 = vpack.c.bf16 %v2825_v28, %v2822_v47  ;;  %v7873_v17 = vunpack.i.h.bf16 %v7871_v20  ;;  %v7872_v59 = vunpack.i.l.bf16 %v7871_v20  ;;  %v12353_v45 = vld [vmem:[#allocation41_spill] sm:$0xff] }
 0x789   : > { %v6757_v11 = vpack.c.bf16 %v3102_v57, %v3099_v31  ;;  %v7877_v21 = vunpack.i.l.bf16 %v7876_v9  ;;  %v12348_v48 = vunpack.i.h.bf16 %v12347_v26  ;;  %v11842_v33 = vunpack.i.h.bf16 %v10573_v13  ;;  %v12359_v26 = vld [vmem:[#allocation19_spill] sm:$0xff] }
 0x78a   : > { %v7787_v12 = vunpack.i.l.bf16 %v10573_v13  ;;  %v6661_v47 = vpack.c.bf16 %v3689_v62, %v12349_v19  ;;  %v12351_v28 = vunpack.i.h.bf16 %v12350_v23  ;;  %vm12352_vm9 = vcmask 1014784   ;;  %6660 = vmatpush1.bf16.msra.mxu0 %v6659_v39  ;;  %v7881_v23 = vpop.permute.xlu0 %7880  ;;  %v12365_v39 = vld [vmem:[#allocation46_spill] sm:$0xff] }
 0x78b   : > { %v3688_v8 = vsel %vm992_vm15, %v12348_v48, %v7777_v32  ;;  %6758 = vmatprep.subr.bf16.mxu1 %v6757_v11  ;;  %v12354_v57 = vunpack.i.h.bf16 %v12353_v45  ;;  %vm12355_vm10 = vmmov %vm12352_vm9  ;;  %v12357_v9 = vunpack.i.h.bf16 %v12356_v61  ;;  %vm12358_vm5 = vcmask 842752   ;;  %v12363_v61 = vld [vmem:[#allocation121_spill] sm:$0xff] }
 0x78c   : > { %v2859_v31 = vsel %vm12352_vm9, %v12351_v28, %v7878_v58  ;;  %6760 = vmatpush3.bf16.msra.mxu1 %v6759_v49  ;;  %v12360_v48 = vunpack.i.h.bf16 %v12359_v26  ;;  %vm12361_vm13 = vmmov %vm12358_vm5  ;;  %v12362_v11 = vunpack.i.h.bf16 %v9502_v27  ;;  %v7886_v58 = vpop.permute.xlu1 %7885  ;;  %v6665_v49 = vpack.c.bf16 %v3723_v52, %v10500_v5  ;;  %6662 = vmatprep.subr.bf16.mxu0 %v6661_v47 }
 0x78d   : > { %v2856_v20 = vsel %vm12355_vm10, %v12354_v57, %v7877_v21  ;;  %v3134_v32 = vsel %vm12358_vm5, %v12357_v9, %v7872_v59  ;;  %v7888_v21 = vunpack.i.h.bf16 %v7886_v58  ;;  %v7887_v45 = vunpack.i.l.bf16 %v7886_v58 }
 0x78e   : > { %v3137_v10 = vsel %vm12361_vm13, %v12360_v48, %v7873_v17  ;;  %v10900_v62 = vsel %vm3787_vm3, %v12362_v11, %v7792_v30  ;;  %v6763_v19 = vpack.c.bf16 %v2859_v31, %v2856_v20  ;;  %v7883_v57 = vunpack.i.h.bf16 %v7881_v23  ;;  %v12368_v31 = vld [vmem:[#allocation92_spill] sm:$0xff]  ;;  %v12374_v48 = vld [vmem:[#allocation106_spill] sm:$0xff] }
 0x78f   : > { %v6761_v28 = vpack.c.bf16 %v3137_v10, %v3134_v32  ;;  %v7882_v59 = vunpack.i.l.bf16 %v7881_v23  ;;  %v6663_v9 = vpack.c.bf16 %v3688_v8, %v12363_v61  ;;  %v7802_v17 = vunpack.i.l.bf16 %v10575_v51  ;;  %v12371_v8 = vld [vmem:[#allocation54_spill] sm:$0xff]  ;;  %v12377_v23 = vld [vmem:[#allocation29_spill] sm:$0xff] }
 0x790   : > { %vm12364_vm7 = vcmask 375808   ;;  %v3792_v10 = vsel %vm3787_vm3, %v7792_v30, %v11841_v4  ;;  %v12366_v5 = vunpack.i.h.bf16 %v12365_v39  ;;  %vm12367_vm9 = vcmask 1006592   ;;  %v7891_v39 = vpop.permute.xlu1 %7890  ;;  %v12452_v4 = vld [vmem:[#allocation61_spill] sm:$0xff] }
 0x791   : > { %6762 = vmatprep.subr.bf16.mxu1 %v6761_v28  ;;  %v3757_v27 = vsel %vm12364_vm7, %v7787_v12, %v11842_v33  ;;  %v12369_v20 = vunpack.i.h.bf16 %v12368_v31  ;;  %vm12370_vm10 = vmmov %vm12367_vm9  ;;  %v12372_v32 = vunpack.i.h.bf16 %v12371_v8  ;;  %vm12373_vm5 = vcmask 834560   ;;  %6664 = vmatpush1.bf16.msra.mxu0 %v6663_v9 }
 0x792   : > { %v2890_v52 = vsel %vm12367_vm9, %v12366_v5, %v7887_v45  ;;  %6764 = vmatpush3.bf16.msra.mxu1 %v6763_v19  ;;  %v12375_v11 = vunpack.i.h.bf16 %v12374_v48  ;;  %vm12376_vm13 = vmmov %vm12373_vm5  ;;  %v12378_v28 = vunpack.i.h.bf16 %v12377_v23  ;;  %v11839_v61 = vunpack.i.h.bf16 %v10575_v51  ;;  %v7896_v5 = vpop.permute.xlu0 %7895  ;;  %6666 = vmatprep.subr.bf16.mxu0 %v6665_v49 }
 0x793   : > { %v2893_v47 = vsel %vm12370_vm10, %v12369_v20, %v7888_v21  ;;  %v3169_v26 = vsel %vm12373_vm5, %v12372_v32, %v7882_v59  ;;  %v7893_v19 = vunpack.i.h.bf16 %v7891_v39  ;;  %v7892_v31 = vunpack.i.l.bf16 %v7891_v39  ;;  %v12390_v39 = vld [vmem:[#allocation114_spill] sm:$0xff] }
 0x794   : > { %v3172_v58 = vsel %vm12376_vm13, %v12375_v11, %v7883_v57  ;;  %v3756_v30 = vsel %vm12364_vm7, %v12378_v28, %v7787_v12  ;;  %v6767_v45 = vpack.c.bf16 %v2893_v47, %v2890_v52  ;;  %v7898_v20 = vunpack.i.h.bf16 %v7896_v5  ;;  %v12380_v52 = vld [vmem:[#allocation125_spill] sm:$0xff]  ;;  %v12381_v47 = vld [vmem:[#allocation99_spill] sm:$0xff] }
 0x795   : > { %v6765_v21 = vpack.c.bf16 %v3172_v58, %v3169_v26  ;;  %v7897_v8 = vunpack.i.l.bf16 %v7896_v5  ;;  %v12379_v59 = vunpack.i.h.bf16 %v12222_v2  ;;  %v11840_v32 = vunpack.i.h.bf16 %v10633_v63  ;;  %v12384_v11 = vld [vmem:[#allocation43_spill] sm:$0xff]  ;;  %6668 = vmatpush1.bf16.msra.mxu0 %v6667_v40  ;;  %v12397_v40 = vld [vmem:[#allocation48_spill] sm:$0xff] }
 0x796   : > { %v7797_v12 = vunpack.i.l.bf16 %v10633_v63  ;;  %v6669_v9 = vpack.c.bf16 %v3757_v27, %v12380_v52  ;;  %v12382_v48 = vunpack.i.h.bf16 %v12381_v47  ;;  %vm12383_vm9 = vcmask 998400   ;;  %v12387_v2 = vld [vmem:[#allocation51_spill] sm:$0xff]  ;;  %v7901_v52 = vpop.permute.xlu0 %7900 }
 0x797   : > { %v10930_v57 = vsel %vm3857_vm11, %v12379_v59, %v7802_v17  ;;  %6766 = vmatprep.subr.bf16.mxu1 %v6765_v21  ;;  %v12385_v58 = vunpack.i.h.bf16 %v12384_v11  ;;  %vm12386_vm10 = vmmov %vm12383_vm9  ;;  %v12388_v23 = vunpack.i.h.bf16 %v12387_v2  ;;  %vm12389_vm5 = vcmask 719872   ;;  %v12394_v2 = vld [vmem:[#allocation123_spill] sm:$0xff] }
 0x798   : > { %v2927_v26 = vsel %vm12383_vm9, %v12382_v48, %v7898_v20  ;;  %6768 = vmatpush3.bf16.msra.mxu1 %v6767_v45  ;;  %v12391_v5 = vunpack.i.h.bf16 %v12390_v39  ;;  %vm12392_vm13 = vmmov %vm12389_vm5  ;;  %v6675_v27 = vpack.c.bf16 %v10900_v62, %v10517_v41  ;;  %v7906_v20 = vpop.permute.xlu1 %7905  ;;  %v12393_v45 = vld [vmem:[#allocation137_spill] sm:$0xff]  ;;  %6670 = vmatprep.subr.bf16.mxu0 %v6669_v9  ;;  %vm12396_vm7 = vcmask 359424   ;;  %v12400_v9 = vld [vmem:[#allocation96_spill] sm:$0xff] }
 0x799   : > { %v2924_v49 = vsel %vm12386_vm10, %v12385_v58, %v7897_v8  ;;  %v3203_v28 = vsel %vm12389_vm5, %v12388_v23, %v7892_v31  ;;  %v6673_v47 = vpack.c.bf16 %v3792_v10, %v12393_v45  ;;  %v7908_v48 = vunpack.i.h.bf16 %v7906_v20  ;;  %v12395_v23 = vld [vmem:[#allocation40_spill] sm:$0xff] }
 0x79a   : > { %v3206_v59 = vsel %vm12392_vm13, %v12391_v5, %v7893_v19  ;;  %v6771_v21 = vpack.c.bf16 %v2927_v26, %v2924_v49  ;;  %v7907_v11 = vunpack.i.l.bf16 %v7906_v20  ;;  %v7903_v31 = vunpack.i.h.bf16 %v7901_v52  ;;  %v12403_v49 = vld [vmem:[#allocation56_spill] sm:$0xff] }
 0x79b   : > { %v6769_v8 = vpack.c.bf16 %v3206_v59, %v3203_v28  ;;  %v7902_v58 = vunpack.i.l.bf16 %v7901_v52  ;;  %v6671_v19 = vpack.c.bf16 %v3756_v30, %v12394_v2  ;;  %v6683_v41 = vpack.c.bf16 %v10930_v57, %v12395_v23  ;;  %v12406_v5 = vld [vmem:[#allocation108_spill] sm:$0xff] }
 0x79c   : > { %v3827_v29 = vsel %vm12396_vm7, %v7797_v12, %v11840_v32  ;;  %v10962_v36 = vsel %vm3857_vm11, %v7802_v17, %v11839_v61  ;;  %v12398_v62 = vunpack.i.h.bf16 %v12397_v40  ;;  %vm12399_vm9 = vcmask 883712   ;;  %v7911_v45 = vpop.permute.xlu1 %7910  ;;  %v12463_v23 = vld [vmem:[#allocation60_spill] sm:$0xff] }
 0x79d   : > { %6770 = vmatprep.subr.bf16.mxu1 %v6769_v8  ;;  %v12401_v26 = vunpack.i.h.bf16 %v12400_v9  ;;  %vm12402_vm10 = vmmov %vm12399_vm9  ;;  %v12404_v28 = vunpack.i.h.bf16 %v12403_v49  ;;  %vm12405_vm5 = vcmask 711680   ;;  %v12407_v59 = vunpack.i.h.bf16 %v12406_v5  ;;  %6672 = vmatpush1.bf16.msra.mxu0 %v6671_v19  ;;  %v12409_v9 = vld [vmem:[#allocation31_spill] sm:$0xff]  ;;  %v12412_v19 = vld [vmem:[#allocation118_spill] sm:$0xff] }
 0x79e   : > { %v2959_v10 = vsel %vm12399_vm9, %v12398_v62, %v7907_v11  ;;  %6772 = vmatpush3.bf16.msra.mxu1 %v6771_v21  ;;  %vm12408_vm13 = vmmov %vm12405_vm5  ;;  %v11837_v17 = vunpack.i.h.bf16 %v10635_v37  ;;  %v7812_v52 = vunpack.i.l.bf16 %v10635_v37  ;;  %v7916_v11 = vpop.permute.xlu0 %7915  ;;  %v7913_v40 = vunpack.i.h.bf16 %v7911_v45  ;;  %6674 = vmatprep.subr.bf16.mxu0 %v6673_v47  ;;  %v12415_v5 = vld [vmem:[#allocation53_spill] sm:$0xff]  ;;  %v12418_v47 = vld [vmem:[#allocation66_spill] sm:$0xff] }
 0x79f   : > { %v2962_v30 = vsel %vm12402_vm10, %v12401_v26, %v7908_v48  ;;  %v3238_v39 = vsel %vm12405_vm5, %v12404_v28, %v7902_v58  ;;  %v3241_v20 = vsel %vm12408_vm13, %v12407_v59, %v7903_v31  ;;  %v7912_v48 = vunpack.i.l.bf16 %v7911_v45  ;;  %v12411_v28 = vld [vmem:[#allocation23_spill] sm:$0xff] }
 0x7a0   : > { %v6775_v8 = vpack.c.bf16 %v2962_v30, %v2959_v10  ;;  %v6773_v2 = vpack.c.bf16 %v3241_v20, %v3238_v39  ;;  %v7918_v21 = vunpack.i.h.bf16 %v7916_v11  ;;  %v7917_v62 = vunpack.i.l.bf16 %v7916_v11 }
 0x7a1   : > { %v12410_v58 = vunpack.i.h.bf16 %v12409_v9  ;;  %v11838_v31 = vunpack.i.h.bf16 %v10676_v18  ;;  %v7807_v49 = vunpack.i.l.bf16 %v10676_v18  ;;  %v6677_v10 = vpack.c.bf16 %v3827_v29, %v12411_v28  ;;  %6676 = vmatpush1.bf16.msra.mxu0 %v6675_v27 }
 0x7a2   : > { %6774 = vmatprep.subr.bf16.mxu1 %v6773_v2  ;;  %v12413_v30 = vunpack.i.h.bf16 %v12412_v19  ;;  %vm12414_vm9 = vcmask 703488   ;;  %v12416_v59 = vunpack.i.h.bf16 %v12415_v5  ;;  %v12419_v45 = vunpack.i.h.bf16 %v12418_v47  ;;  %v12421_v2 = vld [vmem:[#allocation30_spill] sm:$0xff]  ;;  %v7921_v19 = vpop.permute.xlu0 %7920 }
 0x7a3   : > { %v3826_v26 = vsel %vm12396_vm7, %v12410_v58, %v7797_v12  ;;  %vm12417_vm10 = vmmov %vm12414_vm9  ;;  %6776 = vmatpush3.bf16.msra.mxu1 %v6775_v8  ;;  %v12420_v11 = vunpack.i.h.bf16 %v10326_v35  ;;  %v12422_v58 = vunpack.i.h.bf16 %v12421_v2  ;;  %v12423_v8 = vld [vmem:[#allocation141_spill] sm:$0xff]  ;;  %v7923_v35 = vunpack.i.h.bf16 %v7921_v19  ;;  %6678 = vmatprep.subr.bf16.mxu0 %v6677_v10 }
 0x7a4   : > { %v3275_v39 = vsel %vm12414_vm9, %v12413_v30, %v7918_v21  ;;  %v3272_v20 = vsel %vm12417_vm10, %v12416_v59, %v7917_v62  ;;  %v3548_v12 = vsel %vm3545_vm0, %v12419_v45, %v7912_v48  ;;  %v7926_v21 = vpop.permute.xlu1 %7925  ;;  %v11001_v62 = vld [vmem:[#allocation8 + $0x10] sm:$0xff]  ;;  %v6681_v5 = vpack.c.bf16 %v10962_v36, %v12423_v8 }
 0x7a5   : > { %v3551_v9 = vsel %vm3545_vm0, %v12420_v11, %v7913_v40  ;;  %v10999_v29 = vsel %vm3927_vm14, %v12422_v58, %v7812_v52  ;;  %v6779_v28 = vpack.c.bf16 %v3275_v39, %v3272_v20  ;;  %v7928_v48 = vunpack.i.h.bf16 %v7926_v21  ;;  %v12424_v40 = vld [vmem:[#allocation34_spill] sm:$0xff]  ;;  %v12426_v58 = vld [vmem:[#allocation128_spill] sm:$0xff]  ;;  %v12428_v39 = vld [vmem:[#allocation35_spill] sm:$0xff]  ;;  %4908 = vmatmul.mubr.f32.vlgmr.msra.gmra.mrb[12].mxu0 %v11001_v62 }
 0x7a6   : > { %v6777_v30 = vpack.c.bf16 %v3551_v9, %v3548_v12  ;;  %v7927_v59 = vunpack.i.l.bf16 %v7926_v21  ;;  %v7922_v47 = vunpack.i.l.bf16 %v7921_v19  ;;  %v12425_v11 = vld [vmem:[#allocation126_spill] sm:$0xff]  ;;  %5175 = vmatmul.mubr.f32.vlgmr.msra.gmra.mrb[16].mxu1 %v12426_v58  ;;  %vm12427_vm0 = vcmask 343040   ;;  %v12437_v58 = vld [vmem:[#allocation36_spill] sm:$0xff] }
 0x7a7   : > { %v6679_v2 = vpack.c.bf16 %v3826_v26, %v12425_v11  ;;  %v3897_v27 = vsel %vm12427_vm0, %v7807_v49, %v11838_v31  ;;  %v11014_v36 = vsel %vm3927_vm14, %v7812_v52, %v11837_v17  ;;  %v7318_v20 = vunpack.i.h.bf16 %v12428_v39  ;;  %v12429_v12 = vld [vmem:[#allocation58_spill] sm:$0xff]  ;;  %v12438_v17 = vld [vmem:[#allocation33_spill] sm:$0xff]  ;;  %vm12440_vm7 = vmmov %vm12427_vm0 }
 0x7a8   : > { %6778 = vmatprep.subr.bf16.mxu1 %v6777_v30  ;;  %v12430_v10 = vunpack.i.h.bf16 %v12429_v12  ;;  %vm12431_vm5 = vcmask 695296   ;;  %v12432_v21 = vld [vmem:[#allocation110_spill] sm:$0xff]  ;;  %v12435_v30 = vld [vmem:[#allocation68_spill] sm:$0xff]  ;;  %v12439_v31 = vunpack.i.h.bf16 %v12438_v17  ;;  %v7818_v17 = vunpack.i.h.bf16 %v10734_v24  ;;  %v12484_v39 = vld [vmem:[#allocation63_spill] sm:$0xff] }
 0x7a9   : > { %v12433_v26 = vunpack.i.h.bf16 %v12432_v21  ;;  %vm12434_vm13 = vmmov %vm12431_vm5  ;;  %6780 = vmatpush3.bf16.msra.mxu1 %v6779_v28  ;;  %v12436_v8 = vunpack.i.h.bf16 %v12435_v30  ;;  %6680 = vmatpush1.bf16.msra.mxu0 %v6679_v2  ;;  %v12441_v21 = vld [vmem:[#allocation131_spill] sm:$0xff]  ;;  %v12453_v45 = vunpack.i.h.bf16 %v12452_v4  ;;  %vm12454_vm10 = vcmask 515072  }
 0x7aa   : > { %v3306_v9 = vsel %vm12431_vm5, %v12430_v10, %v7927_v59  ;;  %v3896_v61 = vsel %vm12440_vm7, %v12439_v31, %v7807_v49  ;;  %v7931_v59 = vpop.permute.xlu1 %7930  ;;  %v7936_v10 = vpop.permute.xlu0 %7935  ;;  %5179 = vmatprep.mubr.f32.mxu1 %v12441_v21  ;;  %6682 = vmatprep.subr.bf16.mxu0 %v6681_v5  ;;  %v7817_v31 = vunpack.i.l.bf16 %v10734_v24  ;;  %v12443_v49 = vld [vmem:[#allocation132_spill] sm:$0xff]  ;;  %v12451_v5 = vld [vmem:[#allocation25_spill] sm:$0xff]  ;;  %v12455_v52 = vunpack.i.h.bf16 %v10460_v16  ;;  %vm12456_vm0 = vmmov %vm12454_vm10 }
 0x7ab   : > { %v3309_v19 = vsel %vm12434_vm13, %v12433_v26, %v7928_v48  ;;  %v3583_v11 = vsel %vm3580_vm2, %v12436_v8, %v7922_v47  ;;  %v12442_v48 = vunpack.i.h.bf16 %v10366_v6  ;;  %v11035_v26 = vld [vmem:[#allocation8 + $0x50] sm:$0xff]  ;;  %v7933_v30 = vunpack.i.h.bf16 %v7931_v59  ;;  %5180 = vmatmul.mubr.f32.gmra.mrb[18].mxu1 %v12443_v49 }
 0x7ac   : > { %v6783_v12 = vpack.c.bf16 %v3309_v19, %v3306_v9  ;;  %v7932_v47 = vunpack.i.l.bf16 %v7931_v59  ;;  %v7938_v8 = vunpack.i.h.bf16 %v7936_v10  ;;  %v7937_v32 = vunpack.i.l.bf16 %v7936_v10  ;;  %4913 = vmatprep.mubr.f32.mxu0 %v11035_v26  ;;  %v12444_v9 = vld [vmem:[#allocation134_spill] sm:$0xff]  ;;  %v12445_v19 = vld [vmem:[#allocation24_spill] sm:$0xff]  ;;  %5184 = vmatprep.mubr.f32.mxu1 %v12451_v5 }
 0x7ad   : > { %v3586_v28 = vsel %vm3580_vm2, %v12442_v48, %v7923_v35  ;;  %v6685_v6 = vpack.c.bf16 %v3897_v27, %v12444_v9  ;;  %v12446_v35 = vunpack.i.h.bf16 %v12445_v19  ;;  %vm12447_vm2 = vcmask 687104   ;;  %v12448_v48 = vld [vmem:[#allocation55_spill] sm:$0xff]  ;;  %6684 = vmatpush1.bf16.msra.mxu0 %v6683_v41  ;;  %v12469_v5 = vld [vmem:[#allocation16_spill] sm:$0xff] }
 0x7ae   : > { %v6781_v2 = vpack.c.bf16 %v3586_v28, %v3583_v11  ;;  %v12449_v59 = vunpack.i.h.bf16 %v12448_v48  ;;  %vm12450_vm9 = vmmov %vm12447_vm2  ;;  %v3618_v33 = vsel %vm12454_vm10, %v12453_v45, %v7932_v47  ;;  %v3621_v11 = vsel %vm12456_vm0, %v12455_v52, %v7933_v30  ;;  %v12457_v28 = vld [vmem:[#allocation113_spill] sm:$0xff] }
 0x7af   : > { %v3343_v21 = vsel %vm12447_vm2, %v12446_v35, %v7938_v8  ;;  %v7823_v27 = vunpack.i.h.bf16 %v12457_v28  ;;  %v7822_v49 = vunpack.i.l.bf16 %v12457_v28  ;;  %v7941_v8 = vpop.permute.xlu0 %7940  ;;  %v6785_v19 = vpack.c.bf16 %v3621_v11, %v3618_v33  ;;  %6686 = vmatprep.subr.bf16.mxu0 %v6685_v6  ;;  %v12458_v52 = vld [vmem:[#allocation37_spill] sm:$0xff] }
 0x7b0   : > { %v3340_v10 = vsel %vm12450_vm9, %v12449_v59, %v7937_v32  ;;  %6782 = vmatprep.subr.bf16.mxu1 %v6781_v2  ;;  %v7946_v32 = vpop.permute.xlu1 %7945  ;;  %v7943_v47 = vunpack.i.h.bf16 %v7941_v8  ;;  %v7942_v16 = vunpack.i.l.bf16 %v7941_v8  ;;  %v7353_v30 = vunpack.i.h.bf16 %v12458_v52  ;;  %v12459_v35 = vld [vmem:[#allocation129_spill] sm:$0xff]  ;;  %v12460_v59 = vld [vmem:[#allocation75_spill] sm:$0xff] }
 0x7b1   : > { %v6787_v9 = vpack.c.bf16 %v3343_v21, %v3340_v10  ;;  %6784 = vmatpush3.bf16.msra.mxu1 %v6783_v12  ;;  %v7948_v4 = vunpack.i.h.bf16 %v7946_v32  ;;  %v7947_v45 = vunpack.i.l.bf16 %v7946_v32  ;;  %v6687_v48 = vpack.c.bf16 %v3896_v61, %v12459_v35  ;;  %v12461_v2 = vld [vmem:[#allocation117_spill] sm:$0xff]  ;;  %v12466_v21 = vld [vmem:[#allocation111_spill] sm:$0xff]  ;;  %v12470_v61 = vld [vmem:[#allocation70_spill] sm:$0xff] }
 0x7b2   : > { %5185 = vmatmul.mubr.f32.gmra.mrb[20].mxu1 %v12460_v59  ;;  %6786 = vmatprep.subr.bf16.mxu1 %v6785_v19  ;;  %v6689_v57 = vpack.c.bf16 %v11014_v36, %v12461_v2  ;;  %vm12462_vm5 = vcmask 220160   ;;  %v12464_v41 = vunpack.i.h.bf16 %v12463_v23  ;;  %vm12465_vm13 = vcmask 678912   ;;  %v12473_v19 = vld [vmem:[#allocation144_spill] sm:$0xff] }
 0x7b3   : > { %v3967_v33 = vsel %vm12462_vm5, %v7817_v31, %v7818_v17  ;;  %v12467_v6 = vunpack.i.h.bf16 %v12466_v21  ;;  %vm12468_vm7 = vmmov %vm12465_vm13  ;;  %5189 = vmatprep.mubr.f32.mxu1 %v12469_v5  ;;  %v12471_v11 = vunpack.i.h.bf16 %v12470_v61  ;;  %v12472_v36 = vunpack.i.h.bf16 %v10422_v54  ;;  %6688 = vmatpush1.bf16.msra.mxu0 %v6687_v48  ;;  %v7956_v2 = vpop.permute.xlu0 %7955  ;;  %v12476_v48 = vld [vmem:[#allocation140_spill] sm:$0xff] }
 0x7b4   : > { %v3374_v12 = vsel %vm12465_vm13, %v12464_v41, %v7947_v45  ;;  %v6691_v35 = vpack.c.bf16 %v10999_v29, %v12473_v19  ;;  %v7951_v45 = vpop.permute.xlu1 %7950  ;;  %vm12474_vm2 = vcmask 211968   ;;  %6690 = vmatprep.subr.bf16.mxu0 %v6689_v57  ;;  %v7828_v29 = vunpack.i.h.bf16 %v10772_v50  ;;  %v12478_v5 = vld [vmem:[#allocation124_spill] sm:$0xff] }
 0x7b5   : > { %v3377_v10 = vsel %vm12468_vm7, %v12467_v6, %v7948_v4  ;;  %v3653_v32 = vsel %vm3650_vm8, %v12471_v11, %v7942_v16  ;;  %v3656_v8 = vsel %vm3650_vm8, %v12472_v36, %v7943_v47  ;;  %v4001_v4 = vsel %vm12474_vm2, %v7822_v49, %v7823_v27  ;;  %6788 = vmatpush3.bf16.msra.mxu1 %v6787_v9  ;;  %vm12475_vm8 = vmmov %vm12462_vm5  ;;  %v12481_v11 = vld [vmem:[#allocation57_spill] sm:$0xff]  ;;  %v12487_v19 = vld [vmem:[#allocation32_spill] sm:$0xff] }
 0x7b6   : > { %v6791_v59 = vpack.c.bf16 %v3377_v10, %v3374_v12  ;;  %v6789_v23 = vpack.c.bf16 %v3656_v8, %v3653_v32  ;;  %v7953_v41 = vunpack.i.h.bf16 %v7951_v45  ;;  %v7952_v21 = vunpack.i.l.bf16 %v7951_v45  ;;  %5190 = vmatmul.mubr.f32.gmra.mrb[22].mxu1 %v12476_v48  ;;  %v12477_v12 = vld [vmem:[#allocation135_spill] sm:$0xff]  ;;  %v12486_v8 = vld [vmem:[#allocation28_spill] sm:$0xff]  ;;  %vm12489_vm0 = vmmov %vm12474_vm2 }
 0x7b7   : > { %v7958_v16 = vunpack.i.h.bf16 %v7956_v2  ;;  %v7957_v6 = vunpack.i.l.bf16 %v7956_v2  ;;  %v3966_v54 = vsel %vm12475_vm8, %v7318_v20, %v7817_v31  ;;  %v7827_v47 = vunpack.i.l.bf16 %v10772_v50  ;;  %5259 = vmatprep.mubr.f32.mxu1 %v12486_v8  ;;  %6692 = vmatpush1.bf16.msra.mxu0 %v6691_v35  ;;  %v12501_v8 = vld [vmem:[#allocation89_spill] sm:$0xff] }
 0x7b8   : > { %6790 = vmatprep.subr.bf16.mxu1 %v6789_v23  ;;  %v6693_v10 = vpack.c.bf16 %v3967_v33, %v12477_v12  ;;  %v12479_v9 = vunpack.i.h.bf16 %v12478_v5  ;;  %vm12480_vm9 = vcmask 670720   ;;  %v12482_v32 = vunpack.i.h.bf16 %v12481_v11  ;;  %v7966_v23 = vpop.permute.xlu1 %7965 }
 0x7b9   : > { %vm12483_vm10 = vmmov %vm12480_vm9  ;;  %v12485_v36 = vunpack.i.h.bf16 %v12484_v39  ;;  %v3690_v31 = vsel %vm992_vm15, %v7778_v0, %v7953_v41  ;;  %v12488_v33 = vunpack.i.h.bf16 %v12487_v19  ;;  %6792 = vmatpush3.bf16.msra.mxu1 %v6791_v59  ;;  %v7968_v12 = vunpack.i.h.bf16 %v7966_v23  ;;  %v11110_v0 = vld [vmem:[#allocation8 + $0x48] sm:$0xff]  ;;  %v12492_v59 = vld [vmem:[#allocation62_spill] sm:$0xff] }
 0x7ba   : > { %v3411_v61 = vsel %vm12480_vm9, %v12479_v9, %v7958_v16  ;;  %v3408_v57 = vsel %vm12483_vm10, %v12482_v32, %v7957_v6  ;;  %v7961_v16 = vpop.permute.xlu0 %7960  ;;  %v6697_v6 = vpack.c.bf16 %v4001_v4, %v10699_v15  ;;  %6694 = vmatprep.subr.bf16.mxu0 %v6693_v10  ;;  %v12490_v41 = vld [vmem:[#allocation133_spill] sm:$0xff]  ;;  %v7833_v11 = vunpack.i.h.bf16 %v10736_v55  ;;  %4914 = vmatmul.mubr.f32.gmra.mrb[14].mxu0 %v11110_v0 }
 0x7bb   : > { %v3687_v20 = vsel %vm992_vm15, %v12485_v36, %v7952_v21  ;;  %v4000_v45 = vsel %vm12489_vm0, %v12488_v33, %v7822_v49  ;;  %v6795_v2 = vpack.c.bf16 %v3411_v61, %v3408_v57  ;;  %v7967_v21 = vunpack.i.l.bf16 %v7966_v23  ;;  %v11118_v15 = vld [vmem:[#allocation8 + $0x88] sm:$0xff]  ;;  %v12494_v61 = vld [vmem:[#allocation115_spill] sm:$0xff]  ;;  %v12496_v57 = vld [vmem:[#allocation72_spill] sm:$0xff] }
 0x7bc   : > { %v6793_v48 = vpack.c.bf16 %v3690_v31, %v3687_v20  ;;  %v7963_v5 = vunpack.i.h.bf16 %v7961_v16  ;;  %v7962_v43 = vunpack.i.l.bf16 %v7961_v16  ;;  %v6695_v9 = vpack.c.bf16 %v3966_v54, %v12490_v41  ;;  %4919 = vmatprep.mubr.f32.mxu0 %v11118_v15  ;;  %v12502_v33 = vld [vmem:[#allocation21_spill] sm:$0xff] }
 0x7bd   : > { %v7832_v49 = vunpack.i.l.bf16 %v10736_v55  ;;  %vm12491_vm15 = vcmask 203776   ;;  %vm4272_vm5 = vcmask 39936   ;;  %v12493_v4 = vunpack.i.h.bf16 %v12492_v59 }
 0x7be   : > { %6794 = vmatprep.subr.bf16.mxu1 %v6793_v48  ;;  %v4035_v35 = vsel %vm12491_vm15, %v7827_v47, %v7828_v29  ;;  %v12495_v54 = vunpack.i.h.bf16 %v12494_v61  ;;  %v12497_v39 = vunpack.i.h.bf16 %v12496_v57  ;;  %vm12498_vm13 = vcmask 384000   ;;  %6696 = vmatpush1.bf16.msra.mxu0 %v6695_v9  ;;  %v7971_v48 = vpop.permute.xlu1 %7970 }
 0x7bf   : > { %v3443_v10 = vsel %vm3440_vm12, %v12493_v4, %v7967_v21  ;;  %v12499_v20 = vunpack.i.h.bf16 %v10462_v25  ;;  %vm12500_vm7 = vmmov %vm12498_vm13  ;;  %v7588_v19 = vunpack.i.h.bf16 %v12501_v8  ;;  %v6699_v23 = vpack.c.bf16 %v4000_v45, %v12502_v33  ;;  %v7976_v21 = vpop.permute.xlu0 %7975  ;;  %6796 = vmatpush3.bf16.msra.mxu1 %v6795_v2  ;;  %6698 = vmatprep.subr.bf16.mxu0 %v6697_v6  ;;  %v11136_v25 = vld [vmem:[#allocation8 + $0x80] sm:$0xff]  ;;  %v12505_v45 = vld [vmem:[#allocation138_spill] sm:$0xff] }
 0x7c0   : > { %v3446_v32 = vsel %vm3440_vm12, %v12495_v54, %v7968_v12  ;;  %v3721_v36 = vsel %vm12498_vm13, %v12497_v39, %v7962_v43  ;;  %v7973_v12 = vunpack.i.h.bf16 %v7971_v48  ;;  %v7972_v59 = vunpack.i.l.bf16 %v7971_v48  ;;  %vm12504_vm12 = vmmov %vm12491_vm15  ;;  %4920 = vmatmul.mubr.f32.gmra.mrb[16].mxu0 %v11136_v25  ;;  %v12507_v6 = vld [vmem:[#allocation127_spill] sm:$0xff] }
 0x7c1   : > { %v3724_v31 = vsel %vm12500_vm7, %v12499_v20, %v7963_v5  ;;  %v6799_v16 = vpack.c.bf16 %v3446_v32, %v3443_v10  ;;  %v7978_v4 = vunpack.i.h.bf16 %v7976_v21  ;;  %v7977_v43 = vunpack.i.l.bf16 %v7976_v21  ;;  %v11146_v10 = vld [vmem:[#allocation8 + $0xc0] sm:$0xff]  ;;  %v12509_v39 = vld [vmem:[#allocation59_spill] sm:$0xff]  ;;  %v12516_v21 = vld [vmem:[#allocation90_spill] sm:$0xff] }
 0x7c2   : > { %v6797_v41 = vpack.c.bf16 %v3724_v31, %v3721_v36  ;;  %v7587_v5 = vunpack.i.l.bf16 %v12501_v8  ;;  %v12503_v61 = vunpack.i.h.bf16 %v12437_v58  ;;  %v6701_v9 = vpack.c.bf16 %v4035_v35, %v12505_v45  ;;  %4925 = vmatprep.mubr.f32.mxu0 %v11146_v10  ;;  %6700 = vmatpush1.bf16.msra.mxu0 %v6699_v23  ;;  %v11170_v45 = vld [vmem:[#allocation8 + $0x28] sm:$0xff]  ;;  %v12519_v23 = vld [vmem:[#allocation136_spill] sm:$0xff] }
 0x7c3   : > { %vm12506_vm2 = vcmask 195584   ;;  %v12508_v32 = vunpack.i.h.bf16 %v12507_v6  ;;  %v12510_v36 = vunpack.i.h.bf16 %v12509_v39  ;;  %vm12513_vm8 = vcmask 375808   ;;  %v11172_v39 = vld [vmem:[#allocation8 + $0xb8] sm:$0xff] }
 0x7c4   : > { %v4034_v54 = vsel %vm12504_vm12, %v12503_v61, %v7827_v47  ;;  %6798 = vmatprep.subr.bf16.mxu1 %v6797_v41  ;;  %v4069_v2 = vsel %vm12506_vm2, %v7832_v49, %v7833_v11  ;;  %v12511_v47 = vld [vmem:[#allocation65_spill] sm:$0xff]  ;;  %v12514_v31 = vunpack.i.h.bf16 %v10573_v13  ;;  %vm12515_vm9 = vmmov %vm12513_vm8  ;;  %v11167_v48 = vsel %vm4202_vm6, %v7353_v30, %v7588_v19  ;;  %v7981_v61 = vpop.permute.xlu0 %7980  ;;  %6702 = vmatprep.subr.bf16.mxu0 %v6701_v9 }
 0x7c5   : > { %v3481_v57 = vsel %vm3475_vm4, %v12508_v32, %v7978_v4  ;;  %v3478_v58 = vsel %vm3475_vm4, %v12510_v36, %v7977_v43  ;;  %v12512_v20 = vunpack.i.h.bf16 %v12511_v47  ;;  %v7628_v41 = vunpack.i.h.bf16 %v12516_v21  ;;  %v7986_v43 = vpop.permute.xlu1 %7985  ;;  %6800 = vmatpush3.bf16.msra.mxu1 %v6799_v16  ;;  %vm12518_vm4 = vmmov %vm12506_vm2  ;;  %4926 = vmatmul.mubr.f32.gmra.mrb[18].mxu0 %v11172_v39  ;;  %v12520_v16 = vld [vmem:[#allocation64_spill] sm:$0xff] }
 0x7c6   : > { %v3758_v33 = vsel %vm12515_vm9, %v12514_v31, %v7973_v12  ;;  %v6803_v4 = vpack.c.bf16 %v3481_v57, %v3478_v58  ;;  %v7988_v13 = vunpack.i.h.bf16 %v7986_v43  ;;  %v7987_v12 = vunpack.i.l.bf16 %v7986_v43  ;;  %v12523_v31 = vld [vmem:[#allocation74_spill] sm:$0xff]  ;;  %4996 = vmatprep.mubr.f32.mxu0 %v11170_v45 }
 0x7c7   : > { %v3755_v35 = vsel %vm12513_vm8, %v12512_v20, %v7972_v59  ;;  %v7983_v6 = vunpack.i.h.bf16 %v7981_v61  ;;  %v7982_v32 = vunpack.i.l.bf16 %v7981_v61  ;;  %v7627_v52 = vunpack.i.l.bf16 %v12516_v21 }
 0x7c8   : > { %v6801_v59 = vpack.c.bf16 %v3758_v33, %v3755_v35  ;;  %v12517_v30 = vunpack.i.h.bf16 %v12424_v40  ;;  %v6703_v36 = vpack.c.bf16 %v4034_v54, %v12519_v23  ;;  %v6705_v58 = vpack.c.bf16 %v4069_v2, %v10711_v56  ;;  %v7996_v43 = vpop.permute.xlu0 %7995 }
 0x7c9   : > { %vm4237_vm10 = vcmask 48128   ;;  %v12521_v47 = vunpack.i.h.bf16 %v12520_v16  ;;  %v12522_v20 = vunpack.i.h.bf16 %v10265_v22  ;;  %v12524_v40 = vunpack.i.h.bf16 %v12523_v31  ;;  %v7991_v2 = vpop.permute.xlu1 %7990  ;;  %v12529_v16 = vld [vmem:[#allocation94_spill] sm:$0xff] }
 0x7ca   : > { %v4068_v57 = vsel %vm12518_vm4, %v12517_v30, %v7832_v49  ;;  %6802 = vmatprep.subr.bf16.mxu1 %v6801_v59  ;;  %v12525_v54 = vunpack.i.h.bf16 %v10529_v7  ;;  %6704 = vmatpush1.bf16.msra.mxu0 %v6703_v36  ;;  %v12526_v59 = vld [vmem:[#allocation139_spill] sm:$0xff]  ;;  %v7992_v7 = vunpack.i.l.bf16 %v7991_v2  ;;  %v7998_v23 = vunpack.i.h.bf16 %v7996_v43  ;;  %v12530_v36 = vld [vmem:[#allocation82_spill] sm:$0xff] }
 0x7cb   : > { %v3513_v9 = vsel %vm3510_vm1, %v12521_v47, %v7987_v12  ;;  %v3516_v35 = vsel %vm3510_vm1, %v12522_v20, %v7988_v13  ;;  %v3790_v49 = vsel %vm3787_vm3, %v12524_v40, %v7982_v32  ;;  %v6715_v22 = vpack.c.bf16 %v10766_v38, %v12526_v59  ;;  %v12527_v12 = vld [vmem:[#allocation77_spill] sm:$0xff]  ;;  %6804 = vmatpush3.bf16.msra.mxu1 %v6803_v4  ;;  %v12531_v20 = vld [vmem:[#allocation143_spill] sm:$0xff]  ;;  %v12562_v38 = vld [vmem:[#allocation78_spill] sm:$0xff] }
 0x7cc   : > { %v3793_v33 = vsel %vm3787_vm3, %v12525_v54, %v7983_v6  ;;  %v6807_v56 = vpack.c.bf16 %v3516_v35, %v3513_v9  ;;  %v12528_v13 = vunpack.i.h.bf16 %v12527_v12  ;;  %v7993_v32 = vunpack.i.h.bf16 %v7991_v2  ;;  %6706 = vmatprep.subr.bf16.mxu0 %v6705_v58  ;;  %v12534_v40 = vld [vmem:[#allocation67_spill] sm:$0xff]  ;;  %v12537_v54 = vld [vmem:[#allocation80_spill] sm:$0xff] }
 0x7cd   : > { %v6805_v61 = vpack.c.bf16 %v3793_v33, %v3790_v49  ;;  %v7997_v6 = vunpack.i.l.bf16 %v7996_v43  ;;  %v7647_v47 = vunpack.i.l.bf16 %v12529_v16  ;;  %v6707_v9 = vpack.c.bf16 %v4068_v57, %v12530_v36  ;;  %v12541_v43 = vld [vmem:[#allocation93_spill] sm:$0xff]  ;;  %v8001_v36 = vpop.permute.xlu0 %8000 }
 0x7ce   : > { %v11199_v30 = vsel %vm4202_vm6, %v12528_v13, %v7587_v5  ;;  %v6723_v35 = vpack.c.bf16 %v11167_v48, %v12531_v20  ;;  %v11208_v31 = vsel %vm4272_vm5, %v7627_v52, %v7628_v41  ;;  %v12532_v5 = vunpack.i.h.bf16 %v10633_v63  ;;  %v8006_v13 = vpop.permute.xlu1 %8005 }
 0x7cf   : > { %6806 = vmatprep.subr.bf16.mxu1 %v6805_v61  ;;  %vm12533_vm1 = vcmask 359424   ;;  %v12535_v49 = vunpack.i.h.bf16 %v12534_v40  ;;  %v12538_v33 = vunpack.i.h.bf16 %v12537_v54  ;;  %vm12539_vm0 = vcmask 187392   ;;  %6708 = vmatpush1.bf16.msra.mxu0 %v6707_v9 }
 0x7d0   : > { %v3828_v4 = vsel %vm12533_vm1, %v12532_v5, %v7998_v23  ;;  %vm12536_vm3 = vmmov %vm12533_vm1  ;;  %v7603_v61 = vunpack.i.h.bf16 %v12541_v43  ;;  %6808 = vmatpush3.bf16.msra.mxu1 %v6807_v56  ;;  %v8008_v5 = vunpack.i.h.bf16 %v8006_v13  ;;  %v8007_v40 = vunpack.i.l.bf16 %v8006_v13 }
 0x7d1   : > { %v3825_v58 = vsel %vm12536_vm3, %v12535_v49, %v7997_v6  ;;  %v4103_v57 = vsel %vm12539_vm0, %v12538_v33, %v7992_v7  ;;  %vm12540_vm15 = vmmov %vm12539_vm0  ;;  %v8003_v6 = vunpack.i.h.bf16 %v8001_v36  ;;  %v8002_v49 = vunpack.i.l.bf16 %v8001_v36 }
 0x7d2   : > { %v4104_v2 = vsel %vm12540_vm15, %v7992_v7, %v7993_v32  ;;  %v6811_v12 = vpack.c.bf16 %v3828_v4, %v3825_v58  ;;  %v6709_v63 = vpack.c.bf16 %v4103_v57, %v10729_v1  ;;  %v7602_v54 = vunpack.i.l.bf16 %v12541_v43  ;;  %v12542_v32 = vld [vmem:[#allocation97_spill] sm:$0xff]  ;;  %v12543_v4 = vld [vmem:[#allocation76_spill] sm:$0xff] }
 0x7d3   : > { %v6809_v23 = vpack.c.bf16 %v4104_v2, %v10747_v53  ;;  %v11225_v33 = vsel %vm4272_vm5, %v7647_v47, %v7627_v52  ;;  %v7623_v7 = vunpack.i.h.bf16 %v12542_v32  ;;  %v7622_v9 = vunpack.i.l.bf16 %v12542_v32  ;;  %v12549_v47 = vld [vmem:[#allocation86_spill] sm:$0xff]  ;;  %5260 = vmatmul.mubr.f32.vlgmr.msra.gmra.mrb[24].mxu1 %v11001_v62 }
 0x7d4   : > { %6710 = vmatprep.subr.bf16.mxu0 %v6709_v63  ;;  %v12544_v1 = vunpack.i.h.bf16 %v12543_v4  ;;  %v12545_v56 = vunpack.i.h.bf16 %v10575_v51  ;;  %v12546_v57 = vunpack.i.h.bf16 %v12281_v60  ;;  %vm12547_vm13 = vcmask 179200   ;;  %v12551_v51 = vld [vmem:[#allocation142_spill] sm:$0xff]  ;;  %5264 = vmatprep.mubr.f32.mxu1 %v11035_v26 }
 0x7d5   : > { %6810 = vmatprep.subr.bf16.mxu1 %v6809_v23  ;;  %vm12548_vm7 = vmmov %vm12547_vm13  ;;  %v7608_v13 = vunpack.i.h.bf16 %v12549_v47  ;;  %v12550_v63 = vpack.c.bf16 %v10672_v44, %v10704_v3  ;;  %v8011_v23 = vpop.permute.xlu1 %8010  ;;  %v11249_v62 = vsel %vm4237_vm10, %v7622_v9, %v7602_v54  ;;  %v11259_v3 = vsel %vm4237_vm10, %v7602_v54, %v7603_v61 }
 0x7d6   : > { %v3860_v53 = vsel %vm3857_vm11, %v12544_v1, %v8007_v40  ;;  %v3863_v58 = vsel %vm3857_vm11, %v12545_v56, %v8008_v5  ;;  %v4137_v2 = vsel %vm12547_vm13, %v12546_v57, %v8002_v49  ;;  %v4138_v52 = vsel %vm12548_vm7, %v8002_v49, %v8003_v6  ;;  %v8016_v40 = vpop.permute.xlu0 %8015  ;;  %6812 = vmatpush3.bf16.msra.mxu1 %v6811_v12  ;;  %v12554_v12 = vld [vmem:[#allocation69_spill] sm:$0xff] }
 0x7d7   : > { %v6815_v36 = vpack.c.bf16 %v3863_v58, %v3860_v53  ;;  %6712 = vmatpush1.bf16.msra.mxu0 %v12550_v63  ;;  %v6713_v32 = vpack.c.bf16 %v4137_v2, %v12551_v51  ;;  %v6813_v5 = vpack.c.bf16 %v4138_v52, %v10797_v14  ;;  %v8013_v60 = vunpack.i.h.bf16 %v8011_v23  ;;  %5265 = vmatmul.mubr.f32.gmra.mrb[26].mxu1 %v11110_v0 }
 0x7d8   : > { %v8012_v4 = vunpack.i.l.bf16 %v8011_v23  ;;  %v8018_v1 = vunpack.i.h.bf16 %v8016_v40  ;;  %v8017_v6 = vunpack.i.l.bf16 %v8016_v40  ;;  %v7607_v49 = vunpack.i.l.bf16 %v12549_v47  ;;  %5269 = vmatprep.mubr.f32.mxu1 %v11118_v15 }
 0x7d9   : > { %v11254_v44 = vsel %vm4237_vm10, %v7623_v7, %v7608_v13  ;;  %6714 = vmatprep.subr.bf16.mxu0 %v6713_v32  ;;  %6814 = vmatprep.subr.bf16.mxu1 %v6813_v5  ;;  %v12552_v14 = vunpack.i.h.bf16 %v10676_v18  ;;  %vm12553_vm11 = vcmask 343040   ;;  %v12555_v53 = vunpack.i.h.bf16 %v12554_v12  ;;  %v8026_v18 = vpop.permute.xlu1 %8025  ;;  %v12561_v32 = vld [vmem:[#allocation101_spill] sm:$0xff] }
 0x7da   : > { %vm12556_vm12 = vmmov %vm12553_vm11  ;;  %v12557_v56 = vunpack.i.h.bf16 %v12250_v46  ;;  %vm12558_vm2 = vcmask 64512   ;;  %v7648_v57 = vunpack.i.h.bf16 %v12529_v16  ;;  %v8021_v54 = vpop.permute.xlu0 %8020  ;;  %vm4307_vm9 = vcmask 31744   ;;  %6816 = vmatpush3.bf16.msra.mxu1 %v6815_v36  ;;  %v12560_v16 = vld [vmem:[#allocation98_spill] sm:$0xff] }
 0x7db   : > { %v3898_v26 = vsel %vm12553_vm11, %v12552_v14, %v8018_v1  ;;  %v3895_v9 = vsel %vm12556_vm12, %v12555_v53, %v8017_v6  ;;  %vm12559_vm8 = vmmov %vm12558_vm2  ;;  %6716 = vmatpush1.bf16.msra.mxu0 %v6715_v22  ;;  %v8028_v46 = vunpack.i.h.bf16 %v8026_v18  ;;  %v8027_v23 = vunpack.i.l.bf16 %v8026_v18  ;;  %5270 = vmatmul.mubr.f32.gmra.mrb[28].mxu1 %v11136_v25  ;;  %v12565_v1 = vld [vmem:[#allocation83_spill] sm:$0xff]  ;;  %v12566_v6 = vld [vmem:[#allocation112_spill] sm:$0xff] }
 0x7dc   : > { %v4172_v7 = vsel %vm12558_vm2, %v12557_v56, %v8012_v4  ;;  %v4173_v58 = vsel %vm12559_vm8, %v8012_v4, %v8013_v60  ;;  %v6819_v2 = vpack.c.bf16 %v3898_v26, %v3895_v9  ;;  %v8023_v40 = vunpack.i.h.bf16 %v8021_v54  ;;  %5274 = vmatprep.mubr.f32.mxu1 %v11146_v10  ;;  %v12569_v56 = vld [vmem:[#allocation102_spill] sm:$0xff] }
 0x7dd   : > { %v6717_v52 = vpack.c.bf16 %v4172_v7, %v10754_v34  ;;  %v6817_v63 = vpack.c.bf16 %v4173_v58, %v10759_v42  ;;  %v8022_v51 = vunpack.i.l.bf16 %v8021_v54  ;;  %v7668_v0 = vunpack.i.h.bf16 %v12560_v16  ;;  %v12570_v58 = vld [vmem:[#allocation105_spill] sm:$0xff] }
 0x7de   : > { %v7643_v5 = vunpack.i.h.bf16 %v12561_v32  ;;  %v4240_v34 = vsel %vm4237_vm10, %v7603_v61, %v7607_v49  ;;  %v6727_v42 = vpack.c.bf16 %v11254_v44, %v11249_v62  ;;  %v12563_v59 = vunpack.i.h.bf16 %v12562_v38  ;;  %v8031_v62 = vpop.permute.xlu1 %8030  ;;  %v8036_v44 = vpop.permute.xlu0 %8035  ;;  %v12575_v38 = vld [vmem:[#allocation109_spill] sm:$0xff] }
 0x7df   : > { %6718 = vmatprep.subr.bf16.mxu0 %v6717_v52  ;;  %6818 = vmatprep.subr.bf16.mxu1 %v6817_v63  ;;  %v12564_v36 = vunpack.i.h.bf16 %v10635_v37  ;;  %v4207_v60 = vsel %vm4202_vm6, %v7588_v19, %v8022_v51  ;;  %v4208_v4 = vsel %vm4202_vm6, %v8022_v51, %v8023_v40  ;;  %v7667_v43 = vunpack.i.l.bf16 %v12560_v16  ;;  %v12568_v37 = vld [vmem:[#allocation20_spill] sm:$0xff] }
 0x7e0   : > { %v3930_v22 = vsel %vm3927_vm14, %v12563_v59, %v8027_v23  ;;  %v12567_v49 = vpack.c.bf16 %v12565_v1, %v12566_v6  ;;  %v6721_v14 = vpack.c.bf16 %v4207_v60, %v12568_v37  ;;  %v6821_v26 = vpack.c.bf16 %v4208_v4, %v11199_v30  ;;  %6820 = vmatpush3.bf16.msra.mxu1 %v6819_v2  ;;  %v12572_v2 = vld [vmem:[#allocation71_spill] sm:$0xff] }
 0x7e1   : > { %v3933_v15 = vsel %vm3927_vm14, %v12564_v36, %v8028_v46  ;;  %v8033_v8 = vunpack.i.h.bf16 %v8031_v62  ;;  %v8032_v19 = vunpack.i.l.bf16 %v8031_v62  ;;  %v8038_v12 = vunpack.i.h.bf16 %v8036_v44  ;;  %5275 = vmatmul.mubr.f32.gmra.mrb[30].mxu1 %v11172_v39  ;;  %v12581_v62 = vld [vmem:[#allocation73_spill] sm:$0xff] }
 0x7e2   : > { %v6823_v61 = vpack.c.bf16 %v3933_v15, %v3930_v22  ;;  %6720 = vmatpush1.bf16.msra.mxu0 %v12567_v49  ;;  %v8037_v53 = vunpack.i.l.bf16 %v8036_v44  ;;  %v7642_v9 = vunpack.i.l.bf16 %v12561_v32  ;;  %v4276_v25 = vsel %vm4272_vm5, %v7648_v57, %v7643_v5  ;;  %6822 = vmatprep.subr.bf16.mxu1 %v6821_v26  ;;  %v8046_v24 = vpop.permute.xlu1 %8045 }
 0x7e3   : > { %v7688_v7 = vunpack.i.h.bf16 %v12569_v56  ;;  %v7663_v18 = vunpack.i.h.bf16 %v12570_v58  ;;  %6722 = vmatprep.subr.bf16.mxu0 %v6721_v14  ;;  %vm12571_vm6 = vcmask 220160   ;;  %v12573_v54 = vunpack.i.h.bf16 %v12572_v2  ;;  %5344 = vmatprep.mubr.f32.mxu1 %v11170_v45 }
 0x7e4   : > { %v3968_v30 = vsel %vm12571_vm6, %v7818_v17, %v8038_v12  ;;  %vm12574_vm14 = vmmov %vm12571_vm6  ;;  %v4242_v10 = vsel %vm4237_vm10, %v7608_v13, %v8032_v19  ;;  %v4243_v57 = vsel %vm4237_vm10, %v8032_v19, %v8033_v8  ;;  %v7662_v63 = vunpack.i.l.bf16 %v12570_v58  ;;  %v8041_v17 = vpop.permute.xlu0 %8040  ;;  %6824 = vmatpush3.bf16.msra.mxu1 %v6823_v61 }
 0x7e5   : > { %v3965_v52 = vsel %vm12574_vm14, %v12573_v54, %v8037_v53  ;;  %v6725_v23 = vpack.c.bf16 %v4242_v10, %v11259_v3  ;;  %v6825_v40 = vpack.c.bf16 %v4243_v57, %v4240_v34  ;;  %v8048_v47 = vunpack.i.h.bf16 %v8046_v24 }
 0x7e6   : > { %v6827_v46 = vpack.c.bf16 %v3968_v30, %v3965_v52  ;;  %6724 = vmatpush1.bf16.msra.mxu0 %v6723_v35  ;;  %v8047_v51 = vunpack.i.l.bf16 %v8046_v24  ;;  %v8043_v13 = vunpack.i.h.bf16 %v8041_v17  ;;  %v8042_v32 = vunpack.i.l.bf16 %v8041_v17  ;;  %v12576_v35 = vld [vmem:[#allocation79_spill] sm:$0xff]  ;;  %v8051_v60 = vpop.permute.xlu1 %8050  ;;  %v12584_v17 = vld [vmem:[#allocation81_spill] sm:$0xff] }
 0x7e7   : > { %v7683_v59 = vunpack.i.h.bf16 %v12575_v38  ;;  %v7682_v39 = vunpack.i.l.bf16 %v12575_v38  ;;  %6726 = vmatprep.subr.bf16.mxu0 %v6725_v23  ;;  %6826 = vmatprep.subr.bf16.mxu1 %v6825_v40  ;;  %v4275_v48 = vsel %vm4272_vm5, %v7628_v41, %v7642_v9  ;;  %v6731_v20 = vpack.c.bf16 %v4276_v25, %v11225_v33 }
 0x7e8   : > { %v12577_v3 = vunpack.i.h.bf16 %v12576_v35  ;;  %vm12578_vm4 = vcmask 211968   ;;  %v4277_v22 = vsel %vm4272_vm5, %v7643_v5, %v8042_v32  ;;  %v4278_v36 = vsel %vm4272_vm5, %v8042_v32, %v8043_v13  ;;  %v8061_v21 = vpop.permute.xlu0 %8060  ;;  %6828 = vmatpush3.bf16.msra.mxu1 %v6827_v46  ;;  %v4408_v35 = vld [vmem:[#allocation8 + $0x60] sm:$0xff] }
 0x7e9   : > { %vm12579_vm10 = vmmov %vm12578_vm4  ;;  %v6729_v41 = vpack.c.bf16 %v4277_v22, %v11208_v31  ;;  %v6829_v4 = vpack.c.bf16 %v4278_v36, %v4275_v48  ;;  %v4309_v33 = vsel %vm4307_vm9, %v7662_v63, %v7663_v18  ;;  %v8053_v61 = vunpack.i.h.bf16 %v8051_v60 }
 0x7ea   : > { %v3999_v34 = vsel %vm12578_vm4, %v12577_v3, %v8047_v51  ;;  %v4002_v45 = vsel %vm12579_vm10, %v7823_v27, %v8048_v47  ;;  %6728 = vmatpush1.bf16.msra.mxu0 %v6727_v42  ;;  %v8052_v1 = vunpack.i.l.bf16 %v8051_v60  ;;  %v8063_v6 = vunpack.i.h.bf16 %v8061_v21  ;;  %v8056_v19 = vpop.permute.xlu1 %8055 }
 0x7eb   : > { %v6831_v15 = vpack.c.bf16 %v4002_v45, %v3999_v34  ;;  %v8062_v28 = vunpack.i.l.bf16 %v8061_v21  ;;  %v7687_v27 = vunpack.i.l.bf16 %v12569_v56  ;;  %v4308_v5 = vsel %vm4307_vm9, %v7682_v39, %v7662_v63  ;;  %6730 = vmatprep.subr.bf16.mxu0 %v6729_v41  ;;  %6830 = vmatprep.subr.bf16.mxu1 %v6829_v4 }
 0x7ec   : > { %v4311_v42 = vsel %vm4307_vm9, %v7683_v59, %v7668_v0  ;;  %v4310_v31 = vsel %vm4307_vm9, %v7663_v18, %v7667_v43  ;;  %vm12580_vm5 = vcmask 203776   ;;  %v12582_v44 = vunpack.i.h.bf16 %v12581_v62  ;;  %v8066_v12 = vpop.permute.xlu0 %8065 }
 0x7ed   : > { %v4036_v49 = vsel %vm12580_vm5, %v7828_v29, %v8063_v6  ;;  %vm12583_vm1 = vmmov %vm12580_vm5  ;;  %v4312_v14 = vsel %vm4307_vm9, %v7668_v0, %v8052_v1  ;;  %v4313_v26 = vsel %vm4307_vm9, %v8052_v1, %v8053_v61  ;;  %vm4342_vm3 = vcmask 23552   ;;  %6832 = vmatpush3.bf16.msra.mxu1 %v6831_v15  ;;  %v4407_v15 = vld [vmem:[#allocation8 + $0x58] sm:$0xff] }
 0x7ee   : > { %v4033_v37 = vsel %vm12583_vm1, %v12582_v44, %v8062_v28  ;;  %6732 = vmatpush1.bf16.msra.mxu0 %v6731_v20  ;;  %v6733_v53 = vpack.c.bf16 %v4312_v14, %v4309_v33  ;;  %v6833_v43 = vpack.c.bf16 %v4313_v26, %v4310_v31  ;;  %v8058_v50 = vunpack.i.h.bf16 %v8056_v19  ;;  %v8071_v2 = vpop.permute.xlu1 %8070  ;;  %v4400_v20 = vld [vmem:[#allocation8 + $0x20] sm:$0xff]  ;;  %v4421_v31 = vld [vmem:[#allocation8 + $0xc8] sm:$0xff]  ;;  %v4423_v14 = vld [vmem:[#allocation8 + $0xd8] sm:$0xff] }
 0x7ef   : > { %v6835_v8 = vpack.c.bf16 %v4036_v49, %v4033_v37  ;;  %v8057_v29 = vunpack.i.l.bf16 %v8056_v19  ;;  %v8068_v9 = vunpack.i.h.bf16 %v8066_v12  ;;  %v8067_v25 = vunpack.i.l.bf16 %v8066_v12  ;;  %v4402_v49 = vld [vmem:[#allocation8 + $0x30] sm:$0xff]  ;;  %v4409_v44 = vld [vmem:[#allocation8 + $0x68] sm:$0xff]  ;;  %v4416_v37 = vld [vmem:[#allocation8 + $0xa0] sm:$0xff] }
 0x7f0   : > { %v6735_v58 = vpack.c.bf16 %v4311_v42, %v4308_v5  ;;  %6734 = vmatprep.subr.bf16.mxu0 %v6733_v53  ;;  %6834 = vmatprep.subr.bf16.mxu1 %v6833_v43  ;;  %v4344_v16 = vsel %vm4342_vm3, %v7687_v27, %v7688_v7  ;;  %v8076_v54 = vpop.permute.xlu0 %8075  ;;  %v8073_v57 = vunpack.i.h.bf16 %v8071_v2  ;;  %v8072_v63 = vunpack.i.l.bf16 %v8071_v2  ;;  %v4414_v5 = vld [vmem:[#allocation8 + $0x90] sm:$0xff] }
 0x7f1   : > { %v4347_v0 = vsel %vm4342_vm3, %v8058_v50, %v8067_v25  ;;  %v4345_v18 = vsel %vm4342_vm3, %v7688_v7, %v8057_v29  ;;  %v4348_v30 = vsel %vm4342_vm3, %v8067_v25, %v8068_v9  ;;  %6836 = vmatpush3.bf16.msra.mxu1 %v6835_v8  ;;  %v8078_v46 = vunpack.i.h.bf16 %v8076_v54  ;;  %v4422_v42 = vld [vmem:[#allocation8 + $0xd0] sm:$0xff] }
 0x7f2   : > { %6736 = vmatpush1.bf16.msra.mxu0 %v6735_v58  ;;  %v6737_v52 = vpack.c.bf16 %v4347_v0, %v4344_v16  ;;  %v6837_v10 = vpack.c.bf16 %v4348_v30, %v4345_v18  ;;  %v8077_v24 = vunpack.i.l.bf16 %v8076_v54  ;;  %v12585_v23 = vunpack.i.h.bf16 %v12584_v17  ;;  %v8081_v32 = vpop.permute.xlu1 %8080 }
 0x7f3   : > { %vm12586_vm0 = vcmask 195584   ;;  %v4346_v40 = vsel %vm4342_vm3, %v8078_v46, %v8058_v50  ;;  %v8083_v59 = vunpack.i.h.bf16 %v8081_v32  ;;  %v8082_v39 = vunpack.i.l.bf16 %v8081_v32 }
 0x7f4   : > { %6738 = vmatprep.subr.bf16.mxu0 %v6737_v52  ;;  %6838 = vmatprep.subr.bf16.mxu1 %v6837_v10  ;;  %v4067_v56 = vsel %vm12586_vm0, %v12585_v23, %v8072_v63  ;;  %vm12587_vm15 = vmmov %vm12586_vm0  ;;  %v4343_v47 = vsel %vm4342_vm3, %v8077_v24, %v7687_v27  ;;  %v8086_v38 = vpop.permute.xlu0 %8085  ;;  %vm4377_vm13 = vcmask 15360   ;;  %v4415_v27 = vld [vmem:[#allocation8 + $0x98] sm:$0xff]  ;;  %v12588_v62 = vmov 0.0  }
 0x7f5   : > { %v4070_v7 = vsel %vm12587_vm15, %v7833_v11, %v8073_v57  ;;  %v6739_v13 = vpack.c.bf16 %v4346_v40, %v4343_v47  ;;  %v8087_v48 = vunpack.i.l.bf16 %v8086_v38  ;;  %v8088_v3 = vunpack.i.h.bf16 %v8086_v38 }
 0x7f6   : > { %v6839_v51 = vpack.c.bf16 %v4070_v7, %v4067_v56  ;;  %v8091_v55 = vpop.permute.xlu1 %8090  ;;  %v4379_v60 = vsel %vm4377_vm13, %v8082_v39, %v8083_v59  ;;  %vm12589_vm7 = vcmask 130048   ;;  %vm12597_vm4 = vcmask 1039360  }
 0x7f7   : > { %6740 = vmatpush1.bf16.msra.mxu0 %v6739_v13  ;;  %v8093_v11 = vunpack.i.h.bf16 %v8091_v55  ;;  %v8092_v45 = vunpack.i.l.bf16 %v8091_v55  ;;  %v4380_v21 = vsel %vm4377_vm13, %v8083_v59, %v8087_v48  ;;  %vm12590_vm11 = vmmov %vm12589_vm7 }
 0x7f8   : > { %6840 = vmatpush3.bf16.msra.mxu1 %v6839_v51  ;;  %v8096_v34 = vpop.permute.xlu0 %8095  ;;  %vm12591_vm12 = vmmov %vm12589_vm7 }
 0x7f9   : > { %v8098_v22 = vunpack.i.h.bf16 %v8096_v34  ;;  %v8097_v36 = vunpack.i.l.bf16 %v8096_v34  ;;  %v4382_v33 = vsel %vm4377_vm13, %v8088_v3, %v8092_v45  ;;  %v4383_v61 = vsel %vm4377_vm13, %v8092_v45, %v8093_v11  ;;  %vm12592_vm2 = vmmov %vm12589_vm7 }
 0x7fa   : > { %4997 = vmatmul.mubr.f32.vlgmr.msra.gmra.mrb[12].mxu0 %v4400_v20  ;;  %v6741_v6 = vpack.c.bf16 %v4382_v33, %v4379_v60  ;;  %v6841_v28 = vpack.c.bf16 %v4383_v61, %v4380_v21  ;;  %vm12593_vm8 = vmmov %vm12592_vm2  ;;  %v4725_v18 = vpop.permute.xlu1 %4724 }
 0x7fb   : > { %5345 = vmatmul.mubr.f32.vlgmr.msra.gmra.mrb[32].mxu1 %v4400_v20  ;;  %5002 = vmatprep.mubr.f32.mxu0 %v4408_v35  ;;  %v4378_v41 = vsel %vm4377_vm13, %v8097_v36, %v8082_v39  ;;  %v4381_v4 = vsel %vm4377_vm13, %v8098_v22, %v8088_v3  ;;  %vm12594_vm9 = vmmov %vm12592_vm2 }
 0x7fc   : > { %5349 = vmatprep.mubr.f32.mxu1 %v4408_v35  ;;  %v6743_v1 = vpack.c.bf16 %v4381_v4, %v4378_v41  ;;  %6742 = vmatprep.subr.bf16.mxu0 %v6741_v6  ;;  %vm12595_vm6 = vmmov %vm12592_vm2  ;;  %v4730_v57 = vpop.permute.xlu0 %4729 }
 0x7fd   : > { %6842 = vmatprep.subr.bf16.mxu1 %v6841_v28  ;;  %vm12596_vm14 = vmmov %vm12592_vm2 }
 0x7fe   : > { %5003 = vmatmul.mubr.f32.gmra.mrb[14].mxu0 %v4407_v15  ;;  %6844 = vmatpush3.bf16.msra.mxu1 %v6841_v28  ;;  %v4735_v56 = vpop.permute.xlu1 %4734  ;;  %vm12598_vm10 = vmmov %vm12597_vm4 }
 0x7ff   : > { %5350 = vmatmul.mubr.f32.gmra.mrb[34].mxu1 %v4407_v15  ;;  %6744 = vmatpush1.bf16.msra.mxu0 %v6743_v1  ;;  %vm12599_vm5 = vmmov %vm12597_vm4 }
 0x800   : > { %5008 = vmatprep.mubr.f32.mxu0 %v4415_v27  ;;  %5354 = vmatprep.mubr.f32.mxu1 %v4415_v27  ;;  %v4740_v32 = vpop.permute.xlu0 %4739  ;;  %vm12600_vm1 = vmmov %vm12597_vm4 }
 0x801   : > { %vm12601_vm3 = vmmov %vm12600_vm1 }
 0x802   : > { %5009 = vmatmul.mubr.f32.gmra.mrb[16].mxu0 %v4414_v5  ;;  %vm12602_vm0 = vmmov %vm12600_vm1 }
 0x803   : > { %5355 = vmatmul.mubr.f32.gmra.mrb[36].mxu1 %v4414_v5  ;;  %5014 = vmatprep.mubr.f32.mxu0 %v4422_v42  ;;  %vm12603_vm15 = vmmov %vm12602_vm0 }
 0x804   : > { %5359 = vmatprep.mubr.f32.mxu1 %v4422_v42  ;;  %vm12604_vm13 = vmmov %vm12602_vm0 }
 0x806   : > { %5015 = vmatmul.mubr.f32.gmra.mrb[18].mxu0 %v4421_v31 }
 0x807   : > { %5360 = vmatmul.mubr.f32.gmra.mrb[38].mxu1 %v4421_v31  ;;  %5085 = vmatprep.mubr.f32.mxu0 %v12588_v62 }
 0x808   : > { %6039 = vmatprep.mubr.msk.f32.mxu1 %vm12589_vm7, %v4402_v49  ;;  %vm12605_vm7 = vcmask 883712  }
 0x80a   : > { %5842 = vmatmul.mubr.msk.f32.vlgmr.msra.gmra.mrb[12].mxu0 %vm12590_vm11, %v4402_v49  ;;  %vm12606_vm11 = vmmov %vm12605_vm7 }
 0x80b   : > { %6040 = vmatmul.mubr.msk.f32.vlgmr.msra.gmra.mrb[40].mxu1 %vm12591_vm12, %v4409_v44  ;;  %5091 = vmatprep.mubr.f32.mxu0 %v12588_v62  ;;  %vm12607_vm12 = vmmov %vm12605_vm7 }
 0x80c   : > { %6042 = vmatprep.mubr.msk.f32.mxu1 %vm12592_vm2, %v4416_v37  ;;  %vm12608_vm2 = vmmov %vm12605_vm7 }
 0x80e   : > { %5843 = vmatmul.mubr.msk.f32.gmra.mrb[14].mxu0 %vm12593_vm8, %v4409_v44  ;;  %vm12609_vm8 = vmmov %vm12608_vm2 }
 0x80f   : > { %6043 = vmatmul.mubr.msk.f32.gmra.mrb[42].mxu1 %vm12594_vm9, %v4423_v14  ;;  %5097 = vmatprep.mubr.f32.mxu0 %v12588_v62  ;;  %vm12611_vm9 = vmmov %vm12608_vm2 }
 0x812   : > { %5844 = vmatmul.mubr.msk.f32.gmra.mrb[16].mxu0 %vm12595_vm6, %v4416_v37  ;;  %vm12612_vm6 = vmmov %vm12608_vm2 }
 0x813   : > { %5103 = vmatprep.mubr.f32.mxu0 %v12588_v62 }
 0x816   : > { %5845 = vmatmul.mubr.msk.f32.gmra.mrb[18].mxu0 %vm12596_vm14, %v4423_v14  ;;  %vm12613_vm14 = vmmov %vm12608_vm2 }
 0x879   : > { %v5885_v26 = vpop.f32.mrb[16].mxu1 }
 0x87a   : > { %v5886_v8 = vpop.f32.mrb[17].mxu1 }
 0x87b   : > { %v5887_v19 = vadd.f32 %v5886_v8, %v5885_v26 }
 0x87d   : > { %v5177_v2 = vadd.f32 %v5887_v19, %v4725_v18 }
 0x87e   : > { %v5888_v12 = vpop.f32.mrb[18].mxu1 }
 0x87f   : > { %v5889_v53 = vpop.f32.mrb[19].mxu1 }
 0x880   : > { %v5890_v43 = vadd.f32 %v5889_v53, %v5888_v12 }
 0x882   : > { %v5182_v46 = vadd.f32 %v5890_v43, %v4730_v57 }
 0x885   : > { %v5891_v50 = vpop.f32.mrb[20].mxu1 }
 0x886   : > { %v5892_v29 = vpop.f32.mrb[21].mxu1 }
 0x887   : > { %v5893_v9 = vadd.f32 %v5892_v29, %v5891_v50 }
 0x889   : > { %v5894_v25 = vpop.f32.mrb[22].mxu1  ;;  %v5187_v40 = vadd.f32 %v5893_v9, %v4735_v56 }
 0x88a   : > { %v5895_v58 = vpop.f32.mrb[23].mxu1 }
 0x88b   : > { %v5896_v16 = vadd.f32 %v5895_v58, %v5894_v25 }
 0x88d   : > { %v5192_v59 = vadd.f32 %v5896_v16, %v4740_v32 }
 0x8a6   : > { %v5929_v0 = vpop.f32.mrb[24].mxu1 }
 0x8a7   : > { %v5930_v30 = vpop.f32.mrb[25].mxu1 }
 0x8a8   : > { %v5931_v54 = vadd.f32 %v5930_v30, %v5929_v0 }
 0x8aa   : > { %v5262_v52 = vadd.f32 %v5931_v54, %v5177_v2  ;;  %v5932_v10 = vpop.f32.mrb[26].mxu1 }
 0x8ab   : > { %v5933_v63 = vpop.f32.mrb[27].mxu1 }
 0x8ac   : > { %v5934_v24 = vadd.f32 %v5933_v63, %v5932_v10 }
 0x8ae   : > { %v5267_v17 = vadd.f32 %v5934_v24, %v5182_v46  ;;  %v5935_v23 = vpop.f32.mrb[28].mxu1 }
 0x8af   : > { %v5936_v7 = vpop.f32.mrb[29].mxu1 }
 0x8b0   : > { %v5937_v47 = vadd.f32 %v5936_v7, %v5935_v23  ;;  %v5606_v23 = vld [vmem:[#allocation9 + $0x80] sm:$0xff] }
 0x8b1   : > { %v5590_v7 = vld [vmem:[#allocation9] sm:$0xff] }
 0x8b2   : > { %v5272_v51 = vadd.f32 %v5937_v47, %v5187_v40 }
 0x8b4   : > { %v5938_v13 = vpop.f32.mrb[30].mxu1 }
 0x8b5   : > { %v5939_v38 = vpop.f32.mrb[31].mxu1 }
 0x8b6   : > { %v5940_v39 = vadd.f32 %v5939_v38, %v5938_v13  ;;  %v5591_v13 = vld [vmem:[#allocation9 + $0x8] sm:$0xff]  ;;  %v5608_v38 = vld [vmem:[#allocation9 + $0x90] sm:$0xff] }
 0x8b8   : > { %v5277_v48 = vadd.f32 %v5940_v39, %v5192_v59  ;;  %v5609_v59 = vld [vmem:[#allocation9 + $0x98] sm:$0xff] }
 0x8ce   : > { %v5973_v20 = vpop.f32.mrb[32].mxu1 }
 0x8cf   : > { %v5974_v35 = vpop.f32.mrb[33].mxu1 }
 0x8d0   : > { %v5975_v3 = vadd.f32 %v5974_v35, %v5973_v20  ;;  %v6847_v20 = vpack.c.bf16 %v5591_v13, %v5590_v7  ;;  %v5592_v35 = vld [vmem:[#allocation9 + $0x10] sm:$0xff]  ;;  %v5603_v7 = vld [vmem:[#allocation9 + $0x68] sm:$0xff] }
 0x8d2   : > { %v5976_v55 = vpop.f32.mrb[34].mxu1  ;;  %v5347_v34 = vadd.f32 %v5975_v3, %v5262_v52  ;;  %v5593_v3 = vld [vmem:[#allocation9 + $0x18] sm:$0xff] }
 0x8d3   : > { %v5977_v11 = vpop.f32.mrb[35].mxu1 }
 0x8d4   : > { %v5978_v45 = vadd.f32 %v5977_v11, %v5976_v55  ;;  %v5610_v55 = vld [vmem:[#allocation9 + $0xa0] sm:$0xff]  ;;  %v5611_v11 = vld [vmem:[#allocation9 + $0xa8] sm:$0xff] }
 0x8d6   : > { %v5979_v22 = vpop.f32.mrb[36].mxu1  ;;  %v5352_v36 = vadd.f32 %v5978_v45, %v5267_v17 }
 0x8d7   : > { %v5980_v15 = vpop.f32.mrb[37].mxu1 }
 0x8d8   : > { %v5981_v60 = vadd.f32 %v5980_v15, %v5979_v22  ;;  %v6851_v22 = vpack.c.bf16 %v5593_v3, %v5592_v35  ;;  %v5594_v15 = vld [vmem:[#allocation9 + $0x20] sm:$0xff]  ;;  %v5604_v35 = vld [vmem:[#allocation9 + $0x70] sm:$0xff] }
 0x8da   : > { %v5982_v21 = vpop.f32.mrb[38].mxu1  ;;  %v5357_v41 = vadd.f32 %v5981_v60, %v5272_v51  ;;  %v5595_v60 = vld [vmem:[#allocation9 + $0x28] sm:$0xff] }
 0x8db   : > { %v5983_v4 = vpop.f32.mrb[39].mxu1 }
 0x8dc   : > { %v5984_v33 = vadd.f32 %v5983_v4, %v5982_v21  ;;  %v5612_v21 = vld [vmem:[#allocation9 + $0xb0] sm:$0xff]  ;;  %v6855_v4 = vpack.c.bf16 %v5595_v60, %v5594_v15 }
 0x8dd   : > { %v5087_v61 = vpop.f32.mrb[12].mxu0 }
 0x8de   : > { %v6041_v1 = vpop.f32.mrb[40].mxu1  ;;  %v5362_v6 = vadd.f32 %v5984_v33, %v5277_v48  ;;  %v5089_v27 = vpop.f32.mrb[13].mxu0  ;;  %v11399_v49 = vadd.f32 %v5087_v61, %v4725_v18  ;;  %v5596_v61 = vld [vmem:[#allocation9 + $0x30] sm:$0xff] }
 0x8df   : > { %v11393_v28 = vadd.f32 %v6041_v1, %v5352_v36  ;;  %v5431_v5 = vpop.f32.mrb[41].mxu1  ;;  %v11395_v42 = vadd.f32 %v5089_v27, %v4725_v18  ;;  %v6853_v36 = vpack.c.bf16 %v5611_v11, %v5610_v55  ;;  %v5597_v1 = vld [vmem:[#allocation9 + $0x38] sm:$0xff]  ;;  %v5615_v27 = vld [vmem:[#allocation9 + $0xc8] sm:$0xff] }
 0x8e0   : > { %v11397_v31 = vadd.f32 %v5431_v5, %v5347_v34  ;;  %v5450_v25 = vmax.f32 %v11399_v49, 0.0  ;;  %v6859_v5 = vpack.c.bf16 %v5597_v1, %v5596_v61  ;;  %v5605_v11 = vld [vmem:[#allocation9 + $0x78] sm:$0xff] }
 0x8e1   : > { %v5451_v62 = vmax.f32 %v11395_v42, 0.0  ;;  %v5093_v37 = vpop.f32.mrb[14].mxu0  ;;  %v5455_v29 = vmax.f32 %v11393_v28, 0.0  ;;  %v6875_v15 = vpack.c.bf16 %v5605_v11, %v5604_v35 }
 0x8e2   : > { %v5452_v44 = vmax.f32 %v11397_v31, 0.0  ;;  %v6044_v14 = vpop.f32.mrb[42].mxu1  ;;  %v11403_v26 = vadd.f32 %v5093_v37, %v4730_v57  ;;  %v5095_v19 = vpop.f32.mrb[15].mxu0 }
 0x8e3   : > { %v11405_v8 = vadd.f32 %v6044_v14, %v5362_v6  ;;  %v5441_v12 = vpop.f32.mrb[43].mxu1  ;;  %v11411_v43 = vadd.f32 %v5095_v19, %v4730_v57  ;;  %v5614_v6 = vld [vmem:[#allocation9 + $0xc0] sm:$0xff]  ;;  %v5599_v19 = vld [vmem:[#allocation9 + $0x48] sm:$0xff] }
 0x8e4   : > { %v8099_v53 = vpack.i.bf16 %v5452_v44, %v5451_v62  ;;  %v11413_v50 = vadd.f32 %v5441_v12, %v5357_v41  ;;  %v5453_v9 = vmax.f32 %v11403_v26, 0.0  ;;  %v5613_v41 = vld [vmem:[#allocation9 + $0xb8] sm:$0xff]  ;;  %v6861_v37 = vpack.c.bf16 %v5615_v27, %v5614_v6  ;;  %v5598_v14 = vld [vmem:[#allocation9 + $0x40] sm:$0xff]  ;;  %v5616_v12 = vld [vmem:[#allocation9 + $0xd0] sm:$0xff] }
 0x8e5   : > { %v5454_v58 = vmax.f32 %v11411_v43, 0.0  ;;  %v5099_v16 = vpop.f32.mrb[16].mxu0  ;;  %v5461_v40 = vmax.f32 %v11405_v8, 0.0  ;;  %v6857_v33 = vpack.c.bf16 %v5613_v41, %v5612_v21 }
 0x8e6   : > { %8100 = vrot.lane.b32.xlu1 %v8099_v53, %s11909_s7  ;;  %v8109_v0 = vpack.i.bf16 %v5453_v9, %v5455_v29  ;;  %v5101_v18 = vpop.f32.mrb[17].mxu0  ;;  %v5458_v54 = vmax.f32 %v11413_v50, 0.0  ;;  %v11431_v52 = vadd.f32 %v5099_v16, %v4735_v56  ;;  %v5617_v53 = vld [vmem:[#allocation9 + $0xd8] sm:$0xff]  ;;  %v6863_v16 = vpack.c.bf16 %v5599_v19, %v5598_v14 }
 0x8e7   : > { %v8104_v30 = vpack.i.bf16 %v5454_v58, %v5450_v25  ;;  %v11428_v2 = vadd.f32 %v5101_v18, %v4735_v56  ;;  %v5607_v56 = vld [vmem:[#allocation9 + $0x88] sm:$0xff]  ;;  %v5600_v18 = vld [vmem:[#allocation9 + $0x50] sm:$0xff] }
 0x8e8   : > { %v6845_v51 = vpack.c.bf16 %v5607_v56, %v5606_v23  ;;  %v5456_v39 = vmax.f32 %v11431_v52, 0.0  ;;  %v5602_v23 = vld [vmem:[#allocation9 + $0x60] sm:$0xff] }
 0x8e9   : > { %v5457_v10 = vmax.f32 %v11428_v2, 0.0  ;;  %v5105_v57 = vpop.f32.mrb[18].mxu0  ;;  %8105 = vrot.lane.b32.xlu0 %v8104_v30, %s11909_s7  ;;  %v5601_v30 = vld [vmem:[#allocation9 + $0x58] sm:$0xff] }
 0x8ea   : > { %8110 = vrot.lane.b32.xlu1 %v8109_v0, %s11909_s7  ;;  %v11436_v63 = vadd.f32 %v5105_v57, %v4740_v32  ;;  %v5107_v46 = vpop.f32.mrb[19].mxu0  ;;  %6846 = vmatprep.subr.bf16.mxu1 %v6845_v51  ;;  %v6865_v0 = vpack.c.bf16 %v5617_v53, %v5616_v12  ;;  %v6867_v57 = vpack.c.bf16 %v5601_v30, %v5600_v18 }
 0x8eb   : > { %v8114_v24 = vpack.i.bf16 %v5458_v54, %v5457_v10  ;;  %v11442_v17 = vadd.f32 %v5107_v46, %v4740_v32  ;;  %v6849_v32 = vpack.c.bf16 %v5609_v59, %v5608_v38  ;;  %6848 = vmatpush3.bf16.msra.mxu1 %v6847_v20  ;;  %v5618_v46 = vld [vmem:[#allocation9 + $0xe0] sm:$0xff]  ;;  %v6871_v51 = vpack.c.bf16 %v5603_v7, %v5602_v23  ;;  %v5620_v20 = vld [vmem:[#allocation9 + $0xf0] sm:$0xff] }
 0x8ec   : > { %v5459_v47 = vmax.f32 %v11436_v63, 0.0 }
 0x8ed   : > { %v5460_v48 = vmax.f32 %v11442_v17, 0.0  ;;  %8115 = vrot.lane.b32.xlu0 %v8114_v24, %s11909_s7  ;;  %6850 = vmatprep.subr.bf16.mxu1 %v6849_v32  ;;  %v5619_v24 = vld [vmem:[#allocation9 + $0xe8] sm:$0xff]  ;;  %v5621_v32 = vld [vmem:[#allocation9 + $0xf8] sm:$0xff] }
 0x8ee   : > { %v8124_v34 = vpack.i.bf16 %v5459_v47, %v5461_v40  ;;  %v6869_v56 = vpack.c.bf16 %v5619_v24, %v5618_v46 }
 0x8ef   : > { %v8119_v45 = vpack.i.bf16 %v5460_v48, %v5456_v39  ;;  %6852 = vmatpush3.bf16.msra.mxu1 %v6851_v22 }
 0x8f0   : > { %6854 = vmatprep.subr.bf16.mxu1 %v6853_v36 }
 0x8f1   : > { %8120 = vrot.lane.b32.xlu1 %v8119_v45, %s11909_s7  ;;  %8125 = vrot.lane.b32.xlu0 %v8124_v34, %s11909_s7  ;;  %v6873_v34 = vpack.c.bf16 %v5621_v32, %v5620_v20  ;;  %s12610_s7 = sld [smem:[#allocation15_spill]] }
 0x8f3   : > { %6856 = vmatpush3.bf16.msra.mxu1 %v6855_v4 }
 0x8f4   : > { %6858 = vmatprep.subr.bf16.mxu1 %v6857_v33 }
 0x8f7   : > { %6860 = vmatpush3.bf16.msra.mxu1 %v6859_v5  ;;  %s5852_s19 = sshll.u32 %s12610_s7, 5 }
 0x8f8   : > { %6862 = vmatprep.subr.bf16.mxu1 %v6861_v37  ;;  %s334_s3 = scalar_lea.vmem %s12614_s22, %s5852_s19 }
 0x8fb   : > { %6864 = vmatpush3.bf16.msra.mxu1 %v6863_v16 }
 0x8fc   : > { %6866 = vmatprep.subr.bf16.mxu1 %v6865_v0 }
 0x8ff   : > { %6868 = vmatpush3.bf16.msra.mxu1 %v6867_v57 }
 0x900   : > { %6870 = vmatprep.subr.bf16.mxu1 %v6869_v56 }
 0x903   : > { %6872 = vmatpush3.bf16.msra.mxu1 %v6871_v51 }
 0x904   : > { %6874 = vmatprep.subr.bf16.mxu1 %v6873_v34 }
 0x907   : > { %6876 = vmatpush3.bf16.msra.mxu1 %v6875_v15 }
 0x958   : > { %v8101_v13 = vpop.permute.xlu1 %8100 }
 0x959   : > { %v8103_v38 = vunpack.i.h.bf16 %v8101_v13  ;;  %v8102_v59 = vunpack.i.l.bf16 %v8101_v13 }
 0x95b   : > { %v5526_v3 = vmax.f32 %v5452_v44, %v8103_v38  ;;  %v5499_v55 = vsel %vm12597_vm4, %v8102_v59, %v8103_v38  ;;  %v8106_v36 = vpop.permute.xlu0 %8105 }
 0x95c   : > { %v5515_v45 = vmax.f32 %v5451_v62, %v5499_v55  ;;  %v8111_v22 = vpop.permute.xlu1 %8110  ;;  %v8108_v41 = vunpack.i.h.bf16 %v8106_v36  ;;  %v8107_v4 = vunpack.i.l.bf16 %v8106_v36 }
 0x95d   : > { %v8113_v60 = vunpack.i.h.bf16 %v8111_v22  ;;  %v8112_v21 = vunpack.i.l.bf16 %v8111_v22 }
 0x95e   : > { %v8129_v33 = vpack.i.bf16 %v5526_v3, %v5515_v45  ;;  %v5498_v42 = vsel %vm12600_vm1, %v8107_v4, %v8102_v59 }
 0x95f   : > { %v5527_v31 = vmax.f32 %v5455_v29, %v8112_v21  ;;  %v5500_v44 = vsel %vm12598_vm10, %v8113_v60, %v8108_v41  ;;  %v5501_v61 = vsel %vm12599_vm5, %v8108_v41, %v8112_v21  ;;  %v5514_v6 = vmax.f32 %v5450_v25, %v5498_v42  ;;  %v8116_v28 = vpop.permute.xlu0 %8115 }
 0x960   : > { %v11471_v62 = vmax.f32 %v5453_v9, %v5500_v44  ;;  %v5517_v1 = vmax.f32 %v5454_v58, %v5501_v61  ;;  %8130 = vrot.lane.b32.xlu1 %v8129_v33, %s11995_s24  ;;  %v8118_v29 = vunpack.i.h.bf16 %v8116_v28  ;;  %v8117_v27 = vunpack.i.l.bf16 %v8116_v28 }
 0x962   : > { %v8139_v5 = vpack.i.bf16 %v11471_v62, %v5527_v31  ;;  %v8134_v37 = vpack.i.bf16 %v5517_v1, %v5514_v6  ;;  %v5528_v14 = vmax.f32 %v5458_v54, %v8118_v29  ;;  %v5503_v26 = vsel %vm12601_vm3, %v8117_v27, %v8118_v29 }
 0x963   : > { %v5519_v43 = vmax.f32 %v5457_v10, %v5503_v26  ;;  %v8121_v9 = vpop.permute.xlu1 %8120  ;;  %v8126_v58 = vpop.permute.xlu0 %8125 }
 0x964   : > { %8140 = vrot.lane.b32.xlu1 %v8139_v5, %s11995_s24  ;;  %8135 = vrot.lane.b32.xlu0 %v8134_v37, %s11995_s24  ;;  %v8123_v49 = vunpack.i.h.bf16 %v8121_v9  ;;  %v8122_v25 = vunpack.i.l.bf16 %v8121_v9  ;;  %v8128_v19 = vunpack.i.h.bf16 %v8126_v58  ;;  %v8127_v12 = vunpack.i.l.bf16 %v8126_v58 }
 0x965   : > { %v8144_v53 = vpack.i.bf16 %v5528_v14, %v5519_v43 }
 0x966   : > { %v5502_v16 = vsel %vm12602_vm0, %v8122_v25, %v8117_v27  ;;  %v5504_v50 = vsel %vm12603_vm15, %v8128_v19, %v8123_v49  ;;  %v5529_v54 = vmax.f32 %v5461_v40, %v8127_v12  ;;  %v5505_v2 = vsel %vm12604_vm13, %v8123_v49, %v8127_v12 }
 0x967   : > { %v5518_v10 = vmax.f32 %v5456_v39, %v5502_v16  ;;  %v5520_v0 = vmax.f32 %v5459_v47, %v5504_v50  ;;  %v5521_v18 = vmax.f32 %v5460_v48, %v5505_v2 }
 0x968   : > { %8145 = vrot.lane.b32.xlu0 %v8144_v53, %s11995_s24 }
 0x969   : > { %v8154_v30 = vpack.i.bf16 %v5520_v0, %v5529_v54  ;;  %v8149_v57 = vpack.i.bf16 %v5521_v18, %v5518_v10 }
 0x96b   : > { %8150 = vrot.lane.b32.xlu1 %v8149_v57, %s11995_s24 }
 0x96c   : > { %8155 = vrot.lane.b32.xlu0 %v8154_v30, %s11995_s24 }
 0x9d2   : > { %v8131_v8 = vpop.permute.xlu1 %8130 }
 0x9d3   : > { %v8133_v40 = vunpack.i.h.bf16 %v8131_v8  ;;  %v8132_v46 = vunpack.i.l.bf16 %v8131_v8 }
 0x9d5   : > { %v5567_v52 = vsel %vm12605_vm7, %v8132_v46, %v8133_v40 }
 0x9d6   : > { %v8141_v39 = vpop.permute.xlu1 %8140  ;;  %v8136_v24 = vpop.permute.xlu0 %8135  ;;  %v5583_v63 = vmax.f32 %v5515_v45, %v5567_v52 }
 0x9d7   : > { %v8143_v47 = vunpack.i.h.bf16 %v8141_v39  ;;  %v8142_v23 = vunpack.i.l.bf16 %v8141_v39  ;;  %v8138_v17 = vunpack.i.h.bf16 %v8136_v24  ;;  %v8137_v48 = vunpack.i.l.bf16 %v8136_v24 }
 0x9d8   : > { %5686 = vmatprep.mubr.f32.mxu1 %v5583_v63 }
 0x9d9   : > { %v5566_v56 = vsel %vm12606_vm11, %v8137_v48, %v8132_v46  ;;  %v5569_v7 = vsel %vm12607_vm12, %v8138_v17, %v8142_v23  ;;  %v5568_v32 = vsel %vm12608_vm2, %v8143_v47, %v8138_v17 }
 0x9da   : > { %v5582_v51 = vmax.f32 %v5514_v6, %v5566_v56  ;;  %v8146_v13 = vpop.permute.xlu0 %8145  ;;  %v5585_v38 = vmax.f32 %v5517_v1, %v5569_v7  ;;  %v5584_v34 = vmax.f32 %v11471_v62, %v5568_v32 }
 0x9db   : > { %v8148_v59 = vunpack.i.h.bf16 %v8146_v13  ;;  %v8147_v20 = vunpack.i.l.bf16 %v8146_v13 }
 0x9dc   : > { %5687 = vmatmul.mubr.f32.vlgmr.msra.gmra.mrb[44].mxu1 %v5582_v51 }
 0x9dd   : > { %5691 = vmatprep.mubr.f32.mxu1 %v5585_v38  ;;  %v5571_v35 = vsel %vm12609_vm8, %v8147_v20, %v8148_v59  ;;  %v8151_v3 = vpop.permute.xlu1 %8150 }
 0x9de   : > { %v8156_v55 = vpop.permute.xlu0 %8155  ;;  %v5587_v11 = vmax.f32 %v5519_v43, %v5571_v35  ;;  %v8153_v45 = vunpack.i.h.bf16 %v8151_v3  ;;  %v8152_v22 = vunpack.i.l.bf16 %v8151_v3 }
 0x9df   : > { %v8158_v36 = vunpack.i.h.bf16 %v8156_v55  ;;  %v8157_v15 = vunpack.i.l.bf16 %v8156_v55 }
 0x9e0   : > { %5692 = vmatmul.mubr.f32.gmra.mrb[46].mxu1 %v5584_v34  ;;  %v5570_v60 = vsel %vm12611_vm9, %v8152_v22, %v8147_v20 }
 0x9e1   : > { %5696 = vmatprep.mubr.f32.mxu1 %v5587_v11  ;;  %v5573_v21 = vsel %vm12612_vm6, %v8153_v45, %v8157_v15  ;;  %v5586_v41 = vmax.f32 %v5518_v10, %v5570_v60  ;;  %v5572_v33 = vsel %vm12613_vm14, %v8158_v36, %v8153_v45 }
 0x9e2   : > { %v5589_v4 = vmax.f32 %v5521_v18, %v5573_v21  ;;  %v5588_v31 = vmax.f32 %v5520_v0, %v5572_v33 }
 0x9e4   : > { %5697 = vmatmul.mubr.f32.gmra.mrb[48].mxu1 %v5586_v41 }
 0x9e5   : > { %5701 = vmatprep.mubr.f32.mxu1 %v5589_v4 }
 0x9e8   : > { %5702 = vmatmul.mubr.f32.gmra.mrb[50].mxu1 %v5588_v31 }
 0xaaf   : > { %v6023_v44 = vpop.f32.mrb[44].mxu1 }
 0xab0   : > { %v6024_v61 = vpop.f32.mrb[45].mxu1 }
 0xab1   : > { %v6025_v42 = vadd.f32 %v6024_v61, %v6023_v44 }
 0xab3   : > { %5707 = vst [vmem:[%s334_s3] sm:$0xff] %v6025_v42  ;;  %v6026_v62 = vpop.f32.mrb[46].mxu1 }
 0xab4   : > { %v6027_v1 = vpop.f32.mrb[47].mxu1 }
 0xab5   : > { %v6028_v6 = vadd.f32 %v6027_v1, %v6026_v62 }
 0xab7   : > { %5708 = vst [vmem:[%s334_s3 + $0x8] sm:$0xff] %v6028_v6  ;;  %v6029_v28 = vpop.f32.mrb[48].mxu1 }
 0xab8   : > { %v6030_v29 = vpop.f32.mrb[49].mxu1 }
 0xab9   : > { %v6031_v27 = vadd.f32 %v6030_v29, %v6029_v28 }
 0xabb   : > { %5709 = vst [vmem:[%s334_s3 + $0x10] sm:$0xff] %v6031_v27  ;;  %v6032_v5 = vpop.f32.mrb[50].mxu1 }
 0xabc   : > { %v6033_v37 = vpop.f32.mrb[51].mxu1 }
 0xabd   : > { %v6034_v14 = vadd.f32 %v6033_v37, %v6032_v5 }
 0xabf   : > { %5710 = vst [vmem:[%s334_s3 + $0x18] sm:$0xff] %v6034_v14 }
 0xac0 PF: > { %s12615_s5 = sld [smem:[#allocation14_spill]] }
 0xac6   : > { %s20_s24 = sadd.s32 1, %s12615_s5  }
 0xac7   : > { %p17_p1 = scmp.ge.s32.totalorder %s20_s24, 4  }
 0xac9   :  { %19 = sbr.rel (!%p17_p1) target bundleno = 12 (0xc), region = 143 }
 0xad0   :  { %5732 = vsyncpa [#allocation5], 1 }
 0xad1   :  { %5734 = vsyncpa [#allocation5 + $0x1], 1 }
 0xad2   :  { %5735 = vsyncpa [#allocation7], 1 }
 0xad3   :  { %5736 = vsyncpa [#allocation10], 1 }

</bundles_post_ra>
